<compile_context>
chip_gen: v6e
topology: v6e:2x2x1
jax: 0.10.0
libtpu: 0.0.40
codegen_flags: <defaults>
</compile_context>

<pallas_src>
import jax
import jax.numpy as jnp
from jax.experimental import pallas as pl
from jax.experimental.pallas import tpu as pltpu

LEAKY_SLOPE = 0.2

# (in_channels, out_channels) for each Conv1d(k=1) layer, in order.
LAYER_DIMS = [
    (5023, 2023),
    (2023, 1023),
    (1023, 523),
    (523, 263),
    (263, 129),
    (129, 4),
    (4, 1),
]


def _pad128(n: int) -> int:
    return ((n + 127) // 128) * 128


def _pad8(n: int) -> int:
    return ((n + 7) // 8) * 8


def _choose_tile(dim: int, target: int) -> int:
    """Largest multiple-of-128 divisor of `dim` that is <= max(128, target)."""
    t = min(dim, max(128, target))
    while dim % t:
        t -= 128
    return t


# --------------- layer 1: streamed-weight matmul + bias + LeakyReLU ----------

def _stream_layer_kernel(x_ref, w_ref, b_ref, o_ref):
    k = pl.program_id(1)

    @pl.when(k == 0)
    def _():
        o_ref[...] = jnp.zeros_like(o_ref)

    # bf16 x bf16 -> f32 accumulate; accumulate directly into the resident
    # f32 output block (its block index is constant across k).
    o_ref[...] += jnp.dot(x_ref[...], w_ref[...],
                          preferred_element_type=jnp.float32)

    @pl.when(k == pl.num_programs(1) - 1)
    def _():
        y = o_ref[...] + b_ref[...]
        o_ref[...] = jnp.where(y > 0, y, LEAKY_SLOPE * y)


def _stream_layer(h, w, b):
    """h: (Mp, Kpad) bf16, w: (Kpad, Npad) bf16, b: (1, Npad) f32 -> (Mp, Npad) f32."""
    Mp, Kpad = h.shape
    _, Npad = w.shape

    tk = _choose_tile(Kpad, 1024)          # 1024 for Kpad = 5120
    tn = _choose_tile(Npad, Npad // 2)     # 2 parallel N tiles (v7x megacore)
    grid = (Npad // tn, Kpad // tk)

    cost = pl.CostEstimate(
        flops=2 * Mp * Kpad * Npad,
        transcendentals=0,
        bytes_accessed=Kpad * Npad * 2 + Mp * Kpad * 2 + Mp * Npad * 4 + Npad * 4,
    )

    return pl.pallas_call(
        _stream_layer_kernel,
        out_shape=jax.ShapeDtypeStruct((Mp, Npad), jnp.float32),
        grid=grid,
        in_specs=[
            pl.BlockSpec((Mp, tk), lambda j, k: (0, k)),   # activations
            pl.BlockSpec((tk, tn), lambda j, k: (k, j)),   # weights (K, N)
            pl.BlockSpec((1, tn), lambda j, k: (0, j)),    # bias
        ],
        out_specs=pl.BlockSpec((Mp, tn), lambda j, k: (0, j)),
        compiler_params=pltpu.CompilerParams(
            dimension_semantics=("parallel", "arbitrary"),
        ),
        cost_estimate=cost,
    )(h, w, b)


# --------------- layers 2..7 fused: all weights VMEM-resident ----------------

def _tail_kernel(h_ref, *refs):
    o_ref = refs[-1]
    wb = refs[:-1]
    n_layers = len(wb) // 2
    h = h_ref[...]                                   # (Mp, 2048) f32
    for i in range(n_layers):
        w_ref = wb[2 * i]
        b_ref = wb[2 * i + 1]
        z = jnp.dot(h.astype(w_ref.dtype), w_ref[...],
                    preferred_element_type=jnp.float32) + b_ref[...]
        if i < n_layers - 1:
            h = jnp.where(z > 0, z, LEAKY_SLOPE * z)  # LeakyReLU(0.2)
        else:
            h = jax.nn.sigmoid(z)                     # final Sigmoid
    o_ref[...] = h


def _tail_layers(h1, tail_params):
    """h1: (Mp, 2048) f32 -> (Mp, 128) f32 (only column 0 is the real output)."""
    Mp = h1.shape[0]
    n_out = tail_params[-1][0].shape[1]

    flat = []
    flops = 0
    nbytes = h1.size * 4 + Mp * n_out * 4
    for w, b in tail_params:
        flat += [w, b]
        flops += 2 * Mp * w.shape[0] * w.shape[1]
        nbytes += w.size * 2 + b.size * 4

    return pl.pallas_call(
        _tail_kernel,
        out_shape=jax.ShapeDtypeStruct((Mp, n_out), jnp.float32),
        compiler_params=pltpu.CompilerParams(
            vmem_limit_bytes=32 * 1024 * 1024,   # headroom over v5e's 16 MiB default
        ),
        cost_estimate=pl.CostEstimate(
            flops=flops, transcendentals=Mp * n_out, bytes_accessed=nbytes),
    )(h1, *flat)


# ------------------------------ parameters -----------------------------------

def init_params(key):
    """PyTorch-style uniform(+-1/sqrt(fan_in)); weights padded + cast to bf16."""
    params = []
    for cin, cout in LAYER_DIMS:
        key, kw, kb = jax.random.split(key, 3)
        bound = 1.0 / jnp.sqrt(float(cin))
        w = jax.random.uniform(kw, (cout, cin), jnp.float32, -bound, bound)
        b = jax.random.uniform(kb, (cout,), jnp.float32, -bound, bound)

        kpad, npad = _pad128(cin), _pad128(cout)
        wt = jnp.zeros((kpad, npad), jnp.float32).at[:cin, :cout].set(w.T)
        wt = wt.astype(jnp.bfloat16)           # bf16 weights: halve HBM traffic
        bp = jnp.zeros((1, npad), jnp.float32).at[0, :cout].set(b)
        params.append((wt, bp))                # arrays only -> jit-friendly pytree
    return params


# ------------------------------ forward pass ---------------------------------

@jax.jit
def discriminator_forward(x, params):
    """x: (B, 5023, L) f32 -> (B, 1, L) f32 (matches PyTorch NCL)."""
    B, C, L = x.shape
    assert C == LAYER_DIMS[0][0]
    M = B * L
    Mp = _pad8(M)
    Cpad = _pad128(C)

    # NCL -> (B*L, C): tokens on rows, channels on lanes; zero-pad (inert).
    h = jnp.transpose(x, (0, 2, 1)).reshape(M, C)
    h = jnp.pad(h, ((0, Mp - M), (0, Cpad - C))).astype(jnp.bfloat16)

    w1, b1 = params[0]
    h1 = _stream_layer(h, w1, b1)            # (Mp, 2048) f32, LeakyReLU applied
    out = _tail_layers(h1, params[1:])       # (Mp, 128)  f32, Sigmoid applied

    out = out[:M, :1].reshape(B, L, 1)       # real output channel = 1
    return jnp.transpose(out, (0, 2, 1))     # back to (B, 1, L)


def _reference_forward(x, params):
    """Plain-JAX reference with identical padded bf16 params / casts."""
    B, C, L = x.shape
    M = B * L
    h = jnp.transpose(x, (0, 2, 1)).reshape(M, C)
    h = jnp.pad(h, ((0, 0), (0, _pad128(C) - C)))
    n = len(params)
    for i, (w, b) in enumerate(params):
        z = jnp.dot(h.astype(jnp.bfloat16), w,
                    preferred_element_type=jnp.float32) + b
        if i < n - 1:
            h = jnp.where(z > 0, z, LEAKY_SLOPE * z)
        else:
            h = jax.nn.sigmoid(z)
    out = h[:, :1].reshape(B, L, 1)
    return jnp.transpose(out, (0, 2, 1))


if __name__ == "__main__":
    key = jax.random.PRNGKey(0)
    key, kx = jax.random.split(key)

    B, C, L = 2, 5023, 8          # channels fixed by the module; small B / L
    x = jax.random.normal(kx, (B, C, L), jnp.float32)

    params = init_params(key)

    y = jax.block_until_ready(discriminator_forward(x, params))
    assert y.shape == (B, 1, L), y.shape

    y_ref = _reference_forward(x, params)
    err = float(jnp.max(jnp.abs(y - y_ref)))
    assert err < 5e-3, err

    print("KERNEL_OK")
</pallas_src>

<mosaic_0001>
module attributes {stable_mosaic.version = 11 : i64} {
  func.func @_tail_kernel(%arg0: memref<16x2048xf32, #tpu.memory_space<vmem>>, %arg1: memref<2048x1024xbf16, #tpu.memory_space<vmem>>, %arg2: memref<1x1024xf32, #tpu.memory_space<vmem>>, %arg3: memref<1024x640xbf16, #tpu.memory_space<vmem>>, %arg4: memref<1x640xf32, #tpu.memory_space<vmem>>, %arg5: memref<640x384xbf16, #tpu.memory_space<vmem>>, %arg6: memref<1x384xf32, #tpu.memory_space<vmem>>, %arg7: memref<384x256xbf16, #tpu.memory_space<vmem>>, %arg8: memref<1x256xf32, #tpu.memory_space<vmem>>, %arg9: memref<256x128xbf16, #tpu.memory_space<vmem>>, %arg10: memref<1x128xf32, #tpu.memory_space<vmem>>, %arg11: memref<128x128xbf16, #tpu.memory_space<vmem>>, %arg12: memref<1x128xf32, #tpu.memory_space<vmem>>, %arg13: memref<16x128xf32, #tpu.memory_space<vmem>>) attributes {dimension_semantics = [], scalar_prefetch = 0 : i64, scratch_operands = 0 : i64, tpu.core_type = #tpu.core_type<tc>} {
    %c0 = arith.constant 0 : index
    %c0_0 = arith.constant 0 : index
    %0 = vector.load %arg0[%c0, %c0_0] : memref<16x2048xf32, #tpu.memory_space<vmem>>, vector<16x2048xf32>
    %1 = arith.truncf %0 : vector<16x2048xf32> to vector<16x2048xbf16>
    %c0_1 = arith.constant 0 : index
    %c0_2 = arith.constant 0 : index
    %2 = vector.load %arg1[%c0_1, %c0_2] : memref<2048x1024xbf16, #tpu.memory_space<vmem>>, vector<2048x1024xbf16>
    %cst = arith.constant dense<0.000000e+00> : vector<16x1024xf32>
    %3 = tpu.matmul %1, %2, %cst {dimension_numbers = #tpu.dot_dimension_numbers<[1], [0], [0], [1], [0, 0, 1, 1], [], []>} : vector<16x2048xbf16>, vector<2048x1024xbf16>, vector<16x1024xf32> -> vector<16x1024xf32>
    %c0_3 = arith.constant 0 : index
    %c0_4 = arith.constant 0 : index
    %4 = vector.load %arg2[%c0_3, %c0_4] : memref<1x1024xf32, #tpu.memory_space<vmem>>, vector<1x1024xf32>
    %5 = vector.broadcast %4 : vector<1x1024xf32> to vector<16x1024xf32>
    %6 = arith.addf %3, %5 : vector<16x1024xf32>
    %cst_5 = arith.constant 0.000000e+00 : f32
    %7 = vector.broadcast %cst_5 : f32 to vector<16x1024xf32>
    %8 = arith.cmpf ogt, %6, %7 : vector<16x1024xf32>
    %cst_6 = arith.constant 2.000000e-01 : f32
    %9 = vector.broadcast %cst_6 : f32 to vector<16x1024xf32>
    %10 = arith.mulf %9, %6 : vector<16x1024xf32>
    %11 = arith.select %8, %6, %10 : vector<16x1024xi1>, vector<16x1024xf32>
    %12 = arith.truncf %11 : vector<16x1024xf32> to vector<16x1024xbf16>
    %c0_7 = arith.constant 0 : index
    %c0_8 = arith.constant 0 : index
    %13 = vector.load %arg3[%c0_7, %c0_8] : memref<1024x640xbf16, #tpu.memory_space<vmem>>, vector<1024x640xbf16>
    %cst_9 = arith.constant dense<0.000000e+00> : vector<16x640xf32>
    %14 = tpu.matmul %12, %13, %cst_9 {dimension_numbers = #tpu.dot_dimension_numbers<[1], [0], [0], [1], [0, 0, 1, 1], [], []>} : vector<16x1024xbf16>, vector<1024x640xbf16>, vector<16x640xf32> -> vector<16x640xf32>
    %c0_10 = arith.constant 0 : index
    %c0_11 = arith.constant 0 : index
    %15 = vector.load %arg4[%c0_10, %c0_11] : memref<1x640xf32, #tpu.memory_space<vmem>>, vector<1x640xf32>
    %16 = vector.broadcast %15 : vector<1x640xf32> to vector<16x640xf32>
    %17 = arith.addf %14, %16 : vector<16x640xf32>
    %cst_12 = arith.constant 0.000000e+00 : f32
    %18 = vector.broadcast %cst_12 : f32 to vector<16x640xf32>
    %19 = arith.cmpf ogt, %17, %18 : vector<16x640xf32>
    %cst_13 = arith.constant 2.000000e-01 : f32
    %20 = vector.broadcast %cst_13 : f32 to vector<16x640xf32>
    %21 = arith.mulf %20, %17 : vector<16x640xf32>
    %22 = arith.select %19, %17, %21 : vector<16x640xi1>, vector<16x640xf32>
    %23 = arith.truncf %22 : vector<16x640xf32> to vector<16x640xbf16>
    %c0_14 = arith.constant 0 : index
    %c0_15 = arith.constant 0 : index
    %24 = vector.load %arg5[%c0_14, %c0_15] : memref<640x384xbf16, #tpu.memory_space<vmem>>, vector<640x384xbf16>
    %cst_16 = arith.constant dense<0.000000e+00> : vector<16x384xf32>
    %25 = tpu.matmul %23, %24, %cst_16 {dimension_numbers = #tpu.dot_dimension_numbers<[1], [0], [0], [1], [0, 0, 1, 1], [], []>} : vector<16x640xbf16>, vector<640x384xbf16>, vector<16x384xf32> -> vector<16x384xf32>
    %c0_17 = arith.constant 0 : index
    %c0_18 = arith.constant 0 : index
    %26 = vector.load %arg6[%c0_17, %c0_18] : memref<1x384xf32, #tpu.memory_space<vmem>>, vector<1x384xf32>
    %27 = vector.broadcast %26 : vector<1x384xf32> to vector<16x384xf32>
    %28 = arith.addf %25, %27 : vector<16x384xf32>
    %cst_19 = arith.constant 0.000000e+00 : f32
    %29 = vector.broadcast %cst_19 : f32 to vector<16x384xf32>
    %30 = arith.cmpf ogt, %28, %29 : vector<16x384xf32>
    %cst_20 = arith.constant 2.000000e-01 : f32
    %31 = vector.broadcast %cst_20 : f32 to vector<16x384xf32>
    %32 = arith.mulf %31, %28 : vector<16x384xf32>
    %33 = arith.select %30, %28, %32 : vector<16x384xi1>, vector<16x384xf32>
    %34 = arith.truncf %33 : vector<16x384xf32> to vector<16x384xbf16>
    %c0_21 = arith.constant 0 : index
    %c0_22 = arith.constant 0 : index
    %35 = vector.load %arg7[%c0_21, %c0_22] : memref<384x256xbf16, #tpu.memory_space<vmem>>, vector<384x256xbf16>
    %cst_23 = arith.constant dense<0.000000e+00> : vector<16x256xf32>
    %36 = tpu.matmul %34, %35, %cst_23 {dimension_numbers = #tpu.dot_dimension_numbers<[1], [0], [0], [1], [0, 0, 1, 1], [], []>} : vector<16x384xbf16>, vector<384x256xbf16>, vector<16x256xf32> -> vector<16x256xf32>
    %c0_24 = arith.constant 0 : index
    %c0_25 = arith.constant 0 : index
    %37 = vector.load %arg8[%c0_24, %c0_25] : memref<1x256xf32, #tpu.memory_space<vmem>>, vector<1x256xf32>
    %38 = vector.broadcast %37 : vector<1x256xf32> to vector<16x256xf32>
    %39 = arith.addf %36, %38 : vector<16x256xf32>
    %cst_26 = arith.constant 0.000000e+00 : f32
    %40 = vector.broadcast %cst_26 : f32 to vector<16x256xf32>
    %41 = arith.cmpf ogt, %39, %40 : vector<16x256xf32>
    %cst_27 = arith.constant 2.000000e-01 : f32
    %42 = vector.broadcast %cst_27 : f32 to vector<16x256xf32>
    %43 = arith.mulf %42, %39 : vector<16x256xf32>
    %44 = arith.select %41, %39, %43 : vector<16x256xi1>, vector<16x256xf32>
    %45 = arith.truncf %44 : vector<16x256xf32> to vector<16x256xbf16>
    %c0_28 = arith.constant 0 : index
    %c0_29 = arith.constant 0 : index
    %46 = vector.load %arg9[%c0_28, %c0_29] : memref<256x128xbf16, #tpu.memory_space<vmem>>, vector<256x128xbf16>
    %cst_30 = arith.constant dense<0.000000e+00> : vector<16x128xf32>
    %47 = tpu.matmul %45, %46, %cst_30 {dimension_numbers = #tpu.dot_dimension_numbers<[1], [0], [0], [1], [0, 0, 1, 1], [], []>} : vector<16x256xbf16>, vector<256x128xbf16>, vector<16x128xf32> -> vector<16x128xf32>
    %c0_31 = arith.constant 0 : index
    %c0_32 = arith.constant 0 : index
    %48 = vector.load %arg10[%c0_31, %c0_32] : memref<1x128xf32, #tpu.memory_space<vmem>>, vector<1x128xf32>
    %49 = vector.broadcast %48 : vector<1x128xf32> to vector<16x128xf32>
    %50 = arith.addf %47, %49 : vector<16x128xf32>
    %cst_33 = arith.constant 0.000000e+00 : f32
    %51 = vector.broadcast %cst_33 : f32 to vector<16x128xf32>
    %52 = arith.cmpf ogt, %50, %51 : vector<16x128xf32>
    %cst_34 = arith.constant 2.000000e-01 : f32
    %53 = vector.broadcast %cst_34 : f32 to vector<16x128xf32>
    %54 = arith.mulf %53, %50 : vector<16x128xf32>
    %55 = arith.select %52, %50, %54 : vector<16x128xi1>, vector<16x128xf32>
    %56 = arith.truncf %55 : vector<16x128xf32> to vector<16x128xbf16>
    %c0_35 = arith.constant 0 : index
    %c0_36 = arith.constant 0 : index
    %57 = vector.load %arg11[%c0_35, %c0_36] : memref<128x128xbf16, #tpu.memory_space<vmem>>, vector<128x128xbf16>
    %cst_37 = arith.constant dense<0.000000e+00> : vector<16x128xf32>
    %58 = tpu.matmul %56, %57, %cst_37 {dimension_numbers = #tpu.dot_dimension_numbers<[1], [0], [0], [1], [0, 0, 1, 1], [], []>} : vector<16x128xbf16>, vector<128x128xbf16>, vector<16x128xf32> -> vector<16x128xf32>
    %c0_38 = arith.constant 0 : index
    %c0_39 = arith.constant 0 : index
    %59 = vector.load %arg12[%c0_38, %c0_39] : memref<1x128xf32, #tpu.memory_space<vmem>>, vector<1x128xf32>
    %60 = vector.broadcast %59 : vector<1x128xf32> to vector<16x128xf32>
    %61 = arith.addf %58, %60 : vector<16x128xf32>
    %62 = arith.negf %61 : vector<16x128xf32>
    %63 = math.exp %62 : vector<16x128xf32>
    %cst_40 = arith.constant 1.000000e+00 : f32
    %64 = vector.broadcast %cst_40 : f32 to vector<16x128xf32>
    %65 = arith.addf %64, %63 : vector<16x128xf32>
    %66 = arith.divf %64, %65 : vector<16x128xf32>
    %c0_41 = arith.constant 0 : index
    %c0_42 = arith.constant 0 : index
    %67 = vector.load %arg13[%c0_41, %c0_42] : memref<16x128xf32, #tpu.memory_space<vmem>>, vector<16x128xf32>
    tpu.vector_store %arg13[%c0_41, %c0_42], %66 {strides = array<i32>} : memref<16x128xf32, #tpu.memory_space<vmem>>, vector<16x128xf32>,
    return
  }
}

module attributes {stable_mosaic.version = 11 : i64} {
  func.func @_stream_layer_kernel(%arg0: i32, %arg1: i32, %arg2: memref<16x1024xbf16, #tpu.memory_space<vmem>>, %arg3: memref<1024x1024xbf16, #tpu.memory_space<vmem>>, %arg4: memref<1x1024xf32, #tpu.memory_space<vmem>>, %arg5: memref<16x1024xf32, #tpu.memory_space<vmem>>) attributes {dimension_semantics = [#tpu.dimension_semantics<parallel>, #tpu.dimension_semantics<arbitrary>], iteration_bounds = array<i64: 2, 5>, scalar_prefetch = 0 : i64, scratch_operands = 0 : i64, tpu.core_type = #tpu.core_type<tc>, window_params = [{transform_indices = @transform_0, window_bounds = array<i64: 16, 1024>}, {transform_indices = @transform_1, window_bounds = array<i64: 1024, 1024>}, {transform_indices = @transform_2, window_bounds = array<i64: 1, 1024>}, {transform_indices = @transform_3, window_bounds = array<i64: 16, 1024>}]} {
    %c0_i32 = arith.constant 0 : i32
    %0 = arith.cmpi eq, %arg1, %c0_i32 : i32
    %1 = arith.extui %0 : i1 to i32
    %c0_i32_0 = arith.constant 0 : i32
    %2 = arith.cmpi ne, %1, %c0_i32_0 : i32
    scf.if %2 {
      %cst_9 = arith.constant 0.000000e+00 : f32
      %12 = vector.broadcast %cst_9 : f32 to vector<16x1024xf32>
      %c0_10 = arith.constant 0 : index
      %c0_11 = arith.constant 0 : index
      %13 = vector.load %arg5[%c0_10, %c0_11] : memref<16x1024xf32, #tpu.memory_space<vmem>>, vector<16x1024xf32>
      tpu.vector_store %arg5[%c0_10, %c0_11], %12 {strides = array<i32>} : memref<16x1024xf32, #tpu.memory_space<vmem>>, vector<16x1024xf32>,
    } else {
    }
    %c0 = arith.constant 0 : index
    %c0_1 = arith.constant 0 : index
    %3 = vector.load %arg5[%c0, %c0_1] : memref<16x1024xf32, #tpu.memory_space<vmem>>, vector<16x1024xf32>
    %c0_2 = arith.constant 0 : index
    %c0_3 = arith.constant 0 : index
    %4 = vector.load %arg2[%c0_2, %c0_3] : memref<16x1024xbf16, #tpu.memory_space<vmem>>, vector<16x1024xbf16>
    %c0_4 = arith.constant 0 : index
    %c0_5 = arith.constant 0 : index
    %5 = vector.load %arg3[%c0_4, %c0_5] : memref<1024x1024xbf16, #tpu.memory_space<vmem>>, vector<1024x1024xbf16>
    %cst = arith.constant dense<0.000000e+00> : vector<16x1024xf32>
    %6 = tpu.matmul %4, %5, %cst {dimension_numbers = #tpu.dot_dimension_numbers<[1], [0], [0], [1], [0, 0, 1, 1], [], []>} : vector<16x1024xbf16>, vector<1024x1024xbf16>, vector<16x1024xf32> -> vector<16x1024xf32>
    %7 = arith.addf %3, %6 : vector<16x1024xf32>
    %c0_6 = arith.constant 0 : index
    %c0_7 = arith.constant 0 : index
    %8 = vector.load %arg5[%c0_6, %c0_7] : memref<16x1024xf32, #tpu.memory_space<vmem>>, vector<16x1024xf32>
    tpu.vector_store %arg5[%c0_6, %c0_7], %7 {strides = array<i32>} : memref<16x1024xf32, #tpu.memory_space<vmem>>, vector<16x1024xf32>,
    %c4_i32 = arith.constant 4 : i32
    %9 = arith.cmpi eq, %arg1, %c4_i32 : i32
    %10 = arith.extui %9 : i1 to i32
    %c0_i32_8 = arith.constant 0 : i32
    %11 = arith.cmpi ne, %10, %c0_i32_8 : i32
    scf.if %11 {
      %c0_9 = arith.constant 0 : index
      %c0_10 = arith.constant 0 : index
      %12 = vector.load %arg5[%c0_9, %c0_10] : memref<16x1024xf32, #tpu.memory_space<vmem>>, vector<16x1024xf32>
      %c0_11 = arith.constant 0 : index
      %c0_12 = arith.constant 0 : index
      %13 = vector.load %arg4[%c0_11, %c0_12] : memref<1x1024xf32, #tpu.memory_space<vmem>>, vector<1x1024xf32>
      %14 = vector.broadcast %13 : vector<1x1024xf32> to vector<16x1024xf32>
      %15 = arith.addf %12, %14 : vector<16x1024xf32>
      %cst_13 = arith.constant 0.000000e+00 : f32
      %16 = vector.broadcast %cst_13 : f32 to vector<16x1024xf32>
      %17 = arith.cmpf ogt, %15, %16 : vector<16x1024xf32>
      %cst_14 = arith.constant 2.000000e-01 : f32
      %18 = vector.broadcast %cst_14 : f32 to vector<16x1024xf32>
      %19 = arith.mulf %18, %15 : vector<16x1024xf32>
      %20 = arith.select %17, %15, %19 : vector<16x1024xi1>, vector<16x1024xf32>
      %c0_15 = arith.constant 0 : index
      %c0_16 = arith.constant 0 : index
      %21 = vector.load %arg5[%c0_15, %c0_16] : memref<16x1024xf32, #tpu.memory_space<vmem>>, vector<16x1024xf32>
      tpu.vector_store %arg5[%c0_15, %c0_16], %20 {strides = array<i32>} : memref<16x1024xf32, #tpu.memory_space<vmem>>, vector<16x1024xf32>,
    } else {
    }
    return
  }
  func.func @transform_0(%arg0: i32, %arg1: i32) -> (i32, i32) {
    %c0_i32 = arith.constant 0 : i32
    %c0_i32_0 = arith.constant 0 : i32
    return %c0_i32, %arg1 : i32, i32
  }
  func.func @transform_1(%arg0: i32, %arg1: i32) -> (i32, i32) {
    %c0_i32 = arith.constant 0 : i32
    return %arg1, %arg0 : i32, i32
  }
  func.func @transform_2(%arg0: i32, %arg1: i32) -> (i32, i32) {
    %c0_i32 = arith.constant 0 : i32
    %c0_i32_0 = arith.constant 0 : i32
    return %c0_i32, %arg0 : i32, i32
  }
  func.func @transform_3(%arg0: i32, %arg1: i32) -> (i32, i32) {
    %c0_i32 = arith.constant 0 : i32
    %c0_i32_0 = arith.constant 0 : i32
    return %c0_i32, %arg0 : i32, i32
  }
}

</mosaic_0001>

<bundles_post_ra>
// kernel: discriminator_forward.2
= control target key start
LH: loop header
LB: loop body
LE: loop exit
PB: predicated region body
PF: predicated region fallthrough
CT: control target
= control target key end

     0   :  { %s6296_s0 = inlined_call_operand.vmem [shape: bf16[16,5120], index: 0, kind: input, shape index: {}]   ;;  %s6297_s1 = inlined_call_operand.hbm [shape: bf16[5120,2048], index: 1, kind: input, shape index: {}]   ;;  %s6298_s2 = inlined_call_operand.hbm [shape: f32[1,2048], index: 2, kind: input, shape index: {}]   ;;  %s6299_s3 = inlined_call_operand.vmem [shape: f32[16,2048], index: 3, kind: output, shape index: {}]  }
   0x1   :  { %6305 = sst [smem:[#allocation19_spill]] %s6296_s0 }
   0x2   :  { %6306 = sst [smem:[#allocation20_spill]] %s6297_s1 }
   0x3   :  { %6307 = sst [smem:[#allocation21_spill]] %s6299_s3 }
   0x4   :  { %8 = vsyncpa [#allocation4], 0 }
   0x5   :  { %10 = vsyncpa [#allocation4 + $0x1], 0 }
   0x6   :  { %11 = vsyncpa [#allocation6], 0 }
   0x7   :  { %13 = vsyncpa [#allocation6 + $0x1], 0  ;;  %s5344_s12 = smov 0   ;;  %s5346_s13 = smov 0  }
   0x8   :  { %s5348_s14 = smov 0   ;;  %s5350_s15 = smov 0  }
   0x9   :  { %s5352_s16 = smov 0   ;;  %s5354_s17 = smov 0  }
   0xa   :  { %s5356_s18 = smov 0   ;;  %s5358_s19 = smov 0  }
   0xb   :  { %s5360_s20 = smov 0   ;;  %s5362_s21 = smov 0  }
   0xc   :  { %s5364_s22 = smov 0   ;;  %s5366_s23 = smov 0  }
   0xd   :  { %s5368_s24 = smov 0  }
   0xe LB: > { %6308 = sst [smem:[#allocation10_spill]] %s5288_s17  ;;  %s4491_s25 = sadd.s32 4294967295, %s5316_s24   ;;  %s5316_s24 = sphi %s5368_s24, %s19_s24   ;;  %s5312_s23 = sphi %s5366_s23, %s6342_s23   ;;  %s5308_s22 = sphi %s5364_s22, %s6334_s22   ;;  %s5304_s21 = sphi %s5362_s21, %s6341_s21   ;;  %s5300_s20 = sphi %s5360_s20, %s6333_s20   ;;  %s5296_s19 = sphi %s5358_s19, %s6332_s19   ;;  %s5292_s18 = sphi %s5356_s18, %s6331_s18   ;;  %s5288_s17 = sphi %s5354_s17, %s6330_s17   ;;  %s5284_s16 = sphi %s5352_s16, %s6340_s16   ;;  %s5280_s15 = sphi %s5350_s15, %s6339_s15   ;;  %s5276_s14 = sphi %s5348_s14, %s6338_s14   ;;  %s5272_s13 = sphi %s5346_s13, %s6337_s13   ;;  %s5268_s12 = sphi %s5344_s12, %s6336_s12  }
   0xf   : > { %6309 = sst [smem:[#allocation11_spill]] %s5296_s19  ;;  %s28_s26 = sadd.s32 1, %s5308_s22 }
  0x10   : > { %6310 = sst [smem:[#allocation12_spill]] %s5304_s21  ;;  %p29_p0 = scmp.ge.s32.totalorder %s28_s26, 5 }
  0x11   : > { %6311 = sst [smem:[#allocation13_spill]] %s5308_s22  ;;  %s31_s27 = sadd.s32 1, %s5312_s23 }
  0x12   : > { %s38_s28 = sadd.s32 1, %s5296_s19  ;;  %p45_p1 = scmp.ne.s32.totalorder %s5296_s19, %s5292_s18 }
  0x13   : > { %s6344_s26 = smov (%p29_p0, %s28_s26), 0  ;;  %s6346_s27 = smov (!%p29_p0, %s31_s27), %s5312_s23 }
  0x14   : > { %6312 = sst [smem:[#allocation14_spill]] %s6344_s26  ;;  %s35_s29 = ssub.s32 %s5308_s22, %s6344_s26 }
  0x15   : > { %p46_p2 = scmp.eq.s32.totalorder %s5316_s24, 0  ;;  %p33_p3 = scmp.ge.s32.totalorder %s6346_s27, 2 }
  0x16   : > { %p36_p4 = scmp.eq.s32.totalorder %s35_s29, 0  ;;  %s66_s4 = sadd.s32 1, %s5288_s17 }
  0x17   : > { %p5423_p5 = por %p46_p2, %p45_p1  ;;  %s6348_s27 = smov (%p33_p3, %s6346_s27), 0 }
  0x18   : > { %6314 = sst [smem:[#allocation15_spill]] %s6348_s27  ;;  %s62_s6 = ssub.s32 %s5312_s23, %s6348_s27 }
  0x19   : > { %s5431_s5 = scalar_select %p36_p4, %s5296_s19, %s38_s28  }
  0x1a   : > { %p73_p6 = scmp.ne.s32.totalorder %s5288_s17, %s5284_s16  ;;  %s63_s7 = sor.u32 %s62_s6, %s35_s29 }
  0x1b   : > { %6315 = sst [smem:[#allocation16_spill]] %s5431_s5  ;;  %p79_p7 = scmp.ne.s32.totalorder %s5284_s16, %s5280_s15 }
  0x1c   : > { %p64_p8 = scmp.eq.s32.totalorder %s63_s7, 0  ;;  %p5441_p9 = por %p73_p6, %p46_p2 }
  0x1d   : > { %p80_p10 = scmp.eq.s32.totalorder %s4491_s25, 0  ;;  %p90_p11 = scmp.eq.s32.totalorder %s62_s6, 0 }
  0x1e   : > { %s5448_s9 = scalar_select %p64_p8, %s5288_s17, %s66_s4  }
  0x1f   : > { %p5450_p12 = por %p80_p10, %p79_p7  ;;  %s92_s11 = sadd.s32 1, %s5276_s14 }
  0x20   : > { %6317 = sst [smem:[#allocation17_spill]] %s5448_s9  ;;  %p99_p13 = scmp.ne.s32.totalorder %s5276_s14, %s5272_s13 }
  0x21   : > { %s5456_s28 = scalar_select %p90_p11, %s5276_s14, %s92_s11  }
  0x22   : > { %p105_p0 = scmp.ne.s32.totalorder %s5272_s13, %s5268_s12  ;;  %p129_p1 = scmp.eq.s32.totalorder %s4491_s25, 9 }
  0x23   : > { %6319 = sst [smem:[#allocation18_spill]] %s5456_s28  ;;  %p5466_p3 = por %p99_p13, %p46_p2 }
  0x24   : > { %p5470_p4 = por %p105_p0, %p80_p10  ;;  %p5474_p6 = por %p129_p1, %p99_p13 }
  0x25   : > { %p4494_p7 = scmp.ge.s32.totalorder %s5316_s24, 10 }
  0x27   : > { %151 = sbr.rel (%p4494_p7) target bundleno = 91 (0x5b), region = 16 }
  0x2c   : > { %154 = sbr.rel (!%p5423_p5) target bundleno = 58 (0x3a), region = 20  ;;  %s156_s12 = sand.u32 (%p5423_p5), 1, %s5296_s19  }
  0x2d   : > { %s5038_s25 = sshll.u32 (%p5423_p5), %s5308_s22, 5  ;;  %s4495_s6 = sshll.u32 (%p5423_p5), %s156_s12, 6 }
  0x2e   : > { %s6323_s0 = sld [smem:[#allocation19_spill]] (%p5423_p5)  ;;  %s158_s26 = scalar_lea.vmem (%p5423_p5), [#allocation2], %s4495_s6 }
  0x34   : > { %s161_s27 = scalar_lea.vmem %s6323_s0, %s5038_s25 }
  0x35   : > { %v174_v0 = vld [vmem:[%s161_s27] sm:$0xff]  ;;  %v176_v1 = vld [vmem:[%s161_s27 + $0x8] sm:$0xff]  ;;  %v178_v2 = vld [vmem:[%s161_s27 + $0x10] sm:$0xff] }
  0x36   : > { %175 = vst [vmem:[%s158_s26] sm:$0xff] %v174_v0  ;;  %177 = vst [vmem:[%s158_s26 + $0x8] sm:$0xff] %v176_v1  ;;  %v180_v3 = vld [vmem:[%s161_s27 + $0x18] sm:$0xff]  ;;  %v182_v4 = vld [vmem:[%s161_s27 + $0xa0] sm:$0xff] }
  0x37   : > { %179 = vst [vmem:[%s158_s26 + $0x10] sm:$0xff] %v178_v2  ;;  %v184_v5 = vld [vmem:[%s161_s27 + $0xa8] sm:$0xff]  ;;  %181 = vst [vmem:[%s158_s26 + $0x18] sm:$0xff] %v180_v3  ;;  %v186_v6 = vld [vmem:[%s161_s27 + $0xb0] sm:$0xff] }
  0x38   : > { %183 = vst [vmem:[%s158_s26 + $0x20] sm:$0xff] %v182_v4  ;;  %185 = vst [vmem:[%s158_s26 + $0x28] sm:$0xff] %v184_v5  ;;  %v188_v7 = vld [vmem:[%s161_s27 + $0xb8] sm:$0xff] }
  0x39   : > { %187 = vst [vmem:[%s158_s26 + $0x30] sm:$0xff] %v186_v6  ;;  %189 = vst [vmem:[%s158_s26 + $0x38] sm:$0xff] %v188_v7 }
  0x3a PF: > { %s196_s30 = sand.u32 1, %s5288_s17   ;;  %s4500_s12 = sshll.u32 %s5312_s23, 3 }
  0x3b   : > { %s4498_s25 = sshll.u32 %s196_s30, 12  ;;  %s5039_s6 = sshll.u32 %s5308_s22, 11 }
  0x3c   : > { %s207_s7 = sadd.s32 %s5039_s6, %s4500_s12  ;;  %s200_s11 = scalar_lea.vmem [#allocation3], %s4498_s25 }
  0x3d   : > { %s210_s0 = sshll.u32 %s200_s11, 4  ;;  %s4502_s5 = sshll.u32 %s207_s7, 6  ;;  %s211_s0 = int_to_ptr.vmem [resolvable:$true] %s210_s0 }
  0x3e   : > { %s6324_s1 = sld [smem:[#allocation20_spill]]  ;;  %s197_s28 = scalar_lea.sflag [#allocation4], %s196_s30 }
  0x3f   : > { %s5166_s26 = scalar_lea.vmem %s211_s0, 65536  ;;  %s5318_s3 = smov [#allocation3]  }
  0x40   : > { %p5167_p2 = scmp.ne.s32.totalorder %s211_s0, %s5166_s26  ;;  %s5170_s17 = sshll.u32 %s5318_s3, 4  ;;  %s5171_s17 = int_to_ptr.vmem [resolvable:$false] %s5170_s17 }
  0x41   : > { %s5172_s21 = scalar_lea.vmem %s5171_s17, 131072  ;;  %p5173_p10 = scmp.lt.s32.totalorder %s211_s0, %s5171_s17 }
  0x42   : > { %p5168_p5 = pnand %p5167_p2, %p5441_p9  ;;  %p5174_p11 = scmp.lt.s32.totalorder %s5172_s21, %s5166_s26 }
  0x44   : > { %s209_s27 = scalar_lea.hbm %s6324_s1, %s4502_s5  ;;  %p5169_p8 = pneg %p5168_p5 }
  0x45   : > { %p5175_p13 = por %p5174_p11, %p5173_p10 }
  0x47   : > { %p5176_p0 = pnand %p5175_p13, %p5169_p8 }
  0x49   : > { %5179 = shalt.err (!%p5176_p0)
}
  0x4a   : > { %s5319_s12 = smov 1024   ;;  %s5320_s19 = smov 512  }
  0x4b   : > { %s5321_s5 = smov 32   ;;  %s220_s9 = sand.u32 1, %s5276_s14  }
  0x4c   : > { %5042 = dma.hbm_to_vmem [thread:$0]  (%p5441_p9), %s209_s27, 65536, %s211_s0, %s197_s28, %s5319_s12, %s5320_s19, %s5321_s5  }
  0x4d   : > { %s5040_s30 = sshll.u32 %s5312_s23, 7  ;;  %s4503_s25 = sshll.u32 %s220_s9, 3 }
  0x4e   : > { %s230_s17 = scalar_lea.hbm %s6298_s2, %s5040_s30  ;;  %s224_s21 = scalar_lea.vmem [#allocation5], %s4503_s25 }
  0x4f   : > { %s232_s7 = sshll.u32 %s224_s21, 4  ;;  %s221_s11 = scalar_lea.sflag [#allocation6], %s220_s9  ;;  %s233_s7 = int_to_ptr.vmem [resolvable:$true] %s232_s7 }
  0x50   : > { %s5192_s26 = scalar_lea.vmem %s233_s7, 128  ;;  %s5322_s1 = smov [#allocation5]  }
  0x51   : > { %p5193_p1 = scmp.ne.s32.totalorder %s233_s7, %s5192_s26  ;;  %s5196_s22 = sshll.u32 %s5322_s1, 4  ;;  %s5197_s22 = int_to_ptr.vmem [resolvable:$false] %s5196_s22 }
  0x52   : > { %s5198_s0 = scalar_lea.vmem %s5197_s22, 256  ;;  %p5199_p9 = scmp.lt.s32.totalorder %s233_s7, %s5197_s22 }
  0x53   : > { %p5194_p7 = pnand %p5193_p1, %p5466_p3  ;;  %p5200_p5 = scmp.lt.s32.totalorder %s5198_s0, %s5192_s26 }
  0x55   : > { %p5195_p2 = pneg %p5194_p7  ;;  %p5201_p8 = por %p5200_p5, %p5199_p9 }
  0x57   : > { %p5202_p10 = pnand %p5201_p8, %p5195_p2 }
  0x59   : > { %5205 = shalt.err (!%p5202_p10)
}
  0x5a   : > { %5043 = dma.hbm_to_vmem [thread:$0]  (%p5466_p3), %s230_s17, 128, %s233_s7, %s221_s11  }
  0x5b PF: > { %p4506_p11 = scmp.ge.s32.totalorder %s5316_s24, 1  ;;  %p237_p13 = scmp.lt.s32.totalorder %s5316_s24, 11 }
  0x5d   : > { %p238_p0 = pnand %p4506_p11, %p237_p13 }
  0x5e   : > { %s244_s1 = sand.u32 (!%p238_p0), 1, %s5292_s18   ;;  %s250_s8 = sand.u32 (!%p238_p0), 1, %s5284_s16  }
  0x5f   : > { %241 = sbr.rel (%p238_p0) target bundleno = 888 (0x378), region = 51  ;;  %s4507_s22 = sshll.u32 (!%p238_p0), %s244_s1, 6 }
  0x60   : > { %s4508_s28 = sshll.u32 (!%p238_p0), %s250_s8, 12  ;;  %s5509_s27 = scalar_lea.vmem (!%p238_p0), [#allocation2], %s4507_s22 }
  0x61   : > { %s251_s12 = scalar_lea.sflag (!%p238_p0), [#allocation4], %s250_s8  ;;  %s5511_s19 = scalar_lea.vmem (!%p238_p0), [#allocation3], %s4508_s28 }
  0x64   : > { %5259 = dma.done.wait (%p5450_p12), %s251_s12, 65536  }
  0x65   : > { %5261 = vsyncadd (%p5450_p12), %s251_s12, 4294901760  ;;  %s259_s15 = sand.u32 1, %s5272_s13  }
  0x66   : > { %s4509_s5 = sshll.u32 %s259_s15, 3  ;;  %s260_s9 = scalar_lea.sflag [#allocation6], %s259_s15 }
  0x67   : > { %s5518_s30 = scalar_lea.vmem [#allocation5], %s4509_s5 }
  0x68   : > { %5263 = dma.done.wait (%p5470_p4), %s260_s9, 128  }
  0x69   : > { %5265 = vsyncadd (%p5470_p4), %s260_s9, 4294967168  ;;  %s4510_s18 = sshll.u32 %s259_s15, 7  ;;  %p4511_p3 = scmp.ne.s32.totalorder %s5300_s20, 0 }
  0x6a   : > { %s5524_s25 = scalar_lea.vmem [#allocation7], %s4510_s18 }
  0x6b   : > { %302 = sbr.rel (%p4511_p3) target bundleno = 121 (0x79), region = 67 }
  0x70   : > { %v5323_v8 = vmov 0.0  }
  0x71   : > { %303 = vst [vmem:[%s5524_s25] sm:$0xff] %v5323_v8  ;;  %304 = vst [vmem:[%s5524_s25 + $0x8] sm:$0xff] %v5323_v8 }
  0x72   : > { %305 = vst [vmem:[%s5524_s25 + $0x10] sm:$0xff] %v5323_v8  ;;  %306 = vst [vmem:[%s5524_s25 + $0x18] sm:$0xff] %v5323_v8 }
  0x73   : > { %307 = vst [vmem:[%s5524_s25 + $0x20] sm:$0xff] %v5323_v8  ;;  %308 = vst [vmem:[%s5524_s25 + $0x28] sm:$0xff] %v5323_v8 }
  0x74   : > { %309 = vst [vmem:[%s5524_s25 + $0x30] sm:$0xff] %v5323_v8  ;;  %310 = vst [vmem:[%s5524_s25 + $0x38] sm:$0xff] %v5323_v8 }
  0x75   : > { %311 = vst [vmem:[%s5524_s25 + $0x40] sm:$0xff] %v5323_v8  ;;  %312 = vst [vmem:[%s5524_s25 + $0x48] sm:$0xff] %v5323_v8 }
  0x76   : > { %313 = vst [vmem:[%s5524_s25 + $0x50] sm:$0xff] %v5323_v8  ;;  %314 = vst [vmem:[%s5524_s25 + $0x58] sm:$0xff] %v5323_v8 }
  0x77   : > { %315 = vst [vmem:[%s5524_s25 + $0x60] sm:$0xff] %v5323_v8  ;;  %316 = vst [vmem:[%s5524_s25 + $0x68] sm:$0xff] %v5323_v8 }
  0x78   : > { %317 = vst [vmem:[%s5524_s25 + $0x70] sm:$0xff] %v5323_v8  ;;  %318 = vst [vmem:[%s5524_s25 + $0x78] sm:$0xff] %v5323_v8 }
  0x79 PF: > { %v399_v9 = vld [vmem:[%s5511_s19 + $0x1c0] sm:$0xff]  ;;  %v5584_v4 = vld [vmem:[%s5509_s27 + $0x8] sm:$0xff]  ;;  %p5032_p12 = scmp.ne.s32.totalorder %s5300_s20, 4 }
  0x7a   : > { %v403_v10 = vld [vmem:[%s5511_s19 + $0x1e0] sm:$0xff]  ;;  %v5587_v5 = vld [vmem:[%s5509_s27 + $0x28] sm:$0xff] }
  0x7b   : > { %v527_v11 = vld [vmem:[%s5511_s19 + $0x5c0] sm:$0xff]  ;;  %v4577_v12 = vcombine.high %v399_v9, %v403_v10  ;;  %v4576_v14 = vcombine.low %v399_v9, %v403_v10  ;;  %v5593_v8 = vcombine.high %v5584_v4, %v5587_v5 }
  0x7c   : > { %v531_v13 = vld [vmem:[%s5511_s19 + $0x5e0] sm:$0xff] }
  0x7d   : > { %v391_v15 = vld [vmem:[%s5511_s19 + $0x180] sm:$0xff]  ;;  %v4705_v17 = vcombine.high %v527_v11, %v531_v13  ;;  %v4704_v18 = vcombine.low %v527_v11, %v531_v13  ;;  %3455 = vmatprep.subr.bf16.mxu0 %v4577_v12  ;;  %3530 = vmatprep.mubr.bf16.mxu1 %v5593_v8 }
  0x7e   : > { %v395_v16 = vld [vmem:[%s5511_s19 + $0x1a0] sm:$0xff]  ;;  %3456 = vmatpush1.bf16.msra.mxu0 %v4576_v14 }
  0x7f   : > { %v4569_v19 = vcombine.high %v391_v15, %v395_v16  ;;  %v519_v20 = vld [vmem:[%s5511_s19 + $0x580] sm:$0xff]  ;;  %3498 = vmatprep.subr.bf16.mxu1 %v4705_v17  ;;  %v4568_v27 = vcombine.low %v391_v15, %v395_v16 }
  0x80   : > { %v523_v21 = vld [vmem:[%s5511_s19 + $0x5a0] sm:$0xff]  ;;  %3499 = vmatpush1.bf16.msra.mxu1 %v4704_v18 }
  0x81   : > { %v383_v22 = vld [vmem:[%s5511_s19 + $0x140] sm:$0xff]  ;;  %v4697_v23 = vcombine.high %v519_v20, %v523_v21  ;;  %3457 = vmatprep.subr.bf16.mxu0 %v4569_v19  ;;  %v4696_v28 = vcombine.low %v519_v20, %v523_v21 }
  0x82   : > { %v387_v24 = vld [vmem:[%s5511_s19 + $0x160] sm:$0xff]  ;;  %3458 = vmatpush1.bf16.msra.mxu0 %v4568_v27 }
  0x83   : > { %v511_v25 = vld [vmem:[%s5511_s19 + $0x540] sm:$0xff]  ;;  %v4561_v29 = vcombine.high %v383_v22, %v387_v24  ;;  %3500 = vmatprep.subr.bf16.mxu1 %v4697_v23  ;;  %v4560_v35 = vcombine.low %v383_v22, %v387_v24 }
  0x84   : > { %v515_v26 = vld [vmem:[%s5511_s19 + $0x560] sm:$0xff]  ;;  %3501 = vmatpush1.bf16.msra.mxu1 %v4696_v28 }
  0x85   : > { %v4689_v30 = vcombine.high %v511_v25, %v515_v26  ;;  %v375_v31 = vld [vmem:[%s5511_s19 + $0x100] sm:$0xff]  ;;  %3459 = vmatprep.subr.bf16.mxu0 %v4561_v29  ;;  %v4688_v36 = vcombine.low %v511_v25, %v515_v26 }
  0x86   : > { %v379_v32 = vld [vmem:[%s5511_s19 + $0x120] sm:$0xff]  ;;  %3460 = vmatpush1.bf16.msra.mxu0 %v4560_v35 }
  0x87   : > { %v503_v33 = vld [vmem:[%s5511_s19 + $0x500] sm:$0xff]  ;;  %v4553_v37 = vcombine.high %v375_v31, %v379_v32  ;;  %3502 = vmatprep.subr.bf16.mxu1 %v4689_v30  ;;  %v4552_v43 = vcombine.low %v375_v31, %v379_v32 }
  0x88   : > { %v507_v34 = vld [vmem:[%s5511_s19 + $0x520] sm:$0xff]  ;;  %3503 = vmatpush1.bf16.msra.mxu1 %v4688_v36 }
  0x89   : > { %v4681_v38 = vcombine.high %v503_v33, %v507_v34  ;;  %v367_v39 = vld [vmem:[%s5511_s19 + $0xc0] sm:$0xff]  ;;  %3461 = vmatprep.subr.bf16.mxu0 %v4553_v37  ;;  %v4680_v44 = vcombine.low %v503_v33, %v507_v34 }
  0x8a   : > { %v371_v40 = vld [vmem:[%s5511_s19 + $0xe0] sm:$0xff]  ;;  %3462 = vmatpush1.bf16.msra.mxu0 %v4552_v43 }
  0x8b   : > { %v495_v41 = vld [vmem:[%s5511_s19 + $0x4c0] sm:$0xff]  ;;  %v4545_v45 = vcombine.high %v367_v39, %v371_v40  ;;  %3504 = vmatprep.subr.bf16.mxu1 %v4681_v38  ;;  %v4544_v51 = vcombine.low %v367_v39, %v371_v40 }
  0x8c   : > { %v499_v42 = vld [vmem:[%s5511_s19 + $0x4e0] sm:$0xff]  ;;  %3505 = vmatpush1.bf16.msra.mxu1 %v4680_v44 }
  0x8d   : > { %v4673_v46 = vcombine.high %v495_v41, %v499_v42  ;;  %v359_v47 = vld [vmem:[%s5511_s19 + $0x80] sm:$0xff]  ;;  %3463 = vmatprep.subr.bf16.mxu0 %v4545_v45  ;;  %v4672_v52 = vcombine.low %v495_v41, %v499_v42 }
  0x8e   : > { %v363_v48 = vld [vmem:[%s5511_s19 + $0xa0] sm:$0xff]  ;;  %3464 = vmatpush1.bf16.msra.mxu0 %v4544_v51 }
  0x8f   : > { %v487_v49 = vld [vmem:[%s5511_s19 + $0x480] sm:$0xff]  ;;  %v4537_v53 = vcombine.high %v359_v47, %v363_v48  ;;  %3506 = vmatprep.subr.bf16.mxu1 %v4673_v46  ;;  %v4536_v59 = vcombine.low %v359_v47, %v363_v48 }
  0x90   : > { %v491_v50 = vld [vmem:[%s5511_s19 + $0x4a0] sm:$0xff]  ;;  %3507 = vmatpush1.bf16.msra.mxu1 %v4672_v52 }
  0x91   : > { %v4665_v54 = vcombine.high %v487_v49, %v491_v50  ;;  %v351_v55 = vld [vmem:[%s5511_s19 + $0x40] sm:$0xff]  ;;  %3465 = vmatprep.subr.bf16.mxu0 %v4537_v53  ;;  %v4664_v60 = vcombine.low %v487_v49, %v491_v50 }
  0x92   : > { %v355_v56 = vld [vmem:[%s5511_s19 + $0x60] sm:$0xff]  ;;  %3466 = vmatpush1.bf16.msra.mxu0 %v4536_v59 }
  0x93   : > { %v479_v57 = vld [vmem:[%s5511_s19 + $0x440] sm:$0xff]  ;;  %v4529_v61 = vcombine.high %v351_v55, %v355_v56  ;;  %3508 = vmatprep.subr.bf16.mxu1 %v4665_v54  ;;  %v4528_v9 = vcombine.low %v351_v55, %v355_v56 }
  0x94   : > { %v483_v58 = vld [vmem:[%s5511_s19 + $0x460] sm:$0xff]  ;;  %3509 = vmatpush1.bf16.msra.mxu1 %v4664_v60 }
  0x95   : > { %v343_v62 = vld [vmem:[%s5511_s19] sm:$0xff]  ;;  %v4657_v1 = vcombine.high %v479_v57, %v483_v58  ;;  %3467 = vmatprep.subr.bf16.mxu0 %v4529_v61  ;;  %v4656_v10 = vcombine.low %v479_v57, %v483_v58 }
  0x96   : > { %v5573_v63 = vld [vmem:[%s5509_s27] sm:$0xff]  ;;  %3468 = vmatpush1.bf16.msra.mxu0 %v4528_v9 }
  0x97   : > { %v5576_v0 = vld [vmem:[%s5509_s27 + $0x20] sm:$0xff]  ;;  %3510 = vmatprep.subr.bf16.mxu1 %v4657_v1 }
  0x98   : > { %v347_v2 = vld [vmem:[%s5511_s19 + $0x20] sm:$0xff]  ;;  %v5581_v3 = vcombine.high %v5573_v63, %v5576_v0  ;;  %3511 = vmatpush1.bf16.msra.mxu1 %v4656_v10 }
  0x99   : > { %v471_v6 = vld [vmem:[%s5511_s19 + $0x400] sm:$0xff]  ;;  %v4521_v11 = vcombine.high %v343_v62, %v347_v2  ;;  %v4520_v17 = vcombine.low %v343_v62, %v347_v2 }
  0x9a   : > { %v475_v7 = vld [vmem:[%s5511_s19 + $0x420] sm:$0xff]  ;;  %3487 = vmatprep.mubr.bf16.mxu0 %v5581_v3 }
  0x9b   : > { %v4649_v12 = vcombine.high %v471_v6, %v475_v7  ;;  %v463_v13 = vld [vmem:[%s5511_s19 + $0x3c0] sm:$0xff]  ;;  %3469 = vmatprep.subr.bf16.mxu0 %v4521_v11  ;;  %v4648_v18 = vcombine.low %v471_v6, %v475_v7 }
  0x9c   : > { %v467_v14 = vld [vmem:[%s5511_s19 + $0x3e0] sm:$0xff]  ;;  %3470 = vmatpush1.bf16.msra.mxu0 %v4520_v17 }
  0x9d   : > { %v591_v15 = vld [vmem:[%s5511_s19 + $0x7c0] sm:$0xff]  ;;  %v4641_v19 = vcombine.high %v463_v13, %v467_v14  ;;  %3512 = vmatprep.subr.bf16.mxu1 %v4649_v12  ;;  %v4640_v25 = vcombine.low %v463_v13, %v467_v14 }
  0x9e   : > { %v595_v16 = vld [vmem:[%s5511_s19 + $0x7e0] sm:$0xff]  ;;  %3513 = vmatpush1.bf16.msra.mxu1 %v4648_v18 }
  0x9f   : > { %v4769_v20 = vcombine.high %v591_v15, %v595_v16  ;;  %v455_v21 = vld [vmem:[%s5511_s19 + $0x380] sm:$0xff]  ;;  %3471 = vmatprep.subr.bf16.mxu0 %v4641_v19  ;;  %v4768_v26 = vcombine.low %v591_v15, %v595_v16 }
  0xa0   : > { %v459_v22 = vld [vmem:[%s5511_s19 + $0x3a0] sm:$0xff]  ;;  %3472 = vmatpush2.bf16.msra.mxu0 %v4640_v25 }
  0xa1   : > { %v583_v23 = vld [vmem:[%s5511_s19 + $0x780] sm:$0xff]  ;;  %v4633_v27 = vcombine.high %v455_v21, %v459_v22  ;;  %3514 = vmatprep.subr.bf16.mxu1 %v4769_v20  ;;  %v4632_v33 = vcombine.low %v455_v21, %v459_v22 }
  0xa2   : > { %v587_v24 = vld [vmem:[%s5511_s19 + $0x7a0] sm:$0xff]  ;;  %3515 = vmatpush2.bf16.msra.mxu1 %v4768_v26 }
  0xa3   : > { %v4761_v28 = vcombine.high %v583_v23, %v587_v24  ;;  %v447_v29 = vld [vmem:[%s5511_s19 + $0x340] sm:$0xff]  ;;  %3473 = vmatprep.subr.bf16.mxu0 %v4633_v27  ;;  %v4760_v34 = vcombine.low %v583_v23, %v587_v24 }
  0xa4   : > { %v451_v30 = vld [vmem:[%s5511_s19 + $0x360] sm:$0xff]  ;;  %3474 = vmatpush2.bf16.msra.mxu0 %v4632_v33  ;;  %v5645_v33 = vld [vmem:[%s5509_s27 + $0x30] sm:$0xff] }
  0xa5   : > { %v575_v31 = vld [vmem:[%s5511_s19 + $0x740] sm:$0xff]  ;;  %v4625_v35 = vcombine.high %v447_v29, %v451_v30  ;;  %3516 = vmatprep.subr.bf16.mxu1 %v4761_v28  ;;  %v4624_v41 = vcombine.low %v447_v29, %v451_v30  ;;  %v5638_v30 = vcombine.low %v5573_v63, %v5576_v0 }
  0xa6   : > { %v579_v32 = vld [vmem:[%s5511_s19 + $0x760] sm:$0xff]  ;;  %3517 = vmatpush2.bf16.msra.mxu1 %v4760_v34  ;;  %v5649_v34 = vcombine.low %v5584_v4, %v5587_v5 }
  0xa7   : > { %v4753_v36 = vcombine.high %v575_v31, %v579_v32  ;;  %v439_v37 = vld [vmem:[%s5511_s19 + $0x300] sm:$0xff]  ;;  %3475 = vmatprep.subr.bf16.mxu0 %v4625_v35  ;;  %v4752_v42 = vcombine.low %v575_v31, %v579_v32  ;;  %v5642_v32 = vld [vmem:[%s5509_s27 + $0x10] sm:$0xff] }
  0xa8   : > { %v443_v38 = vld [vmem:[%s5511_s19 + $0x320] sm:$0xff]  ;;  %3476 = vmatpush2.bf16.msra.mxu0 %v4624_v41  ;;  %v5661_v41 = vcombine.high %v5642_v32, %v5645_v33 }
  0xa9   : > { %v567_v39 = vld [vmem:[%s5511_s19 + $0x700] sm:$0xff]  ;;  %v4617_v43 = vcombine.high %v439_v37, %v443_v38  ;;  %3518 = vmatprep.subr.bf16.mxu1 %v4753_v36  ;;  %v4616_v49 = vcombine.low %v439_v37, %v443_v38  ;;  %v5652_v36 = vld [vmem:[%s5509_s27 + $0x18] sm:$0xff] }
  0xaa   : > { %v571_v40 = vld [vmem:[%s5511_s19 + $0x720] sm:$0xff]  ;;  %3519 = vmatpush2.bf16.msra.mxu1 %v4752_v42  ;;  %v5655_v37 = vld [vmem:[%s5509_s27 + $0x38] sm:$0xff] }
  0xab   : > { %v4745_v44 = vcombine.high %v567_v39, %v571_v40  ;;  %v431_v45 = vld [vmem:[%s5511_s19 + $0x2c0] sm:$0xff]  ;;  %3477 = vmatprep.subr.bf16.mxu0 %v4617_v43  ;;  %v4744_v50 = vcombine.low %v567_v39, %v571_v40  ;;  %v5668_v42 = vcombine.high %v5652_v36, %v5655_v37 }
  0xac   : > { %v435_v46 = vld [vmem:[%s5511_s19 + $0x2e0] sm:$0xff]  ;;  %3478 = vmatpush2.bf16.msra.mxu0 %v4616_v49 }
  0xad   : > { %v559_v47 = vld [vmem:[%s5511_s19 + $0x6c0] sm:$0xff]  ;;  %v4609_v51 = vcombine.high %v431_v45, %v435_v46  ;;  %3520 = vmatprep.subr.bf16.mxu1 %v4745_v44  ;;  %v4608_v57 = vcombine.low %v431_v45, %v435_v46 }
  0xae   : > { %v563_v48 = vld [vmem:[%s5511_s19 + $0x6e0] sm:$0xff]  ;;  %3521 = vmatpush2.bf16.msra.mxu1 %v4744_v50 }
  0xaf   : > { %v4737_v52 = vcombine.high %v559_v47, %v563_v48  ;;  %v423_v53 = vld [vmem:[%s5511_s19 + $0x280] sm:$0xff]  ;;  %3479 = vmatprep.subr.bf16.mxu0 %v4609_v51  ;;  %v4736_v58 = vcombine.low %v559_v47, %v563_v48 }
  0xb0   : > { %v427_v54 = vld [vmem:[%s5511_s19 + $0x2a0] sm:$0xff]  ;;  %3480 = vmatpush2.bf16.msra.mxu0 %v4608_v57 }
  0xb1   : > { %v551_v55 = vld [vmem:[%s5511_s19 + $0x680] sm:$0xff]  ;;  %v4601_v59 = vcombine.high %v423_v53, %v427_v54  ;;  %3522 = vmatprep.subr.bf16.mxu1 %v4737_v52  ;;  %v4600_v6 = vcombine.low %v423_v53, %v427_v54 }
  0xb2   : > { %v555_v56 = vld [vmem:[%s5511_s19 + $0x6a0] sm:$0xff]  ;;  %3523 = vmatpush2.bf16.msra.mxu1 %v4736_v58 }
  0xb3   : > { %v4729_v60 = vcombine.high %v551_v55, %v555_v56  ;;  %v415_v61 = vld [vmem:[%s5511_s19 + $0x240] sm:$0xff]  ;;  %3481 = vmatprep.subr.bf16.mxu0 %v4601_v59  ;;  %v4728_v7 = vcombine.low %v551_v55, %v555_v56 }
  0xb4   : > { %v419_v62 = vld [vmem:[%s5511_s19 + $0x260] sm:$0xff]  ;;  %3482 = vmatpush2.bf16.msra.mxu0 %v4600_v6 }
  0xb5   : > { %v543_v1 = vld [vmem:[%s5511_s19 + $0x640] sm:$0xff]  ;;  %v4593_v9 = vcombine.high %v415_v61, %v419_v62  ;;  %3524 = vmatprep.subr.bf16.mxu1 %v4729_v60  ;;  %v4592_v15 = vcombine.low %v415_v61, %v419_v62 }
  0xb6   : > { %v547_v2 = vld [vmem:[%s5511_s19 + $0x660] sm:$0xff]  ;;  %3525 = vmatpush2.bf16.msra.mxu1 %v4728_v7 }
  0xb7   : > { %v4721_v10 = vcombine.high %v543_v1, %v547_v2  ;;  %v407_v11 = vld [vmem:[%s5511_s19 + $0x200] sm:$0xff]  ;;  %3483 = vmatprep.subr.bf16.mxu0 %v4593_v9  ;;  %v4720_v16 = vcombine.low %v543_v1, %v547_v2 }
  0xb8   : > { %v411_v12 = vld [vmem:[%s5511_s19 + $0x220] sm:$0xff]  ;;  %3484 = vmatpush2.bf16.msra.mxu0 %v4592_v15 }
  0xb9   : > { %v535_v13 = vld [vmem:[%s5511_s19 + $0x600] sm:$0xff]  ;;  %v4585_v17 = vcombine.high %v407_v11, %v411_v12  ;;  %3526 = vmatprep.subr.bf16.mxu1 %v4721_v10  ;;  %v4584_v23 = vcombine.low %v407_v11, %v411_v12 }
  0xba   : > { %v539_v14 = vld [vmem:[%s5511_s19 + $0x620] sm:$0xff]  ;;  %3527 = vmatpush2.bf16.msra.mxu1 %v4720_v16 }
  0xbb   : > { %v4713_v18 = vcombine.high %v535_v13, %v539_v14  ;;  %v655_v19 = vld [vmem:[%s5511_s19 + $0x9c0] sm:$0xff]  ;;  %3485 = vmatprep.subr.bf16.mxu0 %v4585_v17  ;;  %v4712_v24 = vcombine.low %v535_v13, %v539_v14 }
  0xbc   : > { %v659_v20 = vld [vmem:[%s5511_s19 + $0x9e0] sm:$0xff]  ;;  %3486 = vmatpush2.bf16.msra.mxu0 %v4584_v23 }
  0xbd   : > { %v783_v21 = vld [vmem:[%s5511_s19 + $0xdc0] sm:$0xff]  ;;  %v4833_v25 = vcombine.high %v655_v19, %v659_v20  ;;  %3528 = vmatprep.subr.bf16.mxu1 %v4713_v18  ;;  %v4832_v35 = vcombine.low %v655_v19, %v659_v20 }
  0xbe   : > { %v787_v22 = vld [vmem:[%s5511_s19 + $0xde0] sm:$0xff]  ;;  %3529 = vmatpush2.bf16.msra.mxu1 %v4712_v24 }
  0xbf   : > { %v4961_v26 = vcombine.high %v783_v21, %v787_v22  ;;  %v647_v27 = vld [vmem:[%s5511_s19 + $0x980] sm:$0xff]  ;;  %3541 = vmatprep.subr.bf16.mxu0 %v4833_v25  ;;  %v4960_v63 = vcombine.low %v783_v21, %v787_v22  ;;  %3488 = vmatmul.mubr.bf16.vlgmr.msra.gmra.mxu0 %v5638_v30 }
  0xc0   : > { %v651_v28 = vld [vmem:[%s5511_s19 + $0x9a0] sm:$0xff]  ;;  %3542 = vmatpush1.bf16.msra.mxu0 %v4832_v35  ;;  %3573 = vmatprep.mubr.bf16.mxu0 %v5661_v41 }
  0xc1   : > { %v775_v29 = vld [vmem:[%s5511_s19 + $0xd80] sm:$0xff]  ;;  %v4825_v0 = vcombine.high %v647_v27, %v651_v28  ;;  %3584 = vmatprep.subr.bf16.mxu1 %v4961_v26  ;;  %3531 = vmatmul.mubr.bf16.vlgmr.msra.gmra.mxu1 %v5649_v34  ;;  %v4824_v43 = vcombine.low %v647_v27, %v651_v28 }
  0xc2   : > { %v779_v31 = vld [vmem:[%s5511_s19 + $0xda0] sm:$0xff]  ;;  %3585 = vmatpush1.bf16.msra.mxu1 %v4960_v63  ;;  %3616 = vmatprep.mubr.bf16.mxu1 %v5668_v42 }
  0xc3   : > { %v4953_v38 = vcombine.high %v775_v29, %v779_v31  ;;  %v639_v39 = vld [vmem:[%s5511_s19 + $0x940] sm:$0xff]  ;;  %3543 = vmatprep.subr.bf16.mxu0 %v4825_v0  ;;  %v4952_v44 = vcombine.low %v775_v29, %v779_v31 }
  0xc4   : > { %v643_v40 = vld [vmem:[%s5511_s19 + $0x960] sm:$0xff]  ;;  %3544 = vmatpush1.bf16.msra.mxu0 %v4824_v43 }
  0xc5   : > { %v767_v4 = vld [vmem:[%s5511_s19 + $0xd40] sm:$0xff]  ;;  %v4817_v45 = vcombine.high %v639_v39, %v643_v40  ;;  %3586 = vmatprep.subr.bf16.mxu1 %v4953_v38  ;;  %v4816_v51 = vcombine.low %v639_v39, %v643_v40 }
  0xc6   : > { %v771_v5 = vld [vmem:[%s5511_s19 + $0xd60] sm:$0xff]  ;;  %3587 = vmatpush1.bf16.msra.mxu1 %v4952_v44 }
  0xc7   : > { %v4945_v46 = vcombine.high %v767_v4, %v771_v5  ;;  %v631_v47 = vld [vmem:[%s5511_s19 + $0x900] sm:$0xff]  ;;  %3545 = vmatprep.subr.bf16.mxu0 %v4817_v45  ;;  %v4944_v52 = vcombine.low %v767_v4, %v771_v5 }
  0xc8   : > { %v635_v48 = vld [vmem:[%s5511_s19 + $0x920] sm:$0xff]  ;;  %3546 = vmatpush1.bf16.msra.mxu0 %v4816_v51 }
  0xc9   : > { %v759_v49 = vld [vmem:[%s5511_s19 + $0xd00] sm:$0xff]  ;;  %v4809_v53 = vcombine.high %v631_v47, %v635_v48  ;;  %3588 = vmatprep.subr.bf16.mxu1 %v4945_v46  ;;  %v4808_v59 = vcombine.low %v631_v47, %v635_v48 }
  0xca   : > { %v763_v50 = vld [vmem:[%s5511_s19 + $0xd20] sm:$0xff]  ;;  %3589 = vmatpush1.bf16.msra.mxu1 %v4944_v52 }
  0xcb   : > { %v4937_v54 = vcombine.high %v759_v49, %v763_v50  ;;  %v623_v55 = vld [vmem:[%s5511_s19 + $0x8c0] sm:$0xff]  ;;  %3547 = vmatprep.subr.bf16.mxu0 %v4809_v53  ;;  %v4936_v60 = vcombine.low %v759_v49, %v763_v50 }
  0xcc   : > { %v627_v56 = vld [vmem:[%s5511_s19 + $0x8e0] sm:$0xff]  ;;  %3548 = vmatpush1.bf16.msra.mxu0 %v4808_v59 }
  0xcd   : > { %v751_v57 = vld [vmem:[%s5511_s19 + $0xcc0] sm:$0xff]  ;;  %v4801_v61 = vcombine.high %v623_v55, %v627_v56  ;;  %3590 = vmatprep.subr.bf16.mxu1 %v4937_v54  ;;  %v4800_v9 = vcombine.low %v623_v55, %v627_v56 }
  0xce   : > { %v755_v58 = vld [vmem:[%s5511_s19 + $0xce0] sm:$0xff]  ;;  %3591 = vmatpush1.bf16.msra.mxu1 %v4936_v60 }
  0xcf   : > { %v4929_v62 = vcombine.high %v751_v57, %v755_v58  ;;  %v615_v1 = vld [vmem:[%s5511_s19 + $0x880] sm:$0xff]  ;;  %3549 = vmatprep.subr.bf16.mxu0 %v4801_v61  ;;  %v4928_v10 = vcombine.low %v751_v57, %v755_v58 }
  0xd0   : > { %v619_v2 = vld [vmem:[%s5511_s19 + $0x8a0] sm:$0xff]  ;;  %3550 = vmatpush1.bf16.msra.mxu0 %v4800_v9 }
  0xd1   : > { %v743_v6 = vld [vmem:[%s5511_s19 + $0xc80] sm:$0xff]  ;;  %v4793_v11 = vcombine.high %v615_v1, %v619_v2  ;;  %3592 = vmatprep.subr.bf16.mxu1 %v4929_v62  ;;  %v4792_v17 = vcombine.low %v615_v1, %v619_v2 }
  0xd2   : > { %v747_v7 = vld [vmem:[%s5511_s19 + $0xca0] sm:$0xff]  ;;  %3593 = vmatpush1.bf16.msra.mxu1 %v4928_v10 }
  0xd3   : > { %v4921_v12 = vcombine.high %v743_v6, %v747_v7  ;;  %v607_v13 = vld [vmem:[%s5511_s19 + $0x840] sm:$0xff]  ;;  %3551 = vmatprep.subr.bf16.mxu0 %v4793_v11  ;;  %v4920_v18 = vcombine.low %v743_v6, %v747_v7 }
  0xd4   : > { %v611_v14 = vld [vmem:[%s5511_s19 + $0x860] sm:$0xff]  ;;  %3552 = vmatpush1.bf16.msra.mxu0 %v4792_v17 }
  0xd5   : > { %v735_v15 = vld [vmem:[%s5511_s19 + $0xc40] sm:$0xff]  ;;  %v4785_v19 = vcombine.high %v607_v13, %v611_v14  ;;  %3594 = vmatprep.subr.bf16.mxu1 %v4921_v12  ;;  %v4784_v25 = vcombine.low %v607_v13, %v611_v14 }
  0xd6   : > { %v739_v16 = vld [vmem:[%s5511_s19 + $0xc60] sm:$0xff]  ;;  %3595 = vmatpush1.bf16.msra.mxu1 %v4920_v18 }
  0xd7   : > { %v4913_v20 = vcombine.high %v735_v15, %v739_v16  ;;  %v599_v21 = vld [vmem:[%s5511_s19 + $0x800] sm:$0xff]  ;;  %3553 = vmatprep.subr.bf16.mxu0 %v4785_v19  ;;  %v4912_v26 = vcombine.low %v735_v15, %v739_v16 }
  0xd8   : > { %v603_v22 = vld [vmem:[%s5511_s19 + $0x820] sm:$0xff]  ;;  %3554 = vmatpush1.bf16.msra.mxu0 %v4784_v25 }
  0xd9   : > { %v727_v23 = vld [vmem:[%s5511_s19 + $0xc00] sm:$0xff]  ;;  %v4777_v27 = vcombine.high %v599_v21, %v603_v22  ;;  %3596 = vmatprep.subr.bf16.mxu1 %v4913_v20  ;;  %v4776_v0 = vcombine.low %v599_v21, %v603_v22 }
  0xda   : > { %v731_v24 = vld [vmem:[%s5511_s19 + $0xc20] sm:$0xff]  ;;  %3597 = vmatpush1.bf16.msra.mxu1 %v4912_v26 }
  0xdb   : > { %v4905_v28 = vcombine.high %v727_v23, %v731_v24  ;;  %v719_v29 = vld [vmem:[%s5511_s19 + $0xbc0] sm:$0xff]  ;;  %3555 = vmatprep.subr.bf16.mxu0 %v4777_v27  ;;  %v4904_v38 = vcombine.low %v727_v23, %v731_v24 }
  0xdc   : > { %v723_v31 = vld [vmem:[%s5511_s19 + $0xbe0] sm:$0xff]  ;;  %3556 = vmatpush1.bf16.msra.mxu0 %v4776_v0 }
  0xdd   : > { %v847_v35 = vld [vmem:[%s5511_s19 + $0xfc0] sm:$0xff]  ;;  %v4897_v39 = vcombine.high %v719_v29, %v723_v31  ;;  %3598 = vmatprep.subr.bf16.mxu1 %v4905_v28  ;;  %v4896_v45 = vcombine.low %v719_v29, %v723_v31 }
  0xde   : > { %v851_v63 = vld [vmem:[%s5511_s19 + $0xfe0] sm:$0xff]  ;;  %3599 = vmatpush1.bf16.msra.mxu1 %v4904_v38 }
  0xdf   : > { %v5025_v40 = vcombine.high %v847_v35, %v851_v63  ;;  %v711_v4 = vld [vmem:[%s5511_s19 + $0xb80] sm:$0xff]  ;;  %3557 = vmatprep.subr.bf16.mxu0 %v4897_v39  ;;  %v5024_v46 = vcombine.low %v847_v35, %v851_v63 }
  0xe0   : > { %v715_v5 = vld [vmem:[%s5511_s19 + $0xba0] sm:$0xff]  ;;  %3558 = vmatpush2.bf16.msra.mxu0 %v4896_v45  ;;  %v528_v45 = vld [vmem:[%s5511_s19 + $0x5c8] sm:$0xff] }
  0xe1   : > { %v839_v43 = vld [vmem:[%s5511_s19 + $0xf80] sm:$0xff]  ;;  %v4889_v47 = vcombine.high %v711_v4, %v715_v5  ;;  %3600 = vmatprep.subr.bf16.mxu1 %v5025_v40  ;;  %v4888_v53 = vcombine.low %v711_v4, %v715_v5 }
  0xe2   : > { %v843_v44 = vld [vmem:[%s5511_s19 + $0xfa0] sm:$0xff]  ;;  %3601 = vmatpush2.bf16.msra.mxu1 %v5024_v46  ;;  %v532_v46 = vld [vmem:[%s5511_s19 + $0x5e8] sm:$0xff] }
  0xe3   : > { %v5017_v48 = vcombine.high %v839_v43, %v843_v44  ;;  %v703_v49 = vld [vmem:[%s5511_s19 + $0xb40] sm:$0xff]  ;;  %3559 = vmatprep.subr.bf16.mxu0 %v4889_v47  ;;  %v5016_v54 = vcombine.low %v839_v43, %v843_v44  ;;  %v400_v43 = vld [vmem:[%s5511_s19 + $0x1c8] sm:$0xff] }
  0xe4   : > { %v707_v50 = vld [vmem:[%s5511_s19 + $0xb60] sm:$0xff]  ;;  %3560 = vmatpush2.bf16.msra.mxu0 %v4888_v53  ;;  %v404_v44 = vld [vmem:[%s5511_s19 + $0x1e8] sm:$0xff]  ;;  %v5733_v53 = vcombine.low %v5642_v32, %v5645_v33 }
  0xe5   : > { %v831_v51 = vld [vmem:[%s5511_s19 + $0xf40] sm:$0xff]  ;;  %v4881_v55 = vcombine.high %v703_v49, %v707_v50  ;;  %3602 = vmatprep.subr.bf16.mxu1 %v5017_v48  ;;  %v4880_v61 = vcombine.low %v703_v49, %v707_v50  ;;  %v4579_v49 = vcombine.high %v400_v43, %v404_v44  ;;  %v4707_v50 = vcombine.high %v528_v45, %v532_v46  ;;  %v388_v32 = vld [vmem:[%s5511_s19 + $0x168] sm:$0xff] }
  0xe6   : > { %v835_v52 = vld [vmem:[%s5511_s19 + $0xf60] sm:$0xff]  ;;  %3603 = vmatpush2.bf16.msra.mxu1 %v5016_v54  ;;  %v520_v54 = vld [vmem:[%s5511_s19 + $0x588] sm:$0xff] }
  0xe7   : > { %v5009_v56 = vcombine.high %v831_v51, %v835_v52  ;;  %v695_v57 = vld [vmem:[%s5511_s19 + $0xb00] sm:$0xff]  ;;  %3561 = vmatprep.subr.bf16.mxu0 %v4881_v55  ;;  %v5008_v62 = vcombine.low %v831_v51, %v835_v52  ;;  %v392_v51 = vld [vmem:[%s5511_s19 + $0x188] sm:$0xff] }
  0xe8   : > { %v699_v58 = vld [vmem:[%s5511_s19 + $0xb20] sm:$0xff]  ;;  %3562 = vmatpush2.bf16.msra.mxu0 %v4880_v61  ;;  %v396_v52 = vld [vmem:[%s5511_s19 + $0x1a8] sm:$0xff] }
  0xe9   : > { %v823_v59 = vld [vmem:[%s5511_s19 + $0xf00] sm:$0xff]  ;;  %v4873_v1 = vcombine.high %v695_v57, %v699_v58  ;;  %3604 = vmatprep.subr.bf16.mxu1 %v5009_v56  ;;  %v4872_v11 = vcombine.low %v695_v57, %v699_v58  ;;  %v524_v55 = vld [vmem:[%s5511_s19 + $0x5a8] sm:$0xff]  ;;  %v5739_v56 = vcombine.low %v5652_v36, %v5655_v37  ;;  %v4578_v57 = vcombine.low %v400_v43, %v404_v44 }
  0xea   : > { %v827_v60 = vld [vmem:[%s5511_s19 + $0xf20] sm:$0xff]  ;;  %3605 = vmatpush2.bf16.msra.mxu1 %v5008_v62  ;;  %v4706_v58 = vcombine.low %v528_v45, %v532_v46  ;;  %v384_v61 = vld [vmem:[%s5511_s19 + $0x148] sm:$0xff]  ;;  %v4570_v36 = vcombine.low %v392_v51, %v396_v52  ;;  %v4698_v37 = vcombine.low %v520_v54, %v524_v55 }
  0xeb   : > { %v5001_v2 = vcombine.high %v823_v59, %v827_v60  ;;  %v687_v6 = vld [vmem:[%s5511_s19 + $0xac0] sm:$0xff]  ;;  %3563 = vmatprep.subr.bf16.mxu0 %v4873_v1  ;;  %v5000_v12 = vcombine.low %v823_v59, %v827_v60  ;;  %v4571_v59 = vcombine.high %v392_v51, %v396_v52  ;;  %v4699_v60 = vcombine.high %v520_v54, %v524_v55  ;;  %v512_v33 = vld [vmem:[%s5511_s19 + $0x548] sm:$0xff] }
  0xec   : > { %v691_v7 = vld [vmem:[%s5511_s19 + $0xae0] sm:$0xff]  ;;  %3564 = vmatpush2.bf16.msra.mxu0 %v4872_v11  ;;  %v516_v62 = vld [vmem:[%s5511_s19 + $0x568] sm:$0xff]  ;;  %v4563_v1 = vcombine.high %v384_v61, %v388_v32  ;;  %v4562_v11 = vcombine.low %v384_v61, %v388_v32 }
  0xed   : > { %v815_v9 = vld [vmem:[%s5511_s19 + $0xec0] sm:$0xff]  ;;  %v4865_v13 = vcombine.high %v687_v6, %v691_v7  ;;  %3606 = vmatprep.subr.bf16.mxu1 %v5001_v2  ;;  %v4864_v19 = vcombine.low %v687_v6, %v691_v7  ;;  %v4691_v2 = vcombine.high %v512_v33, %v516_v62  ;;  %v376_v6 = vld [vmem:[%s5511_s19 + $0x108] sm:$0xff] }
  0xee   : > { %v819_v10 = vld [vmem:[%s5511_s19 + $0xee0] sm:$0xff]  ;;  %3607 = vmatpush2.bf16.msra.mxu1 %v5000_v12  ;;  %v380_v7 = vld [vmem:[%s5511_s19 + $0x128] sm:$0xff]  ;;  %v4690_v12 = vcombine.low %v512_v33, %v516_v62 }
  0xef   : > { %v4993_v14 = vcombine.high %v815_v9, %v819_v10  ;;  %v679_v15 = vld [vmem:[%s5511_s19 + $0xa80] sm:$0xff]  ;;  %3565 = vmatprep.subr.bf16.mxu0 %v4865_v13  ;;  %v4992_v20 = vcombine.low %v815_v9, %v819_v10  ;;  %v504_v9 = vld [vmem:[%s5511_s19 + $0x508] sm:$0xff]  ;;  %v4555_v13 = vcombine.high %v376_v6, %v380_v7 }
  0xf0   : > { %v683_v16 = vld [vmem:[%s5511_s19 + $0xaa0] sm:$0xff]  ;;  %3566 = vmatpush2.bf16.msra.mxu0 %v4864_v19  ;;  %v508_v10 = vld [vmem:[%s5511_s19 + $0x528] sm:$0xff]  ;;  %v4554_v19 = vcombine.low %v376_v6, %v380_v7 }
  0xf1   : > { %v807_v17 = vld [vmem:[%s5511_s19 + $0xe80] sm:$0xff]  ;;  %v4857_v21 = vcombine.high %v679_v15, %v683_v16  ;;  %3608 = vmatprep.subr.bf16.mxu1 %v4993_v14  ;;  %v4856_v27 = vcombine.low %v679_v15, %v683_v16  ;;  %v4683_v14 = vcombine.high %v504_v9, %v508_v10  ;;  %v368_v15 = vld [vmem:[%s5511_s19 + $0xc8] sm:$0xff] }
  0xf2   : > { %v811_v18 = vld [vmem:[%s5511_s19 + $0xea0] sm:$0xff]  ;;  %3609 = vmatpush2.bf16.msra.mxu1 %v4992_v20  ;;  %v372_v16 = vld [vmem:[%s5511_s19 + $0xe8] sm:$0xff]  ;;  %v4682_v20 = vcombine.low %v504_v9, %v508_v10 }
  0xf3   : > { %v4985_v22 = vcombine.high %v807_v17, %v811_v18  ;;  %v671_v23 = vld [vmem:[%s5511_s19 + $0xa40] sm:$0xff]  ;;  %3567 = vmatprep.subr.bf16.mxu0 %v4857_v21  ;;  %v4984_v28 = vcombine.low %v807_v17, %v811_v18  ;;  %v496_v17 = vld [vmem:[%s5511_s19 + $0x4c8] sm:$0xff]  ;;  %v4547_v21 = vcombine.high %v368_v15, %v372_v16 }
  0xf4   : > { %v675_v24 = vld [vmem:[%s5511_s19 + $0xa60] sm:$0xff]  ;;  %3568 = vmatpush2.bf16.msra.mxu0 %v4856_v27  ;;  %v500_v18 = vld [vmem:[%s5511_s19 + $0x4e8] sm:$0xff]  ;;  %v4546_v27 = vcombine.low %v368_v15, %v372_v16 }
  0xf5   : > { %v799_v25 = vld [vmem:[%s5511_s19 + $0xe40] sm:$0xff]  ;;  %v4849_v29 = vcombine.high %v671_v23, %v675_v24  ;;  %3610 = vmatprep.subr.bf16.mxu1 %v4985_v22  ;;  %v4848_v39 = vcombine.low %v671_v23, %v675_v24  ;;  %v4675_v22 = vcombine.high %v496_v17, %v500_v18  ;;  %v360_v23 = vld [vmem:[%s5511_s19 + $0x88] sm:$0xff] }
  0xf6   : > { %v803_v26 = vld [vmem:[%s5511_s19 + $0xe60] sm:$0xff]  ;;  %3611 = vmatpush2.bf16.msra.mxu1 %v4984_v28  ;;  %v364_v24 = vld [vmem:[%s5511_s19 + $0xa8] sm:$0xff]  ;;  %v4674_v28 = vcombine.low %v496_v17, %v500_v18 }
  0xf7   : > { %v4977_v31 = vcombine.high %v799_v25, %v803_v26  ;;  %v663_v35 = vld [vmem:[%s5511_s19 + $0xa00] sm:$0xff]  ;;  %3569 = vmatprep.subr.bf16.mxu0 %v4849_v29  ;;  %v4976_v40 = vcombine.low %v799_v25, %v803_v26  ;;  %v488_v25 = vld [vmem:[%s5511_s19 + $0x488] sm:$0xff]  ;;  %v4539_v29 = vcombine.high %v360_v23, %v364_v24 }
  0xf8   : > { %v667_v63 = vld [vmem:[%s5511_s19 + $0xa20] sm:$0xff]  ;;  %3570 = vmatpush2.bf16.msra.mxu0 %v4848_v39  ;;  %v492_v26 = vld [vmem:[%s5511_s19 + $0x4a8] sm:$0xff]  ;;  %v4538_v39 = vcombine.low %v360_v23, %v364_v24 }
  0xf9   : > { %v791_v0 = vld [vmem:[%s5511_s19 + $0xe00] sm:$0xff]  ;;  %v4841_v4 = vcombine.high %v663_v35, %v667_v63  ;;  %3612 = vmatprep.subr.bf16.mxu1 %v4977_v31  ;;  %v4840_v47 = vcombine.low %v663_v35, %v667_v63  ;;  %v4667_v31 = vcombine.high %v488_v25, %v492_v26  ;;  %v352_v35 = vld [vmem:[%s5511_s19 + $0x48] sm:$0xff] }
  0xfa   : > { %v795_v38 = vld [vmem:[%s5511_s19 + $0xe20] sm:$0xff]  ;;  %3613 = vmatpush2.bf16.msra.mxu1 %v4976_v40  ;;  %v356_v63 = vld [vmem:[%s5511_s19 + $0x68] sm:$0xff]  ;;  %v4666_v40 = vcombine.low %v488_v25, %v492_v26 }
  0xfb   : > { %v4969_v5 = vcombine.high %v791_v0, %v795_v38  ;;  %3571 = vmatprep.subr.bf16.mxu0 %v4841_v4  ;;  %v4968_v48 = vcombine.low %v791_v0, %v795_v38  ;;  %v480_v0 = vld [vmem:[%s5511_s19 + $0x448] sm:$0xff]  ;;  %v4531_v4 = vcombine.high %v352_v35, %v356_v63 }
  0xfc   : > { %3572 = vmatpush2.bf16.msra.mxu0 %v4840_v47  ;;  %v484_v38 = vld [vmem:[%s5511_s19 + $0x468] sm:$0xff]  ;;  %v4530_v47 = vcombine.low %v352_v35, %v356_v63 }
  0xfd   : > { %3614 = vmatprep.subr.bf16.mxu1 %v4969_v5  ;;  %3627 = vmatprep.subr.bf16.mxu0 %v4579_v49  ;;  %v4659_v5 = vcombine.high %v480_v0, %v484_v38  ;;  %v344_v43 = vld [vmem:[%s5511_s19 + $0x8] sm:$0xff] }
  0xfe   : > { %3615 = vmatpush2.bf16.msra.mxu1 %v4968_v48  ;;  %v348_v44 = vld [vmem:[%s5511_s19 + $0x28] sm:$0xff]  ;;  %v4658_v48 = vcombine.low %v480_v0, %v484_v38 }
  0xff   : > { %3670 = vmatprep.subr.bf16.mxu1 %v4707_v50  ;;  %3574 = vmatmul.mubr.bf16.vlgmr.msra.gmra.mxu0 %v5733_v53  ;;  %v472_v45 = vld [vmem:[%s5511_s19 + $0x408] sm:$0xff]  ;;  %v4523_v49 = vcombine.high %v344_v43, %v348_v44 }
 0x100   : > { %3628 = vmatpush1.bf16.msra.mxu0 %v4578_v57  ;;  %3659 = vmatprep.mubr.bf16.mxu0 %v5581_v3  ;;  %v476_v46 = vld [vmem:[%s5511_s19 + $0x428] sm:$0xff]  ;;  %v4522_v57 = vcombine.low %v344_v43, %v348_v44 }
 0x101   : > { %3617 = vmatmul.mubr.bf16.vlgmr.msra.gmra.mxu1 %v5739_v56  ;;  %3629 = vmatprep.subr.bf16.mxu0 %v4571_v59  ;;  %v4651_v50 = vcombine.high %v472_v45, %v476_v46  ;;  %v464_v51 = vld [vmem:[%s5511_s19 + $0x3c8] sm:$0xff] }
 0x102   : > { %3671 = vmatpush1.bf16.msra.mxu1 %v4706_v58  ;;  %3702 = vmatprep.mubr.bf16.mxu1 %v5593_v8  ;;  %v468_v52 = vld [vmem:[%s5511_s19 + $0x3e8] sm:$0xff]  ;;  %v4650_v58 = vcombine.low %v472_v45, %v476_v46 }
 0x103   : > { %3672 = vmatprep.subr.bf16.mxu1 %v4699_v60  ;;  %v592_v54 = vld [vmem:[%s5511_s19 + $0x7c8] sm:$0xff]  ;;  %v4643_v59 = vcombine.high %v464_v51, %v468_v52 }
 0x104   : > { %3630 = vmatpush1.bf16.msra.mxu0 %v4570_v36  ;;  %v596_v55 = vld [vmem:[%s5511_s19 + $0x7e8] sm:$0xff]  ;;  %v4642_v36 = vcombine.low %v464_v51, %v468_v52 }
 0x105   : > { %3631 = vmatprep.subr.bf16.mxu0 %v4563_v1  ;;  %v4771_v60 = vcombine.high %v592_v54, %v596_v55  ;;  %v456_v61 = vld [vmem:[%s5511_s19 + $0x388] sm:$0xff] }
 0x106   : > { %3673 = vmatpush1.bf16.msra.mxu1 %v4698_v37  ;;  %v460_v32 = vld [vmem:[%s5511_s19 + $0x3a8] sm:$0xff]  ;;  %v4770_v37 = vcombine.low %v592_v54, %v596_v55 }
 0x107   : > { %3674 = vmatprep.subr.bf16.mxu1 %v4691_v2  ;;  %v584_v33 = vld [vmem:[%s5511_s19 + $0x788] sm:$0xff]  ;;  %v4635_v1 = vcombine.high %v456_v61, %v460_v32 }
 0x108   : > { %3632 = vmatpush1.bf16.msra.mxu0 %v4562_v11  ;;  %v588_v62 = vld [vmem:[%s5511_s19 + $0x7a8] sm:$0xff]  ;;  %v4634_v11 = vcombine.low %v456_v61, %v460_v32 }
 0x109   : > { %3633 = vmatprep.subr.bf16.mxu0 %v4555_v13  ;;  %v4763_v2 = vcombine.high %v584_v33, %v588_v62  ;;  %v448_v6 = vld [vmem:[%s5511_s19 + $0x348] sm:$0xff] }
 0x10a   : > { %3675 = vmatpush1.bf16.msra.mxu1 %v4690_v12  ;;  %v452_v7 = vld [vmem:[%s5511_s19 + $0x368] sm:$0xff]  ;;  %v4762_v12 = vcombine.low %v584_v33, %v588_v62 }
 0x10b   : > { %3676 = vmatprep.subr.bf16.mxu1 %v4683_v14  ;;  %v576_v9 = vld [vmem:[%s5511_s19 + $0x748] sm:$0xff]  ;;  %v4627_v13 = vcombine.high %v448_v6, %v452_v7 }
 0x10c   : > { %3634 = vmatpush1.bf16.msra.mxu0 %v4554_v19  ;;  %v580_v10 = vld [vmem:[%s5511_s19 + $0x768] sm:$0xff]  ;;  %v4626_v19 = vcombine.low %v448_v6, %v452_v7 }
 0x10d   : > { %3635 = vmatprep.subr.bf16.mxu0 %v4547_v21  ;;  %v4755_v14 = vcombine.high %v576_v9, %v580_v10  ;;  %v440_v15 = vld [vmem:[%s5511_s19 + $0x308] sm:$0xff] }
 0x10e   : > { %3677 = vmatpush1.bf16.msra.mxu1 %v4682_v20  ;;  %v444_v16 = vld [vmem:[%s5511_s19 + $0x328] sm:$0xff]  ;;  %v4754_v20 = vcombine.low %v576_v9, %v580_v10 }
 0x10f   : > { %3678 = vmatprep.subr.bf16.mxu1 %v4675_v22  ;;  %v568_v17 = vld [vmem:[%s5511_s19 + $0x708] sm:$0xff]  ;;  %v4619_v21 = vcombine.high %v440_v15, %v444_v16 }
 0x110   : > { %3636 = vmatpush1.bf16.msra.mxu0 %v4546_v27  ;;  %v572_v18 = vld [vmem:[%s5511_s19 + $0x728] sm:$0xff]  ;;  %v4618_v27 = vcombine.low %v440_v15, %v444_v16 }
 0x111   : > { %3637 = vmatprep.subr.bf16.mxu0 %v4539_v29  ;;  %v4747_v22 = vcombine.high %v568_v17, %v572_v18  ;;  %v432_v23 = vld [vmem:[%s5511_s19 + $0x2c8] sm:$0xff] }
 0x112   : > { %3679 = vmatpush1.bf16.msra.mxu1 %v4674_v28  ;;  %v436_v24 = vld [vmem:[%s5511_s19 + $0x2e8] sm:$0xff]  ;;  %v4746_v28 = vcombine.low %v568_v17, %v572_v18 }
 0x113   : > { %3680 = vmatprep.subr.bf16.mxu1 %v4667_v31  ;;  %v560_v25 = vld [vmem:[%s5511_s19 + $0x6c8] sm:$0xff]  ;;  %v4611_v29 = vcombine.high %v432_v23, %v436_v24 }
 0x114   : > { %3638 = vmatpush1.bf16.msra.mxu0 %v4538_v39  ;;  %v564_v26 = vld [vmem:[%s5511_s19 + $0x6e8] sm:$0xff]  ;;  %v4610_v39 = vcombine.low %v432_v23, %v436_v24 }
 0x115   : > { %3639 = vmatprep.subr.bf16.mxu0 %v4531_v4  ;;  %v4739_v31 = vcombine.high %v560_v25, %v564_v26  ;;  %v424_v35 = vld [vmem:[%s5511_s19 + $0x288] sm:$0xff] }
 0x116   : > { %3681 = vmatpush1.bf16.msra.mxu1 %v4666_v40  ;;  %v428_v63 = vld [vmem:[%s5511_s19 + $0x2a8] sm:$0xff]  ;;  %v4738_v40 = vcombine.low %v560_v25, %v564_v26 }
 0x117   : > { %3682 = vmatprep.subr.bf16.mxu1 %v4659_v5  ;;  %v552_v0 = vld [vmem:[%s5511_s19 + $0x688] sm:$0xff]  ;;  %v4603_v4 = vcombine.high %v424_v35, %v428_v63 }
 0x118   : > { %3640 = vmatpush1.bf16.msra.mxu0 %v4530_v47  ;;  %v556_v38 = vld [vmem:[%s5511_s19 + $0x6a8] sm:$0xff]  ;;  %v4602_v47 = vcombine.low %v424_v35, %v428_v63 }
 0x119   : > { %3641 = vmatprep.subr.bf16.mxu0 %v4523_v49  ;;  %v4731_v5 = vcombine.high %v552_v0, %v556_v38  ;;  %v416_v43 = vld [vmem:[%s5511_s19 + $0x248] sm:$0xff] }
 0x11a   : > { %3683 = vmatpush1.bf16.msra.mxu1 %v4658_v48  ;;  %v420_v44 = vld [vmem:[%s5511_s19 + $0x268] sm:$0xff]  ;;  %v4730_v48 = vcombine.low %v552_v0, %v556_v38 }
 0x11b   : > { %3684 = vmatprep.subr.bf16.mxu1 %v4651_v50  ;;  %v544_v45 = vld [vmem:[%s5511_s19 + $0x648] sm:$0xff]  ;;  %v4595_v49 = vcombine.high %v416_v43, %v420_v44 }
 0x11c   : > { %3642 = vmatpush1.bf16.msra.mxu0 %v4522_v57  ;;  %v548_v46 = vld [vmem:[%s5511_s19 + $0x668] sm:$0xff]  ;;  %v4594_v57 = vcombine.low %v416_v43, %v420_v44 }
 0x11d   : > { %3643 = vmatprep.subr.bf16.mxu0 %v4643_v59  ;;  %v4723_v50 = vcombine.high %v544_v45, %v548_v46  ;;  %v408_v51 = vld [vmem:[%s5511_s19 + $0x208] sm:$0xff] }
 0x11e   : > { %3685 = vmatpush1.bf16.msra.mxu1 %v4650_v58  ;;  %v412_v52 = vld [vmem:[%s5511_s19 + $0x228] sm:$0xff]  ;;  %v4722_v58 = vcombine.low %v544_v45, %v548_v46 }
 0x11f   : > { %3686 = vmatprep.subr.bf16.mxu1 %v4771_v60  ;;  %v536_v54 = vld [vmem:[%s5511_s19 + $0x608] sm:$0xff]  ;;  %v4587_v59 = vcombine.high %v408_v51, %v412_v52 }
 0x120   : > { %3644 = vmatpush2.bf16.msra.mxu0 %v4642_v36  ;;  %v540_v55 = vld [vmem:[%s5511_s19 + $0x628] sm:$0xff]  ;;  %v4586_v36 = vcombine.low %v408_v51, %v412_v52 }
 0x121   : > { %3645 = vmatprep.subr.bf16.mxu0 %v4635_v1  ;;  %v4715_v60 = vcombine.high %v536_v54, %v540_v55  ;;  %v656_v61 = vld [vmem:[%s5511_s19 + $0x9c8] sm:$0xff] }
 0x122   : > { %3687 = vmatpush2.bf16.msra.mxu1 %v4770_v37  ;;  %v660_v32 = vld [vmem:[%s5511_s19 + $0x9e8] sm:$0xff]  ;;  %v4714_v37 = vcombine.low %v536_v54, %v540_v55 }
 0x123   : > { %3688 = vmatprep.subr.bf16.mxu1 %v4763_v2  ;;  %v784_v33 = vld [vmem:[%s5511_s19 + $0xdc8] sm:$0xff]  ;;  %v4835_v1 = vcombine.high %v656_v61, %v660_v32 }
 0x124   : > { %3646 = vmatpush2.bf16.msra.mxu0 %v4634_v11  ;;  %v788_v62 = vld [vmem:[%s5511_s19 + $0xde8] sm:$0xff]  ;;  %v4834_v11 = vcombine.low %v656_v61, %v660_v32 }
 0x125   : > { %3647 = vmatprep.subr.bf16.mxu0 %v4627_v13  ;;  %v4963_v2 = vcombine.high %v784_v33, %v788_v62  ;;  %v648_v6 = vld [vmem:[%s5511_s19 + $0x988] sm:$0xff] }
 0x126   : > { %3689 = vmatpush2.bf16.msra.mxu1 %v4762_v12  ;;  %v652_v7 = vld [vmem:[%s5511_s19 + $0x9a8] sm:$0xff]  ;;  %v4962_v12 = vcombine.low %v784_v33, %v788_v62 }
 0x127   : > { %3690 = vmatprep.subr.bf16.mxu1 %v4755_v14  ;;  %v776_v9 = vld [vmem:[%s5511_s19 + $0xd88] sm:$0xff]  ;;  %v4827_v13 = vcombine.high %v648_v6, %v652_v7 }
 0x128   : > { %3648 = vmatpush2.bf16.msra.mxu0 %v4626_v19  ;;  %v780_v10 = vld [vmem:[%s5511_s19 + $0xda8] sm:$0xff]  ;;  %v4826_v19 = vcombine.low %v648_v6, %v652_v7 }
 0x129   : > { %3649 = vmatprep.subr.bf16.mxu0 %v4619_v21  ;;  %v4955_v14 = vcombine.high %v776_v9, %v780_v10  ;;  %v640_v15 = vld [vmem:[%s5511_s19 + $0x948] sm:$0xff] }
 0x12a   : > { %3691 = vmatpush2.bf16.msra.mxu1 %v4754_v20  ;;  %v644_v16 = vld [vmem:[%s5511_s19 + $0x968] sm:$0xff]  ;;  %v4954_v20 = vcombine.low %v776_v9, %v780_v10 }
 0x12b   : > { %3692 = vmatprep.subr.bf16.mxu1 %v4747_v22  ;;  %v768_v17 = vld [vmem:[%s5511_s19 + $0xd48] sm:$0xff]  ;;  %v4819_v21 = vcombine.high %v640_v15, %v644_v16 }
 0x12c   : > { %3650 = vmatpush2.bf16.msra.mxu0 %v4618_v27  ;;  %v772_v18 = vld [vmem:[%s5511_s19 + $0xd68] sm:$0xff]  ;;  %v4818_v27 = vcombine.low %v640_v15, %v644_v16 }
 0x12d   : > { %3651 = vmatprep.subr.bf16.mxu0 %v4611_v29  ;;  %v4947_v22 = vcombine.high %v768_v17, %v772_v18  ;;  %v632_v23 = vld [vmem:[%s5511_s19 + $0x908] sm:$0xff] }
 0x12e   : > { %3693 = vmatpush2.bf16.msra.mxu1 %v4746_v28  ;;  %v636_v24 = vld [vmem:[%s5511_s19 + $0x928] sm:$0xff]  ;;  %v4946_v28 = vcombine.low %v768_v17, %v772_v18 }
 0x12f   : > { %3694 = vmatprep.subr.bf16.mxu1 %v4739_v31  ;;  %v760_v25 = vld [vmem:[%s5511_s19 + $0xd08] sm:$0xff]  ;;  %v4811_v29 = vcombine.high %v632_v23, %v636_v24 }
 0x130   : > { %3652 = vmatpush2.bf16.msra.mxu0 %v4610_v39  ;;  %v764_v26 = vld [vmem:[%s5511_s19 + $0xd28] sm:$0xff]  ;;  %v4810_v39 = vcombine.low %v632_v23, %v636_v24 }
 0x131   : > { %3653 = vmatprep.subr.bf16.mxu0 %v4603_v4  ;;  %v4939_v31 = vcombine.high %v760_v25, %v764_v26  ;;  %v624_v35 = vld [vmem:[%s5511_s19 + $0x8c8] sm:$0xff] }
 0x132   : > { %3695 = vmatpush2.bf16.msra.mxu1 %v4738_v40  ;;  %v628_v63 = vld [vmem:[%s5511_s19 + $0x8e8] sm:$0xff]  ;;  %v4938_v40 = vcombine.low %v760_v25, %v764_v26 }
 0x133   : > { %3696 = vmatprep.subr.bf16.mxu1 %v4731_v5  ;;  %v752_v0 = vld [vmem:[%s5511_s19 + $0xcc8] sm:$0xff]  ;;  %v4803_v4 = vcombine.high %v624_v35, %v628_v63 }
 0x134   : > { %3654 = vmatpush2.bf16.msra.mxu0 %v4602_v47  ;;  %v756_v38 = vld [vmem:[%s5511_s19 + $0xce8] sm:$0xff]  ;;  %v4802_v47 = vcombine.low %v624_v35, %v628_v63 }
 0x135   : > { %3655 = vmatprep.subr.bf16.mxu0 %v4595_v49  ;;  %v4931_v5 = vcombine.high %v752_v0, %v756_v38  ;;  %v616_v43 = vld [vmem:[%s5511_s19 + $0x888] sm:$0xff] }
 0x136   : > { %3697 = vmatpush2.bf16.msra.mxu1 %v4730_v48  ;;  %v620_v44 = vld [vmem:[%s5511_s19 + $0x8a8] sm:$0xff]  ;;  %v4930_v48 = vcombine.low %v752_v0, %v756_v38 }
 0x137   : > { %3698 = vmatprep.subr.bf16.mxu1 %v4723_v50  ;;  %v744_v45 = vld [vmem:[%s5511_s19 + $0xc88] sm:$0xff]  ;;  %v4795_v49 = vcombine.high %v616_v43, %v620_v44 }
 0x138   : > { %3656 = vmatpush2.bf16.msra.mxu0 %v4594_v57  ;;  %v748_v46 = vld [vmem:[%s5511_s19 + $0xca8] sm:$0xff]  ;;  %v4794_v57 = vcombine.low %v616_v43, %v620_v44 }
 0x139   : > { %3657 = vmatprep.subr.bf16.mxu0 %v4587_v59  ;;  %v4923_v50 = vcombine.high %v744_v45, %v748_v46  ;;  %v608_v51 = vld [vmem:[%s5511_s19 + $0x848] sm:$0xff] }
 0x13a   : > { %3699 = vmatpush2.bf16.msra.mxu1 %v4722_v58  ;;  %v612_v52 = vld [vmem:[%s5511_s19 + $0x868] sm:$0xff]  ;;  %v4922_v58 = vcombine.low %v744_v45, %v748_v46 }
 0x13b   : > { %3700 = vmatprep.subr.bf16.mxu1 %v4715_v60  ;;  %v736_v54 = vld [vmem:[%s5511_s19 + $0xc48] sm:$0xff]  ;;  %v4787_v59 = vcombine.high %v608_v51, %v612_v52 }
 0x13c   : > { %3658 = vmatpush2.bf16.msra.mxu0 %v4586_v36  ;;  %v740_v55 = vld [vmem:[%s5511_s19 + $0xc68] sm:$0xff]  ;;  %v4786_v36 = vcombine.low %v608_v51, %v612_v52 }
 0x13d   : > { %3713 = vmatprep.subr.bf16.mxu0 %v4835_v1  ;;  %v4915_v60 = vcombine.high %v736_v54, %v740_v55  ;;  %v600_v61 = vld [vmem:[%s5511_s19 + $0x808] sm:$0xff] }
 0x13e   : > { %3701 = vmatpush2.bf16.msra.mxu1 %v4714_v37  ;;  %v604_v32 = vld [vmem:[%s5511_s19 + $0x828] sm:$0xff]  ;;  %v4914_v37 = vcombine.low %v736_v54, %v740_v55 }
 0x13f   : > { %3756 = vmatprep.subr.bf16.mxu1 %v4963_v2  ;;  %3660 = vmatmul.mubr.bf16.vlgmr.msra.gmra.mxu0 %v5638_v30  ;;  %v728_v33 = vld [vmem:[%s5511_s19 + $0xc08] sm:$0xff]  ;;  %v4779_v1 = vcombine.high %v600_v61, %v604_v32 }
 0x140   : > { %3714 = vmatpush1.bf16.msra.mxu0 %v4834_v11  ;;  %3745 = vmatprep.mubr.bf16.mxu0 %v5661_v41  ;;  %v732_v62 = vld [vmem:[%s5511_s19 + $0xc28] sm:$0xff]  ;;  %v4778_v11 = vcombine.low %v600_v61, %v604_v32 }
 0x141   : > { %3703 = vmatmul.mubr.bf16.vlgmr.msra.gmra.mxu1 %v5649_v34  ;;  %3715 = vmatprep.subr.bf16.mxu0 %v4827_v13  ;;  %v4907_v2 = vcombine.high %v728_v33, %v732_v62  ;;  %v720_v6 = vld [vmem:[%s5511_s19 + $0xbc8] sm:$0xff] }
 0x142   : > { %3757 = vmatpush1.bf16.msra.mxu1 %v4962_v12  ;;  %3788 = vmatprep.mubr.bf16.mxu1 %v5668_v42  ;;  %v724_v7 = vld [vmem:[%s5511_s19 + $0xbe8] sm:$0xff]  ;;  %v4906_v12 = vcombine.low %v728_v33, %v732_v62 }
 0x143   : > { %3758 = vmatprep.subr.bf16.mxu1 %v4955_v14  ;;  %v848_v9 = vld [vmem:[%s5511_s19 + $0xfc8] sm:$0xff]  ;;  %v4899_v13 = vcombine.high %v720_v6, %v724_v7 }
 0x144   : > { %3716 = vmatpush1.bf16.msra.mxu0 %v4826_v19  ;;  %v852_v10 = vld [vmem:[%s5511_s19 + $0xfe8] sm:$0xff]  ;;  %v4898_v19 = vcombine.low %v720_v6, %v724_v7 }
 0x145   : > { %3717 = vmatprep.subr.bf16.mxu0 %v4819_v21  ;;  %v5027_v14 = vcombine.high %v848_v9, %v852_v10  ;;  %v712_v15 = vld [vmem:[%s5511_s19 + $0xb88] sm:$0xff] }
 0x146   : > { %3759 = vmatpush1.bf16.msra.mxu1 %v4954_v20  ;;  %v716_v16 = vld [vmem:[%s5511_s19 + $0xba8] sm:$0xff]  ;;  %v5026_v20 = vcombine.low %v848_v9, %v852_v10 }
 0x147   : > { %3760 = vmatprep.subr.bf16.mxu1 %v4947_v22  ;;  %v840_v17 = vld [vmem:[%s5511_s19 + $0xf88] sm:$0xff]  ;;  %v4891_v21 = vcombine.high %v712_v15, %v716_v16 }
 0x148   : > { %3718 = vmatpush1.bf16.msra.mxu0 %v4818_v27  ;;  %v844_v18 = vld [vmem:[%s5511_s19 + $0xfa8] sm:$0xff]  ;;  %v4890_v27 = vcombine.low %v712_v15, %v716_v16  ;;  %v401_v15 = vld [vmem:[%s5511_s19 + $0x1d0] sm:$0xff] }
 0x149   : > { %3719 = vmatprep.subr.bf16.mxu0 %v4811_v29  ;;  %v5019_v22 = vcombine.high %v840_v17, %v844_v18  ;;  %v704_v23 = vld [vmem:[%s5511_s19 + $0xb48] sm:$0xff]  ;;  %v405_v16 = vld [vmem:[%s5511_s19 + $0x1f0] sm:$0xff] }
 0x14a   : > { %3761 = vmatpush1.bf16.msra.mxu1 %v4946_v28  ;;  %v708_v24 = vld [vmem:[%s5511_s19 + $0xb68] sm:$0xff]  ;;  %v5018_v28 = vcombine.low %v840_v17, %v844_v18  ;;  %v529_v17 = vld [vmem:[%s5511_s19 + $0x5d0] sm:$0xff] }
 0x14b   : > { %3762 = vmatprep.subr.bf16.mxu1 %v4939_v31  ;;  %v832_v25 = vld [vmem:[%s5511_s19 + $0xf48] sm:$0xff]  ;;  %v4883_v29 = vcombine.high %v704_v23, %v708_v24  ;;  %v533_v18 = vld [vmem:[%s5511_s19 + $0x5f0] sm:$0xff] }
 0x14c   : > { %3720 = vmatpush1.bf16.msra.mxu0 %v4810_v39  ;;  %v836_v26 = vld [vmem:[%s5511_s19 + $0xf68] sm:$0xff]  ;;  %v4882_v39 = vcombine.low %v704_v23, %v708_v24  ;;  %v393_v23 = vld [vmem:[%s5511_s19 + $0x190] sm:$0xff] }
 0x14d   : > { %3721 = vmatprep.subr.bf16.mxu0 %v4803_v4  ;;  %v5011_v31 = vcombine.high %v832_v25, %v836_v26  ;;  %v696_v35 = vld [vmem:[%s5511_s19 + $0xb08] sm:$0xff]  ;;  %v397_v24 = vld [vmem:[%s5511_s19 + $0x1b0] sm:$0xff] }
 0x14e   : > { %3763 = vmatpush1.bf16.msra.mxu1 %v4938_v40  ;;  %v700_v63 = vld [vmem:[%s5511_s19 + $0xb28] sm:$0xff]  ;;  %v5010_v40 = vcombine.low %v832_v25, %v836_v26  ;;  %v521_v25 = vld [vmem:[%s5511_s19 + $0x590] sm:$0xff] }
 0x14f   : > { %3764 = vmatprep.subr.bf16.mxu1 %v4931_v5  ;;  %v824_v0 = vld [vmem:[%s5511_s19 + $0xf08] sm:$0xff]  ;;  %v4875_v4 = vcombine.high %v696_v35, %v700_v63  ;;  %v525_v26 = vld [vmem:[%s5511_s19 + $0x5b0] sm:$0xff] }
 0x150   : > { %3722 = vmatpush1.bf16.msra.mxu0 %v4802_v47  ;;  %v828_v38 = vld [vmem:[%s5511_s19 + $0xf28] sm:$0xff]  ;;  %v4874_v47 = vcombine.low %v696_v35, %v700_v63  ;;  %v385_v35 = vld [vmem:[%s5511_s19 + $0x150] sm:$0xff] }
 0x151   : > { %3723 = vmatprep.subr.bf16.mxu0 %v4795_v49  ;;  %v5003_v5 = vcombine.high %v824_v0, %v828_v38  ;;  %v688_v43 = vld [vmem:[%s5511_s19 + $0xac8] sm:$0xff]  ;;  %v389_v63 = vld [vmem:[%s5511_s19 + $0x170] sm:$0xff] }
 0x152   : > { %3765 = vmatpush1.bf16.msra.mxu1 %v4930_v48  ;;  %v692_v44 = vld [vmem:[%s5511_s19 + $0xae8] sm:$0xff]  ;;  %v5002_v48 = vcombine.low %v824_v0, %v828_v38  ;;  %v513_v0 = vld [vmem:[%s5511_s19 + $0x550] sm:$0xff] }
 0x153   : > { %3766 = vmatprep.subr.bf16.mxu1 %v4923_v50  ;;  %v816_v45 = vld [vmem:[%s5511_s19 + $0xec8] sm:$0xff]  ;;  %v4867_v49 = vcombine.high %v688_v43, %v692_v44  ;;  %v517_v38 = vld [vmem:[%s5511_s19 + $0x570] sm:$0xff] }
 0x154   : > { %3724 = vmatpush1.bf16.msra.mxu0 %v4794_v57  ;;  %v820_v46 = vld [vmem:[%s5511_s19 + $0xee8] sm:$0xff]  ;;  %v4866_v57 = vcombine.low %v688_v43, %v692_v44  ;;  %v377_v43 = vld [vmem:[%s5511_s19 + $0x110] sm:$0xff] }
 0x155   : > { %3725 = vmatprep.subr.bf16.mxu0 %v4787_v59  ;;  %v4995_v50 = vcombine.high %v816_v45, %v820_v46  ;;  %v680_v51 = vld [vmem:[%s5511_s19 + $0xa88] sm:$0xff]  ;;  %v381_v44 = vld [vmem:[%s5511_s19 + $0x130] sm:$0xff] }
 0x156   : > { %3767 = vmatpush1.bf16.msra.mxu1 %v4922_v58  ;;  %v684_v52 = vld [vmem:[%s5511_s19 + $0xaa8] sm:$0xff]  ;;  %v4994_v58 = vcombine.low %v816_v45, %v820_v46  ;;  %v505_v45 = vld [vmem:[%s5511_s19 + $0x510] sm:$0xff] }
 0x157   : > { %3768 = vmatprep.subr.bf16.mxu1 %v4915_v60  ;;  %v808_v54 = vld [vmem:[%s5511_s19 + $0xe88] sm:$0xff]  ;;  %v4859_v59 = vcombine.high %v680_v51, %v684_v52  ;;  %v509_v46 = vld [vmem:[%s5511_s19 + $0x530] sm:$0xff] }
 0x158   : > { %3726 = vmatpush1.bf16.msra.mxu0 %v4786_v36  ;;  %v812_v55 = vld [vmem:[%s5511_s19 + $0xea8] sm:$0xff]  ;;  %v4858_v36 = vcombine.low %v680_v51, %v684_v52  ;;  %v369_v51 = vld [vmem:[%s5511_s19 + $0xd0] sm:$0xff] }
 0x159   : > { %3727 = vmatprep.subr.bf16.mxu0 %v4779_v1  ;;  %v4987_v60 = vcombine.high %v808_v54, %v812_v55  ;;  %v672_v61 = vld [vmem:[%s5511_s19 + $0xa48] sm:$0xff]  ;;  %v373_v52 = vld [vmem:[%s5511_s19 + $0xf0] sm:$0xff] }
 0x15a   : > { %3769 = vmatpush1.bf16.msra.mxu1 %v4914_v37  ;;  %v676_v32 = vld [vmem:[%s5511_s19 + $0xa68] sm:$0xff]  ;;  %v4986_v37 = vcombine.low %v808_v54, %v812_v55  ;;  %v497_v54 = vld [vmem:[%s5511_s19 + $0x4d0] sm:$0xff] }
 0x15b   : > { %3770 = vmatprep.subr.bf16.mxu1 %v4907_v2  ;;  %v800_v33 = vld [vmem:[%s5511_s19 + $0xe48] sm:$0xff]  ;;  %v4851_v1 = vcombine.high %v672_v61, %v676_v32  ;;  %v501_v55 = vld [vmem:[%s5511_s19 + $0x4f0] sm:$0xff] }
 0x15c   : > { %3728 = vmatpush1.bf16.msra.mxu0 %v4778_v11  ;;  %v804_v62 = vld [vmem:[%s5511_s19 + $0xe68] sm:$0xff]  ;;  %v4850_v11 = vcombine.low %v672_v61, %v676_v32  ;;  %v361_v61 = vld [vmem:[%s5511_s19 + $0x90] sm:$0xff] }
 0x15d   : > { %3729 = vmatprep.subr.bf16.mxu0 %v4899_v13  ;;  %v4979_v2 = vcombine.high %v800_v33, %v804_v62  ;;  %v664_v6 = vld [vmem:[%s5511_s19 + $0xa08] sm:$0xff]  ;;  %v365_v32 = vld [vmem:[%s5511_s19 + $0xb0] sm:$0xff] }
 0x15e   : > { %3771 = vmatpush1.bf16.msra.mxu1 %v4906_v12  ;;  %v668_v7 = vld [vmem:[%s5511_s19 + $0xa28] sm:$0xff]  ;;  %v4978_v12 = vcombine.low %v800_v33, %v804_v62  ;;  %v489_v33 = vld [vmem:[%s5511_s19 + $0x490] sm:$0xff] }
 0x15f   : > { %3772 = vmatprep.subr.bf16.mxu1 %v5027_v14  ;;  %v792_v9 = vld [vmem:[%s5511_s19 + $0xe08] sm:$0xff]  ;;  %v4843_v13 = vcombine.high %v664_v6, %v668_v7  ;;  %v493_v62 = vld [vmem:[%s5511_s19 + $0x4b0] sm:$0xff] }
 0x160   : > { %3730 = vmatpush2.bf16.msra.mxu0 %v4898_v19  ;;  %v796_v10 = vld [vmem:[%s5511_s19 + $0xe28] sm:$0xff]  ;;  %v4842_v19 = vcombine.low %v664_v6, %v668_v7  ;;  %v353_v6 = vld [vmem:[%s5511_s19 + $0x50] sm:$0xff] }
 0x161   : > { %3731 = vmatprep.subr.bf16.mxu0 %v4891_v21  ;;  %v4971_v14 = vcombine.high %v792_v9, %v796_v10  ;;  %v4581_v21 = vcombine.high %v401_v15, %v405_v16  ;;  %v357_v7 = vld [vmem:[%s5511_s19 + $0x70] sm:$0xff] }
 0x162   : > { %3773 = vmatpush2.bf16.msra.mxu1 %v5026_v20  ;;  %v4970_v20 = vcombine.low %v792_v9, %v796_v10  ;;  %v481_v9 = vld [vmem:[%s5511_s19 + $0x450] sm:$0xff] }
 0x163   : > { %3774 = vmatprep.subr.bf16.mxu1 %v5019_v22  ;;  %v4709_v22 = vcombine.high %v529_v17, %v533_v18  ;;  %v485_v10 = vld [vmem:[%s5511_s19 + $0x470] sm:$0xff] }
 0x164   : > { %3732 = vmatpush2.bf16.msra.mxu0 %v4890_v27  ;;  %v4580_v27 = vcombine.low %v401_v15, %v405_v16  ;;  %v345_v15 = vld [vmem:[%s5511_s19 + $0x10] sm:$0xff] }
 0x165   : > { %3733 = vmatprep.subr.bf16.mxu0 %v4883_v29  ;;  %v4573_v29 = vcombine.high %v393_v23, %v397_v24  ;;  %v349_v16 = vld [vmem:[%s5511_s19 + $0x30] sm:$0xff] }
 0x166   : > { %3775 = vmatpush2.bf16.msra.mxu1 %v5018_v28  ;;  %v4708_v28 = vcombine.low %v529_v17, %v533_v18  ;;  %v473_v17 = vld [vmem:[%s5511_s19 + $0x410] sm:$0xff] }
 0x167   : > { %3776 = vmatprep.subr.bf16.mxu1 %v5011_v31  ;;  %v4701_v31 = vcombine.high %v521_v25, %v525_v26  ;;  %v477_v18 = vld [vmem:[%s5511_s19 + $0x430] sm:$0xff] }
 0x168   : > { %3734 = vmatpush2.bf16.msra.mxu0 %v4882_v39  ;;  %v4572_v39 = vcombine.low %v393_v23, %v397_v24  ;;  %v465_v23 = vld [vmem:[%s5511_s19 + $0x3d0] sm:$0xff] }
 0x169   : > { %3735 = vmatprep.subr.bf16.mxu0 %v4875_v4  ;;  %v4565_v4 = vcombine.high %v385_v35, %v389_v63  ;;  %v469_v24 = vld [vmem:[%s5511_s19 + $0x3f0] sm:$0xff] }
 0x16a   : > { %3777 = vmatpush2.bf16.msra.mxu1 %v5010_v40  ;;  %v4700_v40 = vcombine.low %v521_v25, %v525_v26  ;;  %v593_v25 = vld [vmem:[%s5511_s19 + $0x7d0] sm:$0xff] }
 0x16b   : > { %3778 = vmatprep.subr.bf16.mxu1 %v5003_v5  ;;  %v4693_v5 = vcombine.high %v513_v0, %v517_v38  ;;  %v597_v26 = vld [vmem:[%s5511_s19 + $0x7f0] sm:$0xff] }
 0x16c   : > { %3736 = vmatpush2.bf16.msra.mxu0 %v4874_v47  ;;  %v4564_v47 = vcombine.low %v385_v35, %v389_v63  ;;  %v457_v35 = vld [vmem:[%s5511_s19 + $0x390] sm:$0xff] }
 0x16d   : > { %3737 = vmatprep.subr.bf16.mxu0 %v4867_v49  ;;  %v4557_v49 = vcombine.high %v377_v43, %v381_v44  ;;  %v461_v63 = vld [vmem:[%s5511_s19 + $0x3b0] sm:$0xff] }
 0x16e   : > { %3779 = vmatpush2.bf16.msra.mxu1 %v5002_v48  ;;  %v4692_v48 = vcombine.low %v513_v0, %v517_v38  ;;  %v585_v0 = vld [vmem:[%s5511_s19 + $0x790] sm:$0xff] }
 0x16f   : > { %3780 = vmatprep.subr.bf16.mxu1 %v4995_v50  ;;  %v4685_v50 = vcombine.high %v505_v45, %v509_v46  ;;  %v589_v38 = vld [vmem:[%s5511_s19 + $0x7b0] sm:$0xff] }
 0x170   : > { %3738 = vmatpush2.bf16.msra.mxu0 %v4866_v57  ;;  %v4556_v57 = vcombine.low %v377_v43, %v381_v44  ;;  %v449_v43 = vld [vmem:[%s5511_s19 + $0x350] sm:$0xff] }
 0x171   : > { %3739 = vmatprep.subr.bf16.mxu0 %v4859_v59  ;;  %v4549_v59 = vcombine.high %v369_v51, %v373_v52  ;;  %v453_v44 = vld [vmem:[%s5511_s19 + $0x370] sm:$0xff] }
 0x172   : > { %3781 = vmatpush2.bf16.msra.mxu1 %v4994_v58  ;;  %v4684_v58 = vcombine.low %v505_v45, %v509_v46  ;;  %v577_v45 = vld [vmem:[%s5511_s19 + $0x750] sm:$0xff] }
 0x173   : > { %3782 = vmatprep.subr.bf16.mxu1 %v4987_v60  ;;  %v4677_v60 = vcombine.high %v497_v54, %v501_v55  ;;  %v581_v46 = vld [vmem:[%s5511_s19 + $0x770] sm:$0xff] }
 0x174   : > { %3740 = vmatpush2.bf16.msra.mxu0 %v4858_v36  ;;  %v4548_v36 = vcombine.low %v369_v51, %v373_v52  ;;  %v441_v51 = vld [vmem:[%s5511_s19 + $0x310] sm:$0xff] }
 0x175   : > { %3741 = vmatprep.subr.bf16.mxu0 %v4851_v1  ;;  %v4541_v1 = vcombine.high %v361_v61, %v365_v32  ;;  %v445_v52 = vld [vmem:[%s5511_s19 + $0x330] sm:$0xff] }
 0x176   : > { %3783 = vmatpush2.bf16.msra.mxu1 %v4986_v37  ;;  %v4676_v37 = vcombine.low %v497_v54, %v501_v55  ;;  %v569_v54 = vld [vmem:[%s5511_s19 + $0x710] sm:$0xff] }
 0x177   : > { %3784 = vmatprep.subr.bf16.mxu1 %v4979_v2  ;;  %v4669_v2 = vcombine.high %v489_v33, %v493_v62  ;;  %v573_v55 = vld [vmem:[%s5511_s19 + $0x730] sm:$0xff] }
 0x178   : > { %3742 = vmatpush2.bf16.msra.mxu0 %v4850_v11  ;;  %v4540_v11 = vcombine.low %v361_v61, %v365_v32  ;;  %v433_v61 = vld [vmem:[%s5511_s19 + $0x2d0] sm:$0xff] }
 0x179   : > { %3743 = vmatprep.subr.bf16.mxu0 %v4843_v13  ;;  %v4533_v13 = vcombine.high %v353_v6, %v357_v7  ;;  %v437_v32 = vld [vmem:[%s5511_s19 + $0x2f0] sm:$0xff] }
 0x17a   : > { %3785 = vmatpush2.bf16.msra.mxu1 %v4978_v12  ;;  %v4668_v12 = vcombine.low %v489_v33, %v493_v62  ;;  %v561_v33 = vld [vmem:[%s5511_s19 + $0x6d0] sm:$0xff] }
 0x17b   : > { %3786 = vmatprep.subr.bf16.mxu1 %v4971_v14  ;;  %v4661_v14 = vcombine.high %v481_v9, %v485_v10  ;;  %v565_v62 = vld [vmem:[%s5511_s19 + $0x6f0] sm:$0xff] }
 0x17c   : > { %3744 = vmatpush2.bf16.msra.mxu0 %v4842_v19  ;;  %v4532_v19 = vcombine.low %v353_v6, %v357_v7  ;;  %v425_v6 = vld [vmem:[%s5511_s19 + $0x290] sm:$0xff] }
 0x17d   : > { %3799 = vmatprep.subr.bf16.mxu0 %v4581_v21  ;;  %v4525_v21 = vcombine.high %v345_v15, %v349_v16  ;;  %v429_v7 = vld [vmem:[%s5511_s19 + $0x2b0] sm:$0xff] }
 0x17e   : > { %3787 = vmatpush2.bf16.msra.mxu1 %v4970_v20  ;;  %v4660_v20 = vcombine.low %v481_v9, %v485_v10  ;;  %v553_v9 = vld [vmem:[%s5511_s19 + $0x690] sm:$0xff] }
 0x17f   : > { %3842 = vmatprep.subr.bf16.mxu1 %v4709_v22  ;;  %3746 = vmatmul.mubr.bf16.vlgmr.msra.gmra.mxu0 %v5733_v53  ;;  %v4653_v22 = vcombine.high %v473_v17, %v477_v18  ;;  %v557_v10 = vld [vmem:[%s5511_s19 + $0x6b0] sm:$0xff] }
 0x180   : > { %3800 = vmatpush1.bf16.msra.mxu0 %v4580_v27  ;;  %3831 = vmatprep.mubr.bf16.mxu0 %v5581_v3  ;;  %v4524_v27 = vcombine.low %v345_v15, %v349_v16  ;;  %v417_v15 = vld [vmem:[%s5511_s19 + $0x250] sm:$0xff] }
 0x181   : > { %3789 = vmatmul.mubr.bf16.vlgmr.msra.gmra.mxu1 %v5739_v56  ;;  %3801 = vmatprep.subr.bf16.mxu0 %v4573_v29  ;;  %v4645_v29 = vcombine.high %v465_v23, %v469_v24  ;;  %v421_v16 = vld [vmem:[%s5511_s19 + $0x270] sm:$0xff] }
 0x182   : > { %3843 = vmatpush1.bf16.msra.mxu1 %v4708_v28  ;;  %3874 = vmatprep.mubr.bf16.mxu1 %v5593_v8  ;;  %v4652_v28 = vcombine.low %v473_v17, %v477_v18  ;;  %v545_v17 = vld [vmem:[%s5511_s19 + $0x650] sm:$0xff] }
 0x183   : > { %3844 = vmatprep.subr.bf16.mxu1 %v4701_v31  ;;  %v4773_v31 = vcombine.high %v593_v25, %v597_v26  ;;  %v549_v18 = vld [vmem:[%s5511_s19 + $0x670] sm:$0xff] }
 0x184   : > { %3802 = vmatpush1.bf16.msra.mxu0 %v4572_v39  ;;  %v4644_v39 = vcombine.low %v465_v23, %v469_v24  ;;  %v3532_v23 = vpop.f32.mrf.mxu1  ;;  %v4725_v24 = vcombine.high %v545_v17, %v549_v18 }
 0x185   : > { %3803 = vmatprep.subr.bf16.mxu0 %v4565_v4  ;;  %v4637_v4 = vcombine.high %v457_v35, %v461_v63 }
 0x186   : > { %3845 = vmatpush1.bf16.msra.mxu1 %v4700_v40  ;;  %v4772_v40 = vcombine.low %v593_v25, %v597_v26  ;;  %v409_v25 = vld [vmem:[%s5511_s19 + $0x210] sm:$0xff] }
 0x187   : > { %3846 = vmatprep.subr.bf16.mxu1 %v4693_v5  ;;  %v4765_v5 = vcombine.high %v585_v0, %v589_v38  ;;  %v413_v26 = vld [vmem:[%s5511_s19 + $0x230] sm:$0xff] }
 0x188   : > { %3804 = vmatpush1.bf16.msra.mxu0 %v4564_v47  ;;  %v4636_v47 = vcombine.low %v457_v35, %v461_v63  ;;  %v4724_v35 = vcombine.low %v545_v17, %v549_v18  ;;  %v4589_v63 = vcombine.high %v409_v25, %v413_v26  ;;  %v633_v18 = vld [vmem:[%s5511_s19 + $0x910] sm:$0xff] }
 0x189   : > { %3805 = vmatprep.subr.bf16.mxu0 %v4557_v49  ;;  %v4629_v49 = vcombine.high %v449_v43, %v453_v44 }
 0x18a   : > { %3847 = vmatpush1.bf16.msra.mxu1 %v4692_v48  ;;  %v4764_v48 = vcombine.low %v585_v0, %v589_v38  ;;  %v3534_v0 = vpop.f32.mrf.mxu1 }
 0x18b   : > { %3848 = vmatprep.subr.bf16.mxu1 %v4685_v50  ;;  %v4757_v50 = vcombine.high %v577_v45, %v581_v46 }
 0x18c   : > { %3806 = vmatpush1.bf16.msra.mxu0 %v4556_v57  ;;  %v4628_v57 = vcombine.low %v449_v43, %v453_v44  ;;  %v4588_v43 = vcombine.low %v409_v25, %v413_v26 }
 0x18d   : > { %3807 = vmatprep.subr.bf16.mxu0 %v4549_v59  ;;  %v4621_v59 = vcombine.high %v441_v51, %v445_v52 }
 0x18e   : > { %3849 = vmatpush1.bf16.msra.mxu1 %v4684_v58  ;;  %v4756_v58 = vcombine.low %v577_v45, %v581_v46 }
 0x18f   : > { %3850 = vmatprep.subr.bf16.mxu1 %v4677_v60  ;;  %v4749_v60 = vcombine.high %v569_v54, %v573_v55 }
 0x190   : > { %3808 = vmatpush1.bf16.msra.mxu0 %v4548_v36  ;;  %v4620_v36 = vcombine.low %v441_v51, %v445_v52  ;;  %v777_v51 = vld [vmem:[%s5511_s19 + $0xd90] sm:$0xff] }
 0x191   : > { %3809 = vmatprep.subr.bf16.mxu0 %v4541_v1  ;;  %v4613_v1 = vcombine.high %v433_v61, %v437_v32  ;;  %v781_v52 = vld [vmem:[%s5511_s19 + $0xdb0] sm:$0xff] }
 0x192   : > { %3851 = vmatpush1.bf16.msra.mxu1 %v4676_v37  ;;  %v4748_v37 = vcombine.low %v569_v54, %v573_v55 }
 0x193   : > { %3852 = vmatprep.subr.bf16.mxu1 %v4669_v2  ;;  %v4741_v2 = vcombine.high %v561_v33, %v565_v62 }
 0x194   : > { %3810 = vmatpush1.bf16.msra.mxu0 %v4540_v11  ;;  %v4612_v11 = vcombine.low %v433_v61, %v437_v32  ;;  %v4957_v32 = vcombine.high %v777_v51, %v781_v52 }
 0x195   : > { %3811 = vmatprep.subr.bf16.mxu0 %v4533_v13  ;;  %v4605_v13 = vcombine.high %v425_v6, %v429_v7 }
 0x196   : > { %3853 = vmatpush1.bf16.msra.mxu1 %v4668_v12  ;;  %v4740_v12 = vcombine.low %v561_v33, %v565_v62  ;;  %v645_v33 = vld [vmem:[%s5511_s19 + $0x970] sm:$0xff] }
 0x197   : > { %3854 = vmatprep.subr.bf16.mxu1 %v4661_v14  ;;  %v4733_v14 = vcombine.high %v553_v9, %v557_v10  ;;  %v769_v62 = vld [vmem:[%s5511_s19 + $0xd50] sm:$0xff] }
 0x198   : > { %3812 = vmatpush1.bf16.msra.mxu0 %v4532_v19  ;;  %v4604_v19 = vcombine.low %v425_v6, %v429_v7 }
 0x199   : > { %3813 = vmatprep.subr.bf16.mxu0 %v4525_v21  ;;  %v4732_v21 = vcombine.low %v553_v9, %v557_v10  ;;  %v319_v9 = vld [vmem:[%s5524_s25] sm:$0xff] }
 0x19a   : > { %3855 = vmatpush1.bf16.msra.mxu1 %v4660_v20  ;;  %v3489_v20 = vpop.f32.mrf.mxu0 }
 0x19b   : > { %3856 = vmatprep.subr.bf16.mxu1 %v4653_v22  ;;  %v4597_v22 = vcombine.high %v417_v15, %v421_v16 }
 0x19c   : > { %3814 = vmatpush1.bf16.msra.mxu0 %v4524_v27  ;;  %v537_v27 = vld [vmem:[%s5511_s19 + $0x610] sm:$0xff] }
 0x19d   : > { %3815 = vmatprep.subr.bf16.mxu0 %v4645_v29  ;;  %v4596_v29 = vcombine.low %v417_v15, %v421_v16 }
 0x19e   : > { %3857 = vmatpush1.bf16.msra.mxu1 %v4652_v28  ;;  %v541_v28 = vld [vmem:[%s5511_s19 + $0x630] sm:$0xff] }
 0x19f   : > { %3858 = vmatprep.subr.bf16.mxu1 %v4773_v31  ;;  %v3491_v31 = vpop.f32.mrf.mxu0  ;;  %v4717_v38 = vcombine.high %v537_v27, %v541_v28  ;;  %v4716_v45 = vcombine.low %v537_v27, %v541_v28 }
 0x1a0   : > { %3816 = vmatpush2.bf16.msra.mxu0 %v4644_v39  ;;  %v657_v39 = vld [vmem:[%s5511_s19 + $0x9d0] sm:$0xff] }
 0x1a1   : > { %3817 = vmatprep.subr.bf16.mxu0 %v4637_v4  ;;  %v785_v4 = vld [vmem:[%s5511_s19 + $0xdd0] sm:$0xff]  ;;  %v3493_v44 = vpop.f32.mrf.mxu0 }
 0x1a2   : > { %3859 = vmatpush2.bf16.msra.mxu1 %v4772_v40  ;;  %v661_v40 = vld [vmem:[%s5511_s19 + $0x9f0] sm:$0xff] }
 0x1a3   : > { %3860 = vmatprep.subr.bf16.mxu1 %v4765_v5  ;;  %v789_v5 = vld [vmem:[%s5511_s19 + $0xdf0] sm:$0xff]  ;;  %v4837_v46 = vcombine.high %v657_v39, %v661_v40  ;;  %v4836_v54 = vcombine.low %v657_v39, %v661_v40  ;;  %v3495_v55 = vpop.f32.mrf.mxu0 }
 0x1a4   : > { %3818 = vmatpush2.bf16.msra.mxu0 %v4636_v47  ;;  %v3536_v47 = vpop.f32.mrf.mxu1 }
 0x1a5   : > { %3819 = vmatprep.subr.bf16.mxu0 %v4629_v49  ;;  %v649_v49 = vld [vmem:[%s5511_s19 + $0x990] sm:$0xff] }
 0x1a6   : > { %3861 = vmatpush2.bf16.msra.mxu1 %v4764_v48  ;;  %v4965_v48 = vcombine.high %v785_v4, %v789_v5  ;;  %v3538_v61 = vpop.f32.mrf.mxu1 }
 0x1a7   : > { %3862 = vmatprep.subr.bf16.mxu1 %v4757_v50  ;;  %v653_v50 = vld [vmem:[%s5511_s19 + $0x9b0] sm:$0xff]  ;;  %v3539_v25 = vadd.f32 %v3538_v61, %v3495_v55 }
 0x1a8   : > { %3820 = vmatpush2.bf16.msra.mxu0 %v4628_v57  ;;  %v4964_v57 = vcombine.low %v785_v4, %v789_v5  ;;  %v4828_v7 = vcombine.low %v649_v49, %v653_v50  ;;  %v625_v5 = vld [vmem:[%s5511_s19 + $0x8d0] sm:$0xff] }
 0x1a9   : > { %3821 = vmatprep.subr.bf16.mxu0 %v4621_v59  ;;  %v5946_v59 = vld [vmem:[%s5511_s19 + $0x950] sm:$0xff] }
 0x1aa   : > { %3863 = vmatpush2.bf16.msra.mxu1 %v4756_v58  ;;  %v4829_v58 = vcombine.high %v649_v49, %v653_v50 }
 0x1ab   : > { %3864 = vmatprep.subr.bf16.mxu1 %v4749_v60  ;;  %v3533_v60 = vadd.f32 %v3532_v23, %v3489_v20  ;;  %v320_v20 = vld [vmem:[%s5524_s25 + $0x8] sm:$0xff]  ;;  %v761_v23 = vld [vmem:[%s5511_s19 + $0xd10] sm:$0xff] }
 0x1ac   : > { %3822 = vmatpush2.bf16.msra.mxu0 %v4620_v36  ;;  %v773_v36 = vld [vmem:[%s5511_s19 + $0xd70] sm:$0xff] }
 0x1ad   : > { %3823 = vmatprep.subr.bf16.mxu0 %v4613_v1  ;;  %v3535_v1 = vadd.f32 %v3534_v0, %v3491_v31  ;;  %v327_v31 = vld [vmem:[%s5524_s25 + $0x40] sm:$0xff] }
 0x1ae   : > { %3865 = vmatpush2.bf16.msra.mxu1 %v4748_v37 }
 0x1af   : > { %3866 = vmatprep.subr.bf16.mxu1 %v4741_v2 }
 0x1b0   : > { %3824 = vmatpush2.bf16.msra.mxu0 %v4612_v11  ;;  %v4956_v11 = vcombine.low %v777_v51, %v781_v52 }
 0x1b1   : > { %3825 = vmatprep.subr.bf16.mxu0 %v4605_v13  ;;  %v4949_v13 = vcombine.high %v769_v62, %v773_v36 }
 0x1b2   : > { %3867 = vmatpush2.bf16.msra.mxu1 %v4740_v12  ;;  %v4821_v12 = vcombine.high %v5946_v59, %v645_v33 }
 0x1b3   : > { %3868 = vmatprep.subr.bf16.mxu1 %v4733_v14  ;;  %v3537_v14 = vadd.f32 %v3536_v47, %v3493_v44  ;;  %v328_v44 = vld [vmem:[%s5524_s25 + $0x48] sm:$0xff]  ;;  %v757_v47 = vld [vmem:[%s5511_s19 + $0xcf0] sm:$0xff] }
 0x1b4   : > { %3826 = vmatpush2.bf16.msra.mxu0 %v4604_v19  ;;  %v637_v19 = vld [vmem:[%s5511_s19 + $0x930] sm:$0xff] }
 0x1b5   : > { %3827 = vmatprep.subr.bf16.mxu0 %v4597_v22  ;;  %v4820_v22 = vcombine.low %v5946_v59, %v645_v33  ;;  %v4813_v0 = vcombine.high %v633_v18, %v637_v19  ;;  %v4812_v50 = vcombine.low %v633_v18, %v637_v19  ;;  %v745_v59 = vld [vmem:[%s5511_s19 + $0xc90] sm:$0xff] }
 0x1b6   : > { %3869 = vmatpush2.bf16.msra.mxu1 %v4732_v21  ;;  %v721_v19 = vld [vmem:[%s5511_s19 + $0xbd0] sm:$0xff] }
 0x1b7   : > { %3870 = vmatprep.subr.bf16.mxu1 %v4725_v24  ;;  %v765_v24 = vld [vmem:[%s5511_s19 + $0xd30] sm:$0xff] }
 0x1b8   : > { %3828 = vmatpush2.bf16.msra.mxu0 %v4596_v29  ;;  %v4941_v4 = vcombine.high %v761_v23, %v765_v24  ;;  %v4940_v51 = vcombine.low %v761_v23, %v765_v24 }
 0x1b9   : > { %3829 = vmatprep.subr.bf16.mxu0 %v4589_v63  ;;  %v4948_v63 = vcombine.low %v769_v62, %v773_v36  ;;  %v609_v36 = vld [vmem:[%s5511_s19 + $0x850] sm:$0xff] }
 0x1ba   : > { %3871 = vmatpush2.bf16.msra.mxu1 %v4724_v35 }
 0x1bb   : > { %3872 = vmatprep.subr.bf16.mxu1 %v4717_v38 }
 0x1bc   : > { %3830 = vmatpush2.bf16.msra.mxu0 %v4588_v43  ;;  %v629_v43 = vld [vmem:[%s5511_s19 + $0x8f0] sm:$0xff] }
 0x1bd   : > { %3885 = vmatprep.subr.bf16.mxu0 %v4837_v46  ;;  %v753_v46 = vld [vmem:[%s5511_s19 + $0xcd0] sm:$0xff]  ;;  %v4805_v52 = vcombine.high %v625_v5, %v629_v43  ;;  %v4804_v61 = vcombine.low %v625_v5, %v629_v43 }
 0x1be   : > { %3873 = vmatpush2.bf16.msra.mxu1 %v4716_v45  ;;  %v4933_v55 = vcombine.high %v753_v46, %v757_v47  ;;  %v837_v5 = vld [vmem:[%s5511_s19 + $0xf70] sm:$0xff] }
 0x1bf   : > { %3928 = vmatprep.subr.bf16.mxu1 %v4965_v48  ;;  %v3575_v37 = vpop.f32.mrf.mxu0  ;;  %3832 = vmatmul.mubr.bf16.vlgmr.msra.gmra.mxu0 %v5638_v30 }
 0x1c0   : > { %v3576_v2 = vadd.f32 %v3575_v37, %v3533_v60  ;;  %3886 = vmatpush1.bf16.msra.mxu0 %v4836_v54  ;;  %3917 = vmatprep.mubr.bf16.mxu0 %v5661_v41  ;;  %v749_v60 = vld [vmem:[%s5511_s19 + $0xcb0] sm:$0xff] }
 0x1c1   : > { %v3618_v6 = vpop.f32.mrf.mxu1  ;;  %3875 = vmatmul.mubr.bf16.vlgmr.msra.gmra.mxu1 %v5649_v34  ;;  %v3577_v10 = vpop.f32.mrf.mxu0  ;;  %3887 = vmatprep.subr.bf16.mxu0 %v4829_v58  ;;  %v621_v58 = vld [vmem:[%s5511_s19 + $0x8b0] sm:$0xff]  ;;  %v4925_v62 = vcombine.high %v745_v59, %v749_v60 }
 0x1c2   : > { %3929 = vmatpush1.bf16.msra.mxu1 %v4964_v57  ;;  %v3619_v15 = vadd.f32 %v3618_v6, %v3576_v2  ;;  %v3578_v16 = vadd.f32 %v3577_v10, %v3535_v1  ;;  %3960 = vmatprep.mubr.bf16.mxu1 %v5668_v42  ;;  %v617_v57 = vld [vmem:[%s5511_s19 + $0x890] sm:$0xff] }
 0x1c3   : > { %v3620_v17 = vpop.f32.mrf.mxu1  ;;  %3930 = vmatprep.subr.bf16.mxu1 %v4957_v32  ;;  %v3579_v21 = vpop.f32.mrf.mxu0  ;;  %v4932_v32 = vcombine.low %v753_v46, %v757_v47  ;;  %v4797_v33 = vcombine.high %v617_v57, %v621_v58  ;;  %v613_v37 = vld [vmem:[%s5511_s19 + $0x870] sm:$0xff]  ;;  %v4796_v6 = vcombine.low %v617_v57, %v621_v58 }
 0x1c4   : > { %v4143_v26 = vadd.f32 %v3619_v15, %v319_v9  ;;  %v3621_v27 = vadd.f32 %v3620_v17, %v3578_v16  ;;  %v3580_v28 = vadd.f32 %v3579_v21, %v3537_v14  ;;  %3888 = vmatpush1.bf16.msra.mxu0 %v4828_v7  ;;  %v737_v1 = vld [vmem:[%s5511_s19 + $0xc50] sm:$0xff]  ;;  %v4924_v7 = vcombine.low %v745_v59, %v749_v60 }
 0x1c5   : > { %v3622_v29 = vpop.f32.mrf.mxu1  ;;  %v3581_v35 = vpop.f32.mrf.mxu0  ;;  %3889 = vmatprep.subr.bf16.mxu0 %v4821_v12  ;;  %v741_v2 = vld [vmem:[%s5511_s19 + $0xc70] sm:$0xff]  ;;  %v4789_v9 = vcombine.high %v609_v36, %v613_v37  ;;  %v4788_v15 = vcombine.low %v609_v36, %v613_v37 }
 0x1c6   : > { %3931 = vmatpush1.bf16.msra.mxu1 %v4956_v11  ;;  %4159 = vst [vmem:[%s5524_s25] sm:$0xff] %v4143_v26  ;;  %v4144_v38 = vadd.f32 %v3621_v27, %v320_v20  ;;  %v3623_v39 = vadd.f32 %v3622_v29, %v3580_v28  ;;  %v3582_v40 = vadd.f32 %v3581_v35, %v3539_v25  ;;  %v601_v11 = vld [vmem:[%s5511_s19 + $0x810] sm:$0xff] }
 0x1c7   : > { %3932 = vmatprep.subr.bf16.mxu1 %v4949_v13  ;;  %v3624_v45 = vpop.f32.mrf.mxu1  ;;  %v4917_v10 = vcombine.high %v737_v1, %v741_v2  ;;  %v605_v12 = vld [vmem:[%s5511_s19 + $0x830] sm:$0xff]  ;;  %v4916_v16 = vcombine.low %v737_v1, %v741_v2 }
 0x1c8   : > { %4160 = vst [vmem:[%s5524_s25 + $0x8] sm:$0xff] %v4144_v38  ;;  %v4151_v48 = vadd.f32 %v3623_v39, %v327_v31  ;;  %v3625_v49 = vadd.f32 %v3624_v45, %v3582_v40  ;;  %3890 = vmatpush1.bf16.msra.mxu0 %v4820_v22  ;;  %v729_v13 = vld [vmem:[%s5511_s19 + $0xc10] sm:$0xff]  ;;  %v4781_v17 = vcombine.high %v601_v11, %v605_v12 }
 0x1c9   : > { %3891 = vmatprep.subr.bf16.mxu0 %v4813_v0  ;;  %v733_v14 = vld [vmem:[%s5511_s19 + $0xc30] sm:$0xff]  ;;  %v4780_v23 = vcombine.low %v601_v11, %v605_v12 }
 0x1ca   : > { %3933 = vmatpush1.bf16.msra.mxu1 %v4948_v63  ;;  %4167 = vst [vmem:[%s5524_s25 + $0x40] sm:$0xff] %v4151_v48  ;;  %v4152_v54 = vadd.f32 %v3625_v49, %v328_v44  ;;  %v4909_v18 = vcombine.high %v729_v13, %v733_v14  ;;  %v725_v20 = vld [vmem:[%s5511_s19 + $0xbf0] sm:$0xff]  ;;  %v4908_v24 = vcombine.low %v729_v13, %v733_v14 }
 0x1cb   : > { %3934 = vmatprep.subr.bf16.mxu1 %v4941_v4  ;;  %v849_v21 = vld [vmem:[%s5511_s19 + $0xfd0] sm:$0xff]  ;;  %v4901_v25 = vcombine.high %v721_v19, %v725_v20  ;;  %v4900_v35 = vcombine.low %v721_v19, %v725_v20 }
 0x1cc   : > { %4168 = vst [vmem:[%s5524_s25 + $0x48] sm:$0xff] %v4152_v54  ;;  %3892 = vmatpush1.bf16.msra.mxu0 %v4812_v50  ;;  %v853_v22 = vld [vmem:[%s5511_s19 + $0xff0] sm:$0xff] }
 0x1cd   : > { %3893 = vmatprep.subr.bf16.mxu0 %v4805_v52  ;;  %v5029_v26 = vcombine.high %v849_v21, %v853_v22  ;;  %v713_v27 = vld [vmem:[%s5511_s19 + $0xb90] sm:$0xff]  ;;  %v5028_v63 = vcombine.low %v849_v21, %v853_v22 }
 0x1ce   : > { %3935 = vmatpush1.bf16.msra.mxu1 %v4940_v51  ;;  %v717_v28 = vld [vmem:[%s5511_s19 + $0xbb0] sm:$0xff] }
 0x1cf   : > { %3936 = vmatprep.subr.bf16.mxu1 %v4933_v55  ;;  %v841_v29 = vld [vmem:[%s5511_s19 + $0xf90] sm:$0xff]  ;;  %v4893_v0 = vcombine.high %v713_v27, %v717_v28  ;;  %v4892_v43 = vcombine.low %v713_v27, %v717_v28  ;;  %v402_v27 = vld [vmem:[%s5511_s19 + $0x1d8] sm:$0xff] }
 0x1d0   : > { %3894 = vmatpush1.bf16.msra.mxu0 %v4804_v61  ;;  %v845_v31 = vld [vmem:[%s5511_s19 + $0xfb0] sm:$0xff]  ;;  %v406_v28 = vld [vmem:[%s5511_s19 + $0x1f8] sm:$0xff] }
 0x1d1   : > { %3895 = vmatprep.subr.bf16.mxu0 %v4797_v33  ;;  %v5021_v38 = vcombine.high %v841_v29, %v845_v31  ;;  %v705_v39 = vld [vmem:[%s5511_s19 + $0xb50] sm:$0xff]  ;;  %v5020_v44 = vcombine.low %v841_v29, %v845_v31  ;;  %v530_v29 = vld [vmem:[%s5511_s19 + $0x5d8] sm:$0xff] }
 0x1d2   : > { %3937 = vmatpush1.bf16.msra.mxu1 %v4932_v32  ;;  %v709_v40 = vld [vmem:[%s5511_s19 + $0xb70] sm:$0xff]  ;;  %v534_v31 = vld [vmem:[%s5511_s19 + $0x5f8] sm:$0xff] }
 0x1d3   : > { %3938 = vmatprep.subr.bf16.mxu1 %v4925_v62  ;;  %v833_v4 = vld [vmem:[%s5511_s19 + $0xf50] sm:$0xff]  ;;  %v4885_v45 = vcombine.high %v705_v39, %v709_v40  ;;  %v4884_v51 = vcombine.low %v705_v39, %v709_v40  ;;  %v394_v39 = vld [vmem:[%s5511_s19 + $0x198] sm:$0xff] }
 0x1d4   : > { %3896 = vmatpush1.bf16.msra.mxu0 %v4796_v6  ;;  %v5013_v46 = vcombine.high %v833_v4, %v837_v5  ;;  %v697_v47 = vld [vmem:[%s5511_s19 + $0xb10] sm:$0xff]  ;;  %v5012_v52 = vcombine.low %v833_v4, %v837_v5  ;;  %v398_v40 = vld [vmem:[%s5511_s19 + $0x1b8] sm:$0xff] }
 0x1d5   : > { %3897 = vmatprep.subr.bf16.mxu0 %v4789_v9  ;;  %v701_v48 = vld [vmem:[%s5511_s19 + $0xb30] sm:$0xff]  ;;  %v522_v4 = vld [vmem:[%s5511_s19 + $0x598] sm:$0xff] }
 0x1d6   : > { %3939 = vmatpush1.bf16.msra.mxu1 %v4924_v7  ;;  %v825_v49 = vld [vmem:[%s5511_s19 + $0xf10] sm:$0xff]  ;;  %v4877_v54 = vcombine.high %v697_v47, %v701_v48  ;;  %v4876_v61 = vcombine.low %v697_v47, %v701_v48  ;;  %v526_v5 = vld [vmem:[%s5511_s19 + $0x5b8] sm:$0xff] }
 0x1d7   : > { %3940 = vmatprep.subr.bf16.mxu1 %v4917_v10  ;;  %v829_v50 = vld [vmem:[%s5511_s19 + $0xf30] sm:$0xff]  ;;  %v386_v47 = vld [vmem:[%s5511_s19 + $0x158] sm:$0xff] }
 0x1d8   : > { %3898 = vmatpush1.bf16.msra.mxu0 %v4788_v15  ;;  %v5005_v55 = vcombine.high %v825_v49, %v829_v50  ;;  %v689_v57 = vld [vmem:[%s5511_s19 + $0xad0] sm:$0xff]  ;;  %v5004_v32 = vcombine.low %v825_v49, %v829_v50  ;;  %v390_v48 = vld [vmem:[%s5511_s19 + $0x178] sm:$0xff] }
 0x1d9   : > { %3899 = vmatprep.subr.bf16.mxu0 %v4781_v17  ;;  %v693_v58 = vld [vmem:[%s5511_s19 + $0xaf0] sm:$0xff]  ;;  %v514_v49 = vld [vmem:[%s5511_s19 + $0x558] sm:$0xff] }
 0x1da   : > { %3941 = vmatpush1.bf16.msra.mxu1 %v4916_v16  ;;  %v817_v59 = vld [vmem:[%s5511_s19 + $0xed0] sm:$0xff]  ;;  %v4869_v33 = vcombine.high %v689_v57, %v693_v58  ;;  %v4868_v6 = vcombine.low %v689_v57, %v693_v58  ;;  %v518_v50 = vld [vmem:[%s5511_s19 + $0x578] sm:$0xff] }
 0x1db   : > { %3942 = vmatprep.subr.bf16.mxu1 %v4909_v18  ;;  %v821_v60 = vld [vmem:[%s5511_s19 + $0xef0] sm:$0xff]  ;;  %v378_v57 = vld [vmem:[%s5511_s19 + $0x118] sm:$0xff] }
 0x1dc   : > { %3900 = vmatpush1.bf16.msra.mxu0 %v4780_v23  ;;  %v4997_v62 = vcombine.high %v817_v59, %v821_v60  ;;  %v681_v36 = vld [vmem:[%s5511_s19 + $0xa90] sm:$0xff]  ;;  %v4996_v7 = vcombine.low %v817_v59, %v821_v60  ;;  %v382_v58 = vld [vmem:[%s5511_s19 + $0x138] sm:$0xff] }
 0x1dd   : > { %3901 = vmatprep.subr.bf16.mxu0 %v4901_v25  ;;  %v685_v37 = vld [vmem:[%s5511_s19 + $0xab0] sm:$0xff]  ;;  %v506_v59 = vld [vmem:[%s5511_s19 + $0x518] sm:$0xff] }
 0x1de   : > { %3943 = vmatpush1.bf16.msra.mxu1 %v4908_v24  ;;  %v809_v1 = vld [vmem:[%s5511_s19 + $0xe90] sm:$0xff]  ;;  %v4861_v9 = vcombine.high %v681_v36, %v685_v37  ;;  %v4860_v15 = vcombine.low %v681_v36, %v685_v37  ;;  %v510_v60 = vld [vmem:[%s5511_s19 + $0x538] sm:$0xff] }
 0x1df   : > { %3944 = vmatprep.subr.bf16.mxu1 %v5029_v26  ;;  %v813_v2 = vld [vmem:[%s5511_s19 + $0xeb0] sm:$0xff]  ;;  %v370_v36 = vld [vmem:[%s5511_s19 + $0xd8] sm:$0xff] }
 0x1e0   : > { %3902 = vmatpush2.bf16.msra.mxu0 %v4900_v35  ;;  %v4989_v10 = vcombine.high %v809_v1, %v813_v2  ;;  %v673_v11 = vld [vmem:[%s5511_s19 + $0xa50] sm:$0xff]  ;;  %v4988_v16 = vcombine.low %v809_v1, %v813_v2  ;;  %v374_v37 = vld [vmem:[%s5511_s19 + $0xf8] sm:$0xff]  ;;  %v4558_v2 = vcombine.low %v378_v57, %v382_v58 }
 0x1e1   : > { %3903 = vmatprep.subr.bf16.mxu0 %v4893_v0  ;;  %v677_v12 = vld [vmem:[%s5511_s19 + $0xa70] sm:$0xff]  ;;  %v4583_v0 = vcombine.high %v402_v27, %v406_v28  ;;  %v498_v1 = vld [vmem:[%s5511_s19 + $0x4d8] sm:$0xff] }
 0x1e2   : > { %3945 = vmatpush2.bf16.msra.mxu1 %v5028_v63  ;;  %v801_v13 = vld [vmem:[%s5511_s19 + $0xe50] sm:$0xff]  ;;  %v4853_v17 = vcombine.high %v673_v11, %v677_v12  ;;  %v4852_v23 = vcombine.low %v673_v11, %v677_v12  ;;  %v490_v11 = vld [vmem:[%s5511_s19 + $0x498] sm:$0xff] }
 0x1e3   : > { %3946 = vmatprep.subr.bf16.mxu1 %v5021_v38  ;;  %v805_v14 = vld [vmem:[%s5511_s19 + $0xe70] sm:$0xff]  ;;  %v4711_v38 = vcombine.high %v530_v29, %v534_v31  ;;  %v494_v12 = vld [vmem:[%s5511_s19 + $0x4b8] sm:$0xff] }
 0x1e4   : > { %3904 = vmatpush2.bf16.msra.mxu0 %v4892_v43  ;;  %v4981_v18 = vcombine.high %v801_v13, %v805_v14  ;;  %v665_v19 = vld [vmem:[%s5511_s19 + $0xa10] sm:$0xff]  ;;  %v4980_v24 = vcombine.low %v801_v13, %v805_v14  ;;  %v4582_v43 = vcombine.low %v402_v27, %v406_v28  ;;  %v4550_v13 = vcombine.low %v370_v36, %v374_v37  ;;  %v474_v27 = vld [vmem:[%s5511_s19 + $0x418] sm:$0xff] }
 0x1e5   : > { %3905 = vmatprep.subr.bf16.mxu0 %v4885_v45  ;;  %v669_v20 = vld [vmem:[%s5511_s19 + $0xa30] sm:$0xff]  ;;  %v4575_v45 = vcombine.high %v394_v39, %v398_v40  ;;  %v478_v28 = vld [vmem:[%s5511_s19 + $0x438] sm:$0xff] }
 0x1e6   : > { %3947 = vmatpush2.bf16.msra.mxu1 %v5020_v44  ;;  %v793_v21 = vld [vmem:[%s5511_s19 + $0xe10] sm:$0xff]  ;;  %v4845_v25 = vcombine.high %v665_v19, %v669_v20  ;;  %v4844_v35 = vcombine.low %v665_v19, %v669_v20  ;;  %v4710_v44 = vcombine.low %v530_v29, %v534_v31  ;;  %v482_v19 = vld [vmem:[%s5511_s19 + $0x458] sm:$0xff] }
 0x1e7   : > { %3948 = vmatprep.subr.bf16.mxu1 %v5013_v46  ;;  %v797_v22 = vld [vmem:[%s5511_s19 + $0xe30] sm:$0xff]  ;;  %v4703_v46 = vcombine.high %v522_v4, %v526_v5  ;;  %v486_v20 = vld [vmem:[%s5511_s19 + $0x478] sm:$0xff] }
 0x1e8   : > { %3906 = vmatpush2.bf16.msra.mxu0 %v4884_v51  ;;  %v4973_v26 = vcombine.high %v793_v21, %v797_v22  ;;  %v4972_v63 = vcombine.low %v793_v21, %v797_v22  ;;  %v4574_v51 = vcombine.low %v394_v39, %v398_v40  ;;  %v4670_v22 = vcombine.low %v490_v11, %v494_v12  ;;  %v594_v39 = vld [vmem:[%s5511_s19 + $0x7d8] sm:$0xff] }
 0x1e9   : > { %3907 = vmatprep.subr.bf16.mxu0 %v4877_v54  ;;  %v4567_v54 = vcombine.high %v386_v47, %v390_v48  ;;  %v4662_v31 = vcombine.low %v482_v19, %v486_v20  ;;  %v598_v40 = vld [vmem:[%s5511_s19 + $0x7f8] sm:$0xff] }
 0x1ea   : > { %3949 = vmatpush2.bf16.msra.mxu1 %v5012_v52  ;;  %v4702_v52 = vcombine.low %v522_v4, %v526_v5  ;;  %v4654_v5 = vcombine.low %v474_v27, %v478_v28 }
 0x1eb   : > { %3950 = vmatprep.subr.bf16.mxu1 %v5005_v55  ;;  %v4695_v55 = vcombine.high %v514_v49, %v518_v50 }
 0x1ec   : > { %3908 = vmatpush2.bf16.msra.mxu0 %v4876_v61  ;;  %v4566_v61 = vcombine.low %v386_v47, %v390_v48  ;;  %v586_v47 = vld [vmem:[%s5511_s19 + $0x798] sm:$0xff] }
 0x1ed   : > { %3909 = vmatprep.subr.bf16.mxu0 %v4869_v33  ;;  %v4559_v33 = vcombine.high %v378_v57, %v382_v58  ;;  %v590_v48 = vld [vmem:[%s5511_s19 + $0x7b8] sm:$0xff] }
 0x1ee   : > { %3951 = vmatpush2.bf16.msra.mxu1 %v5004_v32  ;;  %v4694_v32 = vcombine.low %v514_v49, %v518_v50  ;;  %v4774_v50 = vcombine.low %v594_v39, %v598_v40  ;;  %v578_v57 = vld [vmem:[%s5511_s19 + $0x758] sm:$0xff] }
 0x1ef   : > { %3952 = vmatprep.subr.bf16.mxu1 %v4997_v62  ;;  %v4687_v62 = vcombine.high %v506_v59, %v510_v60  ;;  %v582_v58 = vld [vmem:[%s5511_s19 + $0x778] sm:$0xff] }
 0x1f0   : > { %3910 = vmatpush2.bf16.msra.mxu0 %v4868_v6  ;;  %v4551_v6 = vcombine.high %v370_v36, %v374_v37  ;;  %v570_v36 = vld [vmem:[%s5511_s19 + $0x718] sm:$0xff] }
 0x1f1   : > { %3911 = vmatprep.subr.bf16.mxu0 %v4861_v9  ;;  %v362_v9 = vld [vmem:[%s5511_s19 + $0x98] sm:$0xff] }
 0x1f2   : > { %3953 = vmatpush2.bf16.msra.mxu1 %v4996_v7  ;;  %v574_v37 = vld [vmem:[%s5511_s19 + $0x738] sm:$0xff] }
 0x1f3   : > { %3954 = vmatprep.subr.bf16.mxu1 %v4989_v10  ;;  %v366_v10 = vld [vmem:[%s5511_s19 + $0xb8] sm:$0xff] }
 0x1f4   : > { %3912 = vmatpush2.bf16.msra.mxu0 %v4860_v15  ;;  %v4543_v15 = vcombine.high %v362_v9, %v366_v10  ;;  %v4542_v21 = vcombine.low %v362_v9, %v366_v10  ;;  %v562_v9 = vld [vmem:[%s5511_s19 + $0x6d8] sm:$0xff] }
 0x1f5   : > { %3913 = vmatprep.subr.bf16.mxu0 %v4853_v17  ;;  %v354_v17 = vld [vmem:[%s5511_s19 + $0x58] sm:$0xff] }
 0x1f6   : > { %3955 = vmatpush2.bf16.msra.mxu1 %v4988_v16  ;;  %v4671_v16 = vcombine.high %v490_v11, %v494_v12  ;;  %v566_v10 = vld [vmem:[%s5511_s19 + $0x6f8] sm:$0xff]  ;;  %v4750_v12 = vcombine.low %v570_v36, %v574_v37 }
 0x1f7   : > { %3956 = vmatprep.subr.bf16.mxu1 %v4981_v18  ;;  %v358_v18 = vld [vmem:[%s5511_s19 + $0x78] sm:$0xff] }
 0x1f8   : > { %3914 = vmatpush2.bf16.msra.mxu0 %v4852_v23  ;;  %v4535_v23 = vcombine.high %v354_v17, %v358_v18  ;;  %v4534_v29 = vcombine.low %v354_v17, %v358_v18  ;;  %v554_v17 = vld [vmem:[%s5511_s19 + $0x698] sm:$0xff] }
 0x1f9   : > { %3915 = vmatprep.subr.bf16.mxu0 %v4845_v25  ;;  %v346_v25 = vld [vmem:[%s5511_s19 + $0x18] sm:$0xff] }
 0x1fa   : > { %3957 = vmatpush2.bf16.msra.mxu1 %v4980_v24  ;;  %v4663_v24 = vcombine.high %v482_v19, %v486_v20  ;;  %v558_v18 = vld [vmem:[%s5511_s19 + $0x6b8] sm:$0xff]  ;;  %v4742_v20 = vcombine.low %v562_v9, %v566_v10 }
 0x1fb   : > { %3958 = vmatprep.subr.bf16.mxu1 %v4973_v26  ;;  %v350_v26 = vld [vmem:[%s5511_s19 + $0x38] sm:$0xff] }
 0x1fc   : > { %3916 = vmatpush2.bf16.msra.mxu0 %v4844_v35  ;;  %v4527_v35 = vcombine.high %v346_v25, %v350_v26  ;;  %v4526_v4 = vcombine.low %v346_v25, %v350_v26  ;;  %v546_v25 = vld [vmem:[%s5511_s19 + $0x658] sm:$0xff] }
 0x1fd   : > { %3971 = vmatprep.subr.bf16.mxu0 %v4583_v0  ;;  %v466_v0 = vld [vmem:[%s5511_s19 + $0x3d8] sm:$0xff] }
 0x1fe   : > { %3959 = vmatpush2.bf16.msra.mxu1 %v4972_v63  ;;  %v4655_v63 = vcombine.high %v474_v27, %v478_v28  ;;  %v550_v26 = vld [vmem:[%s5511_s19 + $0x678] sm:$0xff] }
 0x1ff   : > { %4014 = vmatprep.subr.bf16.mxu1 %v4711_v38  ;;  %3918 = vmatmul.mubr.bf16.vlgmr.msra.gmra.mxu0 %v5733_v53  ;;  %v470_v38 = vld [vmem:[%s5511_s19 + $0x3f8] sm:$0xff]  ;;  %v3661_v28 = vpop.f32.mrf.mxu0 }
 0x200   : > { %3972 = vmatpush1.bf16.msra.mxu0 %v4582_v43  ;;  %4003 = vmatprep.mubr.bf16.mxu0 %v5581_v3  ;;  %v502_v3 = vld [vmem:[%s5511_s19 + $0x4f8] sm:$0xff]  ;;  %v4647_v43 = vcombine.high %v466_v0, %v470_v38  ;;  %v4646_v49 = vcombine.low %v466_v0, %v470_v38 }
 0x201   : > { %3961 = vmatmul.mubr.bf16.vlgmr.msra.gmra.mxu1 %v5739_v56  ;;  %3973 = vmatprep.subr.bf16.mxu0 %v4575_v45  ;;  %v4679_v7 = vcombine.high %v498_v1, %v502_v3  ;;  %v4678_v14 = vcombine.low %v498_v1, %v502_v3  ;;  %v458_v45 = vld [vmem:[%s5511_s19 + $0x398] sm:$0xff]  ;;  %v4758_v3 = vcombine.low %v578_v57, %v582_v58 }
 0x202   : > { %4015 = vmatpush1.bf16.msra.mxu1 %v4710_v44  ;;  %4046 = vmatprep.mubr.bf16.mxu1 %v5593_v8  ;;  %v4686_v8 = vcombine.low %v506_v59, %v510_v60  ;;  %v4775_v44 = vcombine.high %v594_v39, %v598_v40  ;;  %v4766_v60 = vcombine.low %v586_v47, %v590_v48  ;;  %v410_v0 = vld [vmem:[%s5511_s19 + $0x218] sm:$0xff] }
 0x203   : > { %4016 = vmatprep.subr.bf16.mxu1 %v4703_v46  ;;  %v462_v46 = vld [vmem:[%s5511_s19 + $0x3b8] sm:$0xff] }
 0x204   : > { %3974 = vmatpush1.bf16.msra.mxu0 %v4574_v51  ;;  %v4639_v51 = vcombine.high %v458_v45, %v462_v46  ;;  %v4638_v59 = vcombine.low %v458_v45, %v462_v46  ;;  %v414_v38 = vld [vmem:[%s5511_s19 + $0x238] sm:$0xff] }
 0x205   : > { %3975 = vmatprep.subr.bf16.mxu0 %v4567_v54  ;;  %v450_v54 = vld [vmem:[%s5511_s19 + $0x358] sm:$0xff] }
 0x206   : > { %4017 = vmatpush1.bf16.msra.mxu1 %v4702_v52  ;;  %v4767_v52 = vcombine.high %v586_v47, %v590_v48  ;;  %v538_v39 = vld [vmem:[%s5511_s19 + $0x618] sm:$0xff] }
 0x207   : > { %4018 = vmatprep.subr.bf16.mxu1 %v4695_v55  ;;  %v454_v55 = vld [vmem:[%s5511_s19 + $0x378] sm:$0xff] }
 0x208   : > { %3976 = vmatpush1.bf16.msra.mxu0 %v4566_v61  ;;  %v4631_v61 = vcombine.high %v450_v54, %v454_v55  ;;  %v4630_v1 = vcombine.low %v450_v54, %v454_v55  ;;  %v542_v40 = vld [vmem:[%s5511_s19 + $0x638] sm:$0xff] }
 0x209   : > { %3977 = vmatprep.subr.bf16.mxu0 %v4559_v33  ;;  %v442_v33 = vld [vmem:[%s5511_s19 + $0x318] sm:$0xff]  ;;  %v4719_v46 = vcombine.high %v538_v39, %v542_v40  ;;  %v4718_v54 = vcombine.low %v538_v39, %v542_v40 }
 0x20a   : > { %4019 = vmatpush1.bf16.msra.mxu1 %v4694_v32  ;;  %v4759_v32 = vcombine.high %v578_v57, %v582_v58  ;;  %v658_v47 = vld [vmem:[%s5511_s19 + $0x9d8] sm:$0xff] }
 0x20b   : > { %4020 = vmatprep.subr.bf16.mxu1 %v4687_v62  ;;  %v446_v62 = vld [vmem:[%s5511_s19 + $0x338] sm:$0xff] }
 0x20c   : > { %3978 = vmatpush1.bf16.msra.mxu0 %v4558_v2  ;;  %v4623_v2 = vcombine.high %v442_v33, %v446_v62  ;;  %v4622_v11 = vcombine.low %v442_v33, %v446_v62  ;;  %v662_v48 = vld [vmem:[%s5511_s19 + $0x9f8] sm:$0xff] }
 0x20d   : > { %3979 = vmatprep.subr.bf16.mxu0 %v4551_v6  ;;  %v434_v6 = vld [vmem:[%s5511_s19 + $0x2d8] sm:$0xff]  ;;  %v4839_v55 = vcombine.high %v658_v47, %v662_v48  ;;  %v4838_v33 = vcombine.low %v658_v47, %v662_v48 }
 0x20e   : > { %4021 = vmatpush1.bf16.msra.mxu1 %v4686_v8  ;;  %v4751_v8 = vcombine.high %v570_v36, %v574_v37  ;;  %v754_v48 = vld [vmem:[%s5511_s19 + $0xcd8] sm:$0xff] }
 0x20f   : > { %4022 = vmatprep.subr.bf16.mxu1 %v4679_v7  ;;  %v438_v7 = vld [vmem:[%s5511_s19 + $0x2f8] sm:$0xff] }
 0x210   : > { %3980 = vmatpush1.bf16.msra.mxu0 %v4550_v13  ;;  %v4615_v13 = vcombine.high %v434_v6, %v438_v7  ;;  %v4614_v19 = vcombine.low %v434_v6, %v438_v7  ;;  %v646_v6 = vld [vmem:[%s5511_s19 + $0x978] sm:$0xff] }
 0x211   : > { %3981 = vmatprep.subr.bf16.mxu0 %v4543_v15  ;;  %v426_v15 = vld [vmem:[%s5511_s19 + $0x298] sm:$0xff] }
 0x212   : > { %4023 = vmatpush1.bf16.msra.mxu1 %v4678_v14  ;;  %v4743_v14 = vcombine.high %v562_v9, %v566_v10  ;;  %v770_v7 = vld [vmem:[%s5511_s19 + $0xd58] sm:$0xff] }
 0x213   : > { %4024 = vmatprep.subr.bf16.mxu1 %v4671_v16  ;;  %v430_v16 = vld [vmem:[%s5511_s19 + $0x2b8] sm:$0xff] }
 0x214   : > { %3982 = vmatpush1.bf16.msra.mxu0 %v4542_v21  ;;  %v4607_v21 = vcombine.high %v426_v15, %v430_v16  ;;  %v4606_v27 = vcombine.low %v426_v15, %v430_v16  ;;  %v774_v9 = vld [vmem:[%s5511_s19 + $0xd78] sm:$0xff]  ;;  %v321_v15 = vld [vmem:[%s5524_s25 + $0x10] sm:$0xff] }
 0x215   : > { %3983 = vmatprep.subr.bf16.mxu0 %v4535_v23  ;;  %v418_v23 = vld [vmem:[%s5511_s19 + $0x258] sm:$0xff]  ;;  %v4950_v39 = vcombine.low %v770_v7, %v774_v9 }
 0x216   : > { %4025 = vmatpush1.bf16.msra.mxu1 %v4670_v22  ;;  %v4735_v22 = vcombine.high %v554_v17, %v558_v18 }
 0x217   : > { %4026 = vmatprep.subr.bf16.mxu1 %v4663_v24  ;;  %v422_v24 = vld [vmem:[%s5511_s19 + $0x278] sm:$0xff] }
 0x218   : > { %3984 = vmatpush1.bf16.msra.mxu0 %v4534_v29  ;;  %v4734_v29 = vcombine.low %v554_v17, %v558_v18 }
 0x219   : > { %3985 = vmatprep.subr.bf16.mxu0 %v4527_v35  ;;  %v3704_v35 = vpop.f32.mrf.mxu1 }
 0x21a   : > { %4027 = vmatpush1.bf16.msra.mxu1 %v4662_v31  ;;  %v4599_v31 = vcombine.high %v418_v23, %v422_v24 }
 0x21b   : > { %4028 = vmatprep.subr.bf16.mxu1 %v4655_v63  ;;  %v4727_v63 = vcombine.high %v546_v25, %v550_v26  ;;  %v3706_v45 = vpop.f32.mrf.mxu1 }
 0x21c   : > { %3986 = vmatpush1.bf16.msra.mxu0 %v4526_v4  ;;  %v4598_v4 = vcombine.low %v418_v23, %v422_v24  ;;  %v638_v23 = vld [vmem:[%s5511_s19 + $0x938] sm:$0xff]  ;;  %v322_v24 = vld [vmem:[%s5524_s25 + $0x18] sm:$0xff] }
 0x21d   : > { %3987 = vmatprep.subr.bf16.mxu0 %v4647_v43  ;;  %v4726_v43 = vcombine.low %v546_v25, %v550_v26  ;;  %v3708_v57 = vpop.f32.mrf.mxu1 }
 0x21e   : > { %4029 = vmatpush1.bf16.msra.mxu1 %v4654_v5  ;;  %v3663_v5 = vpop.f32.mrf.mxu0 }
 0x21f   : > { %4030 = vmatprep.subr.bf16.mxu1 %v4775_v44  ;;  %v4591_v44 = vcombine.high %v410_v0, %v414_v38 }
 0x220   : > { %3988 = vmatpush2.bf16.msra.mxu0 %v4646_v49  ;;  %v786_v49 = vld [vmem:[%s5511_s19 + $0xdd8] sm:$0xff] }
 0x221   : > { %3989 = vmatprep.subr.bf16.mxu0 %v4639_v51  ;;  %v4590_v51 = vcombine.low %v410_v0, %v414_v38  ;;  %v329_v38 = vld [vmem:[%s5524_s25 + $0x50] sm:$0xff] }
 0x222   : > { %4031 = vmatpush2.bf16.msra.mxu1 %v4774_v50  ;;  %v790_v50 = vld [vmem:[%s5511_s19 + $0xdf8] sm:$0xff] }
 0x223   : > { %4032 = vmatprep.subr.bf16.mxu1 %v4767_v52  ;;  %v3665_v52 = vpop.f32.mrf.mxu0  ;;  %v4967_v58 = vcombine.high %v786_v49, %v790_v50  ;;  %v4966_v36 = vcombine.low %v786_v49, %v790_v50  ;;  %v758_v49 = vld [vmem:[%s5511_s19 + $0xcf8] sm:$0xff] }
 0x224   : > { %3990 = vmatpush2.bf16.msra.mxu0 %v4638_v59  ;;  %v650_v59 = vld [vmem:[%s5511_s19 + $0x998] sm:$0xff] }
 0x225   : > { %3991 = vmatprep.subr.bf16.mxu0 %v4631_v61  ;;  %v778_v61 = vld [vmem:[%s5511_s19 + $0xd98] sm:$0xff]  ;;  %v3667_v62 = vpop.f32.mrf.mxu0 }
 0x226   : > { %4033 = vmatpush2.bf16.msra.mxu1 %v4766_v60  ;;  %v654_v60 = vld [vmem:[%s5511_s19 + $0x9b8] sm:$0xff] }
 0x227   : > { %4034 = vmatprep.subr.bf16.mxu1 %v4759_v32  ;;  %v782_v32 = vld [vmem:[%s5511_s19 + $0xdb8] sm:$0xff]  ;;  %v4831_v37 = vcombine.high %v650_v59, %v654_v60 }
 0x228   : > { %3992 = vmatpush2.bf16.msra.mxu0 %v4630_v1  ;;  %v6094_v1 = vld [vmem:[%s5511_s19 + $0x958] sm:$0xff]  ;;  %v4958_v17 = vcombine.low %v778_v61, %v782_v32 }
 0x229   : > { %3993 = vmatprep.subr.bf16.mxu0 %v4623_v2  ;;  %v3710_v2 = vpop.f32.mrf.mxu1  ;;  %v4823_v18 = vcombine.high %v6094_v1, %v646_v6  ;;  %v4822_v26 = vcombine.low %v6094_v1, %v646_v6  ;;  %v610_v1 = vld [vmem:[%s5511_s19 + $0x858] sm:$0xff] }
 0x22a   : > { %4035 = vmatpush2.bf16.msra.mxu1 %v4758_v3  ;;  %v3705_v3 = vadd.f32 %v3704_v35, %v3661_v28  ;;  %v766_v28 = vld [vmem:[%s5511_s19 + $0xd38] sm:$0xff] }
 0x22b   : > { %4036 = vmatprep.subr.bf16.mxu1 %v4751_v8  ;;  %v4959_v8 = vcombine.high %v778_v61, %v782_v32  ;;  %v746_v61 = vld [vmem:[%s5511_s19 + $0xc98] sm:$0xff] }
 0x22c   : > { %3994 = vmatpush2.bf16.msra.mxu0 %v4622_v11  ;;  %v3707_v11 = vadd.f32 %v3706_v45, %v3663_v5  ;;  %v630_v45 = vld [vmem:[%s5511_s19 + $0x8f8] sm:$0xff] }
 0x22d   : > { %3995 = vmatprep.subr.bf16.mxu0 %v4615_v13  ;;  %v750_v32 = vld [vmem:[%s5511_s19 + $0xcb8] sm:$0xff] }
 0x22e   : > { %4037 = vmatpush2.bf16.msra.mxu1 %v4750_v12 }
 0x22f   : > { %4038 = vmatprep.subr.bf16.mxu1 %v4743_v14  ;;  %v4830_v14 = vcombine.low %v650_v59, %v654_v60  ;;  %v618_v59 = vld [vmem:[%s5511_s19 + $0x898] sm:$0xff] }
 0x230   : > { %3996 = vmatpush2.bf16.msra.mxu0 %v4614_v19  ;;  %v3709_v19 = vadd.f32 %v3708_v57, %v3665_v52  ;;  %v622_v60 = vld [vmem:[%s5511_s19 + $0x8b8] sm:$0xff] }
 0x231   : > { %3997 = vmatprep.subr.bf16.mxu0 %v4607_v21  ;;  %v4798_v6 = vcombine.low %v618_v59, %v622_v60 }
 0x232   : > { %4039 = vmatpush2.bf16.msra.mxu1 %v4742_v20 }
 0x233   : > { %4040 = vmatprep.subr.bf16.mxu1 %v4735_v22 }
 0x234   : > { %3998 = vmatpush2.bf16.msra.mxu0 %v4606_v27  ;;  %v762_v27 = vld [vmem:[%s5511_s19 + $0xd18] sm:$0xff] }
 0x235   : > { %3999 = vmatprep.subr.bf16.mxu0 %v4599_v31 }
 0x236   : > { %4041 = vmatpush2.bf16.msra.mxu1 %v4734_v29  ;;  %v3711_v29 = vadd.f32 %v3710_v2, %v3667_v62  ;;  %v4934_v62 = vcombine.low %v754_v48, %v758_v49  ;;  %v738_v2 = vld [vmem:[%s5511_s19 + $0xc58] sm:$0xff] }
 0x237   : > { %4042 = vmatprep.subr.bf16.mxu1 %v4727_v63 }
 0x238   : > { %4000 = vmatpush2.bf16.msra.mxu0 %v4598_v4 }
 0x239   : > { %4001 = vmatprep.subr.bf16.mxu0 %v4591_v44  ;;  %v626_v44 = vld [vmem:[%s5511_s19 + $0x8d8] sm:$0xff] }
 0x23a   : > { %4043 = vmatpush2.bf16.msra.mxu1 %v4726_v43  ;;  %v4943_v43 = vcombine.high %v762_v27, %v766_v28 }
 0x23b   : > { %4044 = vmatprep.subr.bf16.mxu1 %v4719_v46  ;;  %v330_v46 = vld [vmem:[%s5524_s25 + $0x58] sm:$0xff] }
 0x23c   : > { %4002 = vmatpush2.bf16.msra.mxu0 %v4590_v51 }
 0x23d   : > { %4057 = vmatprep.subr.bf16.mxu0 %v4839_v55  ;;  %v4807_v55 = vcombine.high %v626_v44, %v630_v45 }
 0x23e   : > { %4045 = vmatpush2.bf16.msra.mxu1 %v4718_v54  ;;  %v4942_v54 = vcombine.low %v762_v27, %v766_v28  ;;  %v842_v27 = vld [vmem:[%s5511_s19 + $0xf98] sm:$0xff] }
 0x23f   : > { %4100 = vmatprep.subr.bf16.mxu1 %v4967_v58  ;;  %v3747_v10 = vpop.f32.mrf.mxu0  ;;  %4004 = vmatmul.mubr.bf16.vlgmr.msra.gmra.mxu0 %v5638_v30  ;;  %v4951_v30 = vcombine.high %v770_v7, %v774_v9  ;;  %v4935_v58 = vcombine.high %v754_v48, %v758_v49  ;;  %v4926_v7 = vcombine.low %v746_v61, %v750_v32  ;;  %v846_v28 = vld [vmem:[%s5511_s19 + $0xfb8] sm:$0xff] }
 0x240   : > { %v3748_v12 = vadd.f32 %v3747_v10, %v3705_v3  ;;  %4058 = vmatpush1.bf16.msra.mxu0 %v4838_v33  ;;  %4089 = vmatprep.mubr.bf16.mxu0 %v5661_v41  ;;  %v4806_v33 = vcombine.low %v626_v44, %v630_v45  ;;  %v614_v3 = vld [vmem:[%s5511_s19 + $0x878] sm:$0xff] }
 0x241   : > { %v3790_v13 = vpop.f32.mrf.mxu1  ;;  %4047 = vmatmul.mubr.bf16.vlgmr.msra.gmra.mxu1 %v5649_v34  ;;  %v3749_v16 = vpop.f32.mrf.mxu0  ;;  %4059 = vmatprep.subr.bf16.mxu0 %v4831_v37  ;;  %v634_v34 = vld [vmem:[%s5511_s19 + $0x918] sm:$0xff]  ;;  %v4927_v37 = vcombine.high %v746_v61, %v750_v32  ;;  %v4791_v9 = vcombine.high %v610_v1, %v614_v3 }
 0x242   : > { %4101 = vmatpush1.bf16.msra.mxu1 %v4966_v36  ;;  %v3791_v20 = vadd.f32 %v3790_v13, %v3748_v12  ;;  %v3750_v21 = vadd.f32 %v3749_v16, %v3707_v11  ;;  %4132 = vmatprep.mubr.bf16.mxu1 %v5668_v42  ;;  %v4815_v40 = vcombine.high %v634_v34, %v638_v23  ;;  %v602_v11 = vld [vmem:[%s5511_s19 + $0x818] sm:$0xff] }
 0x243   : > { %v3792_v22 = vpop.f32.mrf.mxu1  ;;  %4102 = vmatprep.subr.bf16.mxu1 %v4959_v8  ;;  %v3751_v25 = vpop.f32.mrf.mxu0  ;;  %v4814_v52 = vcombine.low %v634_v34, %v638_v23  ;;  %v4799_v36 = vcombine.high %v618_v59, %v622_v60  ;;  %v742_v8 = vld [vmem:[%s5511_s19 + $0xc78] sm:$0xff] }
 0x244   : > { %v4145_v31 = vadd.f32 %v3791_v20, %v321_v15  ;;  %v3793_v35 = vadd.f32 %v3792_v22, %v3750_v21  ;;  %v3752_v63 = vadd.f32 %v3751_v25, %v3709_v19  ;;  %4060 = vmatpush1.bf16.msra.mxu0 %v4830_v14  ;;  %v4919_v10 = vcombine.high %v738_v2, %v742_v8  ;;  %v606_v12 = vld [vmem:[%s5511_s19 + $0x838] sm:$0xff] }
 0x245   : > { %v3794_v0 = vpop.f32.mrf.mxu1  ;;  %v3753_v41 = vpop.f32.mrf.mxu0  ;;  %4061 = vmatprep.subr.bf16.mxu0 %v4823_v18  ;;  %v730_v13 = vld [vmem:[%s5511_s19 + $0xc18] sm:$0xff]  ;;  %v4790_v15 = vcombine.low %v610_v1, %v614_v3  ;;  %v4918_v16 = vcombine.low %v738_v2, %v742_v8  ;;  %v4782_v22 = vcombine.low %v602_v11, %v606_v12 }
 0x246   : > { %4103 = vmatpush1.bf16.msra.mxu1 %v4958_v17  ;;  %4161 = vst [vmem:[%s5524_s25 + $0x10] sm:$0xff] %v4145_v31  ;;  %v4146_v42 = vadd.f32 %v3793_v35, %v322_v24  ;;  %v3795_v4 = vadd.f32 %v3794_v0, %v3752_v63  ;;  %v3754_v5 = vadd.f32 %v3753_v41, %v3711_v29  ;;  %v734_v14 = vld [vmem:[%s5511_s19 + $0xc38] sm:$0xff] }
 0x247   : > { %4104 = vmatprep.subr.bf16.mxu1 %v4951_v30  ;;  %v3796_v47 = vpop.f32.mrf.mxu1  ;;  %v4783_v17 = vcombine.high %v602_v11, %v606_v12  ;;  %v4911_v18 = vcombine.high %v730_v13, %v734_v14  ;;  %v722_v30 = vld [vmem:[%s5511_s19 + $0xbd8] sm:$0xff]  ;;  %v4910_v34 = vcombine.low %v730_v13, %v734_v14  ;;  %v5023_v63 = vcombine.high %v842_v27, %v846_v28 }
 0x248   : > { %4162 = vst [vmem:[%s5524_s25 + $0x18] sm:$0xff] %v4146_v42  ;;  %v4153_v50 = vadd.f32 %v3795_v4, %v329_v38  ;;  %v3797_v51 = vadd.f32 %v3796_v47, %v3754_v5  ;;  %4062 = vmatpush1.bf16.msra.mxu0 %v4822_v26  ;;  %v726_v19 = vld [vmem:[%s5511_s19 + $0xbf8] sm:$0xff]  ;;  %v5022_v42 = vcombine.low %v842_v27, %v846_v28 }
 0x249   : > { %4063 = vmatprep.subr.bf16.mxu0 %v4815_v40  ;;  %v850_v20 = vld [vmem:[%s5511_s19 + $0xfd8] sm:$0xff]  ;;  %v4903_v23 = vcombine.high %v722_v30, %v726_v19  ;;  %v4902_v29 = vcombine.low %v722_v30, %v726_v19 }
 0x24a   : > { %4105 = vmatpush1.bf16.msra.mxu1 %v4950_v39  ;;  %4169 = vst [vmem:[%s5524_s25 + $0x50] sm:$0xff] %v4153_v50  ;;  %v4154_v57 = vadd.f32 %v3797_v51, %v330_v46  ;;  %v854_v21 = vld [vmem:[%s5511_s19 + $0xff8] sm:$0xff] }
 0x24b   : > { %4106 = vmatprep.subr.bf16.mxu1 %v4943_v43  ;;  %v5031_v24 = vcombine.high %v850_v20, %v854_v21  ;;  %v714_v25 = vld [vmem:[%s5511_s19 + $0xb98] sm:$0xff]  ;;  %v5030_v31 = vcombine.low %v850_v20, %v854_v21 }
 0x24c   : > { %4170 = vst [vmem:[%s5524_s25 + $0x58] sm:$0xff] %v4154_v57  ;;  %4064 = vmatpush1.bf16.msra.mxu0 %v4814_v52  ;;  %v718_v26 = vld [vmem:[%s5511_s19 + $0xbb8] sm:$0xff] }
 0x24d   : > { %4065 = vmatprep.subr.bf16.mxu0 %v4807_v55  ;;  %v4895_v35 = vcombine.high %v714_v25, %v718_v26  ;;  %v706_v0 = vld [vmem:[%s5511_s19 + $0xb58] sm:$0xff]  ;;  %v4894_v40 = vcombine.low %v714_v25, %v718_v26 }
 0x24e   : > { %4107 = vmatpush1.bf16.msra.mxu1 %v4942_v54  ;;  %v710_v38 = vld [vmem:[%s5511_s19 + $0xb78] sm:$0xff] }
 0x24f   : > { %4108 = vmatprep.subr.bf16.mxu1 %v4935_v58  ;;  %v834_v41 = vld [vmem:[%s5511_s19 + $0xf58] sm:$0xff]  ;;  %v4887_v4 = vcombine.high %v706_v0, %v710_v38  ;;  %v4886_v47 = vcombine.low %v706_v0, %v710_v38  ;;  %v323_v38 = vld [vmem:[%s5524_s25 + $0x20] sm:$0xff] }
 0x250   : > { %4066 = vmatpush1.bf16.msra.mxu0 %v4806_v33  ;;  %v838_v39 = vld [vmem:[%s5511_s19 + $0xf78] sm:$0xff] }
 0x251   : > { %4067 = vmatprep.subr.bf16.mxu0 %v4799_v36  ;;  %v5015_v5 = vcombine.high %v834_v41, %v838_v39  ;;  %v698_v43 = vld [vmem:[%s5511_s19 + $0xb18] sm:$0xff]  ;;  %v5014_v48 = vcombine.low %v834_v41, %v838_v39 }
 0x252   : > { %4109 = vmatpush1.bf16.msra.mxu1 %v4934_v62  ;;  %v702_v44 = vld [vmem:[%s5511_s19 + $0xb38] sm:$0xff] }
 0x253   : > { %4110 = vmatprep.subr.bf16.mxu1 %v4927_v37  ;;  %v826_v45 = vld [vmem:[%s5511_s19 + $0xf18] sm:$0xff]  ;;  %v4879_v49 = vcombine.high %v698_v43, %v702_v44  ;;  %v4878_v57 = vcombine.low %v698_v43, %v702_v44 }
 0x254   : > { %4068 = vmatpush1.bf16.msra.mxu0 %v4798_v6  ;;  %v830_v46 = vld [vmem:[%s5511_s19 + $0xf38] sm:$0xff] }
 0x255   : > { %4069 = vmatprep.subr.bf16.mxu0 %v4791_v9  ;;  %v5007_v50 = vcombine.high %v826_v45, %v830_v46  ;;  %v690_v51 = vld [vmem:[%s5511_s19 + $0xad8] sm:$0xff]  ;;  %v5006_v58 = vcombine.low %v826_v45, %v830_v46 }
 0x256   : > { %4111 = vmatpush1.bf16.msra.mxu1 %v4926_v7  ;;  %v694_v52 = vld [vmem:[%s5511_s19 + $0xaf8] sm:$0xff] }
 0x257   : > { %4112 = vmatprep.subr.bf16.mxu1 %v4919_v10  ;;  %v818_v54 = vld [vmem:[%s5511_s19 + $0xed8] sm:$0xff]  ;;  %v4871_v59 = vcombine.high %v690_v51, %v694_v52  ;;  %v4870_v36 = vcombine.low %v690_v51, %v694_v52 }
 0x258   : > { %4070 = vmatpush1.bf16.msra.mxu0 %v4790_v15  ;;  %v822_v55 = vld [vmem:[%s5511_s19 + $0xef8] sm:$0xff] }
 0x259   : > { %4071 = vmatprep.subr.bf16.mxu0 %v4783_v17  ;;  %v4999_v60 = vcombine.high %v818_v54, %v822_v55  ;;  %v682_v61 = vld [vmem:[%s5511_s19 + $0xa98] sm:$0xff]  ;;  %v4998_v37 = vcombine.low %v818_v54, %v822_v55 }
 0x25a   : > { %4113 = vmatpush1.bf16.msra.mxu1 %v4918_v16  ;;  %v686_v32 = vld [vmem:[%s5511_s19 + $0xab8] sm:$0xff] }
 0x25b   : > { %4114 = vmatprep.subr.bf16.mxu1 %v4911_v18  ;;  %v810_v33 = vld [vmem:[%s5511_s19 + $0xe98] sm:$0xff]  ;;  %v4863_v1 = vcombine.high %v682_v61, %v686_v32  ;;  %v4862_v9 = vcombine.low %v682_v61, %v686_v32 }
 0x25c   : > { %4072 = vmatpush1.bf16.msra.mxu0 %v4782_v22  ;;  %v814_v62 = vld [vmem:[%s5511_s19 + $0xeb8] sm:$0xff] }
 0x25d   : > { %4073 = vmatprep.subr.bf16.mxu0 %v4903_v23  ;;  %v4991_v3 = vcombine.high %v810_v33, %v814_v62  ;;  %v674_v2 = vld [vmem:[%s5511_s19 + $0xa58] sm:$0xff]  ;;  %v4990_v10 = vcombine.low %v810_v33, %v814_v62 }
 0x25e   : > { %4115 = vmatpush1.bf16.msra.mxu1 %v4910_v34  ;;  %v678_v8 = vld [vmem:[%s5511_s19 + $0xa78] sm:$0xff] }
 0x25f   : > { %4116 = vmatprep.subr.bf16.mxu1 %v5031_v24  ;;  %v802_v6 = vld [vmem:[%s5511_s19 + $0xe58] sm:$0xff]  ;;  %v4855_v11 = vcombine.high %v674_v2, %v678_v8  ;;  %v4854_v17 = vcombine.low %v674_v2, %v678_v8 }
 0x260   : > { %4074 = vmatpush2.bf16.msra.mxu0 %v4902_v29  ;;  %v806_v7 = vld [vmem:[%s5511_s19 + $0xe78] sm:$0xff] }
 0x261   : > { %4075 = vmatprep.subr.bf16.mxu0 %v4895_v35  ;;  %v4983_v12 = vcombine.high %v802_v6, %v806_v7  ;;  %v666_v13 = vld [vmem:[%s5511_s19 + $0xa18] sm:$0xff]  ;;  %v4982_v18 = vcombine.low %v802_v6, %v806_v7  ;;  %v325_v7 = vld [vmem:[%s5524_s25 + $0x30] sm:$0xff] }
 0x262   : > { %4117 = vmatpush2.bf16.msra.mxu1 %v5030_v31  ;;  %v670_v14 = vld [vmem:[%s5511_s19 + $0xa38] sm:$0xff] }
 0x263   : > { %4118 = vmatprep.subr.bf16.mxu1 %v5023_v63  ;;  %v794_v15 = vld [vmem:[%s5511_s19 + $0xe18] sm:$0xff]  ;;  %v4847_v30 = vcombine.high %v666_v13, %v670_v14  ;;  %v4846_v20 = vcombine.low %v666_v13, %v670_v14  ;;  %v326_v14 = vld [vmem:[%s5524_s25 + $0x38] sm:$0xff] }
 0x264   : > { %4076 = vmatpush2.bf16.msra.mxu0 %v4894_v40  ;;  %v798_v16 = vld [vmem:[%s5511_s19 + $0xe38] sm:$0xff] }
 0x265   : > { %4077 = vmatprep.subr.bf16.mxu0 %v4887_v4  ;;  %v4975_v19 = vcombine.high %v794_v15, %v798_v16  ;;  %v4974_v21 = vcombine.low %v794_v15, %v798_v16  ;;  %v332_v52 = vld [vmem:[%s5524_s25 + $0x68] sm:$0xff] }
 0x266   : > { %4119 = vmatpush2.bf16.msra.mxu1 %v5022_v42  ;;  %v324_v42 = vld [vmem:[%s5524_s25 + $0x28] sm:$0xff] }
 0x267   : > { %4120 = vmatprep.subr.bf16.mxu1 %v5015_v5 }
 0x268   : > { %4078 = vmatpush2.bf16.msra.mxu0 %v4886_v47  ;;  %v331_v47 = vld [vmem:[%s5524_s25 + $0x60] sm:$0xff] }
 0x269   : > { %4079 = vmatprep.subr.bf16.mxu0 %v4879_v49 }
 0x26a   : > { %4121 = vmatpush2.bf16.msra.mxu1 %v5014_v48 }
 0x26b   : > { %4122 = vmatprep.subr.bf16.mxu1 %v5007_v50 }
 0x26c   : > { %4080 = vmatpush2.bf16.msra.mxu0 %v4878_v57 }
 0x26d   : > { %4081 = vmatprep.subr.bf16.mxu0 %v4871_v59 }
 0x26e   : > { %4123 = vmatpush2.bf16.msra.mxu1 %v5006_v58 }
 0x26f   : > { %4124 = vmatprep.subr.bf16.mxu1 %v4999_v60 }
 0x270   : > { %4082 = vmatpush2.bf16.msra.mxu0 %v4870_v36 }
 0x271   : > { %4083 = vmatprep.subr.bf16.mxu0 %v4863_v1 }
 0x272   : > { %4125 = vmatpush2.bf16.msra.mxu1 %v4998_v37 }
 0x273   : > { %4126 = vmatprep.subr.bf16.mxu1 %v4991_v3 }
 0x274   : > { %4084 = vmatpush2.bf16.msra.mxu0 %v4862_v9 }
 0x275   : > { %4085 = vmatprep.subr.bf16.mxu0 %v4855_v11 }
 0x276   : > { %4127 = vmatpush2.bf16.msra.mxu1 %v4990_v10 }
 0x277   : > { %4128 = vmatprep.subr.bf16.mxu1 %v4983_v12 }
 0x278   : > { %4086 = vmatpush2.bf16.msra.mxu0 %v4854_v17 }
 0x279   : > { %4087 = vmatprep.subr.bf16.mxu0 %v4847_v30 }
 0x27a   : > { %4129 = vmatpush2.bf16.msra.mxu1 %v4982_v18 }
 0x27b   : > { %4130 = vmatprep.subr.bf16.mxu1 %v4975_v19 }
 0x27c   : > { %4088 = vmatpush2.bf16.msra.mxu0 %v4846_v20  ;;  %v333_v20 = vld [vmem:[%s5524_s25 + $0x70] sm:$0xff] }
 0x27e   : > { %4131 = vmatpush2.bf16.msra.mxu1 %v4974_v21 }
 0x27f   : > { %4090 = vmatmul.mubr.bf16.vlgmr.msra.gmra.mxu0 %v5733_v53  ;;  %v3833_v22 = vpop.f32.mrf.mxu0 }
 0x281   : > { %4133 = vmatmul.mubr.bf16.vlgmr.msra.gmra.mxu1 %v5739_v56  ;;  %v3876_v34 = vpop.f32.mrf.mxu1  ;;  %v3835_v23 = vpop.f32.mrf.mxu0 }
 0x282   : > { %v3877_v28 = vadd.f32 %v3876_v34, %v3833_v22 }
 0x283   : > { %v3878_v24 = vpop.f32.mrf.mxu1  ;;  %v3837_v25 = vpop.f32.mrf.mxu0 }
 0x284   : > { %v3879_v35 = vadd.f32 %v3878_v24, %v3835_v23  ;;  %v334_v24 = vld [vmem:[%s5524_s25 + $0x78] sm:$0xff] }
 0x285   : > { %v3880_v26 = vpop.f32.mrf.mxu1  ;;  %v3839_v27 = vpop.f32.mrf.mxu0 }
 0x286   : > { %v3881_v41 = vadd.f32 %v3880_v26, %v3837_v25 }
 0x287   : > { %v3882_v29 = vpop.f32.mrf.mxu1 }
 0x288   : > { %v3883_v5 = vadd.f32 %v3882_v29, %v3839_v27 }
 0x2bf   : > { %v3919_v31 = vpop.f32.mrf.mxu0 }
 0x2c0   : > { %v3920_v63 = vadd.f32 %v3919_v31, %v3877_v28 }
 0x2c1   : > { %v3962_v0 = vpop.f32.mrf.mxu1  ;;  %v3921_v53 = vpop.f32.mrf.mxu0 }
 0x2c2   : > { %v3963_v56 = vadd.f32 %v3962_v0, %v3920_v63  ;;  %v3922_v39 = vadd.f32 %v3921_v53, %v3879_v35 }
 0x2c3   : > { %v3964_v40 = vpop.f32.mrf.mxu1  ;;  %v3923_v4 = vpop.f32.mrf.mxu0 }
 0x2c4   : > { %v4147_v43 = vadd.f32 %v3963_v56, %v323_v38  ;;  %v3965_v44 = vadd.f32 %v3964_v40, %v3922_v39  ;;  %v3924_v45 = vadd.f32 %v3923_v4, %v3881_v41 }
 0x2c5   : > { %v3966_v46 = vpop.f32.mrf.mxu1  ;;  %v3925_v48 = vpop.f32.mrf.mxu0 }
 0x2c6   : > { %4163 = vst [vmem:[%s5524_s25 + $0x20] sm:$0xff] %v4147_v43  ;;  %v4148_v49 = vadd.f32 %v3965_v44, %v324_v42  ;;  %v3967_v50 = vadd.f32 %v3966_v46, %v3924_v45  ;;  %v3926_v51 = vadd.f32 %v3925_v48, %v3883_v5 }
 0x2c7   : > { %v3968_v54 = vpop.f32.mrf.mxu1 }
 0x2c8   : > { %4164 = vst [vmem:[%s5524_s25 + $0x28] sm:$0xff] %v4148_v49  ;;  %v4155_v55 = vadd.f32 %v3967_v50, %v331_v47  ;;  %v3969_v57 = vadd.f32 %v3968_v54, %v3926_v51 }
 0x2ca   : > { %4171 = vst [vmem:[%s5524_s25 + $0x60] sm:$0xff] %v4155_v55  ;;  %v4156_v58 = vadd.f32 %v3969_v57, %v332_v52 }
 0x2cc   : > { %4172 = vst [vmem:[%s5524_s25 + $0x68] sm:$0xff] %v4156_v58 }
 0x2ff   : > { %v4005_v59 = vpop.f32.mrf.mxu0 }
 0x301   : > { %v4048_v60 = vpop.f32.mrf.mxu1  ;;  %v4007_v61 = vpop.f32.mrf.mxu0 }
 0x302   : > { %v4049_v37 = vadd.f32 %v4048_v60, %v4005_v59 }
 0x303   : > { %v4050_v32 = vpop.f32.mrf.mxu1  ;;  %v4009_v33 = vpop.f32.mrf.mxu0 }
 0x304   : > { %v4051_v2 = vadd.f32 %v4050_v32, %v4007_v61 }
 0x305   : > { %v4052_v62 = vpop.f32.mrf.mxu1  ;;  %v4011_v36 = vpop.f32.mrf.mxu0 }
 0x306   : > { %v4053_v10 = vadd.f32 %v4052_v62, %v4009_v33 }
 0x307   : > { %v4054_v1 = vpop.f32.mrf.mxu1 }
 0x308   : > { %v4055_v16 = vadd.f32 %v4054_v1, %v4011_v36 }
 0x33f   : > { %v4091_v3 = vpop.f32.mrf.mxu0 }
 0x340   : > { %v4092_v8 = vadd.f32 %v4091_v3, %v4049_v37 }
 0x341   : > { %v4134_v6 = vpop.f32.mrf.mxu1  ;;  %v4093_v9 = vpop.f32.mrf.mxu0 }
 0x342   : > { %v4135_v11 = vadd.f32 %v4134_v6, %v4092_v8  ;;  %v4094_v12 = vadd.f32 %v4093_v9, %v4051_v2 }
 0x343   : > { %v4136_v13 = vpop.f32.mrf.mxu1  ;;  %v4095_v15 = vpop.f32.mrf.mxu0 }
 0x344   : > { %v4149_v17 = vadd.f32 %v4135_v11, %v325_v7  ;;  %v4137_v18 = vadd.f32 %v4136_v13, %v4094_v12  ;;  %v4096_v30 = vadd.f32 %v4095_v15, %v4053_v10 }
 0x345   : > { %v4138_v19 = vpop.f32.mrf.mxu1  ;;  %v4097_v21 = vpop.f32.mrf.mxu0 }
 0x346   : > { %4165 = vst [vmem:[%s5524_s25 + $0x30] sm:$0xff] %v4149_v17  ;;  %v4150_v22 = vadd.f32 %v4137_v18, %v326_v14  ;;  %v4139_v34 = vadd.f32 %v4138_v19, %v4096_v30  ;;  %v4098_v23 = vadd.f32 %v4097_v21, %v4055_v16 }
 0x347   : > { %v4140_v25 = vpop.f32.mrf.mxu1 }
 0x348   : > { %4166 = vst [vmem:[%s5524_s25 + $0x38] sm:$0xff] %v4150_v22  ;;  %v4157_v26 = vadd.f32 %v4139_v34, %v333_v20  ;;  %v4141_v27 = vadd.f32 %v4140_v25, %v4098_v23  ;;  %4178 = sbr.rel (%p5032_p12) target bundleno = 872 (0x368), region = 71 }
 0x34a   : > { %4173 = vst [vmem:[%s5524_s25 + $0x70] sm:$0xff] %v4157_v26  ;;  %v4158_v28 = vadd.f32 %v4141_v27, %v334_v24 }
 0x34c   : > { %4174 = vst [vmem:[%s5524_s25 + $0x78] sm:$0xff] %v4158_v28 }
 0x34d   : > { %v4197_v29 = vlaneseq  ;;  %v4179_v35 = vld [vmem:[%s5524_s25] sm:$0xff]  ;;  %v4195_v63 = vld [vmem:[%s5518_s30] sm:$0xff]  ;;  %v4180_v38 = vld [vmem:[%s5524_s25 + $0x8] sm:$0xff] }
 0x34e   : > { %v4181_v41 = vld [vmem:[%s5524_s25 + $0x10] sm:$0xff]  ;;  %v4182_v40 = vld [vmem:[%s5524_s25 + $0x18] sm:$0xff]  ;;  %v4183_v42 = vld [vmem:[%s5524_s25 + $0x20] sm:$0xff] }
 0x34f   : > { %v4198_v31 = vshrl.u32 %v4197_v29, 7  ;;  %v4184_v49 = vld [vmem:[%s5524_s25 + $0x28] sm:$0xff]  ;;  %v4185_v50 = vld [vmem:[%s5524_s25 + $0x30] sm:$0xff]  ;;  %v4186_v51 = vld [vmem:[%s5524_s25 + $0x38] sm:$0xff] }
 0x350   : > { %v4187_v9 = vld [vmem:[%s5524_s25 + $0x40] sm:$0xff]  ;;  %v4188_v10 = vld [vmem:[%s5524_s25 + $0x48] sm:$0xff]  ;;  %v4189_v14 = vld [vmem:[%s5524_s25 + $0x50] sm:$0xff] }
 0x351   : > { %v4199_v0 = vsub.s32 0, %v4198_v31  ;;  %v4203_v53 = vsub.s32 1, %v4198_v31  ;;  %v4207_v56 = vsub.s32 2, %v4198_v31  ;;  %v4211_v39 = vsub.s32 3, %v4198_v31  ;;  %v4190_v15 = vld [vmem:[%s5524_s25 + $0x58] sm:$0xff]  ;;  %v4191_v16 = vld [vmem:[%s5524_s25 + $0x60] sm:$0xff] }
 0x352   : > { %v4215_v4 = vsub.s32 4, %v4198_v31  ;;  %v4219_v5 = vsub.s32 5, %v4198_v31  ;;  %v4223_v43 = vsub.s32 6, %v4198_v31  ;;  %v4227_v44 = vsub.s32 7, %v4198_v31  ;;  %v4192_v25 = vld [vmem:[%s5524_s25 + $0x68] sm:$0xff]  ;;  %v4193_v28 = vld [vmem:[%s5524_s25 + $0x70] sm:$0xff] }
 0x353   : > { %v4200_v45 = vrot.slane %v4195_v63, %v4199_v0  ;;  %v4204_v46 = vrot.slane %v4195_v63, %v4203_v53  ;;  %v4208_v47 = vrot.slane %v4195_v63, %v4207_v56  ;;  %v4212_v48 = vrot.slane %v4195_v63, %v4211_v39  ;;  %v4194_v29 = vld [vmem:[%s5524_s25 + $0x78] sm:$0xff] }
 0x354   : > { %v4216_v52 = vrot.slane %v4195_v63, %v4215_v4  ;;  %v6193_v54 = vrot.slane %v4195_v63, %v4219_v5  ;;  %v6195_v55 = vrot.slane %v4195_v63, %v4223_v43  ;;  %v6197_v57 = vrot.slane %v4195_v63, %v4227_v44 }
 0x355   : > { %v4237_v58 = vadd.f32 %v4200_v45, %v4179_v35  ;;  %v4238_v59 = vadd.f32 %v4204_v46, %v4180_v38  ;;  %v4239_v60 = vadd.f32 %v4208_v47, %v4181_v41  ;;  %v4240_v61 = vadd.f32 %v4212_v48, %v4182_v40 }
 0x356   : > { %v4241_v32 = vadd.f32 %v4216_v52, %v4183_v42  ;;  %v4242_v33 = vadd.f32 %v6193_v54, %v4184_v49  ;;  %v4243_v62 = vadd.f32 %v6195_v55, %v4185_v50  ;;  %v4244_v36 = vadd.f32 %v6197_v57, %v4186_v51 }
 0x357   : > { %vm4253_vm0 = vcmp.gt.f32.partialorder %v4237_v58, 0.0  ;;  %v4269_v37 = vmul.f32 0.2, %v4237_v58  ;;  %vm4254_vm1 = vcmp.gt.f32.partialorder %v4238_v59, 0.0  ;;  %v4270_v1 = vmul.f32 0.2, %v4238_v59 }
 0x358   : > { %vm4255_vm2 = vcmp.gt.f32.partialorder %v4239_v60, 0.0  ;;  %v4271_v3 = vmul.f32 0.2, %v4239_v60  ;;  %vm4256_vm3 = vcmp.gt.f32.partialorder %v4240_v61, 0.0  ;;  %v4272_v2 = vmul.f32 0.2, %v4240_v61 }
 0x359   : > { %v4285_v8 = vsel %vm4253_vm0, %v4237_v58, %v4269_v37  ;;  %v4286_v6 = vsel %vm4254_vm1, %v4238_v59, %v4270_v1  ;;  %vm4257_vm4 = vcmp.gt.f32.partialorder %v4241_v32, 0.0  ;;  %v4273_v7 = vmul.f32 0.2, %v4241_v32 }
 0x35a   : > { %4301 = vst [vmem:[%s5524_s25] sm:$0xff] %v4285_v8  ;;  %4302 = vst [vmem:[%s5524_s25 + $0x8] sm:$0xff] %v4286_v6  ;;  %v4287_v11 = vsel %vm4255_vm2, %v4239_v60, %v4271_v3  ;;  %v4288_v12 = vsel %vm4256_vm3, %v4240_v61, %v4272_v2  ;;  %vm4258_vm5 = vcmp.gt.f32.partialorder %v4242_v33, 0.0  ;;  %v4274_v13 = vmul.f32 0.2, %v4242_v33 }
 0x35b   : > { %4303 = vst [vmem:[%s5524_s25 + $0x10] sm:$0xff] %v4287_v11  ;;  %4304 = vst [vmem:[%s5524_s25 + $0x18] sm:$0xff] %v4288_v12  ;;  %v4289_v17 = vsel %vm4257_vm4, %v4241_v32, %v4273_v7  ;;  %vm4259_vm6 = vcmp.gt.f32.partialorder %v4243_v62, 0.0  ;;  %v4275_v18 = vmul.f32 0.2, %v4243_v62  ;;  %vm4260_vm7 = vcmp.gt.f32.partialorder %v4244_v36, 0.0 }
 0x35c   : > { %4305 = vst [vmem:[%s5524_s25 + $0x20] sm:$0xff] %v4289_v17  ;;  %v4290_v30 = vsel %vm4258_vm5, %v4242_v33, %v4274_v13  ;;  %v4276_v19 = vmul.f32 0.2, %v4244_v36  ;;  %v4245_v20 = vadd.f32 %v4200_v45, %v4187_v9  ;;  %v4246_v21 = vadd.f32 %v4204_v46, %v4188_v10 }
 0x35d   : > { %4306 = vst [vmem:[%s5524_s25 + $0x28] sm:$0xff] %v4290_v30  ;;  %v4291_v22 = vsel %vm4259_vm6, %v4243_v62, %v4275_v18  ;;  %v4247_v34 = vadd.f32 %v4208_v47, %v4189_v14  ;;  %v4248_v23 = vadd.f32 %v4212_v48, %v4190_v15  ;;  %v4249_v24 = vadd.f32 %v4216_v52, %v4191_v16 }
 0x35e   : > { %4307 = vst [vmem:[%s5524_s25 + $0x30] sm:$0xff] %v4291_v22  ;;  %v4292_v26 = vsel %vm4260_vm7, %v4244_v36, %v4276_v19  ;;  %vm4261_vm8 = vcmp.gt.f32.partialorder %v4245_v20, 0.0  ;;  %v4277_v27 = vmul.f32 0.2, %v4245_v20  ;;  %vm4262_vm9 = vcmp.gt.f32.partialorder %v4246_v21, 0.0 }
 0x35f   : > { %4308 = vst [vmem:[%s5524_s25 + $0x38] sm:$0xff] %v4292_v26  ;;  %v4278_v31 = vmul.f32 0.2, %v4246_v21  ;;  %vm4263_vm10 = vcmp.gt.f32.partialorder %v4247_v34, 0.0  ;;  %v4279_v35 = vmul.f32 0.2, %v4247_v34  ;;  %v4250_v56 = vadd.f32 %v6193_v54, %v4192_v25 }
 0x360   : > { %vm4264_vm11 = vcmp.gt.f32.partialorder %v4248_v23, 0.0  ;;  %v4293_v63 = vsel %vm4261_vm8, %v4245_v20, %v4277_v27  ;;  %v4280_v0 = vmul.f32 0.2, %v4248_v23  ;;  %vm4265_vm12 = vcmp.gt.f32.partialorder %v4249_v24, 0.0 }
 0x361   : > { %v4281_v38 = vmul.f32 0.2, %v4249_v24  ;;  %4309 = vst [vmem:[%s5524_s25 + $0x40] sm:$0xff] %v4293_v63  ;;  %v4294_v53 = vsel %vm4262_vm9, %v4246_v21, %v4278_v31  ;;  %v4295_v41 = vsel %vm4263_vm10, %v4247_v34, %v4279_v35  ;;  %v4251_v39 = vadd.f32 %v6195_v55, %v4193_v28 }
 0x362   : > { %4310 = vst [vmem:[%s5524_s25 + $0x48] sm:$0xff] %v4294_v53  ;;  %4311 = vst [vmem:[%s5524_s25 + $0x50] sm:$0xff] %v4295_v41  ;;  %v4296_v40 = vsel %vm4264_vm11, %v4248_v23, %v4280_v0  ;;  %v4252_v4 = vadd.f32 %v6197_v57, %v4194_v29  ;;  %vm4266_vm13 = vcmp.gt.f32.partialorder %v4250_v56, 0.0  ;;  %v4282_v5 = vmul.f32 0.2, %v4250_v56 }
 0x363   : > { %v4297_v42 = vsel %vm4265_vm12, %v4249_v24, %v4281_v38  ;;  %4312 = vst [vmem:[%s5524_s25 + $0x58] sm:$0xff] %v4296_v40  ;;  %vm4267_vm14 = vcmp.gt.f32.partialorder %v4251_v39, 0.0  ;;  %v4283_v43 = vmul.f32 0.2, %v4251_v39 }
 0x364   : > { %4313 = vst [vmem:[%s5524_s25 + $0x60] sm:$0xff] %v4297_v42  ;;  %vm4268_vm15 = vcmp.gt.f32.partialorder %v4252_v4, 0.0  ;;  %v4284_v44 = vmul.f32 0.2, %v4252_v4  ;;  %v4298_v45 = vsel %vm4266_vm13, %v4250_v56, %v4282_v5 }
 0x365   : > { %v4299_v46 = vsel %vm4267_vm14, %v4251_v39, %v4283_v43  ;;  %4314 = vst [vmem:[%s5524_s25 + $0x68] sm:$0xff] %v4298_v45 }
 0x366   : > { %4315 = vst [vmem:[%s5524_s25 + $0x70] sm:$0xff] %v4299_v46  ;;  %v4300_v47 = vsel %vm4268_vm15, %v4252_v4, %v4284_v44 }
 0x367   : > { %4316 = vst [vmem:[%s5524_s25 + $0x78] sm:$0xff] %v4300_v47 }
 0x368 PF: > { %4323 = sbr.rel (!%p5474_p6) target bundleno = 888 (0x378), region = 75  ;;  %s6325_s20 = sld [smem:[#allocation12_spill]] (%p5474_p6)  ;;  %v4339_v48 = vld [vmem:[%s5524_s25] sm:$0xff] (%p5474_p6)  ;;  %v4341_v49 = vld [vmem:[%s5524_s25 + $0x8] sm:$0xff] (%p5474_p6)  ;;  %v4343_v50 = vld [vmem:[%s5524_s25 + $0x10] sm:$0xff] (%p5474_p6) }
 0x369   : > { %s6326_s6 = sld [smem:[#allocation21_spill]] (%p5474_p6)  ;;  %v4345_v51 = vld [vmem:[%s5524_s25 + $0x18] sm:$0xff] (%p5474_p6)  ;;  %v4347_v52 = vld [vmem:[%s5524_s25 + $0x20] sm:$0xff] (%p5474_p6)  ;;  %v4349_v54 = vld [vmem:[%s5524_s25 + $0x28] sm:$0xff] (%p5474_p6) }
 0x36a   : > { %v4351_v55 = vld [vmem:[%s5524_s25 + $0x30] sm:$0xff] (%p5474_p6)  ;;  %v4353_v57 = vld [vmem:[%s5524_s25 + $0x38] sm:$0xff] (%p5474_p6)  ;;  %v4355_v58 = vld [vmem:[%s5524_s25 + $0x40] sm:$0xff] (%p5474_p6) }
 0x36b   : > { %v4357_v59 = vld [vmem:[%s5524_s25 + $0x48] sm:$0xff] (%p5474_p6)  ;;  %v4359_v60 = vld [vmem:[%s5524_s25 + $0x50] sm:$0xff] (%p5474_p6)  ;;  %v4361_v61 = vld [vmem:[%s5524_s25 + $0x58] sm:$0xff] (%p5474_p6) }
 0x36c   : > { %v4363_v32 = vld [vmem:[%s5524_s25 + $0x60] sm:$0xff] (%p5474_p6)  ;;  %v4365_v33 = vld [vmem:[%s5524_s25 + $0x68] sm:$0xff] (%p5474_p6) }
 0x36d   : > { %v4367_v62 = vld [vmem:[%s5524_s25 + $0x70] sm:$0xff] }
 0x36e   : > { %s5041_s10 = sshll.u32 %s6325_s20, 6  ;;  %v4369_v36 = vld [vmem:[%s5524_s25 + $0x78] sm:$0xff] }
 0x36f   : > { %s4326_s17 = scalar_lea.vmem %s6326_s6, %s5041_s10 }
 0x370   : > { %4340 = vst [vmem:[%s4326_s17] sm:$0xff] %v4339_v48  ;;  %4342 = vst [vmem:[%s4326_s17 + $0x8] sm:$0xff] %v4341_v49 }
 0x371   : > { %4344 = vst [vmem:[%s4326_s17 + $0x10] sm:$0xff] %v4343_v50  ;;  %4346 = vst [vmem:[%s4326_s17 + $0x18] sm:$0xff] %v4345_v51 }
 0x372   : > { %4348 = vst [vmem:[%s4326_s17 + $0x20] sm:$0xff] %v4347_v52  ;;  %4350 = vst [vmem:[%s4326_s17 + $0x28] sm:$0xff] %v4349_v54 }
 0x373   : > { %4352 = vst [vmem:[%s4326_s17 + $0x30] sm:$0xff] %v4351_v55  ;;  %4354 = vst [vmem:[%s4326_s17 + $0x38] sm:$0xff] %v4353_v57 }
 0x374   : > { %4356 = vst [vmem:[%s4326_s17 + $0x80] sm:$0xff] %v4355_v58  ;;  %4358 = vst [vmem:[%s4326_s17 + $0x88] sm:$0xff] %v4357_v59 }
 0x375   : > { %4360 = vst [vmem:[%s4326_s17 + $0x90] sm:$0xff] %v4359_v60  ;;  %4362 = vst [vmem:[%s4326_s17 + $0x98] sm:$0xff] %v4361_v61 }
 0x376   : > { %4364 = vst [vmem:[%s4326_s17 + $0xa0] sm:$0xff] %v4363_v32  ;;  %4366 = vst [vmem:[%s4326_s17 + $0xa8] sm:$0xff] %v4365_v33 }
 0x377   : > { %4368 = vst [vmem:[%s4326_s17 + $0xb0] sm:$0xff] %v4367_v62  ;;  %4370 = vst [vmem:[%s4326_s17 + $0xb8] sm:$0xff] %v4369_v36 }
 0x378 PF: > { %s19_s24 = sadd.s32 1, %s5316_s24   ;;  %s6328_s21 = sld [smem:[#allocation18_spill]] }
 0x379   : > { %p6252_p4 = scmp.ge.s32.totalorder %s19_s24, 12   ;;  %s6329_s7 = sld [smem:[#allocation10_spill]] }
 0x37a   : > { %s6330_s17 = sld [smem:[#allocation17_spill]]  ;;  %s6336_s12 = smov %s5272_s13 }
 0x37b   : > { %s6331_s18 = sld [smem:[#allocation11_spill]]  ;;  %s6337_s13 = smov %s5276_s14 }
 0x37c   : > { %s6332_s19 = sld [smem:[#allocation16_spill]]  ;;  %s6339_s15 = smov %s5284_s16 }
 0x37d   : > { %s6333_s20 = sld [smem:[#allocation13_spill]] }
 0x37e   : > { %s6334_s22 = sld [smem:[#allocation14_spill]]  ;;  %s6338_s14 = smov %s6328_s21 }
 0x37f   : > { %s6335_s11 = sld [smem:[#allocation15_spill]]  ;;  %s6340_s16 = smov %s6329_s7 }
 0x380   : > { %s6341_s21 = smov %s5312_s23 }
 0x381   :  { %18 = sbr.rel (!%p6252_p4) target bundleno = 14 (0xe), region = 147 }
 0x385   : > { %s6342_s23 = smov %s6335_s11 }
 0x386   :  { %4386 = vsyncpa [#allocation4], 1 }
 0x387   :  { %4388 = vsyncpa [#allocation4 + $0x1], 1 }
 0x388   :  { %4389 = vsyncpa [#allocation6], 1 }
 0x389   :  { %4391 = vsyncpa [#allocation6 + $0x1], 1 }

// kernel: discriminator_forward.3
= control target key start
LH: loop header
LB: loop body
LE: loop exit
PB: predicated region body
PF: predicated region fallthrough
CT: control target
= control target key end

     0   :  { %s19829_s1 = inlined_call_operand.vmem [shape: bf16[2048,1024], index: 1, kind: input, shape index: {}]   ;;  %s19830_s0 = inlined_call_operand.vmem [shape: f32[16,2048], index: 0, kind: input, shape index: {}]   ;;  %s19831_s2 = inlined_call_operand.vmem [shape: f32[1,1024], index: 2, kind: input, shape index: {}]   ;;  %s19832_s3 = inlined_call_operand.vmem [shape: bf16[1024,640], index: 3, kind: input, shape index: {}]   ;;  %s19833_s5 = inlined_call_operand.vmem [shape: bf16[640,384], index: 5, kind: input, shape index: {}]   ;;  %s19834_s4 = inlined_call_operand.vmem [shape: f32[1,640], index: 4, kind: input, shape index: {}]   ;;  %s19835_s7 = inlined_call_operand.vmem [shape: bf16[384,256], index: 7, kind: input, shape index: {}]   ;;  %s19836_s6 = inlined_call_operand.vmem [shape: f32[1,384], index: 6, kind: input, shape index: {}]   ;;  %s19837_s9 = inlined_call_operand.vmem [shape: bf16[256,128], index: 9, kind: input, shape index: {}]   ;;  %s19838_s11 = inlined_call_operand.vmem [shape: bf16[128,128], index: 11, kind: input, shape index: {}]   ;;  %s19839_s8 = inlined_call_operand.vmem [shape: f32[1,256], index: 8, kind: input, shape index: {}]   ;;  %s19840_s10 = inlined_call_operand.vmem [shape: f32[1,128], index: 10, kind: input, shape index: {}]   ;;  %s19841_s12 = inlined_call_operand.vmem [shape: f32[1,128], index: 12, kind: input, shape index: {}]   ;;  %s19842_s13 = inlined_call_operand.vmem [shape: f32[16,128], index: 13, kind: output, shape index: {}]  }
   0x1   :  { %v149_v0 = vld [vmem:[%s19829_s1 + $0x1c0] sm:$0xff]  ;;  %v46_v54 = vld [vmem:[%s19830_s0 + $0x8] sm:$0xff]  ;;  %v48_v59 = vld [vmem:[%s19830_s0 + $0x18] sm:$0xff] }
   0x2   :  { %v153_v1 = vld [vmem:[%s19829_s1 + $0x1e0] sm:$0xff]  ;;  %v62_v55 = vld [vmem:[%s19830_s0 + $0x88] sm:$0xff]  ;;  %v64_v60 = vld [vmem:[%s19830_s0 + $0x98] sm:$0xff] }
   0x3   :  { %v277_v2 = vld [vmem:[%s19829_s1 + $0x5c0] sm:$0xff]  ;;  %v12189_v3 = vcombine.high %v149_v0, %v153_v1  ;;  %v12188_v5 = vcombine.low %v149_v0, %v153_v1  ;;  %v14772_v58 = vpack.c.bf16 %v62_v55, %v46_v54  ;;  %v14786_v63 = vpack.c.bf16 %v64_v60, %v48_v59 }
   0x4   :  { %v281_v4 = vld [vmem:[%s19829_s1 + $0x5e0] sm:$0xff] }
   0x5   :  { %v141_v6 = vld [vmem:[%s19829_s1 + $0x180] sm:$0xff]  ;;  %v12317_v8 = vcombine.high %v277_v2, %v281_v4  ;;  %v12316_v9 = vcombine.low %v277_v2, %v281_v4  ;;  %6279 = vmatprep.subr.bf16.mxu0 %v12189_v3  ;;  %6311 = vmatprep.mubr.bf16.mxu0 %v14772_v58 }
   0x6   :  { %v145_v7 = vld [vmem:[%s19829_s1 + $0x1a0] sm:$0xff]  ;;  %6280 = vmatpush1.bf16.msra.mxu0 %v12188_v5  ;;  %6354 = vmatprep.mubr.bf16.mxu1 %v14786_v63 }
   0x7   :  { %v12181_v10 = vcombine.high %v141_v6, %v145_v7  ;;  %v269_v11 = vld [vmem:[%s19829_s1 + $0x580] sm:$0xff]  ;;  %6322 = vmatprep.subr.bf16.mxu1 %v12317_v8  ;;  %v12180_v18 = vcombine.low %v141_v6, %v145_v7 }
   0x8   :  { %v273_v12 = vld [vmem:[%s19829_s1 + $0x5a0] sm:$0xff]  ;;  %6323 = vmatpush1.bf16.msra.mxu1 %v12316_v9 }
   0x9   :  { %v133_v13 = vld [vmem:[%s19829_s1 + $0x140] sm:$0xff]  ;;  %v12309_v14 = vcombine.high %v269_v11, %v273_v12  ;;  %6281 = vmatprep.subr.bf16.mxu0 %v12181_v10  ;;  %v12308_v19 = vcombine.low %v269_v11, %v273_v12 }
   0xa   :  { %v137_v15 = vld [vmem:[%s19829_s1 + $0x160] sm:$0xff]  ;;  %6282 = vmatpush1.bf16.msra.mxu0 %v12180_v18 }
   0xb   :  { %v261_v16 = vld [vmem:[%s19829_s1 + $0x540] sm:$0xff]  ;;  %v12173_v20 = vcombine.high %v133_v13, %v137_v15  ;;  %6324 = vmatprep.subr.bf16.mxu1 %v12309_v14  ;;  %v12172_v26 = vcombine.low %v133_v13, %v137_v15 }
   0xc   :  { %v265_v17 = vld [vmem:[%s19829_s1 + $0x560] sm:$0xff]  ;;  %6325 = vmatpush1.bf16.msra.mxu1 %v12308_v19 }
   0xd   :  { %v12301_v21 = vcombine.high %v261_v16, %v265_v17  ;;  %v125_v22 = vld [vmem:[%s19829_s1 + $0x100] sm:$0xff]  ;;  %6283 = vmatprep.subr.bf16.mxu0 %v12173_v20  ;;  %v12300_v27 = vcombine.low %v261_v16, %v265_v17 }
   0xe   :  { %v129_v23 = vld [vmem:[%s19829_s1 + $0x120] sm:$0xff]  ;;  %6284 = vmatpush1.bf16.msra.mxu0 %v12172_v26 }
   0xf   :  { %v253_v24 = vld [vmem:[%s19829_s1 + $0x500] sm:$0xff]  ;;  %v12165_v28 = vcombine.high %v125_v22, %v129_v23  ;;  %6326 = vmatprep.subr.bf16.mxu1 %v12301_v21  ;;  %v12164_v34 = vcombine.low %v125_v22, %v129_v23 }
  0x10   :  { %v257_v25 = vld [vmem:[%s19829_s1 + $0x520] sm:$0xff]  ;;  %6327 = vmatpush1.bf16.msra.mxu1 %v12300_v27 }
  0x11   :  { %v12293_v29 = vcombine.high %v253_v24, %v257_v25  ;;  %v117_v30 = vld [vmem:[%s19829_s1 + $0xc0] sm:$0xff]  ;;  %6285 = vmatprep.subr.bf16.mxu0 %v12165_v28  ;;  %v12292_v35 = vcombine.low %v253_v24, %v257_v25 }
  0x12   :  { %v121_v31 = vld [vmem:[%s19829_s1 + $0xe0] sm:$0xff]  ;;  %6286 = vmatpush1.bf16.msra.mxu0 %v12164_v34 }
  0x13   :  { %v245_v32 = vld [vmem:[%s19829_s1 + $0x4c0] sm:$0xff]  ;;  %v12157_v36 = vcombine.high %v117_v30, %v121_v31  ;;  %6328 = vmatprep.subr.bf16.mxu1 %v12293_v29  ;;  %v12156_v42 = vcombine.low %v117_v30, %v121_v31 }
  0x14   :  { %v249_v33 = vld [vmem:[%s19829_s1 + $0x4e0] sm:$0xff]  ;;  %6329 = vmatpush1.bf16.msra.mxu1 %v12292_v35 }
  0x15   :  { %v12285_v37 = vcombine.high %v245_v32, %v249_v33  ;;  %v109_v38 = vld [vmem:[%s19829_s1 + $0x80] sm:$0xff]  ;;  %6287 = vmatprep.subr.bf16.mxu0 %v12157_v36  ;;  %v12284_v43 = vcombine.low %v245_v32, %v249_v33 }
  0x16   :  { %v113_v39 = vld [vmem:[%s19829_s1 + $0xa0] sm:$0xff]  ;;  %6288 = vmatpush1.bf16.msra.mxu0 %v12156_v42 }
  0x17   :  { %v237_v40 = vld [vmem:[%s19829_s1 + $0x480] sm:$0xff]  ;;  %v12149_v44 = vcombine.high %v109_v38, %v113_v39  ;;  %6330 = vmatprep.subr.bf16.mxu1 %v12285_v37  ;;  %v12148_v50 = vcombine.low %v109_v38, %v113_v39 }
  0x18   :  { %v241_v41 = vld [vmem:[%s19829_s1 + $0x4a0] sm:$0xff]  ;;  %6331 = vmatpush1.bf16.msra.mxu1 %v12284_v43 }
  0x19   :  { %v12277_v45 = vcombine.high %v237_v40, %v241_v41  ;;  %v101_v46 = vld [vmem:[%s19829_s1 + $0x40] sm:$0xff]  ;;  %6289 = vmatprep.subr.bf16.mxu0 %v12149_v44  ;;  %v12276_v51 = vcombine.low %v237_v40, %v241_v41 }
  0x1a   :  { %v105_v47 = vld [vmem:[%s19829_s1 + $0x60] sm:$0xff]  ;;  %6290 = vmatpush1.bf16.msra.mxu0 %v12148_v50 }
  0x1b   :  { %v229_v48 = vld [vmem:[%s19829_s1 + $0x440] sm:$0xff]  ;;  %v12141_v52 = vcombine.high %v101_v46, %v105_v47  ;;  %6332 = vmatprep.subr.bf16.mxu1 %v12277_v45  ;;  %v12140_v0 = vcombine.low %v101_v46, %v105_v47 }
  0x1c   :  { %v233_v49 = vld [vmem:[%s19829_s1 + $0x460] sm:$0xff]  ;;  %6333 = vmatpush1.bf16.msra.mxu1 %v12276_v51 }
  0x1d   :  { %v93_v53 = vld [vmem:[%s19829_s1] sm:$0xff]  ;;  %v12269_v56 = vcombine.high %v229_v48, %v233_v49  ;;  %6291 = vmatprep.subr.bf16.mxu0 %v12141_v52  ;;  %v12268_v1 = vcombine.low %v229_v48, %v233_v49 }
  0x1e   :  { %v97_v57 = vld [vmem:[%s19829_s1 + $0x20] sm:$0xff]  ;;  %6292 = vmatpush1.bf16.msra.mxu0 %v12140_v0 }
  0x1f   :  { %v221_v61 = vld [vmem:[%s19829_s1 + $0x400] sm:$0xff]  ;;  %v12133_v2 = vcombine.high %v93_v53, %v97_v57  ;;  %6334 = vmatprep.subr.bf16.mxu1 %v12269_v56  ;;  %v12132_v8 = vcombine.low %v93_v53, %v97_v57 }
  0x20   :  { %v225_v62 = vld [vmem:[%s19829_s1 + $0x420] sm:$0xff]  ;;  %6335 = vmatpush1.bf16.msra.mxu1 %v12268_v1 }
  0x21   :  { %v12261_v3 = vcombine.high %v221_v61, %v225_v62  ;;  %v213_v4 = vld [vmem:[%s19829_s1 + $0x3c0] sm:$0xff]  ;;  %6293 = vmatprep.subr.bf16.mxu0 %v12133_v2  ;;  %v12260_v9 = vcombine.low %v221_v61, %v225_v62 }
  0x22   :  { %v217_v5 = vld [vmem:[%s19829_s1 + $0x3e0] sm:$0xff]  ;;  %6294 = vmatpush1.bf16.msra.mxu0 %v12132_v8 }
  0x23   :  { %v341_v6 = vld [vmem:[%s19829_s1 + $0x7c0] sm:$0xff]  ;;  %v12253_v10 = vcombine.high %v213_v4, %v217_v5  ;;  %6336 = vmatprep.subr.bf16.mxu1 %v12261_v3  ;;  %v12252_v16 = vcombine.low %v213_v4, %v217_v5 }
  0x24   :  { %v345_v7 = vld [vmem:[%s19829_s1 + $0x7e0] sm:$0xff]  ;;  %6337 = vmatpush1.bf16.msra.mxu1 %v12260_v9 }
  0x25   :  { %v12381_v11 = vcombine.high %v341_v6, %v345_v7  ;;  %v205_v12 = vld [vmem:[%s19829_s1 + $0x380] sm:$0xff]  ;;  %6295 = vmatprep.subr.bf16.mxu0 %v12253_v10  ;;  %v12380_v17 = vcombine.low %v341_v6, %v345_v7 }
  0x26   :  { %v209_v13 = vld [vmem:[%s19829_s1 + $0x3a0] sm:$0xff]  ;;  %6296 = vmatpush2.bf16.msra.mxu0 %v12252_v16 }
  0x27   :  { %v333_v14 = vld [vmem:[%s19829_s1 + $0x780] sm:$0xff]  ;;  %v12245_v18 = vcombine.high %v205_v12, %v209_v13  ;;  %6338 = vmatprep.subr.bf16.mxu1 %v12381_v11  ;;  %v12244_v24 = vcombine.low %v205_v12, %v209_v13 }
  0x28   :  { %v337_v15 = vld [vmem:[%s19829_s1 + $0x7a0] sm:$0xff]  ;;  %6339 = vmatpush2.bf16.msra.mxu1 %v12380_v17 }
  0x29   :  { %v12373_v19 = vcombine.high %v333_v14, %v337_v15  ;;  %v197_v20 = vld [vmem:[%s19829_s1 + $0x340] sm:$0xff]  ;;  %6297 = vmatprep.subr.bf16.mxu0 %v12245_v18  ;;  %v12372_v25 = vcombine.low %v333_v14, %v337_v15  ;;  %v47_v14 = vld [vmem:[%s19830_s0 + $0x10] sm:$0xff] }
  0x2a   :  { %v201_v21 = vld [vmem:[%s19829_s1 + $0x360] sm:$0xff]  ;;  %6298 = vmatpush2.bf16.msra.mxu0 %v12244_v24  ;;  %v63_v15 = vld [vmem:[%s19830_s0 + $0x90] sm:$0xff]  ;;  %v66_v24 = vld [vmem:[%s19830_s0 + $0xa8] sm:$0xff] }
  0x2b   :  { %v325_v22 = vld [vmem:[%s19829_s1 + $0x740] sm:$0xff]  ;;  %v12237_v26 = vcombine.high %v197_v20, %v201_v21  ;;  %6340 = vmatprep.subr.bf16.mxu1 %v12373_v19  ;;  %v12236_v32 = vcombine.low %v197_v20, %v201_v21 }
  0x2c   :  { %v329_v23 = vld [vmem:[%s19829_s1 + $0x760] sm:$0xff]  ;;  %6341 = vmatpush2.bf16.msra.mxu1 %v12372_v25  ;;  %v14930_v25 = vpack.c.bf16 %v63_v15, %v47_v14 }
  0x2d   :  { %v12365_v27 = vcombine.high %v325_v22, %v329_v23  ;;  %v189_v28 = vld [vmem:[%s19829_s1 + $0x300] sm:$0xff]  ;;  %6299 = vmatprep.subr.bf16.mxu0 %v12237_v26  ;;  %v12364_v33 = vcombine.low %v325_v22, %v329_v23  ;;  %v50_v23 = vld [vmem:[%s19830_s0 + $0x28] sm:$0xff] }
  0x2e   :  { %v193_v29 = vld [vmem:[%s19829_s1 + $0x320] sm:$0xff]  ;;  %6300 = vmatpush2.bf16.msra.mxu0 %v12236_v32 }
  0x2f   :  { %v317_v30 = vld [vmem:[%s19829_s1 + $0x700] sm:$0xff]  ;;  %v12229_v34 = vcombine.high %v189_v28, %v193_v29  ;;  %6342 = vmatprep.subr.bf16.mxu1 %v12365_v27  ;;  %v12228_v40 = vcombine.low %v189_v28, %v193_v29  ;;  %v52_v27 = vld [vmem:[%s19830_s0 + $0x38] sm:$0xff] }
  0x30   :  { %v321_v31 = vld [vmem:[%s19829_s1 + $0x720] sm:$0xff]  ;;  %6343 = vmatpush2.bf16.msra.mxu1 %v12364_v33  ;;  %v68_v28 = vld [vmem:[%s19830_s0 + $0xb8] sm:$0xff] }
  0x31   :  { %v12357_v35 = vcombine.high %v317_v30, %v321_v31  ;;  %v181_v36 = vld [vmem:[%s19829_s1 + $0x2c0] sm:$0xff]  ;;  %6301 = vmatprep.subr.bf16.mxu0 %v12229_v34  ;;  %v12356_v41 = vcombine.low %v317_v30, %v321_v31  ;;  %v14944_v34 = vpack.c.bf16 %v66_v24, %v50_v23 }
  0x32   :  { %v185_v37 = vld [vmem:[%s19829_s1 + $0x2e0] sm:$0xff]  ;;  %6302 = vmatpush2.bf16.msra.mxu0 %v12228_v40 }
  0x33   :  { %v309_v38 = vld [vmem:[%s19829_s1 + $0x6c0] sm:$0xff]  ;;  %v12221_v42 = vcombine.high %v181_v36, %v185_v37  ;;  %6344 = vmatprep.subr.bf16.mxu1 %v12357_v35  ;;  %v12220_v48 = vcombine.low %v181_v36, %v185_v37  ;;  %v14953_v37 = vpack.c.bf16 %v68_v28, %v52_v27 }
  0x34   :  { %v313_v39 = vld [vmem:[%s19829_s1 + $0x6e0] sm:$0xff]  ;;  %6345 = vmatpush2.bf16.msra.mxu1 %v12356_v41 }
  0x35   :  { %v12349_v43 = vcombine.high %v309_v38, %v313_v39  ;;  %v173_v44 = vld [vmem:[%s19829_s1 + $0x280] sm:$0xff]  ;;  %6303 = vmatprep.subr.bf16.mxu0 %v12221_v42  ;;  %v12348_v49 = vcombine.low %v309_v38, %v313_v39 }
  0x36   :  { %v177_v45 = vld [vmem:[%s19829_s1 + $0x2a0] sm:$0xff]  ;;  %6304 = vmatpush2.bf16.msra.mxu0 %v12220_v48 }
  0x37   :  { %v301_v46 = vld [vmem:[%s19829_s1 + $0x680] sm:$0xff]  ;;  %v12213_v50 = vcombine.high %v173_v44, %v177_v45  ;;  %6346 = vmatprep.subr.bf16.mxu1 %v12349_v43  ;;  %v12212_v56 = vcombine.low %v173_v44, %v177_v45 }
  0x38   :  { %v305_v47 = vld [vmem:[%s19829_s1 + $0x6a0] sm:$0xff]  ;;  %6347 = vmatpush2.bf16.msra.mxu1 %v12348_v49 }
  0x39   :  { %v12341_v51 = vcombine.high %v301_v46, %v305_v47  ;;  %v165_v52 = vld [vmem:[%s19829_s1 + $0x240] sm:$0xff]  ;;  %6305 = vmatprep.subr.bf16.mxu0 %v12213_v50  ;;  %v12340_v57 = vcombine.low %v301_v46, %v305_v47 }
  0x3a   :  { %v169_v53 = vld [vmem:[%s19829_s1 + $0x260] sm:$0xff]  ;;  %6306 = vmatpush2.bf16.msra.mxu0 %v12212_v56 }
  0x3b   :  { %v293_v54 = vld [vmem:[%s19829_s1 + $0x640] sm:$0xff]  ;;  %v12205_v59 = vcombine.high %v165_v52, %v169_v53  ;;  %6348 = vmatprep.subr.bf16.mxu1 %v12341_v51  ;;  %v12204_v2 = vcombine.low %v165_v52, %v169_v53 }
  0x3c   :  { %v297_v55 = vld [vmem:[%s19829_s1 + $0x660] sm:$0xff]  ;;  %6349 = vmatpush2.bf16.msra.mxu1 %v12340_v57 }
  0x3d   :  { %v12333_v60 = vcombine.high %v293_v54, %v297_v55  ;;  %v157_v61 = vld [vmem:[%s19829_s1 + $0x200] sm:$0xff]  ;;  %6307 = vmatprep.subr.bf16.mxu0 %v12205_v59  ;;  %v12332_v3 = vcombine.low %v293_v54, %v297_v55 }
  0x3e   :  { %v161_v62 = vld [vmem:[%s19829_s1 + $0x220] sm:$0xff]  ;;  %6308 = vmatpush2.bf16.msra.mxu0 %v12204_v2 }
  0x3f   :  { %v285_v0 = vld [vmem:[%s19829_s1 + $0x600] sm:$0xff]  ;;  %v12197_v4 = vcombine.high %v157_v61, %v161_v62  ;;  %6350 = vmatprep.subr.bf16.mxu1 %v12333_v60  ;;  %v12196_v10 = vcombine.low %v157_v61, %v161_v62 }
  0x40   :  { %v289_v1 = vld [vmem:[%s19829_s1 + $0x620] sm:$0xff]  ;;  %6351 = vmatpush2.bf16.msra.mxu1 %v12332_v3 }
  0x41   :  { %v12325_v5 = vcombine.high %v285_v0, %v289_v1  ;;  %v405_v6 = vld [vmem:[%s19829_s1 + $0x9c0] sm:$0xff]  ;;  %6309 = vmatprep.subr.bf16.mxu0 %v12197_v4  ;;  %v12324_v13 = vcombine.low %v285_v0, %v289_v1 }
  0x42   :  { %v409_v7 = vld [vmem:[%s19829_s1 + $0x9e0] sm:$0xff]  ;;  %6310 = vmatpush2.bf16.msra.mxu0 %v12196_v10 }
  0x43   :  { %v533_v8 = vld [vmem:[%s19829_s1 + $0xdc0] sm:$0xff]  ;;  %v12445_v16 = vcombine.high %v405_v6, %v409_v7  ;;  %6352 = vmatprep.subr.bf16.mxu1 %v12325_v5  ;;  %v12444_v26 = vcombine.low %v405_v6, %v409_v7 }
  0x44   :  { %v537_v9 = vld [vmem:[%s19829_s1 + $0xde0] sm:$0xff]  ;;  %6353 = vmatpush2.bf16.msra.mxu1 %v12324_v13 }
  0x45   :  { %v45_v11 = vld [vmem:[%s19830_s0] sm:$0xff]  ;;  %v12573_v17 = vcombine.high %v533_v8, %v537_v9  ;;  %6365 = vmatprep.subr.bf16.mxu0 %v12445_v16  ;;  %v12572_v29 = vcombine.low %v533_v8, %v537_v9 }
  0x46   :  { %v61_v12 = vld [vmem:[%s19830_s0 + $0x80] sm:$0xff] }
  0x47   :  { %v397_v18 = vld [vmem:[%s19829_s1 + $0x980] sm:$0xff]  ;;  %v14919_v21 = vpack.c.bf16 %v61_v12, %v45_v11  ;;  %6408 = vmatprep.subr.bf16.mxu1 %v12573_v17  ;;  %6355 = vmatmul.mubr.bf16.vlgmr.msra.gmra.mxu1 %v14930_v25 }
  0x48   :  { %v401_v19 = vld [vmem:[%s19829_s1 + $0x9a0] sm:$0xff]  ;;  %6409 = vmatpush1.bf16.msra.mxu1 %v12572_v29  ;;  %6440 = vmatprep.mubr.bf16.mxu1 %v14953_v37 }
  0x49   :  { %v525_v20 = vld [vmem:[%s19829_s1 + $0xd80] sm:$0xff]  ;;  %v12437_v30 = vcombine.high %v397_v18, %v401_v19  ;;  %6312 = vmatmul.mubr.bf16.vlgmr.msra.gmra.mxu0 %v14919_v21  ;;  %v12436_v38 = vcombine.low %v397_v18, %v401_v19 }
  0x4a   :  { %v529_v22 = vld [vmem:[%s19829_s1 + $0xda0] sm:$0xff]  ;;  %6366 = vmatpush1.bf16.msra.mxu0 %v12444_v26  ;;  %6397 = vmatprep.mubr.bf16.mxu0 %v14944_v34 }
  0x4b   :  { %v12565_v31 = vcombine.high %v525_v20, %v529_v22  ;;  %v389_v32 = vld [vmem:[%s19829_s1 + $0x940] sm:$0xff]  ;;  %6367 = vmatprep.subr.bf16.mxu0 %v12437_v30  ;;  %v12564_v39 = vcombine.low %v525_v20, %v529_v22 }
  0x4c   :  { %v393_v33 = vld [vmem:[%s19829_s1 + $0x960] sm:$0xff] }
  0x4d   :  { %v517_v35 = vld [vmem:[%s19829_s1 + $0xd40] sm:$0xff]  ;;  %v12429_v40 = vcombine.high %v389_v32, %v393_v33  ;;  %6410 = vmatprep.subr.bf16.mxu1 %v12565_v31  ;;  %v12428_v46 = vcombine.low %v389_v32, %v393_v33 }
  0x4e   :  { %v521_v36 = vld [vmem:[%s19829_s1 + $0xd60] sm:$0xff]  ;;  %6368 = vmatpush1.bf16.msra.mxu0 %v12436_v38  ;;  %6411 = vmatpush1.bf16.msra.mxu1 %v12564_v39 }
  0x4f   :  { %v12557_v41 = vcombine.high %v517_v35, %v521_v36  ;;  %v381_v42 = vld [vmem:[%s19829_s1 + $0x900] sm:$0xff]  ;;  %6369 = vmatprep.subr.bf16.mxu0 %v12429_v40  ;;  %v12556_v47 = vcombine.low %v517_v35, %v521_v36 }
  0x50   :  { %v385_v43 = vld [vmem:[%s19829_s1 + $0x920] sm:$0xff] }
  0x51   :  { %v509_v44 = vld [vmem:[%s19829_s1 + $0xd00] sm:$0xff]  ;;  %v12421_v48 = vcombine.high %v381_v42, %v385_v43  ;;  %6412 = vmatprep.subr.bf16.mxu1 %v12557_v41  ;;  %v12420_v54 = vcombine.low %v381_v42, %v385_v43 }
  0x52   :  { %v513_v45 = vld [vmem:[%s19829_s1 + $0xd20] sm:$0xff]  ;;  %6370 = vmatpush1.bf16.msra.mxu0 %v12428_v46  ;;  %6413 = vmatpush1.bf16.msra.mxu1 %v12556_v47 }
  0x53   :  { %v12549_v49 = vcombine.high %v509_v44, %v513_v45  ;;  %v373_v50 = vld [vmem:[%s19829_s1 + $0x8c0] sm:$0xff]  ;;  %6371 = vmatprep.subr.bf16.mxu0 %v12421_v48  ;;  %v12548_v55 = vcombine.low %v509_v44, %v513_v45 }
  0x54   :  { %v377_v51 = vld [vmem:[%s19829_s1 + $0x8e0] sm:$0xff] }
  0x55   :  { %v501_v52 = vld [vmem:[%s19829_s1 + $0xcc0] sm:$0xff]  ;;  %v12413_v56 = vcombine.high %v373_v50, %v377_v51  ;;  %6414 = vmatprep.subr.bf16.mxu1 %v12549_v49  ;;  %v12412_v0 = vcombine.low %v373_v50, %v377_v51 }
  0x56   :  { %v505_v53 = vld [vmem:[%s19829_s1 + $0xce0] sm:$0xff]  ;;  %6372 = vmatpush1.bf16.msra.mxu0 %v12420_v54  ;;  %6415 = vmatpush1.bf16.msra.mxu1 %v12548_v55 }
  0x57   :  { %v12541_v57 = vcombine.high %v501_v52, %v505_v53  ;;  %v365_v59 = vld [vmem:[%s19829_s1 + $0x880] sm:$0xff]  ;;  %6373 = vmatprep.subr.bf16.mxu0 %v12413_v56  ;;  %v12540_v1 = vcombine.low %v501_v52, %v505_v53 }
  0x58   :  { %v369_v60 = vld [vmem:[%s19829_s1 + $0x8a0] sm:$0xff] }
  0x59   :  { %v493_v61 = vld [vmem:[%s19829_s1 + $0xc80] sm:$0xff]  ;;  %v12405_v2 = vcombine.high %v365_v59, %v369_v60  ;;  %6416 = vmatprep.subr.bf16.mxu1 %v12541_v57  ;;  %v12404_v8 = vcombine.low %v365_v59, %v369_v60 }
  0x5a   :  { %v497_v62 = vld [vmem:[%s19829_s1 + $0xca0] sm:$0xff]  ;;  %6374 = vmatpush1.bf16.msra.mxu0 %v12412_v0  ;;  %6417 = vmatpush1.bf16.msra.mxu1 %v12540_v1 }
  0x5b   :  { %v12533_v3 = vcombine.high %v493_v61, %v497_v62  ;;  %v357_v4 = vld [vmem:[%s19829_s1 + $0x840] sm:$0xff]  ;;  %6375 = vmatprep.subr.bf16.mxu0 %v12405_v2  ;;  %v12532_v9 = vcombine.low %v493_v61, %v497_v62 }
  0x5c   :  { %v361_v5 = vld [vmem:[%s19829_s1 + $0x860] sm:$0xff] }
  0x5d   :  { %v485_v6 = vld [vmem:[%s19829_s1 + $0xc40] sm:$0xff]  ;;  %v12397_v10 = vcombine.high %v357_v4, %v361_v5  ;;  %6418 = vmatprep.subr.bf16.mxu1 %v12533_v3  ;;  %v12396_v16 = vcombine.low %v357_v4, %v361_v5 }
  0x5e   :  { %v489_v7 = vld [vmem:[%s19829_s1 + $0xc60] sm:$0xff]  ;;  %6376 = vmatpush1.bf16.msra.mxu0 %v12404_v8  ;;  %6419 = vmatpush1.bf16.msra.mxu1 %v12532_v9 }
  0x5f   :  { %v12525_v11 = vcombine.high %v485_v6, %v489_v7  ;;  %v349_v12 = vld [vmem:[%s19829_s1 + $0x800] sm:$0xff]  ;;  %6377 = vmatprep.subr.bf16.mxu0 %v12397_v10  ;;  %v12524_v17 = vcombine.low %v485_v6, %v489_v7 }
  0x60   :  { %v353_v13 = vld [vmem:[%s19829_s1 + $0x820] sm:$0xff] }
  0x61   :  { %v477_v14 = vld [vmem:[%s19829_s1 + $0xc00] sm:$0xff]  ;;  %v12389_v18 = vcombine.high %v349_v12, %v353_v13  ;;  %6420 = vmatprep.subr.bf16.mxu1 %v12525_v11  ;;  %v12388_v26 = vcombine.low %v349_v12, %v353_v13 }
  0x62   :  { %v481_v15 = vld [vmem:[%s19829_s1 + $0xc20] sm:$0xff]  ;;  %6378 = vmatpush1.bf16.msra.mxu0 %v12396_v16  ;;  %6421 = vmatpush1.bf16.msra.mxu1 %v12524_v17 }
  0x63   :  { %v12517_v19 = vcombine.high %v477_v14, %v481_v15  ;;  %v469_v20 = vld [vmem:[%s19829_s1 + $0xbc0] sm:$0xff]  ;;  %6379 = vmatprep.subr.bf16.mxu0 %v12389_v18  ;;  %v12516_v27 = vcombine.low %v477_v14, %v481_v15 }
  0x64   :  { %v473_v22 = vld [vmem:[%s19829_s1 + $0xbe0] sm:$0xff] }
  0x65   :  { %v597_v23 = vld [vmem:[%s19829_s1 + $0xfc0] sm:$0xff]  ;;  %v12509_v28 = vcombine.high %v469_v20, %v473_v22  ;;  %6422 = vmatprep.subr.bf16.mxu1 %v12517_v19  ;;  %v12508_v35 = vcombine.low %v469_v20, %v473_v22 }
  0x66   :  { %v601_v24 = vld [vmem:[%s19829_s1 + $0xfe0] sm:$0xff]  ;;  %6380 = vmatpush1.bf16.msra.mxu0 %v12388_v26  ;;  %6423 = vmatpush1.bf16.msra.mxu1 %v12516_v27 }
  0x67   :  { %v12637_v29 = vcombine.high %v597_v23, %v601_v24  ;;  %v461_v30 = vld [vmem:[%s19829_s1 + $0xb80] sm:$0xff]  ;;  %6381 = vmatprep.subr.bf16.mxu0 %v12509_v28  ;;  %v12636_v36 = vcombine.low %v597_v23, %v601_v24 }
  0x68   :  { %v465_v31 = vld [vmem:[%s19829_s1 + $0xba0] sm:$0xff] }
  0x69   :  { %v589_v32 = vld [vmem:[%s19829_s1 + $0xf80] sm:$0xff]  ;;  %v12501_v38 = vcombine.high %v461_v30, %v465_v31  ;;  %6424 = vmatprep.subr.bf16.mxu1 %v12637_v29  ;;  %v12500_v44 = vcombine.low %v461_v30, %v465_v31 }
  0x6a   :  { %v593_v33 = vld [vmem:[%s19829_s1 + $0xfa0] sm:$0xff]  ;;  %6382 = vmatpush2.bf16.msra.mxu0 %v12508_v35  ;;  %6425 = vmatpush2.bf16.msra.mxu1 %v12636_v36 }
  0x6b   :  { %v12629_v39 = vcombine.high %v589_v32, %v593_v33  ;;  %v453_v40 = vld [vmem:[%s19829_s1 + $0xb40] sm:$0xff]  ;;  %6383 = vmatprep.subr.bf16.mxu0 %v12501_v38  ;;  %v12628_v45 = vcombine.low %v589_v32, %v593_v33  ;;  %v51_v38 = vld [vmem:[%s19830_s0 + $0x30] sm:$0xff] }
  0x6c   :  { %v457_v41 = vld [vmem:[%s19829_s1 + $0xb60] sm:$0xff] }
  0x6d   :  { %v581_v42 = vld [vmem:[%s19829_s1 + $0xf40] sm:$0xff]  ;;  %v12493_v46 = vcombine.high %v453_v40, %v457_v41  ;;  %6426 = vmatprep.subr.bf16.mxu1 %v12629_v39  ;;  %v12492_v52 = vcombine.low %v453_v40, %v457_v41  ;;  %v67_v39 = vld [vmem:[%s19830_s0 + $0xb0] sm:$0xff] }
  0x6e   :  { %v585_v43 = vld [vmem:[%s19829_s1 + $0xf60] sm:$0xff]  ;;  %6384 = vmatpush2.bf16.msra.mxu0 %v12500_v44  ;;  %6427 = vmatpush2.bf16.msra.mxu1 %v12628_v45 }
  0x6f   :  { %v12621_v47 = vcombine.high %v581_v42, %v585_v43  ;;  %v445_v48 = vld [vmem:[%s19829_s1 + $0xb00] sm:$0xff]  ;;  %6385 = vmatprep.subr.bf16.mxu0 %v12493_v46  ;;  %v12620_v53 = vcombine.low %v581_v42, %v585_v43 }
  0x70   :  { %v449_v49 = vld [vmem:[%s19829_s1 + $0xb20] sm:$0xff] }
  0x71   :  { %v573_v50 = vld [vmem:[%s19829_s1 + $0xf00] sm:$0xff]  ;;  %v12485_v54 = vcombine.high %v445_v48, %v449_v49  ;;  %6428 = vmatprep.subr.bf16.mxu1 %v12621_v47  ;;  %v12484_v61 = vcombine.low %v445_v48, %v449_v49  ;;  %v54_v47 = vld [vmem:[%s19830_s0 + $0x48] sm:$0xff]  ;;  %v15158_v49 = vpack.c.bf16 %v67_v39, %v51_v38 }
  0x72   :  { %v577_v51 = vld [vmem:[%s19829_s1 + $0xf20] sm:$0xff]  ;;  %6386 = vmatpush2.bf16.msra.mxu0 %v12492_v52  ;;  %6429 = vmatpush2.bf16.msra.mxu1 %v12620_v53  ;;  %v70_v48 = vld [vmem:[%s19830_s0 + $0xc8] sm:$0xff]  ;;  %v72_v52 = vld [vmem:[%s19830_s0 + $0xd8] sm:$0xff] }
  0x73   :  { %v12613_v55 = vcombine.high %v573_v50, %v577_v51  ;;  %v437_v56 = vld [vmem:[%s19829_s1 + $0xac0] sm:$0xff]  ;;  %6387 = vmatprep.subr.bf16.mxu0 %v12485_v54  ;;  %v12612_v62 = vcombine.low %v573_v50, %v577_v51  ;;  %v56_v51 = vld [vmem:[%s19830_s0 + $0x58] sm:$0xff] }
  0x74   :  { %v441_v57 = vld [vmem:[%s19829_s1 + $0xae0] sm:$0xff] }
  0x75   :  { %v565_v59 = vld [vmem:[%s19829_s1 + $0xec0] sm:$0xff]  ;;  %v12477_v0 = vcombine.high %v437_v56, %v441_v57  ;;  %6430 = vmatprep.subr.bf16.mxu1 %v12613_v55  ;;  %v12476_v6 = vcombine.low %v437_v56, %v441_v57 }
  0x76   :  { %v569_v60 = vld [vmem:[%s19829_s1 + $0xee0] sm:$0xff]  ;;  %6388 = vmatpush2.bf16.msra.mxu0 %v12484_v61  ;;  %6431 = vmatpush2.bf16.msra.mxu1 %v12612_v62  ;;  %v15181_v62 = vpack.c.bf16 %v72_v52, %v56_v51 }
  0x77   :  { %v12605_v1 = vcombine.high %v565_v59, %v569_v60  ;;  %v429_v2 = vld [vmem:[%s19829_s1 + $0xa80] sm:$0xff]  ;;  %6389 = vmatprep.subr.bf16.mxu0 %v12477_v0  ;;  %v12604_v7 = vcombine.low %v565_v59, %v569_v60  ;;  %v15172_v59 = vpack.c.bf16 %v70_v48, %v54_v47 }
  0x78   :  { %v433_v3 = vld [vmem:[%s19829_s1 + $0xaa0] sm:$0xff] }
  0x79   :  { %v557_v4 = vld [vmem:[%s19829_s1 + $0xe80] sm:$0xff]  ;;  %v12469_v8 = vcombine.high %v429_v2, %v433_v3  ;;  %6432 = vmatprep.subr.bf16.mxu1 %v12605_v1  ;;  %v12468_v14 = vcombine.low %v429_v2, %v433_v3 }
  0x7a   :  { %v561_v5 = vld [vmem:[%s19829_s1 + $0xea0] sm:$0xff]  ;;  %6390 = vmatpush2.bf16.msra.mxu0 %v12476_v6  ;;  %6433 = vmatpush2.bf16.msra.mxu1 %v12604_v7 }
  0x7b   :  { %v12597_v9 = vcombine.high %v557_v4, %v561_v5  ;;  %v421_v10 = vld [vmem:[%s19829_s1 + $0xa40] sm:$0xff]  ;;  %6391 = vmatprep.subr.bf16.mxu0 %v12469_v8  ;;  %v12596_v15 = vcombine.low %v557_v4, %v561_v5 }
  0x7c   :  { %v425_v11 = vld [vmem:[%s19829_s1 + $0xa60] sm:$0xff] }
  0x7d   :  { %v549_v12 = vld [vmem:[%s19829_s1 + $0xe40] sm:$0xff]  ;;  %v12461_v16 = vcombine.high %v421_v10, %v425_v11  ;;  %6434 = vmatprep.subr.bf16.mxu1 %v12597_v9  ;;  %v12460_v23 = vcombine.low %v421_v10, %v425_v11 }
  0x7e   :  { %v553_v13 = vld [vmem:[%s19829_s1 + $0xe60] sm:$0xff]  ;;  %6392 = vmatpush2.bf16.msra.mxu0 %v12468_v14  ;;  %6435 = vmatpush2.bf16.msra.mxu1 %v12596_v15 }
  0x7f   :  { %v12589_v17 = vcombine.high %v549_v12, %v553_v13  ;;  %v413_v18 = vld [vmem:[%s19829_s1 + $0xa00] sm:$0xff]  ;;  %6393 = vmatprep.subr.bf16.mxu0 %v12461_v16  ;;  %v12588_v24 = vcombine.low %v549_v12, %v553_v13 }
  0x80   :  { %v417_v19 = vld [vmem:[%s19829_s1 + $0xa20] sm:$0xff] }
  0x81   :  { %v541_v20 = vld [vmem:[%s19829_s1 + $0xe00] sm:$0xff]  ;;  %v12453_v26 = vcombine.high %v413_v18, %v417_v19  ;;  %6436 = vmatprep.subr.bf16.mxu1 %v12589_v17  ;;  %v12452_v32 = vcombine.low %v413_v18, %v417_v19 }
  0x82   :  { %v545_v22 = vld [vmem:[%s19829_s1 + $0xe20] sm:$0xff]  ;;  %6394 = vmatpush2.bf16.msra.mxu0 %v12460_v23  ;;  %6437 = vmatpush2.bf16.msra.mxu1 %v12588_v24 }
  0x83   :  { %v12581_v27 = vcombine.high %v541_v20, %v545_v22  ;;  %v661_v28 = vld [vmem:[%s19829_s1 + $0x11c0] sm:$0xff]  ;;  %6395 = vmatprep.subr.bf16.mxu0 %v12453_v26  ;;  %v12580_v36 = vcombine.low %v541_v20, %v545_v22 }
  0x84   :  { %v665_v29 = vld [vmem:[%s19829_s1 + $0x11e0] sm:$0xff] }
  0x85   :  { %v789_v30 = vld [vmem:[%s19829_s1 + $0x15c0] sm:$0xff]  ;;  %v12701_v40 = vcombine.high %v661_v28, %v665_v29  ;;  %6438 = vmatprep.subr.bf16.mxu1 %v12581_v27  ;;  %v12700_v50 = vcombine.low %v661_v28, %v665_v29 }
  0x86   :  { %v793_v31 = vld [vmem:[%s19829_s1 + $0x15e0] sm:$0xff]  ;;  %6396 = vmatpush2.bf16.msra.mxu0 %v12452_v32  ;;  %6439 = vmatpush2.bf16.msra.mxu1 %v12580_v36 }
  0x87   :  { %v49_v33 = vld [vmem:[%s19830_s0 + $0x20] sm:$0xff]  ;;  %v12829_v41 = vcombine.high %v789_v30, %v793_v31  ;;  %6451 = vmatprep.subr.bf16.mxu0 %v12701_v40  ;;  %v12828_v53 = vcombine.low %v789_v30, %v793_v31 }
  0x88   :  { %v65_v35 = vld [vmem:[%s19830_s0 + $0xa0] sm:$0xff] }
  0x89   :  { %v653_v42 = vld [vmem:[%s19829_s1 + $0x1180] sm:$0xff]  ;;  %v15147_v45 = vpack.c.bf16 %v65_v35, %v49_v33  ;;  %6494 = vmatprep.subr.bf16.mxu1 %v12829_v41  ;;  %6441 = vmatmul.mubr.bf16.vlgmr.msra.gmra.mxu1 %v15158_v49 }
  0x8a   :  { %v657_v43 = vld [vmem:[%s19829_s1 + $0x11a0] sm:$0xff]  ;;  %6495 = vmatpush1.bf16.msra.mxu1 %v12828_v53  ;;  %6526 = vmatprep.mubr.bf16.mxu1 %v15181_v62 }
  0x8b   :  { %v781_v44 = vld [vmem:[%s19829_s1 + $0x1580] sm:$0xff]  ;;  %v12693_v54 = vcombine.high %v653_v42, %v657_v43  ;;  %6398 = vmatmul.mubr.bf16.vlgmr.msra.gmra.mxu0 %v15147_v45  ;;  %v12692_v0 = vcombine.low %v653_v42, %v657_v43 }
  0x8c   :  { %v785_v46 = vld [vmem:[%s19829_s1 + $0x15a0] sm:$0xff]  ;;  %6452 = vmatpush1.bf16.msra.mxu0 %v12700_v50  ;;  %6483 = vmatprep.mubr.bf16.mxu0 %v15172_v59 }
  0x8d   :  { %v12821_v55 = vcombine.high %v781_v44, %v785_v46  ;;  %v645_v56 = vld [vmem:[%s19829_s1 + $0x1140] sm:$0xff]  ;;  %6453 = vmatprep.subr.bf16.mxu0 %v12693_v54  ;;  %v12820_v1 = vcombine.low %v781_v44, %v785_v46 }
  0x8e   :  { %v649_v57 = vld [vmem:[%s19829_s1 + $0x1160] sm:$0xff] }
  0x8f   :  { %v773_v60 = vld [vmem:[%s19829_s1 + $0x1540] sm:$0xff]  ;;  %v12685_v2 = vcombine.high %v645_v56, %v649_v57  ;;  %6496 = vmatprep.subr.bf16.mxu1 %v12821_v55  ;;  %v12684_v8 = vcombine.low %v645_v56, %v649_v57 }
  0x90   :  { %v777_v61 = vld [vmem:[%s19829_s1 + $0x1560] sm:$0xff]  ;;  %6454 = vmatpush1.bf16.msra.mxu0 %v12692_v0  ;;  %6497 = vmatpush1.bf16.msra.mxu1 %v12820_v1 }
  0x91   :  { %v12813_v3 = vcombine.high %v773_v60, %v777_v61  ;;  %v637_v4 = vld [vmem:[%s19829_s1 + $0x1100] sm:$0xff]  ;;  %6455 = vmatprep.subr.bf16.mxu0 %v12685_v2  ;;  %v12812_v9 = vcombine.low %v773_v60, %v777_v61 }
  0x92   :  { %v641_v5 = vld [vmem:[%s19829_s1 + $0x1120] sm:$0xff] }
  0x93   :  { %v765_v6 = vld [vmem:[%s19829_s1 + $0x1500] sm:$0xff]  ;;  %v12677_v10 = vcombine.high %v637_v4, %v641_v5  ;;  %6498 = vmatprep.subr.bf16.mxu1 %v12813_v3  ;;  %v12676_v16 = vcombine.low %v637_v4, %v641_v5 }
  0x94   :  { %v769_v7 = vld [vmem:[%s19829_s1 + $0x1520] sm:$0xff]  ;;  %6456 = vmatpush1.bf16.msra.mxu0 %v12684_v8  ;;  %6499 = vmatpush1.bf16.msra.mxu1 %v12812_v9 }
  0x95   :  { %v12805_v11 = vcombine.high %v765_v6, %v769_v7  ;;  %v629_v12 = vld [vmem:[%s19829_s1 + $0x10c0] sm:$0xff]  ;;  %6457 = vmatprep.subr.bf16.mxu0 %v12677_v10  ;;  %v12804_v17 = vcombine.low %v765_v6, %v769_v7 }
  0x96   :  { %v633_v13 = vld [vmem:[%s19829_s1 + $0x10e0] sm:$0xff] }
  0x97   :  { %v757_v14 = vld [vmem:[%s19829_s1 + $0x14c0] sm:$0xff]  ;;  %v12669_v18 = vcombine.high %v629_v12, %v633_v13  ;;  %6500 = vmatprep.subr.bf16.mxu1 %v12805_v11  ;;  %v12668_v26 = vcombine.low %v629_v12, %v633_v13 }
  0x98   :  { %v761_v15 = vld [vmem:[%s19829_s1 + $0x14e0] sm:$0xff]  ;;  %6458 = vmatpush1.bf16.msra.mxu0 %v12676_v16  ;;  %6501 = vmatpush1.bf16.msra.mxu1 %v12804_v17 }
  0x99   :  { %v12797_v19 = vcombine.high %v757_v14, %v761_v15  ;;  %v621_v20 = vld [vmem:[%s19829_s1 + $0x1080] sm:$0xff]  ;;  %6459 = vmatprep.subr.bf16.mxu0 %v12669_v18  ;;  %v12796_v27 = vcombine.low %v757_v14, %v761_v15 }
  0x9a   :  { %v625_v22 = vld [vmem:[%s19829_s1 + $0x10a0] sm:$0xff] }
  0x9b   :  { %v749_v23 = vld [vmem:[%s19829_s1 + $0x1480] sm:$0xff]  ;;  %v12661_v28 = vcombine.high %v621_v20, %v625_v22  ;;  %6502 = vmatprep.subr.bf16.mxu1 %v12797_v19  ;;  %v12660_v35 = vcombine.low %v621_v20, %v625_v22 }
  0x9c   :  { %v753_v24 = vld [vmem:[%s19829_s1 + $0x14a0] sm:$0xff]  ;;  %6460 = vmatpush1.bf16.msra.mxu0 %v12668_v26  ;;  %6503 = vmatpush1.bf16.msra.mxu1 %v12796_v27 }
  0x9d   :  { %v12789_v29 = vcombine.high %v749_v23, %v753_v24  ;;  %v613_v30 = vld [vmem:[%s19829_s1 + $0x1040] sm:$0xff]  ;;  %6461 = vmatprep.subr.bf16.mxu0 %v12661_v28  ;;  %v12788_v36 = vcombine.low %v749_v23, %v753_v24 }
  0x9e   :  { %v617_v31 = vld [vmem:[%s19829_s1 + $0x1060] sm:$0xff] }
  0x9f   :  { %v741_v32 = vld [vmem:[%s19829_s1 + $0x1440] sm:$0xff]  ;;  %v12653_v38 = vcombine.high %v613_v30, %v617_v31  ;;  %6504 = vmatprep.subr.bf16.mxu1 %v12789_v29  ;;  %v12652_v44 = vcombine.low %v613_v30, %v617_v31 }
  0xa0   :  { %v745_v33 = vld [vmem:[%s19829_s1 + $0x1460] sm:$0xff]  ;;  %6462 = vmatpush1.bf16.msra.mxu0 %v12660_v35  ;;  %6505 = vmatpush1.bf16.msra.mxu1 %v12788_v36 }
  0xa1   :  { %v12781_v39 = vcombine.high %v741_v32, %v745_v33  ;;  %v605_v40 = vld [vmem:[%s19829_s1 + $0x1000] sm:$0xff]  ;;  %6463 = vmatprep.subr.bf16.mxu0 %v12653_v38  ;;  %v12780_v46 = vcombine.low %v741_v32, %v745_v33 }
  0xa2   :  { %v609_v41 = vld [vmem:[%s19829_s1 + $0x1020] sm:$0xff] }
  0xa3   :  { %v733_v42 = vld [vmem:[%s19829_s1 + $0x1400] sm:$0xff]  ;;  %v12645_v47 = vcombine.high %v605_v40, %v609_v41  ;;  %6506 = vmatprep.subr.bf16.mxu1 %v12781_v39  ;;  %v12644_v54 = vcombine.low %v605_v40, %v609_v41 }
  0xa4   :  { %v737_v43 = vld [vmem:[%s19829_s1 + $0x1420] sm:$0xff]  ;;  %6464 = vmatpush1.bf16.msra.mxu0 %v12652_v44  ;;  %6507 = vmatpush1.bf16.msra.mxu1 %v12780_v46 }
  0xa5   :  { %v12773_v48 = vcombine.high %v733_v42, %v737_v43  ;;  %v725_v50 = vld [vmem:[%s19829_s1 + $0x13c0] sm:$0xff]  ;;  %6465 = vmatprep.subr.bf16.mxu0 %v12645_v47  ;;  %v12772_v55 = vcombine.low %v733_v42, %v737_v43 }
  0xa6   :  { %v729_v51 = vld [vmem:[%s19829_s1 + $0x13e0] sm:$0xff] }
  0xa7   :  { %v853_v52 = vld [vmem:[%s19829_s1 + $0x17c0] sm:$0xff]  ;;  %v12765_v56 = vcombine.high %v725_v50, %v729_v51  ;;  %6508 = vmatprep.subr.bf16.mxu1 %v12773_v48  ;;  %v12764_v2 = vcombine.low %v725_v50, %v729_v51 }
  0xa8   :  { %v857_v53 = vld [vmem:[%s19829_s1 + $0x17e0] sm:$0xff]  ;;  %6466 = vmatpush1.bf16.msra.mxu0 %v12644_v54  ;;  %6509 = vmatpush1.bf16.msra.mxu1 %v12772_v55 }
  0xa9   :  { %v12893_v57 = vcombine.high %v853_v52, %v857_v53  ;;  %v717_v60 = vld [vmem:[%s19829_s1 + $0x1380] sm:$0xff]  ;;  %6467 = vmatprep.subr.bf16.mxu0 %v12765_v56  ;;  %v12892_v3 = vcombine.low %v853_v52, %v857_v53 }
  0xaa   :  { %v721_v61 = vld [vmem:[%s19829_s1 + $0x13a0] sm:$0xff] }
  0xab   :  { %v845_v0 = vld [vmem:[%s19829_s1 + $0x1780] sm:$0xff]  ;;  %v12757_v4 = vcombine.high %v717_v60, %v721_v61  ;;  %6510 = vmatprep.subr.bf16.mxu1 %v12893_v57  ;;  %v12756_v10 = vcombine.low %v717_v60, %v721_v61 }
  0xac   :  { %v849_v1 = vld [vmem:[%s19829_s1 + $0x17a0] sm:$0xff]  ;;  %6468 = vmatpush2.bf16.msra.mxu0 %v12764_v2  ;;  %6511 = vmatpush2.bf16.msra.mxu1 %v12892_v3 }
  0xad   :  { %v12885_v5 = vcombine.high %v845_v0, %v849_v1  ;;  %v709_v6 = vld [vmem:[%s19829_s1 + $0x1340] sm:$0xff]  ;;  %6469 = vmatprep.subr.bf16.mxu0 %v12757_v4  ;;  %v12884_v11 = vcombine.low %v845_v0, %v849_v1 }
  0xae   :  { %v713_v7 = vld [vmem:[%s19829_s1 + $0x1360] sm:$0xff] }
  0xaf   :  { %v837_v8 = vld [vmem:[%s19829_s1 + $0x1740] sm:$0xff]  ;;  %v12749_v12 = vcombine.high %v709_v6, %v713_v7  ;;  %6512 = vmatprep.subr.bf16.mxu1 %v12885_v5  ;;  %v12748_v18 = vcombine.low %v709_v6, %v713_v7 }
  0xb0   :  { %v841_v9 = vld [vmem:[%s19829_s1 + $0x1760] sm:$0xff]  ;;  %6470 = vmatpush2.bf16.msra.mxu0 %v12756_v10  ;;  %6513 = vmatpush2.bf16.msra.mxu1 %v12884_v11 }
  0xb1   :  { %v12877_v13 = vcombine.high %v837_v8, %v841_v9  ;;  %v701_v14 = vld [vmem:[%s19829_s1 + $0x1300] sm:$0xff]  ;;  %6471 = vmatprep.subr.bf16.mxu0 %v12749_v12  ;;  %v12876_v19 = vcombine.low %v837_v8, %v841_v9  ;;  %v55_v8 = vld [vmem:[%s19830_s0 + $0x50] sm:$0xff] }
  0xb2   :  { %v705_v15 = vld [vmem:[%s19829_s1 + $0x1320] sm:$0xff]  ;;  %v71_v9 = vld [vmem:[%s19830_s0 + $0xd0] sm:$0xff] }
  0xb3   :  { %v829_v16 = vld [vmem:[%s19829_s1 + $0x1700] sm:$0xff]  ;;  %v12741_v20 = vcombine.high %v701_v14, %v705_v15  ;;  %6514 = vmatprep.subr.bf16.mxu1 %v12877_v13  ;;  %v12740_v28 = vcombine.low %v701_v14, %v705_v15 }
  0xb4   :  { %v833_v17 = vld [vmem:[%s19829_s1 + $0x1720] sm:$0xff]  ;;  %6472 = vmatpush2.bf16.msra.mxu0 %v12748_v18  ;;  %6515 = vmatpush2.bf16.msra.mxu1 %v12876_v19  ;;  %v74_v18 = vld [vmem:[%s19830_s0 + $0xe8] sm:$0xff]  ;;  %v15386_v19 = vpack.c.bf16 %v71_v9, %v55_v8 }
  0xb5   :  { %v12869_v22 = vcombine.high %v829_v16, %v833_v17  ;;  %v693_v23 = vld [vmem:[%s19829_s1 + $0x12c0] sm:$0xff]  ;;  %6473 = vmatprep.subr.bf16.mxu0 %v12741_v20  ;;  %v12868_v29 = vcombine.low %v829_v16, %v833_v17  ;;  %v58_v17 = vld [vmem:[%s19830_s0 + $0x68] sm:$0xff] }
  0xb6   :  { %v697_v24 = vld [vmem:[%s19829_s1 + $0x12e0] sm:$0xff] }
  0xb7   :  { %v821_v26 = vld [vmem:[%s19829_s1 + $0x16c0] sm:$0xff]  ;;  %v12733_v30 = vcombine.high %v693_v23, %v697_v24  ;;  %6516 = vmatprep.subr.bf16.mxu1 %v12869_v22  ;;  %v12732_v38 = vcombine.low %v693_v23, %v697_v24  ;;  %v60_v22 = vld [vmem:[%s19830_s0 + $0x78] sm:$0xff] }
  0xb8   :  { %v825_v27 = vld [vmem:[%s19829_s1 + $0x16e0] sm:$0xff]  ;;  %6474 = vmatpush2.bf16.msra.mxu0 %v12740_v28  ;;  %6517 = vmatpush2.bf16.msra.mxu1 %v12868_v29  ;;  %v76_v23 = vld [vmem:[%s19830_s0 + $0xf8] sm:$0xff] }
  0xb9   :  { %v12861_v31 = vcombine.high %v821_v26, %v825_v27  ;;  %v685_v32 = vld [vmem:[%s19829_s1 + $0x1280] sm:$0xff]  ;;  %6475 = vmatprep.subr.bf16.mxu0 %v12733_v30  ;;  %v12860_v39 = vcombine.low %v821_v26, %v825_v27  ;;  %v15400_v30 = vpack.c.bf16 %v74_v18, %v58_v17 }
  0xba   :  { %v689_v33 = vld [vmem:[%s19829_s1 + $0x12a0] sm:$0xff] }
  0xbb   :  { %v813_v35 = vld [vmem:[%s19829_s1 + $0x1680] sm:$0xff]  ;;  %v12725_v40 = vcombine.high %v685_v32, %v689_v33  ;;  %6518 = vmatprep.subr.bf16.mxu1 %v12861_v31  ;;  %v12724_v47 = vcombine.low %v685_v32, %v689_v33  ;;  %v15409_v33 = vpack.c.bf16 %v76_v23, %v60_v22 }
  0xbc   :  { %v817_v36 = vld [vmem:[%s19829_s1 + $0x16a0] sm:$0xff]  ;;  %6476 = vmatpush2.bf16.msra.mxu0 %v12732_v38  ;;  %6519 = vmatpush2.bf16.msra.mxu1 %v12860_v39 }
  0xbd   :  { %v12853_v41 = vcombine.high %v813_v35, %v817_v36  ;;  %v677_v42 = vld [vmem:[%s19829_s1 + $0x1240] sm:$0xff]  ;;  %6477 = vmatprep.subr.bf16.mxu0 %v12725_v40  ;;  %v12852_v48 = vcombine.low %v813_v35, %v817_v36 }
  0xbe   :  { %v681_v43 = vld [vmem:[%s19829_s1 + $0x1260] sm:$0xff] }
  0xbf   :  { %v805_v44 = vld [vmem:[%s19829_s1 + $0x1640] sm:$0xff]  ;;  %v12717_v50 = vcombine.high %v677_v42, %v681_v43  ;;  %6520 = vmatprep.subr.bf16.mxu1 %v12853_v41  ;;  %v12716_v56 = vcombine.low %v677_v42, %v681_v43 }
  0xc0   :  { %v809_v46 = vld [vmem:[%s19829_s1 + $0x1660] sm:$0xff]  ;;  %6478 = vmatpush2.bf16.msra.mxu0 %v12724_v47  ;;  %6521 = vmatpush2.bf16.msra.mxu1 %v12852_v48 }
  0xc1   :  { %v12845_v51 = vcombine.high %v805_v44, %v809_v46  ;;  %v669_v52 = vld [vmem:[%s19829_s1 + $0x1200] sm:$0xff]  ;;  %6479 = vmatprep.subr.bf16.mxu0 %v12717_v50  ;;  %v12844_v57 = vcombine.low %v805_v44, %v809_v46 }
  0xc2   :  { %v673_v53 = vld [vmem:[%s19829_s1 + $0x1220] sm:$0xff] }
  0xc3   :  { %v797_v54 = vld [vmem:[%s19829_s1 + $0x1600] sm:$0xff]  ;;  %v12709_v60 = vcombine.high %v669_v52, %v673_v53  ;;  %6522 = vmatprep.subr.bf16.mxu1 %v12845_v51  ;;  %v12708_v4 = vcombine.low %v669_v52, %v673_v53 }
  0xc4   :  { %v801_v55 = vld [vmem:[%s19829_s1 + $0x1620] sm:$0xff]  ;;  %6480 = vmatpush2.bf16.msra.mxu0 %v12716_v56  ;;  %6523 = vmatpush2.bf16.msra.mxu1 %v12844_v57 }
  0xc5   :  { %v12837_v61 = vcombine.high %v797_v54, %v801_v55  ;;  %v917_v0 = vld [vmem:[%s19829_s1 + $0x19c0] sm:$0xff]  ;;  %6481 = vmatprep.subr.bf16.mxu0 %v12709_v60  ;;  %v12836_v7 = vcombine.low %v797_v54, %v801_v55 }
  0xc6   :  { %v921_v1 = vld [vmem:[%s19829_s1 + $0x19e0] sm:$0xff] }
  0xc7   :  { %v1045_v2 = vld [vmem:[%s19829_s1 + $0x1dc0] sm:$0xff]  ;;  %v12957_v10 = vcombine.high %v917_v0, %v921_v1  ;;  %6524 = vmatprep.subr.bf16.mxu1 %v12837_v61  ;;  %v12956_v20 = vcombine.low %v917_v0, %v921_v1 }
  0xc8   :  { %v1049_v3 = vld [vmem:[%s19829_s1 + $0x1de0] sm:$0xff]  ;;  %6482 = vmatpush2.bf16.msra.mxu0 %v12708_v4  ;;  %6525 = vmatpush2.bf16.msra.mxu1 %v12836_v7 }
  0xc9   :  { %v53_v5 = vld [vmem:[%s19830_s0 + $0x40] sm:$0xff]  ;;  %v13085_v11 = vcombine.high %v1045_v2, %v1049_v3  ;;  %6537 = vmatprep.subr.bf16.mxu0 %v12957_v10  ;;  %v13084_v24 = vcombine.low %v1045_v2, %v1049_v3 }
  0xca   :  { %v69_v6 = vld [vmem:[%s19830_s0 + $0xc0] sm:$0xff] }
  0xcb   :  { %v909_v12 = vld [vmem:[%s19829_s1 + $0x1980] sm:$0xff]  ;;  %v15375_v15 = vpack.c.bf16 %v69_v6, %v53_v5  ;;  %6580 = vmatprep.subr.bf16.mxu1 %v13085_v11  ;;  %6527 = vmatmul.mubr.bf16.vlgmr.msra.gmra.mxu1 %v15386_v19 }
  0xcc   :  { %v913_v13 = vld [vmem:[%s19829_s1 + $0x19a0] sm:$0xff]  ;;  %6581 = vmatpush1.bf16.msra.mxu1 %v13084_v24  ;;  %6612 = vmatprep.mubr.bf16.mxu1 %v15409_v33 }
  0xcd   :  { %v1037_v14 = vld [vmem:[%s19829_s1 + $0x1d80] sm:$0xff]  ;;  %v12949_v26 = vcombine.high %v909_v12, %v913_v13  ;;  %6484 = vmatmul.mubr.bf16.vlgmr.msra.gmra.mxu0 %v15375_v15  ;;  %v12948_v35 = vcombine.low %v909_v12, %v913_v13 }
  0xce   :  { %v1041_v16 = vld [vmem:[%s19829_s1 + $0x1da0] sm:$0xff]  ;;  %6538 = vmatpush1.bf16.msra.mxu0 %v12956_v20  ;;  %6569 = vmatprep.mubr.bf16.mxu0 %v15400_v30 }
  0xcf   :  { %v13077_v27 = vcombine.high %v1037_v14, %v1041_v16  ;;  %v901_v28 = vld [vmem:[%s19829_s1 + $0x1940] sm:$0xff]  ;;  %6539 = vmatprep.subr.bf16.mxu0 %v12949_v26  ;;  %v13076_v36 = vcombine.low %v1037_v14, %v1041_v16 }
  0xd0   :  { %v905_v29 = vld [vmem:[%s19829_s1 + $0x1960] sm:$0xff] }
  0xd1   :  { %v1029_v31 = vld [vmem:[%s19829_s1 + $0x1d40] sm:$0xff]  ;;  %v12941_v38 = vcombine.high %v901_v28, %v905_v29  ;;  %6582 = vmatprep.subr.bf16.mxu1 %v13077_v27  ;;  %v12940_v44 = vcombine.low %v901_v28, %v905_v29 }
  0xd2   :  { %v1033_v32 = vld [vmem:[%s19829_s1 + $0x1d60] sm:$0xff]  ;;  %6540 = vmatpush1.bf16.msra.mxu0 %v12948_v35  ;;  %6583 = vmatpush1.bf16.msra.mxu1 %v13076_v36 }
  0xd3   :  { %v13069_v39 = vcombine.high %v1029_v31, %v1033_v32  ;;  %v893_v40 = vld [vmem:[%s19829_s1 + $0x1900] sm:$0xff]  ;;  %6541 = vmatprep.subr.bf16.mxu0 %v12941_v38  ;;  %v13068_v46 = vcombine.low %v1029_v31, %v1033_v32 }
  0xd4   :  { %v897_v41 = vld [vmem:[%s19829_s1 + $0x1920] sm:$0xff] }
  0xd5   :  { %v1021_v42 = vld [vmem:[%s19829_s1 + $0x1d00] sm:$0xff]  ;;  %v12933_v47 = vcombine.high %v893_v40, %v897_v41  ;;  %6584 = vmatprep.subr.bf16.mxu1 %v13069_v39  ;;  %v12932_v54 = vcombine.low %v893_v40, %v897_v41 }
  0xd6   :  { %v1025_v43 = vld [vmem:[%s19829_s1 + $0x1d20] sm:$0xff]  ;;  %6542 = vmatpush1.bf16.msra.mxu0 %v12940_v44  ;;  %6585 = vmatpush1.bf16.msra.mxu1 %v13068_v46 }
  0xd7   :  { %v13061_v48 = vcombine.high %v1021_v42, %v1025_v43  ;;  %v885_v50 = vld [vmem:[%s19829_s1 + $0x18c0] sm:$0xff]  ;;  %6543 = vmatprep.subr.bf16.mxu0 %v12933_v47  ;;  %v13060_v55 = vcombine.low %v1021_v42, %v1025_v43 }
  0xd8   :  { %v889_v51 = vld [vmem:[%s19829_s1 + $0x18e0] sm:$0xff] }
  0xd9   :  { %v1013_v52 = vld [vmem:[%s19829_s1 + $0x1cc0] sm:$0xff]  ;;  %v12925_v56 = vcombine.high %v885_v50, %v889_v51  ;;  %6586 = vmatprep.subr.bf16.mxu1 %v13061_v48  ;;  %v12924_v2 = vcombine.low %v885_v50, %v889_v51 }
  0xda   :  { %v1017_v53 = vld [vmem:[%s19829_s1 + $0x1ce0] sm:$0xff]  ;;  %6544 = vmatpush1.bf16.msra.mxu0 %v12932_v54  ;;  %6587 = vmatpush1.bf16.msra.mxu1 %v13060_v55 }
  0xdb   :  { %v13053_v57 = vcombine.high %v1013_v52, %v1017_v53  ;;  %v877_v60 = vld [vmem:[%s19829_s1 + $0x1880] sm:$0xff]  ;;  %6545 = vmatprep.subr.bf16.mxu0 %v12925_v56  ;;  %v13052_v3 = vcombine.low %v1013_v52, %v1017_v53 }
  0xdc   :  { %v881_v61 = vld [vmem:[%s19829_s1 + $0x18a0] sm:$0xff] }
  0xdd   :  { %v1005_v0 = vld [vmem:[%s19829_s1 + $0x1c80] sm:$0xff]  ;;  %v12917_v4 = vcombine.high %v877_v60, %v881_v61  ;;  %6588 = vmatprep.subr.bf16.mxu1 %v13053_v57  ;;  %v12916_v10 = vcombine.low %v877_v60, %v881_v61 }
  0xde   :  { %v1009_v1 = vld [vmem:[%s19829_s1 + $0x1ca0] sm:$0xff]  ;;  %6546 = vmatpush1.bf16.msra.mxu0 %v12924_v2  ;;  %6589 = vmatpush1.bf16.msra.mxu1 %v13052_v3 }
  0xdf   :  { %v13045_v5 = vcombine.high %v1005_v0, %v1009_v1  ;;  %v869_v6 = vld [vmem:[%s19829_s1 + $0x1840] sm:$0xff]  ;;  %6547 = vmatprep.subr.bf16.mxu0 %v12917_v4  ;;  %v13044_v11 = vcombine.low %v1005_v0, %v1009_v1 }
  0xe0   :  { %v873_v7 = vld [vmem:[%s19829_s1 + $0x1860] sm:$0xff] }
  0xe1   :  { %v997_v8 = vld [vmem:[%s19829_s1 + $0x1c40] sm:$0xff]  ;;  %v12909_v12 = vcombine.high %v869_v6, %v873_v7  ;;  %6590 = vmatprep.subr.bf16.mxu1 %v13045_v5  ;;  %v12908_v20 = vcombine.low %v869_v6, %v873_v7 }
  0xe2   :  { %v1001_v9 = vld [vmem:[%s19829_s1 + $0x1c60] sm:$0xff]  ;;  %6548 = vmatpush1.bf16.msra.mxu0 %v12916_v10  ;;  %6591 = vmatpush1.bf16.msra.mxu1 %v13044_v11 }
  0xe3   :  { %v13037_v13 = vcombine.high %v997_v8, %v1001_v9  ;;  %v861_v14 = vld [vmem:[%s19829_s1 + $0x1800] sm:$0xff]  ;;  %6549 = vmatprep.subr.bf16.mxu0 %v12909_v12  ;;  %v13036_v22 = vcombine.low %v997_v8, %v1001_v9 }
  0xe4   :  { %v865_v16 = vld [vmem:[%s19829_s1 + $0x1820] sm:$0xff] }
  0xe5   :  { %v989_v17 = vld [vmem:[%s19829_s1 + $0x1c00] sm:$0xff]  ;;  %v12901_v23 = vcombine.high %v861_v14, %v865_v16  ;;  %6592 = vmatprep.subr.bf16.mxu1 %v13037_v13  ;;  %v12900_v31 = vcombine.low %v861_v14, %v865_v16 }
  0xe6   :  { %v993_v18 = vld [vmem:[%s19829_s1 + $0x1c20] sm:$0xff]  ;;  %6550 = vmatpush1.bf16.msra.mxu0 %v12908_v20  ;;  %6593 = vmatpush1.bf16.msra.mxu1 %v13036_v22 }
  0xe7   :  { %v13029_v24 = vcombine.high %v989_v17, %v993_v18  ;;  %v981_v26 = vld [vmem:[%s19829_s1 + $0x1bc0] sm:$0xff]  ;;  %6551 = vmatprep.subr.bf16.mxu0 %v12901_v23  ;;  %v13028_v32 = vcombine.low %v989_v17, %v993_v18 }
  0xe8   :  { %v985_v27 = vld [vmem:[%s19829_s1 + $0x1be0] sm:$0xff] }
  0xe9   :  { %v1109_v28 = vld [vmem:[%s19829_s1 + $0x1fc0] sm:$0xff]  ;;  %v13021_v35 = vcombine.high %v981_v26, %v985_v27  ;;  %6594 = vmatprep.subr.bf16.mxu1 %v13029_v24  ;;  %v13020_v42 = vcombine.low %v981_v26, %v985_v27 }
  0xea   :  { %v1113_v29 = vld [vmem:[%s19829_s1 + $0x1fe0] sm:$0xff]  ;;  %6552 = vmatpush1.bf16.msra.mxu0 %v12900_v31  ;;  %6595 = vmatpush1.bf16.msra.mxu1 %v13028_v32 }
  0xeb   :  { %v13149_v36 = vcombine.high %v1109_v28, %v1113_v29  ;;  %v973_v38 = vld [vmem:[%s19829_s1 + $0x1b80] sm:$0xff]  ;;  %6553 = vmatprep.subr.bf16.mxu0 %v13021_v35  ;;  %v13148_v43 = vcombine.low %v1109_v28, %v1113_v29  ;;  %v1119_v29 = vlaneseq }
  0xec   :  { %v977_v39 = vld [vmem:[%s19829_s1 + $0x1ba0] sm:$0xff] }
  0xed   :  { %v1101_v40 = vld [vmem:[%s19829_s1 + $0x1f80] sm:$0xff]  ;;  %v13013_v44 = vcombine.high %v973_v38, %v977_v39  ;;  %6596 = vmatprep.subr.bf16.mxu1 %v13149_v36  ;;  %v13012_v52 = vcombine.low %v973_v38, %v977_v39 }
  0xee   :  { %v1105_v41 = vld [vmem:[%s19829_s1 + $0x1fa0] sm:$0xff]  ;;  %6554 = vmatpush2.bf16.msra.mxu0 %v13020_v42  ;;  %6597 = vmatpush2.bf16.msra.mxu1 %v13148_v43  ;;  %v15570_v42 = vshrl.u32 %v1119_v29, 7 }
  0xef   :  { %v13141_v46 = vcombine.high %v1101_v40, %v1105_v41  ;;  %v965_v47 = vld [vmem:[%s19829_s1 + $0x1b40] sm:$0xff]  ;;  %6555 = vmatprep.subr.bf16.mxu0 %v13013_v44  ;;  %v13140_v53 = vcombine.low %v1101_v40, %v1105_v41 }
  0xf0   :  { %v969_v48 = vld [vmem:[%s19829_s1 + $0x1b60] sm:$0xff] }
  0xf1   :  { %v1093_v50 = vld [vmem:[%s19829_s1 + $0x1f40] sm:$0xff]  ;;  %v13005_v54 = vcombine.high %v965_v47, %v969_v48  ;;  %6598 = vmatprep.subr.bf16.mxu1 %v13141_v46  ;;  %v13004_v0 = vcombine.low %v965_v47, %v969_v48  ;;  %v150_v47 = vld [vmem:[%s19829_s1 + $0x1c8] sm:$0xff] }
  0xf2   :  { %v1097_v51 = vld [vmem:[%s19829_s1 + $0x1f60] sm:$0xff]  ;;  %6556 = vmatpush2.bf16.msra.mxu0 %v13012_v52  ;;  %6599 = vmatpush2.bf16.msra.mxu1 %v13140_v53  ;;  %v154_v48 = vld [vmem:[%s19829_s1 + $0x1e8] sm:$0xff]  ;;  %v15585_v53 = vsub.s32 0, %v15570_v42 }
  0xf3   :  { %v13133_v55 = vcombine.high %v1093_v50, %v1097_v51  ;;  %v957_v56 = vld [vmem:[%s19829_s1 + $0x1b00] sm:$0xff]  ;;  %6557 = vmatprep.subr.bf16.mxu0 %v13005_v54  ;;  %v13132_v1 = vcombine.low %v1093_v50, %v1097_v51  ;;  %v278_v50 = vld [vmem:[%s19829_s1 + $0x5c8] sm:$0xff] }
  0xf4   :  { %v961_v57 = vld [vmem:[%s19829_s1 + $0x1b20] sm:$0xff]  ;;  %v282_v51 = vld [vmem:[%s19829_s1 + $0x5e8] sm:$0xff]  ;;  %19851 = vst [vmem:[#allocation2_spill] sm:$0xff] %v15585_v53 }
  0xf5   :  { %v1085_v60 = vld [vmem:[%s19829_s1 + $0x1f00] sm:$0xff]  ;;  %v12997_v2 = vcombine.high %v957_v56, %v961_v57  ;;  %6600 = vmatprep.subr.bf16.mxu1 %v13133_v55  ;;  %v12996_v8 = vcombine.low %v957_v56, %v961_v57 }
  0xf6   :  { %v1089_v61 = vld [vmem:[%s19829_s1 + $0x1f20] sm:$0xff]  ;;  %6558 = vmatpush2.bf16.msra.mxu0 %v13004_v0  ;;  %6601 = vmatpush2.bf16.msra.mxu1 %v13132_v1  ;;  %v12191_v0 = vcombine.high %v150_v47, %v154_v48  ;;  %v12319_v1 = vcombine.high %v278_v50, %v282_v51 }
  0xf7   :  { %v13125_v3 = vcombine.high %v1085_v60, %v1089_v61  ;;  %v949_v4 = vld [vmem:[%s19829_s1 + $0x1ac0] sm:$0xff]  ;;  %6559 = vmatprep.subr.bf16.mxu0 %v12997_v2  ;;  %v13124_v9 = vcombine.low %v1085_v60, %v1089_v61  ;;  %v59_v60 = vld [vmem:[%s19830_s0 + $0x70] sm:$0xff]  ;;  %v142_v2 = vld [vmem:[%s19829_s1 + $0x188] sm:$0xff] }
  0xf8   :  { %v953_v5 = vld [vmem:[%s19829_s1 + $0x1ae0] sm:$0xff]  ;;  %v75_v61 = vld [vmem:[%s19830_s0 + $0xf0] sm:$0xff] }
  0xf9   :  { %v1077_v6 = vld [vmem:[%s19829_s1 + $0x1ec0] sm:$0xff]  ;;  %v12989_v10 = vcombine.high %v949_v4, %v953_v5  ;;  %6602 = vmatprep.subr.bf16.mxu1 %v13125_v3  ;;  %v12988_v17 = vcombine.low %v949_v4, %v953_v5  ;;  %v146_v3 = vld [vmem:[%s19829_s1 + $0x1a8] sm:$0xff] }
  0xfa   :  { %v1081_v7 = vld [vmem:[%s19829_s1 + $0x1ee0] sm:$0xff]  ;;  %6560 = vmatpush2.bf16.msra.mxu0 %v12996_v8  ;;  %6603 = vmatpush2.bf16.msra.mxu1 %v13124_v9  ;;  %v270_v5 = vld [vmem:[%s19829_s1 + $0x588] sm:$0xff]  ;;  %v15617_v8 = vpack.c.bf16 %v75_v61, %v59_v60  ;;  %v12190_v9 = vcombine.low %v150_v47, %v154_v48 }
  0xfb   :  { %v13117_v11 = vcombine.high %v1077_v6, %v1081_v7  ;;  %v941_v12 = vld [vmem:[%s19829_s1 + $0x1a80] sm:$0xff]  ;;  %6561 = vmatprep.subr.bf16.mxu0 %v12989_v10  ;;  %v13116_v18 = vcombine.low %v1077_v6, %v1081_v7  ;;  %v274_v6 = vld [vmem:[%s19829_s1 + $0x5a8] sm:$0xff]  ;;  %v12318_v10 = vcombine.low %v278_v50, %v282_v51 }
  0xfc   :  { %v945_v13 = vld [vmem:[%s19829_s1 + $0x1aa0] sm:$0xff]  ;;  %v118_v50 = vld [vmem:[%s19829_s1 + $0xc8] sm:$0xff] }
  0xfd   :  { %v1069_v14 = vld [vmem:[%s19829_s1 + $0x1e80] sm:$0xff]  ;;  %v12981_v20 = vcombine.high %v941_v12, %v945_v13  ;;  %6604 = vmatprep.subr.bf16.mxu1 %v13117_v11  ;;  %v12980_v28 = vcombine.low %v941_v12, %v945_v13  ;;  %v12183_v11 = vcombine.high %v142_v2, %v146_v3  ;;  %v12311_v12 = vcombine.high %v270_v5, %v274_v6  ;;  %v134_v13 = vld [vmem:[%s19829_s1 + $0x148] sm:$0xff] }
  0xfe   :  { %v1073_v16 = vld [vmem:[%s19829_s1 + $0x1ea0] sm:$0xff]  ;;  %6562 = vmatpush2.bf16.msra.mxu0 %v12988_v17  ;;  %6605 = vmatpush2.bf16.msra.mxu1 %v13116_v18  ;;  %v262_v17 = vld [vmem:[%s19829_s1 + $0x548] sm:$0xff] }
  0xff   :  { %v13109_v22 = vcombine.high %v1069_v14, %v1073_v16  ;;  %v933_v23 = vld [vmem:[%s19829_s1 + $0x1a40] sm:$0xff]  ;;  %6563 = vmatprep.subr.bf16.mxu0 %v12981_v20  ;;  %v13108_v31 = vcombine.low %v1069_v14, %v1073_v16  ;;  %v138_v14 = vld [vmem:[%s19829_s1 + $0x168] sm:$0xff] }
 0x100   :  { %v937_v24 = vld [vmem:[%s19829_s1 + $0x1a60] sm:$0xff]  ;;  %v266_v18 = vld [vmem:[%s19829_s1 + $0x568] sm:$0xff] }
 0x101   :  { %v1061_v26 = vld [vmem:[%s19829_s1 + $0x1e40] sm:$0xff]  ;;  %v12973_v32 = vcombine.high %v933_v23, %v937_v24  ;;  %6606 = vmatprep.subr.bf16.mxu1 %v13109_v22  ;;  %v12972_v41 = vcombine.low %v933_v23, %v937_v24  ;;  %v12182_v23 = vcombine.low %v142_v2, %v146_v3  ;;  %v122_v51 = vld [vmem:[%s19829_s1 + $0xe8] sm:$0xff] }
 0x102   :  { %v1065_v27 = vld [vmem:[%s19829_s1 + $0x1e60] sm:$0xff]  ;;  %6564 = vmatpush2.bf16.msra.mxu0 %v12980_v28  ;;  %6607 = vmatpush2.bf16.msra.mxu1 %v13108_v31  ;;  %v12303_v31 = vcombine.high %v262_v17, %v266_v18  ;;  %v110_v61 = vld [vmem:[%s19829_s1 + $0x88] sm:$0xff]  ;;  %v12158_v3 = vcombine.low %v118_v50, %v122_v51 }
 0x103   :  { %v13101_v35 = vcombine.high %v1061_v26, %v1065_v27  ;;  %v925_v36 = vld [vmem:[%s19829_s1 + $0x1a00] sm:$0xff]  ;;  %6565 = vmatprep.subr.bf16.mxu0 %v12973_v32  ;;  %v13100_v43 = vcombine.low %v1061_v26, %v1065_v27  ;;  %v12310_v26 = vcombine.low %v270_v5, %v274_v6  ;;  %v12175_v27 = vcombine.high %v134_v13, %v138_v14  ;;  %v126_v32 = vld [vmem:[%s19829_s1 + $0x108] sm:$0xff] }
 0x104   :  { %v929_v38 = vld [vmem:[%s19829_s1 + $0x1a20] sm:$0xff]  ;;  %v242_v2 = vld [vmem:[%s19829_s1 + $0x4a8] sm:$0xff] }
 0x105   :  { %v1053_v39 = vld [vmem:[%s19829_s1 + $0x1e00] sm:$0xff]  ;;  %v12965_v44 = vcombine.high %v925_v36, %v929_v38  ;;  %6608 = vmatprep.subr.bf16.mxu1 %v13101_v35  ;;  %v12964_v52 = vcombine.low %v925_v36, %v929_v38  ;;  %v130_v35 = vld [vmem:[%s19829_s1 + $0x128] sm:$0xff] }
 0x106   :  { %v1057_v40 = vld [vmem:[%s19829_s1 + $0x1e20] sm:$0xff]  ;;  %6566 = vmatpush2.bf16.msra.mxu0 %v12972_v41  ;;  %6609 = vmatpush2.bf16.msra.mxu1 %v13100_v43  ;;  %v254_v38 = vld [vmem:[%s19829_s1 + $0x508] sm:$0xff]  ;;  %v12174_v41 = vcombine.low %v134_v13, %v138_v14 }
 0x107   :  { %v13093_v46 = vcombine.high %v1053_v39, %v1057_v40  ;;  %v57_v54 = vld [vmem:[%s19830_s0 + $0x60] sm:$0xff]  ;;  %6567 = vmatprep.subr.bf16.mxu0 %v12965_v44  ;;  %v13092_v56 = vcombine.low %v1053_v39, %v1057_v40  ;;  %v6356_v22 = vpop.f32.mrf.mxu1  ;;  %v258_v39 = vld [vmem:[%s19829_s1 + $0x528] sm:$0xff]  ;;  %v12302_v44 = vcombine.low %v262_v17, %v266_v18 }
 0x108   :  { %v73_v55 = vld [vmem:[%s19830_s0 + $0xe0] sm:$0xff]  ;;  %v12295_v48 = vcombine.high %v254_v38, %v258_v39  ;;  %v94_v18 = vld [vmem:[%s19829_s1 + $0x8] sm:$0xff] }
 0x109   :  { %v1117_v57 = vld [vmem:[%s19831_s2] sm:$0xff]  ;;  %6610 = vmatprep.subr.bf16.mxu1 %v13093_v46  ;;  %v15608_v4 = vpack.c.bf16 %v73_v55, %v57_v54  ;;  %v6313_v16 = vpop.f32.mrf.mxu0  ;;  %v15637_v29 = vpop.f32.mrf.mxu1  ;;  %v12167_v46 = vcombine.high %v126_v32, %v130_v35  ;;  %v250_v54 = vld [vmem:[%s19829_s1 + $0x4e8] sm:$0xff]  ;;  %v12166_v55 = vcombine.low %v126_v32, %v130_v35 }
 0x10a   :  { %6568 = vmatpush2.bf16.msra.mxu0 %v12964_v52  ;;  %v1122_v7 = vrot.slane %v1117_v57, %v15585_v53  ;;  %6611 = vmatpush2.bf16.msra.mxu1 %v13092_v56  ;;  %v246_v52 = vld [vmem:[%s19829_s1 + $0x4c8] sm:$0xff]  ;;  %v12294_v56 = vcombine.low %v254_v38, %v258_v39  ;;  %v12159_v57 = vcombine.high %v118_v50, %v122_v51  ;;  %v379_v53 = vld [vmem:[%s19829_s1 + $0x8f0] sm:$0xff] }
 0x10b   :  { %6623 = vmatprep.subr.bf16.mxu0 %v12191_v0  ;;  %6666 = vmatprep.subr.bf16.mxu1 %v12319_v1  ;;  %v15633_v24 = vpop.f32.mrf.mxu0  ;;  %v6360_v43 = vpop.f32.mrf.mxu1  ;;  %v12287_v60 = vcombine.high %v246_v52, %v250_v54  ;;  %v114_v0 = vld [vmem:[%s19829_s1 + $0xa8] sm:$0xff]  ;;  %v12286_v5 = vcombine.low %v246_v52, %v250_v54 }
 0x10c   :  { %v6314_v20 = vadd.f32 %v6313_v16, %v1122_v7  ;;  %v238_v1 = vld [vmem:[%s19829_s1 + $0x488] sm:$0xff]  ;;  %v12151_v6 = vcombine.high %v110_v61, %v114_v0  ;;  %v12150_v13 = vcombine.low %v110_v61, %v114_v0 }
 0x10d   :  { %6570 = vmatmul.mubr.bf16.vlgmr.msra.gmra.mxu0 %v15608_v4  ;;  %6613 = vmatmul.mubr.bf16.vlgmr.msra.gmra.mxu1 %v15617_v8  ;;  %v6317_v36 = vpop.f32.mrf.mxu0  ;;  %v12278_v14 = vcombine.low %v238_v1, %v242_v2  ;;  %v214_v35 = vld [vmem:[%s19829_s1 + $0x3c8] sm:$0xff] }
 0x10e   :  { %6624 = vmatpush1.bf16.msra.mxu0 %v12190_v9  ;;  %6667 = vmatpush1.bf16.msra.mxu1 %v12318_v10  ;;  %v15635_v28 = vadd.f32 %v6356_v22, %v6314_v20  ;;  %v6318_v40 = vadd.f32 %v6317_v36, %v1122_v7  ;;  %v12279_v7 = vcombine.high %v238_v1, %v242_v2  ;;  %v102_v9 = vld [vmem:[%s19829_s1 + $0x48] sm:$0xff] }
 0x10f   :  { %6625 = vmatprep.subr.bf16.mxu0 %v12183_v11  ;;  %6668 = vmatprep.subr.bf16.mxu1 %v12311_v12  ;;  %v106_v10 = vld [vmem:[%s19829_s1 + $0x68] sm:$0xff] }
 0x110   :  { %6655 = vmatprep.mubr.bf16.mxu0 %v14772_v58  ;;  %6698 = vmatprep.mubr.bf16.mxu1 %v14786_v63  ;;  %v15653_v47 = vadd.f32 %v6360_v43, %v6318_v40  ;;  %v230_v11 = vld [vmem:[%s19829_s1 + $0x448] sm:$0xff]  ;;  %v12143_v16 = vcombine.high %v102_v9, %v106_v10 }
 0x111   :  { %v234_v12 = vld [vmem:[%s19829_s1 + $0x468] sm:$0xff] }
 0x112   :  { %6626 = vmatpush1.bf16.msra.mxu0 %v12182_v23  ;;  %6669 = vmatpush1.bf16.msra.mxu1 %v12310_v26  ;;  %v12271_v17 = vcombine.high %v230_v11, %v234_v12  ;;  %v98_v20 = vld [vmem:[%s19829_s1 + $0x28] sm:$0xff]  ;;  %v12142_v26 = vcombine.low %v102_v9, %v106_v10 }
 0x113   :  { %6627 = vmatprep.subr.bf16.mxu0 %v12175_v27  ;;  %6670 = vmatprep.subr.bf16.mxu1 %v12303_v31  ;;  %v222_v22 = vld [vmem:[%s19829_s1 + $0x408] sm:$0xff]  ;;  %v12270_v27 = vcombine.low %v230_v11, %v234_v12  ;;  %v12135_v31 = vcombine.high %v94_v18, %v98_v20  ;;  %v12134_v40 = vcombine.low %v94_v18, %v98_v20 }
 0x114   :  { %v226_v23 = vld [vmem:[%s19829_s1 + $0x428] sm:$0xff] }
 0x115   :  { %v12263_v32 = vcombine.high %v222_v22, %v226_v23  ;;  %v218_v36 = vld [vmem:[%s19829_s1 + $0x3e8] sm:$0xff] }
 0x116   :  { %6628 = vmatpush1.bf16.msra.mxu0 %v12174_v41  ;;  %6671 = vmatpush1.bf16.msra.mxu1 %v12302_v44  ;;  %v342_v38 = vld [vmem:[%s19829_s1 + $0x7c8] sm:$0xff]  ;;  %v12262_v41 = vcombine.low %v222_v22, %v226_v23  ;;  %v12255_v43 = vcombine.high %v214_v35, %v218_v36  ;;  %v12254_v52 = vcombine.low %v214_v35, %v218_v36 }
 0x117   :  { %6629 = vmatprep.subr.bf16.mxu0 %v12167_v46  ;;  %6672 = vmatprep.subr.bf16.mxu1 %v12295_v48  ;;  %v346_v39 = vld [vmem:[%s19829_s1 + $0x7e8] sm:$0xff] }
 0x118   :  { %v12383_v44 = vcombine.high %v342_v38, %v346_v39  ;;  %v206_v46 = vld [vmem:[%s19829_s1 + $0x388] sm:$0xff]  ;;  %v12382_v54 = vcombine.low %v342_v38, %v346_v39 }
 0x119   :  { %v210_v48 = vld [vmem:[%s19829_s1 + $0x3a8] sm:$0xff] }
 0x11a   :  { %6630 = vmatpush1.bf16.msra.mxu0 %v12166_v55  ;;  %6673 = vmatpush1.bf16.msra.mxu1 %v12294_v56  ;;  %v334_v50 = vld [vmem:[%s19829_s1 + $0x788] sm:$0xff]  ;;  %v12247_v55 = vcombine.high %v206_v46, %v210_v48  ;;  %v12246_v1 = vcombine.low %v206_v46, %v210_v48 }
 0x11b   :  { %6631 = vmatprep.subr.bf16.mxu0 %v12159_v57  ;;  %6674 = vmatprep.subr.bf16.mxu1 %v12287_v60  ;;  %v338_v51 = vld [vmem:[%s19829_s1 + $0x7a8] sm:$0xff] }
 0x11c   :  { %v12375_v56 = vcombine.high %v334_v50, %v338_v51  ;;  %v198_v57 = vld [vmem:[%s19829_s1 + $0x348] sm:$0xff]  ;;  %v12374_v2 = vcombine.low %v334_v50, %v338_v51 }
 0x11d   :  { %v202_v60 = vld [vmem:[%s19829_s1 + $0x368] sm:$0xff] }
 0x11e   :  { %6632 = vmatpush1.bf16.msra.mxu0 %v12158_v3  ;;  %6675 = vmatpush1.bf16.msra.mxu1 %v12286_v5  ;;  %v326_v61 = vld [vmem:[%s19829_s1 + $0x748] sm:$0xff]  ;;  %v12239_v3 = vcombine.high %v198_v57, %v202_v60  ;;  %v12238_v11 = vcombine.low %v198_v57, %v202_v60 }
 0x11f   :  { %6633 = vmatprep.subr.bf16.mxu0 %v12151_v6  ;;  %6676 = vmatprep.subr.bf16.mxu1 %v12279_v7  ;;  %v330_v0 = vld [vmem:[%s19829_s1 + $0x768] sm:$0xff] }
 0x120   :  { %v12367_v5 = vcombine.high %v326_v61, %v330_v0  ;;  %v190_v6 = vld [vmem:[%s19829_s1 + $0x308] sm:$0xff]  ;;  %v12366_v12 = vcombine.low %v326_v61, %v330_v0 }
 0x121   :  { %v194_v7 = vld [vmem:[%s19829_s1 + $0x328] sm:$0xff] }
 0x122   :  { %6634 = vmatpush1.bf16.msra.mxu0 %v12150_v13  ;;  %6677 = vmatpush1.bf16.msra.mxu1 %v12278_v14  ;;  %v318_v9 = vld [vmem:[%s19829_s1 + $0x708] sm:$0xff]  ;;  %v12231_v13 = vcombine.high %v190_v6, %v194_v7  ;;  %v12230_v22 = vcombine.low %v190_v6, %v194_v7 }
 0x123   :  { %6635 = vmatprep.subr.bf16.mxu0 %v12143_v16  ;;  %6678 = vmatprep.subr.bf16.mxu1 %v12271_v17  ;;  %v322_v10 = vld [vmem:[%s19829_s1 + $0x728] sm:$0xff] }
 0x124   :  { %v12359_v14 = vcombine.high %v318_v9, %v322_v10  ;;  %v182_v16 = vld [vmem:[%s19829_s1 + $0x2c8] sm:$0xff]  ;;  %v12358_v23 = vcombine.low %v318_v9, %v322_v10 }
 0x125   :  { %v186_v17 = vld [vmem:[%s19829_s1 + $0x2e8] sm:$0xff] }
 0x126   :  { %6636 = vmatpush1.bf16.msra.mxu0 %v12142_v26  ;;  %6679 = vmatpush1.bf16.msra.mxu1 %v12270_v27  ;;  %v310_v18 = vld [vmem:[%s19829_s1 + $0x6c8] sm:$0xff]  ;;  %v12223_v26 = vcombine.high %v182_v16, %v186_v17  ;;  %v12222_v38 = vcombine.low %v182_v16, %v186_v17 }
 0x127   :  { %6637 = vmatprep.subr.bf16.mxu0 %v12135_v31  ;;  %6680 = vmatprep.subr.bf16.mxu1 %v12263_v32  ;;  %v314_v20 = vld [vmem:[%s19829_s1 + $0x6e8] sm:$0xff] }
 0x128   :  { %v12351_v27 = vcombine.high %v310_v18, %v314_v20  ;;  %v174_v31 = vld [vmem:[%s19829_s1 + $0x288] sm:$0xff]  ;;  %v12350_v39 = vcombine.low %v310_v18, %v314_v20  ;;  %v15823_v20 = vpop.f32.mrf.mxu0 }
 0x129   :  { %v178_v32 = vld [vmem:[%s19829_s1 + $0x2a8] sm:$0xff] }
 0x12a   :  { %6638 = vmatpush1.bf16.msra.mxu0 %v12134_v40  ;;  %6681 = vmatpush1.bf16.msra.mxu1 %v12262_v41  ;;  %v302_v35 = vld [vmem:[%s19829_s1 + $0x688] sm:$0xff]  ;;  %v12215_v40 = vcombine.high %v174_v31, %v178_v32  ;;  %v12214_v50 = vcombine.low %v174_v31, %v178_v32 }
 0x12b   :  { %6639 = vmatprep.subr.bf16.mxu0 %v12255_v43  ;;  %6682 = vmatprep.subr.bf16.mxu1 %v12383_v44  ;;  %v306_v36 = vld [vmem:[%s19829_s1 + $0x6a8] sm:$0xff] }
 0x12c   :  { %v12343_v41 = vcombine.high %v302_v35, %v306_v36  ;;  %v166_v43 = vld [vmem:[%s19829_s1 + $0x248] sm:$0xff]  ;;  %v12342_v51 = vcombine.low %v302_v35, %v306_v36 }
 0x12d   :  { %v170_v44 = vld [vmem:[%s19829_s1 + $0x268] sm:$0xff] }
 0x12e   :  { %6640 = vmatpush2.bf16.msra.mxu0 %v12254_v52  ;;  %6683 = vmatpush2.bf16.msra.mxu1 %v12382_v54  ;;  %v294_v46 = vld [vmem:[%s19829_s1 + $0x648] sm:$0xff]  ;;  %v12207_v52 = vcombine.high %v166_v43, %v170_v44  ;;  %v12206_v61 = vcombine.low %v166_v43, %v170_v44 }
 0x12f   :  { %6641 = vmatprep.subr.bf16.mxu0 %v12247_v55  ;;  %6684 = vmatprep.subr.bf16.mxu1 %v12375_v56  ;;  %v298_v48 = vld [vmem:[%s19829_s1 + $0x668] sm:$0xff] }
 0x130   :  { %v12335_v54 = vcombine.high %v294_v46, %v298_v48  ;;  %v158_v55 = vld [vmem:[%s19829_s1 + $0x208] sm:$0xff]  ;;  %v12334_v0 = vcombine.low %v294_v46, %v298_v48 }
 0x131   :  { %v162_v56 = vld [vmem:[%s19829_s1 + $0x228] sm:$0xff] }
 0x132   :  { %6642 = vmatpush2.bf16.msra.mxu0 %v12246_v1  ;;  %6685 = vmatpush2.bf16.msra.mxu1 %v12374_v2  ;;  %v286_v57 = vld [vmem:[%s19829_s1 + $0x608] sm:$0xff]  ;;  %v12199_v1 = vcombine.high %v158_v55, %v162_v56  ;;  %v12198_v9 = vcombine.low %v158_v55, %v162_v56 }
 0x133   :  { %6643 = vmatprep.subr.bf16.mxu0 %v12239_v3  ;;  %6686 = vmatprep.subr.bf16.mxu1 %v12367_v5  ;;  %v290_v60 = vld [vmem:[%s19829_s1 + $0x628] sm:$0xff] }
 0x134   :  { %v12327_v2 = vcombine.high %v286_v57, %v290_v60  ;;  %v406_v3 = vld [vmem:[%s19829_s1 + $0x9c8] sm:$0xff]  ;;  %v12326_v10 = vcombine.low %v286_v57, %v290_v60 }
 0x135   :  { %v410_v5 = vld [vmem:[%s19829_s1 + $0x9e8] sm:$0xff] }
 0x136   :  { %6644 = vmatpush2.bf16.msra.mxu0 %v12238_v11  ;;  %6687 = vmatpush2.bf16.msra.mxu1 %v12366_v12  ;;  %v534_v6 = vld [vmem:[%s19829_s1 + $0xdc8] sm:$0xff]  ;;  %v12447_v11 = vcombine.high %v406_v3, %v410_v5  ;;  %v12446_v18 = vcombine.low %v406_v3, %v410_v5 }
 0x137   :  { %6645 = vmatprep.subr.bf16.mxu0 %v12231_v13  ;;  %6688 = vmatprep.subr.bf16.mxu1 %v12359_v14  ;;  %v538_v7 = vld [vmem:[%s19829_s1 + $0xde8] sm:$0xff] }
 0x138   :  { %v12575_v12 = vcombine.high %v534_v6, %v538_v7  ;;  %v398_v13 = vld [vmem:[%s19829_s1 + $0x988] sm:$0xff] }
 0x139   :  { %v402_v14 = vld [vmem:[%s19829_s1 + $0x9a8] sm:$0xff] }
 0x13a   :  { %6646 = vmatpush2.bf16.msra.mxu0 %v12230_v22  ;;  %6689 = vmatpush2.bf16.msra.mxu1 %v12358_v23  ;;  %v526_v16 = vld [vmem:[%s19829_s1 + $0xd88] sm:$0xff]  ;;  %v12574_v22 = vcombine.low %v534_v6, %v538_v7  ;;  %v12439_v23 = vcombine.high %v398_v13, %v402_v14 }
 0x13b   :  { %6647 = vmatprep.subr.bf16.mxu0 %v12223_v26  ;;  %6690 = vmatprep.subr.bf16.mxu1 %v12351_v27  ;;  %v530_v17 = vld [vmem:[%s19829_s1 + $0xda8] sm:$0xff]  ;;  %v15825_v26 = vpop.f32.mrf.mxu1 }
 0x13c   :  { %v12567_v27 = vcombine.high %v526_v16, %v530_v17  ;;  %v390_v31 = vld [vmem:[%s19829_s1 + $0x948] sm:$0xff]  ;;  %v12566_v44 = vcombine.low %v526_v16, %v530_v17 }
 0x13d   :  { %v394_v32 = vld [vmem:[%s19829_s1 + $0x968] sm:$0xff] }
 0x13e   :  { %6648 = vmatpush2.bf16.msra.mxu0 %v12222_v38  ;;  %6691 = vmatpush2.bf16.msra.mxu1 %v12350_v39  ;;  %v518_v36 = vld [vmem:[%s19829_s1 + $0xd48] sm:$0xff]  ;;  %v12431_v46 = vcombine.high %v390_v31, %v394_v32  ;;  %v12430_v60 = vcombine.low %v390_v31, %v394_v32 }
 0x13f   :  { %6649 = vmatprep.subr.bf16.mxu0 %v12215_v40  ;;  %6692 = vmatprep.subr.bf16.mxu1 %v12343_v41  ;;  %v522_v38 = vld [vmem:[%s19829_s1 + $0xd68] sm:$0xff]  ;;  %v12438_v41 = vcombine.low %v398_v13, %v402_v14 }
 0x140   :  { %v510_v55 = vld [vmem:[%s19829_s1 + $0xd08] sm:$0xff] }
 0x141   :  { %v514_v56 = vld [vmem:[%s19829_s1 + $0xd28] sm:$0xff] }
 0x142   :  { %6650 = vmatpush2.bf16.msra.mxu0 %v12214_v50  ;;  %6693 = vmatpush2.bf16.msra.mxu1 %v12342_v51  ;;  %v12559_v51 = vcombine.high %v518_v36, %v522_v38  ;;  %v12551_v3 = vcombine.high %v510_v55, %v514_v56  ;;  %v374_v5 = vld [vmem:[%s19829_s1 + $0x8c8] sm:$0xff] }
 0x143   :  { %6651 = vmatprep.subr.bf16.mxu0 %v12207_v52  ;;  %6694 = vmatprep.subr.bf16.mxu1 %v12335_v54  ;;  %v386_v52 = vld [vmem:[%s19829_s1 + $0x928] sm:$0xff] }
 0x144   :  { %v378_v6 = vld [vmem:[%s19829_s1 + $0x8e8] sm:$0xff] }
 0x145   :  { %v506_v7 = vld [vmem:[%s19829_s1 + $0xce8] sm:$0xff] }
 0x146   :  { %6652 = vmatpush2.bf16.msra.mxu0 %v12206_v61  ;;  %6695 = vmatpush2.bf16.msra.mxu1 %v12334_v0  ;;  %v12558_v0 = vcombine.low %v518_v36, %v522_v38  ;;  %v366_v13 = vld [vmem:[%s19829_s1 + $0x888] sm:$0xff] }
 0x147   :  { %6653 = vmatprep.subr.bf16.mxu0 %v12199_v1  ;;  %6696 = vmatprep.subr.bf16.mxu1 %v12327_v2  ;;  %v370_v14 = vld [vmem:[%s19829_s1 + $0x8a8] sm:$0xff] }
 0x148   :  { %v494_v16 = vld [vmem:[%s19829_s1 + $0xc88] sm:$0xff]  ;;  %v12406_v38 = vcombine.low %v366_v13, %v370_v14 }
 0x149   :  { %v6442_v40 = vpop.f32.mrf.mxu1  ;;  %v498_v17 = vld [vmem:[%s19829_s1 + $0xca8] sm:$0xff] }
 0x14a   :  { %6654 = vmatpush2.bf16.msra.mxu0 %v12198_v9  ;;  %6697 = vmatpush2.bf16.msra.mxu1 %v12326_v10  ;;  %v12550_v10 = vcombine.low %v510_v55, %v514_v56  ;;  %v358_v31 = vld [vmem:[%s19829_s1 + $0x848] sm:$0xff] }
 0x14b   :  { %6709 = vmatprep.subr.bf16.mxu0 %v12447_v11  ;;  %6752 = vmatprep.subr.bf16.mxu1 %v12575_v12  ;;  %v6399_v35 = vpop.f32.mrf.mxu0  ;;  %v15846_v50 = vpop.f32.mrf.mxu1  ;;  %v12415_v11 = vcombine.high %v374_v5, %v378_v6  ;;  %v362_v32 = vld [vmem:[%s19829_s1 + $0x868] sm:$0xff] }
 0x14c   :  { %v6400_v39 = vadd.f32 %v6399_v35, %v15635_v28  ;;  %v382_v28 = vld [vmem:[%s19829_s1 + $0x908] sm:$0xff] }
 0x14d   :  { %6656 = vmatmul.mubr.bf16.vlgmr.msra.gmra.mxu0 %v14919_v21  ;;  %6699 = vmatmul.mubr.bf16.vlgmr.msra.gmra.mxu1 %v14930_v25  ;;  %v15842_v43 = vpop.f32.mrf.mxu0  ;;  %v6446_v61 = vpop.f32.mrf.mxu1  ;;  %v12423_v1 = vcombine.high %v382_v28, %v386_v52  ;;  %v12422_v9 = vcombine.low %v382_v28, %v386_v52  ;;  %v486_v35 = vld [vmem:[%s19829_s1 + $0xc48] sm:$0xff]  ;;  %v12398_v52 = vcombine.low %v358_v31, %v362_v32 }
 0x14e   :  { %6710 = vmatpush1.bf16.msra.mxu0 %v12446_v18  ;;  %6753 = vmatpush1.bf16.msra.mxu1 %v12574_v22  ;;  %v15844_v48 = vadd.f32 %v6442_v40, %v6400_v39  ;;  %v12414_v18 = vcombine.low %v374_v5, %v378_v6  ;;  %v490_v36 = vld [vmem:[%s19829_s1 + $0xc68] sm:$0xff]  ;;  %v12534_v39 = vcombine.low %v494_v16, %v498_v17 }
 0x14f   :  { %6711 = vmatprep.subr.bf16.mxu0 %v12439_v23  ;;  %6754 = vmatprep.subr.bf16.mxu1 %v12567_v27  ;;  %v6403_v54 = vpop.f32.mrf.mxu0  ;;  %v12407_v23 = vcombine.high %v366_v13, %v370_v14  ;;  %v12535_v27 = vcombine.high %v494_v16, %v498_v17  ;;  %v12399_v40 = vcombine.high %v358_v31, %v362_v32  ;;  %v482_v28 = vld [vmem:[%s19829_s1 + $0xc28] sm:$0xff] }
 0x150   :  { %6741 = vmatprep.mubr.bf16.mxu0 %v14944_v34  ;;  %6784 = vmatprep.mubr.bf16.mxu1 %v14953_v37  ;;  %v6404_v57 = vadd.f32 %v6403_v54, %v15653_v47  ;;  %v502_v47 = vld [vmem:[%s19829_s1 + $0xcc8] sm:$0xff]  ;;  %v12526_v54 = vcombine.low %v486_v35, %v490_v36 }
 0x151   :  { %v12543_v12 = vcombine.high %v502_v47, %v506_v7  ;;  %v12542_v22 = vcombine.low %v502_v47, %v506_v7  ;;  %v462_v47 = vld [vmem:[%s19829_s1 + $0xb88] sm:$0xff] }
 0x152   :  { %6712 = vmatpush1.bf16.msra.mxu0 %v12438_v41  ;;  %6755 = vmatpush1.bf16.msra.mxu1 %v12566_v44  ;;  %v15863_v2 = vadd.f32 %v6446_v61, %v6404_v57  ;;  %v12527_v41 = vcombine.high %v486_v35, %v490_v36  ;;  %v350_v44 = vld [vmem:[%s19829_s1 + $0x808] sm:$0xff] }
 0x153   :  { %6713 = vmatprep.subr.bf16.mxu0 %v12431_v46  ;;  %6756 = vmatprep.subr.bf16.mxu1 %v12559_v51  ;;  %v354_v46 = vld [vmem:[%s19829_s1 + $0x828] sm:$0xff] }
 0x154   :  { %v478_v51 = vld [vmem:[%s19829_s1 + $0xc08] sm:$0xff]  ;;  %v12391_v55 = vcombine.high %v350_v44, %v354_v46 }
 0x155   :  { %v12519_v56 = vcombine.high %v478_v51, %v482_v28  ;;  %v470_v57 = vld [vmem:[%s19829_s1 + $0xbc8] sm:$0xff] }
 0x156   :  { %6714 = vmatpush1.bf16.msra.mxu0 %v12430_v60  ;;  %6757 = vmatpush1.bf16.msra.mxu1 %v12558_v0  ;;  %v474_v60 = vld [vmem:[%s19829_s1 + $0xbe8] sm:$0xff] }
 0x157   :  { %6715 = vmatprep.subr.bf16.mxu0 %v12423_v1  ;;  %6758 = vmatprep.subr.bf16.mxu1 %v12551_v3  ;;  %v598_v61 = vld [vmem:[%s19829_s1 + $0xfc8] sm:$0xff]  ;;  %v12390_v1 = vcombine.low %v350_v44, %v354_v46  ;;  %v12518_v3 = vcombine.low %v478_v51, %v482_v28  ;;  %v12511_v5 = vcombine.high %v470_v57, %v474_v60 }
 0x158   :  { %v602_v0 = vld [vmem:[%s19829_s1 + $0xfe8] sm:$0xff] }
 0x159   :  { %v12639_v6 = vcombine.high %v598_v61, %v602_v0  ;;  %v466_v7 = vld [vmem:[%s19829_s1 + $0xba8] sm:$0xff] }
 0x15a   :  { %6716 = vmatpush1.bf16.msra.mxu0 %v12422_v9  ;;  %6759 = vmatpush1.bf16.msra.mxu1 %v12550_v10  ;;  %v590_v9 = vld [vmem:[%s19829_s1 + $0xf88] sm:$0xff]  ;;  %v12503_v13 = vcombine.high %v462_v47, %v466_v7 }
 0x15b   :  { %6717 = vmatprep.subr.bf16.mxu0 %v12415_v11  ;;  %6760 = vmatprep.subr.bf16.mxu1 %v12543_v12  ;;  %v594_v10 = vld [vmem:[%s19829_s1 + $0xfa8] sm:$0xff]  ;;  %v12510_v11 = vcombine.low %v470_v57, %v474_v60  ;;  %v12638_v12 = vcombine.low %v598_v61, %v602_v0 }
 0x15c   :  { %v12631_v14 = vcombine.high %v590_v9, %v594_v10  ;;  %v454_v16 = vld [vmem:[%s19829_s1 + $0xb48] sm:$0xff] }
 0x15d   :  { %v458_v17 = vld [vmem:[%s19829_s1 + $0xb68] sm:$0xff] }
 0x15e   :  { %6718 = vmatpush1.bf16.msra.mxu0 %v12414_v18  ;;  %6761 = vmatpush1.bf16.msra.mxu1 %v12542_v22  ;;  %v582_v18 = vld [vmem:[%s19829_s1 + $0xf48] sm:$0xff]  ;;  %v12495_v31 = vcombine.high %v454_v16, %v458_v17 }
 0x15f   :  { %6719 = vmatprep.subr.bf16.mxu0 %v12407_v23  ;;  %6762 = vmatprep.subr.bf16.mxu1 %v12535_v27  ;;  %v586_v22 = vld [vmem:[%s19829_s1 + $0xf68] sm:$0xff]  ;;  %v12502_v23 = vcombine.low %v462_v47, %v466_v7  ;;  %v12630_v27 = vcombine.low %v590_v9, %v594_v10 }
 0x160   :  { %v12623_v32 = vcombine.high %v582_v18, %v586_v22  ;;  %v446_v35 = vld [vmem:[%s19829_s1 + $0xb08] sm:$0xff] }
 0x161   :  { %v450_v36 = vld [vmem:[%s19829_s1 + $0xb28] sm:$0xff] }
 0x162   :  { %6720 = vmatpush1.bf16.msra.mxu0 %v12406_v38  ;;  %6763 = vmatpush1.bf16.msra.mxu1 %v12534_v39  ;;  %v574_v38 = vld [vmem:[%s19829_s1 + $0xf08] sm:$0xff]  ;;  %v12487_v44 = vcombine.high %v446_v35, %v450_v36 }
 0x163   :  { %6721 = vmatprep.subr.bf16.mxu0 %v12399_v40  ;;  %6764 = vmatprep.subr.bf16.mxu1 %v12527_v41  ;;  %v578_v39 = vld [vmem:[%s19829_s1 + $0xf28] sm:$0xff]  ;;  %v12494_v40 = vcombine.low %v454_v16, %v458_v17  ;;  %v12622_v41 = vcombine.low %v582_v18, %v586_v22 }
 0x164   :  { %v12615_v46 = vcombine.high %v574_v38, %v578_v39  ;;  %v438_v51 = vld [vmem:[%s19829_s1 + $0xac8] sm:$0xff] }
 0x165   :  { %v442_v28 = vld [vmem:[%s19829_s1 + $0xae8] sm:$0xff] }
 0x166   :  { %6722 = vmatpush1.bf16.msra.mxu0 %v12398_v52  ;;  %6765 = vmatpush1.bf16.msra.mxu1 %v12526_v54  ;;  %v566_v52 = vld [vmem:[%s19829_s1 + $0xec8] sm:$0xff]  ;;  %v12479_v57 = vcombine.high %v438_v51, %v442_v28 }
 0x167   :  { %6723 = vmatprep.subr.bf16.mxu0 %v12391_v55  ;;  %6766 = vmatprep.subr.bf16.mxu1 %v12519_v56  ;;  %v570_v54 = vld [vmem:[%s19829_s1 + $0xee8] sm:$0xff]  ;;  %v12486_v55 = vcombine.low %v446_v35, %v450_v36  ;;  %v12614_v56 = vcombine.low %v574_v38, %v578_v39 }
 0x168   :  { %v12607_v60 = vcombine.high %v566_v52, %v570_v54  ;;  %v430_v61 = vld [vmem:[%s19829_s1 + $0xa88] sm:$0xff] }
 0x169   :  { %v434_v0 = vld [vmem:[%s19829_s1 + $0xaa8] sm:$0xff] }
 0x16a   :  { %6724 = vmatpush1.bf16.msra.mxu0 %v12390_v1  ;;  %6767 = vmatpush1.bf16.msra.mxu1 %v12518_v3  ;;  %v558_v1 = vld [vmem:[%s19829_s1 + $0xe88] sm:$0xff]  ;;  %v12471_v47 = vcombine.high %v430_v61, %v434_v0 }
 0x16b   :  { %6725 = vmatprep.subr.bf16.mxu0 %v12511_v5  ;;  %6768 = vmatprep.subr.bf16.mxu1 %v12639_v6  ;;  %v562_v3 = vld [vmem:[%s19829_s1 + $0xea8] sm:$0xff]  ;;  %v12478_v5 = vcombine.low %v438_v51, %v442_v28  ;;  %v12606_v6 = vcombine.low %v566_v52, %v570_v54 }
 0x16c   :  { %v12599_v7 = vcombine.high %v558_v1, %v562_v3  ;;  %v422_v9 = vld [vmem:[%s19829_s1 + $0xa48] sm:$0xff] }
 0x16d   :  { %v426_v10 = vld [vmem:[%s19829_s1 + $0xa68] sm:$0xff] }
 0x16e   :  { %6726 = vmatpush2.bf16.msra.mxu0 %v12510_v11  ;;  %6769 = vmatpush2.bf16.msra.mxu1 %v12638_v12  ;;  %v550_v11 = vld [vmem:[%s19829_s1 + $0xe48] sm:$0xff]  ;;  %v12463_v16 = vcombine.high %v422_v9, %v426_v10 }
 0x16f   :  { %6727 = vmatprep.subr.bf16.mxu0 %v12503_v13  ;;  %6770 = vmatprep.subr.bf16.mxu1 %v12631_v14  ;;  %v554_v12 = vld [vmem:[%s19829_s1 + $0xe68] sm:$0xff]  ;;  %v12470_v13 = vcombine.low %v430_v61, %v434_v0  ;;  %v12598_v14 = vcombine.low %v558_v1, %v562_v3  ;;  %v16035_v1 = vpop.f32.mrf.mxu1 }
 0x170   :  { %v12591_v17 = vcombine.high %v550_v11, %v554_v12  ;;  %v414_v18 = vld [vmem:[%s19829_s1 + $0xa08] sm:$0xff] }
 0x171   :  { %v418_v22 = vld [vmem:[%s19829_s1 + $0xa28] sm:$0xff] }
 0x172   :  { %6728 = vmatpush2.bf16.msra.mxu0 %v12502_v23  ;;  %6771 = vmatpush2.bf16.msra.mxu1 %v12630_v27  ;;  %v542_v23 = vld [vmem:[%s19829_s1 + $0xe08] sm:$0xff]  ;;  %v12455_v35 = vcombine.high %v414_v18, %v418_v22 }
 0x173   :  { %6729 = vmatprep.subr.bf16.mxu0 %v12495_v31  ;;  %6772 = vmatprep.subr.bf16.mxu1 %v12623_v32  ;;  %v546_v27 = vld [vmem:[%s19829_s1 + $0xe28] sm:$0xff]  ;;  %v12462_v31 = vcombine.low %v422_v9, %v426_v10  ;;  %v12590_v32 = vcombine.low %v550_v11, %v554_v12 }
 0x174   :  { %v12583_v36 = vcombine.high %v542_v23, %v546_v27  ;;  %v662_v38 = vld [vmem:[%s19829_s1 + $0x11c8] sm:$0xff] }
 0x175   :  { %v666_v39 = vld [vmem:[%s19829_s1 + $0x11e8] sm:$0xff] }
 0x176   :  { %6730 = vmatpush2.bf16.msra.mxu0 %v12494_v40  ;;  %6773 = vmatpush2.bf16.msra.mxu1 %v12622_v41  ;;  %v790_v40 = vld [vmem:[%s19829_s1 + $0x15c8] sm:$0xff]  ;;  %v12703_v51 = vcombine.high %v662_v38, %v666_v39 }
 0x177   :  { %6731 = vmatprep.subr.bf16.mxu0 %v12487_v44  ;;  %6774 = vmatprep.subr.bf16.mxu1 %v12615_v46  ;;  %v794_v41 = vld [vmem:[%s19829_s1 + $0x15e8] sm:$0xff]  ;;  %v12454_v44 = vcombine.low %v414_v18, %v418_v22  ;;  %v12582_v46 = vcombine.low %v542_v23, %v546_v27 }
 0x178   :  { %v12831_v28 = vcombine.high %v790_v40, %v794_v41  ;;  %v654_v52 = vld [vmem:[%s19829_s1 + $0x1188] sm:$0xff]  ;;  %v12830_v61 = vcombine.low %v790_v40, %v794_v41 }
 0x179   :  { %v658_v54 = vld [vmem:[%s19829_s1 + $0x11a8] sm:$0xff] }
 0x17a   :  { %6732 = vmatpush2.bf16.msra.mxu0 %v12486_v55  ;;  %6775 = vmatpush2.bf16.msra.mxu1 %v12614_v56  ;;  %v782_v55 = vld [vmem:[%s19829_s1 + $0x1588] sm:$0xff]  ;;  %v12695_v0 = vcombine.high %v654_v52, %v658_v54  ;;  %v12694_v12 = vcombine.low %v654_v52, %v658_v54 }
 0x17b   :  { %6733 = vmatprep.subr.bf16.mxu0 %v12479_v57  ;;  %6776 = vmatprep.subr.bf16.mxu1 %v12607_v60  ;;  %v786_v56 = vld [vmem:[%s19829_s1 + $0x15a8] sm:$0xff]  ;;  %v12702_v57 = vcombine.low %v662_v38, %v666_v39  ;;  %v16033_v60 = vpop.f32.mrf.mxu0 }
 0x17c   :  { %v12823_v3 = vcombine.high %v782_v55, %v786_v56  ;;  %v778_v9 = vld [vmem:[%s19829_s1 + $0x1568] sm:$0xff] }
 0x17d   :  { %v642_v23 = vld [vmem:[%s19829_s1 + $0x1128] sm:$0xff] }
 0x17e   :  { %6734 = vmatpush2.bf16.msra.mxu0 %v12478_v5  ;;  %6777 = vmatpush2.bf16.msra.mxu1 %v12606_v6  ;;  %v646_v5 = vld [vmem:[%s19829_s1 + $0x1148] sm:$0xff] }
 0x17f   :  { %6735 = vmatprep.subr.bf16.mxu0 %v12471_v47  ;;  %6778 = vmatprep.subr.bf16.mxu1 %v12599_v7  ;;  %v650_v6 = vld [vmem:[%s19829_s1 + $0x1168] sm:$0xff] }
 0x180   :  { %v774_v7 = vld [vmem:[%s19829_s1 + $0x1548] sm:$0xff] }
 0x181   :  { %v12815_v22 = vcombine.high %v774_v7, %v778_v9  ;;  %v12814_v39 = vcombine.low %v774_v7, %v778_v9  ;;  %v614_v9 = vld [vmem:[%s19829_s1 + $0x1048] sm:$0xff] }
 0x182   :  { %6736 = vmatpush2.bf16.msra.mxu0 %v12470_v13  ;;  %6779 = vmatpush2.bf16.msra.mxu1 %v12598_v14  ;;  %v12822_v14 = vcombine.low %v782_v55, %v786_v56 }
 0x183   :  { %6737 = vmatprep.subr.bf16.mxu0 %v12463_v16  ;;  %6780 = vmatprep.subr.bf16.mxu1 %v12591_v17  ;;  %v12687_v16 = vcombine.high %v646_v5, %v650_v6 }
 0x186   :  { %6738 = vmatpush2.bf16.msra.mxu0 %v12462_v31  ;;  %6781 = vmatpush2.bf16.msra.mxu1 %v12590_v32  ;;  %v766_v31 = vld [vmem:[%s19829_s1 + $0x1508] sm:$0xff] }
 0x187   :  { %6739 = vmatprep.subr.bf16.mxu0 %v12455_v35  ;;  %6782 = vmatprep.subr.bf16.mxu1 %v12583_v36  ;;  %v770_v32 = vld [vmem:[%s19829_s1 + $0x1528] sm:$0xff]  ;;  %v12686_v36 = vcombine.low %v646_v5, %v650_v6 }
 0x188   :  { %v12806_v54 = vcombine.low %v766_v31, %v770_v32 }
 0x18a   :  { %6740 = vmatpush2.bf16.msra.mxu0 %v12454_v44  ;;  %6783 = vmatpush2.bf16.msra.mxu1 %v12582_v46  ;;  %v12807_v44 = vcombine.high %v766_v31, %v770_v32  ;;  %v630_v46 = vld [vmem:[%s19829_s1 + $0x10c8] sm:$0xff] }
 0x18b   :  { %6795 = vmatprep.subr.bf16.mxu0 %v12703_v51  ;;  %6838 = vmatprep.subr.bf16.mxu1 %v12831_v28  ;;  %v6528_v11 = vpop.f32.mrf.mxu1  ;;  %v634_v51 = vld [vmem:[%s19829_s1 + $0x10e8] sm:$0xff] }
 0x18c   :  { %v762_v28 = vld [vmem:[%s19829_s1 + $0x14e8] sm:$0xff]  ;;  %v12671_v55 = vcombine.high %v630_v46, %v634_v51  ;;  %v12670_v5 = vcombine.low %v630_v46, %v634_v51 }
 0x18d   :  { %v6485_v47 = vpop.f32.mrf.mxu0  ;;  %6742 = vmatmul.mubr.bf16.vlgmr.msra.gmra.mxu0 %v15147_v45  ;;  %6785 = vmatmul.mubr.bf16.vlgmr.msra.gmra.mxu1 %v15158_v49  ;;  %v16056_v18 = vpop.f32.mrf.mxu1  ;;  %v734_v31 = vld [vmem:[%s19829_s1 + $0x1408] sm:$0xff] }
 0x18e   :  { %v6486_v10 = vadd.f32 %v6485_v47, %v15844_v48  ;;  %6796 = vmatpush1.bf16.msra.mxu0 %v12702_v57  ;;  %6839 = vmatpush1.bf16.msra.mxu1 %v12830_v61  ;;  %v638_v48 = vld [vmem:[%s19829_s1 + $0x1108] sm:$0xff] }
 0x18f   :  { %v16052_v13 = vpop.f32.mrf.mxu0  ;;  %6797 = vmatprep.subr.bf16.mxu0 %v12695_v0  ;;  %6840 = vmatprep.subr.bf16.mxu1 %v12823_v3  ;;  %v6532_v38 = vpop.f32.mrf.mxu1  ;;  %v12679_v40 = vcombine.high %v638_v48, %v642_v23  ;;  %v12678_v52 = vcombine.low %v638_v48, %v642_v23  ;;  %v622_v57 = vld [vmem:[%s19829_s1 + $0x1088] sm:$0xff] }
 0x190   :  { %v16054_v17 = vadd.f32 %v6528_v11, %v6486_v10  ;;  %6827 = vmatprep.mubr.bf16.mxu0 %v15172_v59  ;;  %6870 = vmatprep.mubr.bf16.mxu1 %v15181_v62  ;;  %v626_v61 = vld [vmem:[%s19829_s1 + $0x10a8] sm:$0xff] }
 0x191   :  { %v6489_v27 = vpop.f32.mrf.mxu0  ;;  %v750_v0 = vld [vmem:[%s19829_s1 + $0x1488] sm:$0xff]  ;;  %v12663_v47 = vcombine.high %v622_v57, %v626_v61 }
 0x192   :  { %v6490_v35 = vadd.f32 %v6489_v27, %v15863_v2  ;;  %6798 = vmatpush1.bf16.msra.mxu0 %v12694_v12  ;;  %6841 = vmatpush1.bf16.msra.mxu1 %v12822_v14  ;;  %v758_v2 = vld [vmem:[%s19829_s1 + $0x14c8] sm:$0xff]  ;;  %v12662_v14 = vcombine.low %v622_v57, %v626_v61 }
 0x193   :  { %6799 = vmatprep.subr.bf16.mxu0 %v12687_v16  ;;  %6842 = vmatprep.subr.bf16.mxu1 %v12815_v22  ;;  %v12799_v56 = vcombine.high %v758_v2, %v762_v28  ;;  %v754_v3 = vld [vmem:[%s19829_s1 + $0x14a8] sm:$0xff]  ;;  %v12798_v6 = vcombine.low %v758_v2, %v762_v28 }
 0x194   :  { %v16073_v41 = vadd.f32 %v6532_v38, %v6490_v35  ;;  %v12791_v7 = vcombine.high %v750_v0, %v754_v3  ;;  %v618_v10 = vld [vmem:[%s19829_s1 + $0x1068] sm:$0xff]  ;;  %v12790_v16 = vcombine.low %v750_v0, %v754_v3 }
 0x195   :  { %v742_v11 = vld [vmem:[%s19829_s1 + $0x1448] sm:$0xff]  ;;  %v12655_v22 = vcombine.high %v614_v9, %v618_v10  ;;  %v12654_v35 = vcombine.low %v614_v9, %v618_v10 }
 0x196   :  { %6800 = vmatpush1.bf16.msra.mxu0 %v12686_v36  ;;  %6843 = vmatpush1.bf16.msra.mxu1 %v12814_v39  ;;  %v746_v12 = vld [vmem:[%s19829_s1 + $0x1468] sm:$0xff] }
 0x197   :  { %6801 = vmatprep.subr.bf16.mxu0 %v12679_v40  ;;  %6844 = vmatprep.subr.bf16.mxu1 %v12807_v44  ;;  %v12783_v48 = vcombine.high %v742_v11, %v746_v12  ;;  %v606_v23 = vld [vmem:[%s19829_s1 + $0x1008] sm:$0xff]  ;;  %v12782_v36 = vcombine.low %v742_v11, %v746_v12 }
 0x198   :  { %v610_v27 = vld [vmem:[%s19829_s1 + $0x1028] sm:$0xff] }
 0x199   :  { %v738_v32 = vld [vmem:[%s19829_s1 + $0x1428] sm:$0xff]  ;;  %v12647_v38 = vcombine.high %v606_v23, %v610_v27  ;;  %v12646_v2 = vcombine.low %v606_v23, %v610_v27 }
 0x19a   :  { %6802 = vmatpush1.bf16.msra.mxu0 %v12678_v52  ;;  %6845 = vmatpush1.bf16.msra.mxu1 %v12806_v54  ;;  %v12775_v39 = vcombine.high %v734_v31, %v738_v32  ;;  %v726_v40 = vld [vmem:[%s19829_s1 + $0x13c8] sm:$0xff]  ;;  %v12774_v28 = vcombine.low %v734_v31, %v738_v32 }
 0x19b   :  { %6803 = vmatprep.subr.bf16.mxu0 %v12671_v55  ;;  %6846 = vmatprep.subr.bf16.mxu1 %v12799_v56  ;;  %v730_v44 = vld [vmem:[%s19829_s1 + $0x13e8] sm:$0xff] }
 0x19c   :  { %v854_v46 = vld [vmem:[%s19829_s1 + $0x17c8] sm:$0xff]  ;;  %v12767_v52 = vcombine.high %v726_v40, %v730_v44  ;;  %v12766_v0 = vcombine.low %v726_v40, %v730_v44 }
 0x19d   :  { %v858_v51 = vld [vmem:[%s19829_s1 + $0x17e8] sm:$0xff] }
 0x19e   :  { %6804 = vmatpush1.bf16.msra.mxu0 %v12670_v5  ;;  %6847 = vmatpush1.bf16.msra.mxu1 %v12798_v6  ;;  %v12895_v54 = vcombine.high %v854_v46, %v858_v51  ;;  %v718_v55 = vld [vmem:[%s19829_s1 + $0x1388] sm:$0xff]  ;;  %v12894_v3 = vcombine.low %v854_v46, %v858_v51 }
 0x19f   :  { %6805 = vmatprep.subr.bf16.mxu0 %v12663_v47  ;;  %6848 = vmatprep.subr.bf16.mxu1 %v12791_v7  ;;  %v722_v56 = vld [vmem:[%s19829_s1 + $0x13a8] sm:$0xff] }
 0x1a0   :  { %v846_v57 = vld [vmem:[%s19829_s1 + $0x1788] sm:$0xff]  ;;  %v12759_v5 = vcombine.high %v718_v55, %v722_v56  ;;  %v12758_v11 = vcombine.low %v718_v55, %v722_v56 }
 0x1a1   :  { %v850_v61 = vld [vmem:[%s19829_s1 + $0x17a8] sm:$0xff] }
 0x1a2   :  { %6806 = vmatpush1.bf16.msra.mxu0 %v12662_v14  ;;  %6849 = vmatpush1.bf16.msra.mxu1 %v12790_v16  ;;  %v12887_v6 = vcombine.high %v846_v57, %v850_v61  ;;  %v710_v47 = vld [vmem:[%s19829_s1 + $0x1348] sm:$0xff]  ;;  %v12886_v12 = vcombine.low %v846_v57, %v850_v61 }
 0x1a3   :  { %6807 = vmatprep.subr.bf16.mxu0 %v12655_v22  ;;  %6850 = vmatprep.subr.bf16.mxu1 %v12783_v48  ;;  %v714_v7 = vld [vmem:[%s19829_s1 + $0x1368] sm:$0xff] }
 0x1a4   :  { %v838_v9 = vld [vmem:[%s19829_s1 + $0x1748] sm:$0xff]  ;;  %v12751_v14 = vcombine.high %v710_v47, %v714_v7  ;;  %v12750_v31 = vcombine.low %v710_v47, %v714_v7 }
 0x1a5   :  { %v842_v10 = vld [vmem:[%s19829_s1 + $0x1768] sm:$0xff] }
 0x1a6   :  { %6808 = vmatpush1.bf16.msra.mxu0 %v12654_v35  ;;  %6851 = vmatpush1.bf16.msra.mxu1 %v12782_v36  ;;  %v12879_v16 = vcombine.high %v838_v9, %v842_v10  ;;  %v702_v22 = vld [vmem:[%s19829_s1 + $0x1308] sm:$0xff]  ;;  %v12878_v32 = vcombine.low %v838_v9, %v842_v10 }
 0x1a7   :  { %6809 = vmatprep.subr.bf16.mxu0 %v12647_v38  ;;  %6852 = vmatprep.subr.bf16.mxu1 %v12775_v39  ;;  %v706_v48 = vld [vmem:[%s19829_s1 + $0x1328] sm:$0xff] }
 0x1a8   :  { %v830_v23 = vld [vmem:[%s19829_s1 + $0x1708] sm:$0xff]  ;;  %v12743_v35 = vcombine.high %v702_v22, %v706_v48  ;;  %v12742_v46 = vcombine.low %v702_v22, %v706_v48 }
 0x1a9   :  { %v834_v27 = vld [vmem:[%s19829_s1 + $0x1728] sm:$0xff] }
 0x1aa   :  { %6810 = vmatpush1.bf16.msra.mxu0 %v12646_v2  ;;  %6853 = vmatpush1.bf16.msra.mxu1 %v12774_v28  ;;  %v12871_v36 = vcombine.high %v830_v23, %v834_v27  ;;  %v694_v38 = vld [vmem:[%s19829_s1 + $0x12c8] sm:$0xff]  ;;  %v12870_v51 = vcombine.low %v830_v23, %v834_v27 }
 0x1ab   :  { %6811 = vmatprep.subr.bf16.mxu0 %v12767_v52  ;;  %6854 = vmatprep.subr.bf16.mxu1 %v12895_v54  ;;  %v698_v39 = vld [vmem:[%s19829_s1 + $0x12e8] sm:$0xff] }
 0x1ac   :  { %v822_v40 = vld [vmem:[%s19829_s1 + $0x16c8] sm:$0xff]  ;;  %v12735_v2 = vcombine.high %v694_v38, %v698_v39  ;;  %v12734_v57 = vcombine.low %v694_v38, %v698_v39 }
 0x1ad   :  { %v826_v44 = vld [vmem:[%s19829_s1 + $0x16e8] sm:$0xff] }
 0x1ae   :  { %6812 = vmatpush2.bf16.msra.mxu0 %v12766_v0  ;;  %6855 = vmatpush2.bf16.msra.mxu1 %v12894_v3  ;;  %v12863_v28 = vcombine.high %v822_v40, %v826_v44  ;;  %v686_v52 = vld [vmem:[%s19829_s1 + $0x1288] sm:$0xff]  ;;  %v12862_v61 = vcombine.low %v822_v40, %v826_v44 }
 0x1af   :  { %6813 = vmatprep.subr.bf16.mxu0 %v12759_v5  ;;  %6856 = vmatprep.subr.bf16.mxu1 %v12887_v6  ;;  %v690_v54 = vld [vmem:[%s19829_s1 + $0x12a8] sm:$0xff] }
 0x1b0   :  { %v814_v55 = vld [vmem:[%s19829_s1 + $0x1688] sm:$0xff]  ;;  %v12727_v0 = vcombine.high %v686_v52, %v690_v54  ;;  %v12726_v9 = vcombine.low %v686_v52, %v690_v54 }
 0x1b1   :  { %v818_v56 = vld [vmem:[%s19829_s1 + $0x16a8] sm:$0xff] }
 0x1b2   :  { %6814 = vmatpush2.bf16.msra.mxu0 %v12758_v11  ;;  %6857 = vmatpush2.bf16.msra.mxu1 %v12886_v12  ;;  %v12855_v3 = vcombine.high %v814_v55, %v818_v56  ;;  %v678_v5 = vld [vmem:[%s19829_s1 + $0x1248] sm:$0xff]  ;;  %v12854_v10 = vcombine.low %v814_v55, %v818_v56  ;;  %v16243_v56 = vpop.f32.mrf.mxu0 }
 0x1b3   :  { %6815 = vmatprep.subr.bf16.mxu0 %v12751_v14  ;;  %6858 = vmatprep.subr.bf16.mxu1 %v12879_v16  ;;  %v682_v6 = vld [vmem:[%s19829_s1 + $0x1268] sm:$0xff] }
 0x1b4   :  { %v806_v47 = vld [vmem:[%s19829_s1 + $0x1648] sm:$0xff]  ;;  %v12719_v11 = vcombine.high %v678_v5, %v682_v6  ;;  %v12718_v23 = vcombine.low %v678_v5, %v682_v6 }
 0x1b5   :  { %v810_v7 = vld [vmem:[%s19829_s1 + $0x1668] sm:$0xff] }
 0x1b6   :  { %6816 = vmatpush2.bf16.msra.mxu0 %v12750_v31  ;;  %6859 = vmatpush2.bf16.msra.mxu1 %v12878_v32  ;;  %v12847_v12 = vcombine.high %v806_v47, %v810_v7  ;;  %v670_v14 = vld [vmem:[%s19829_s1 + $0x1208] sm:$0xff]  ;;  %v12846_v27 = vcombine.low %v806_v47, %v810_v7 }
 0x1b7   :  { %6817 = vmatprep.subr.bf16.mxu0 %v12743_v35  ;;  %6860 = vmatprep.subr.bf16.mxu1 %v12871_v36  ;;  %v674_v16 = vld [vmem:[%s19829_s1 + $0x1228] sm:$0xff] }
 0x1b8   :  { %v798_v22 = vld [vmem:[%s19829_s1 + $0x1608] sm:$0xff]  ;;  %v12711_v31 = vcombine.high %v670_v14, %v674_v16  ;;  %v12710_v40 = vcombine.low %v670_v14, %v674_v16 }
 0x1b9   :  { %v802_v48 = vld [vmem:[%s19829_s1 + $0x1628] sm:$0xff] }
 0x1ba   :  { %6818 = vmatpush2.bf16.msra.mxu0 %v12742_v46  ;;  %6861 = vmatpush2.bf16.msra.mxu1 %v12870_v51  ;;  %v12839_v32 = vcombine.high %v798_v22, %v802_v48  ;;  %v918_v35 = vld [vmem:[%s19829_s1 + $0x19c8] sm:$0xff]  ;;  %v12838_v44 = vcombine.low %v798_v22, %v802_v48 }
 0x1bb   :  { %6819 = vmatprep.subr.bf16.mxu0 %v12735_v2  ;;  %6862 = vmatprep.subr.bf16.mxu1 %v12863_v28  ;;  %v922_v36 = vld [vmem:[%s19829_s1 + $0x19e8] sm:$0xff] }
 0x1bc   :  { %v1046_v38 = vld [vmem:[%s19829_s1 + $0x1dc8] sm:$0xff]  ;;  %v12959_v46 = vcombine.high %v918_v35, %v922_v36  ;;  %v12958_v55 = vcombine.low %v918_v35, %v922_v36 }
 0x1bd   :  { %v1050_v39 = vld [vmem:[%s19829_s1 + $0x1de8] sm:$0xff] }
 0x1be   :  { %6820 = vmatpush2.bf16.msra.mxu0 %v12734_v57  ;;  %6863 = vmatpush2.bf16.msra.mxu1 %v12862_v61  ;;  %v13087_v51 = vcombine.high %v1046_v38, %v1050_v39  ;;  %v910_v2 = vld [vmem:[%s19829_s1 + $0x1988] sm:$0xff]  ;;  %v13086_v57 = vcombine.low %v1046_v38, %v1050_v39 }
 0x1bf   :  { %6821 = vmatprep.subr.bf16.mxu0 %v12727_v0  ;;  %6864 = vmatprep.subr.bf16.mxu1 %v12855_v3  ;;  %v914_v28 = vld [vmem:[%s19829_s1 + $0x19a8] sm:$0xff]  ;;  %v16245_v0 = vpop.f32.mrf.mxu1 }
 0x1c0   :  { %v1038_v52 = vld [vmem:[%s19829_s1 + $0x1d88] sm:$0xff]  ;;  %v12951_v61 = vcombine.high %v910_v2, %v914_v28 }
 0x1c1   :  { %v1042_v54 = vld [vmem:[%s19829_s1 + $0x1da8] sm:$0xff] }
 0x1c2   :  { %6822 = vmatpush2.bf16.msra.mxu0 %v12726_v9  ;;  %6865 = vmatpush2.bf16.msra.mxu1 %v12854_v10  ;;  %v13079_v3 = vcombine.high %v1038_v52, %v1042_v54  ;;  %v902_v5 = vld [vmem:[%s19829_s1 + $0x1948] sm:$0xff]  ;;  %v13078_v16 = vcombine.low %v1038_v52, %v1042_v54 }
 0x1c3   :  { %6823 = vmatprep.subr.bf16.mxu0 %v12719_v11  ;;  %6866 = vmatprep.subr.bf16.mxu1 %v12847_v12  ;;  %v906_v6 = vld [vmem:[%s19829_s1 + $0x1968] sm:$0xff]  ;;  %v12950_v12 = vcombine.low %v910_v2, %v914_v28 }
 0x1c4   :  { %v1030_v7 = vld [vmem:[%s19829_s1 + $0x1d48] sm:$0xff]  ;;  %v12943_v22 = vcombine.high %v902_v5, %v906_v6  ;;  %v12942_v39 = vcombine.low %v902_v5, %v906_v6 }
 0x1c5   :  { %v1034_v9 = vld [vmem:[%s19829_s1 + $0x1d68] sm:$0xff] }
 0x1c6   :  { %6824 = vmatpush2.bf16.msra.mxu0 %v12718_v23  ;;  %6867 = vmatpush2.bf16.msra.mxu1 %v12846_v27  ;;  %v13071_v27 = vcombine.high %v1030_v7, %v1034_v9  ;;  %v1022_v35 = vld [vmem:[%s19829_s1 + $0x1d08] sm:$0xff] }
 0x1c7   :  { %6825 = vmatprep.subr.bf16.mxu0 %v12711_v31  ;;  %6868 = vmatprep.subr.bf16.mxu1 %v12839_v32  ;;  %v898_v31 = vld [vmem:[%s19829_s1 + $0x1928] sm:$0xff] }
 0x1c8   :  { %v1026_v36 = vld [vmem:[%s19829_s1 + $0x1d28] sm:$0xff] }
 0x1c9   :  { %v13063_v28 = vcombine.high %v1022_v35, %v1026_v36  ;;  %v886_v52 = vld [vmem:[%s19829_s1 + $0x18c8] sm:$0xff] }
 0x1ca   :  { %6826 = vmatpush2.bf16.msra.mxu0 %v12710_v40  ;;  %6869 = vmatpush2.bf16.msra.mxu1 %v12838_v44  ;;  %v13070_v44 = vcombine.low %v1030_v7, %v1034_v9  ;;  %v890_v54 = vld [vmem:[%s19829_s1 + $0x18e8] sm:$0xff] }
 0x1cb   :  { %6881 = vmatprep.subr.bf16.mxu0 %v12959_v46  ;;  %6924 = vmatprep.subr.bf16.mxu1 %v13087_v51  ;;  %v12927_v5 = vcombine.high %v886_v52, %v890_v54  ;;  %v878_v9 = vld [vmem:[%s19829_s1 + $0x1888] sm:$0xff] }
 0x1cd   :  { %v6571_v47 = vpop.f32.mrf.mxu0  ;;  %6828 = vmatmul.mubr.bf16.vlgmr.msra.gmra.mxu0 %v15375_v15  ;;  %v6614_v11 = vpop.f32.mrf.mxu1  ;;  %6871 = vmatmul.mubr.bf16.vlgmr.msra.gmra.mxu1 %v15386_v19 }
 0x1ce   :  { %v6572_v10 = vadd.f32 %v6571_v47, %v16054_v17  ;;  %6882 = vmatpush1.bf16.msra.mxu0 %v12958_v55  ;;  %6925 = vmatpush1.bf16.msra.mxu1 %v13086_v57  ;;  %v894_v17 = vld [vmem:[%s19829_s1 + $0x1908] sm:$0xff] }
 0x1cf   :  { %v16262_v14 = vpop.f32.mrf.mxu0  ;;  %6883 = vmatprep.subr.bf16.mxu0 %v12951_v61  ;;  %v16264_v23 = vpop.f32.mrf.mxu1  ;;  %6926 = vmatprep.subr.bf16.mxu1 %v13079_v3  ;;  %v12935_v46 = vcombine.high %v894_v17, %v898_v31  ;;  %v1018_v55 = vld [vmem:[%s19829_s1 + $0x1ce8] sm:$0xff]  ;;  %v12934_v61 = vcombine.low %v894_v17, %v898_v31  ;;  %v13062_v3 = vcombine.low %v1022_v35, %v1026_v36 }
 0x1d0   :  { %19852 = vst [vmem:[#allocation3_spill] sm:$0xff] %v16262_v14  ;;  %v6615_v48 = vadd.f32 %v6614_v11, %v6572_v10  ;;  %19853 = vst [vmem:[#allocation4_spill] sm:$0xff] %v16264_v23  ;;  %6913 = vmatprep.mubr.bf16.mxu0 %v15400_v30  ;;  %6956 = vmatprep.mubr.bf16.mxu1 %v15409_v33  ;;  %v882_v10 = vld [vmem:[%s19829_s1 + $0x18a8] sm:$0xff]  ;;  %v631_v23 = vld [vmem:[%s19829_s1 + $0x10d0] sm:$0xff] }
 0x1d1   :  { %v6575_v32 = vpop.f32.mrf.mxu0  ;;  %v6618_v40 = vpop.f32.mrf.mxu1  ;;  %v870_v31 = vld [vmem:[%s19829_s1 + $0x1848] sm:$0xff] }
 0x1d2   :  { %v6576_v38 = vadd.f32 %v6575_v32, %v16073_v41  ;;  %6884 = vmatpush1.bf16.msra.mxu0 %v12950_v12  ;;  %6927 = vmatpush1.bf16.msra.mxu1 %v13078_v16  ;;  %v7671_v51 = vmul.f32 0.2, %v6615_v48  ;;  %vm7655_vm0 = vcmp.gt.f32.partialorder %v6615_v48, 0.0  ;;  %v1014_v41 = vld [vmem:[%s19829_s1 + $0x1cc8] sm:$0xff] }
 0x1d3   :  { %6885 = vmatprep.subr.bf16.mxu0 %v12943_v22  ;;  %6928 = vmatprep.subr.bf16.mxu1 %v13071_v27  ;;  %v13055_v7 = vcombine.high %v1014_v41, %v1018_v55  ;;  %v1006_v12 = vld [vmem:[%s19829_s1 + $0x1c88] sm:$0xff]  ;;  %v12926_v22 = vcombine.low %v886_v52, %v890_v54  ;;  %v12919_v27 = vcombine.high %v878_v9, %v882_v10 }
 0x1d4   :  { %v6619_v2 = vadd.f32 %v6618_v40, %v6576_v38  ;;  %v7687_v6 = vsel %vm7655_vm0, %v6615_v48, %v7671_v51  ;;  %v1010_v16 = vld [vmem:[%s19829_s1 + $0x1ca8] sm:$0xff]  ;;  %v13054_v48 = vcombine.low %v1014_v41, %v1018_v55  ;;  %v12918_v38 = vcombine.low %v878_v9, %v882_v10 }
 0x1d5   :  { %v13047_v17 = vcombine.high %v1006_v12, %v1010_v16  ;;  %v874_v32 = vld [vmem:[%s19829_s1 + $0x1868] sm:$0xff] }
 0x1d6   :  { %vm7663_vm1 = vcmp.gt.f32.partialorder %v6619_v2, 0.0  ;;  %v7679_v57 = vmul.f32 0.2, %v6619_v2  ;;  %6886 = vmatpush1.bf16.msra.mxu0 %v12942_v39  ;;  %6929 = vmatpush1.bf16.msra.mxu1 %v13070_v44  ;;  %v998_v35 = vld [vmem:[%s19829_s1 + $0x1c48] sm:$0xff]  ;;  %v13046_v39 = vcombine.low %v1006_v12, %v1010_v16  ;;  %v12911_v40 = vcombine.high %v870_v31, %v874_v32 }
 0x1d7   :  { %6887 = vmatprep.subr.bf16.mxu0 %v12935_v46  ;;  %6930 = vmatprep.subr.bf16.mxu1 %v13063_v28  ;;  %v1002_v36 = vld [vmem:[%s19829_s1 + $0x1c68] sm:$0xff]  ;;  %v12910_v52 = vcombine.low %v870_v31, %v874_v32 }
 0x1d8   :  { %v7695_v47 = vsel %vm7663_vm1, %v6619_v2, %v7679_v57  ;;  %v13039_v44 = vcombine.high %v998_v35, %v1002_v36  ;;  %v862_v46 = vld [vmem:[%s19829_s1 + $0x1808] sm:$0xff]  ;;  %v13038_v54 = vcombine.low %v998_v35, %v1002_v36 }
 0x1d9   :  { %v16299_v11 = vpack.c.bf16 %v7695_v47, %v7687_v6  ;;  %v866_v51 = vld [vmem:[%s19829_s1 + $0x1828] sm:$0xff] }
 0x1da   :  { %6888 = vmatpush1.bf16.msra.mxu0 %v12934_v61  ;;  %6931 = vmatpush1.bf16.msra.mxu1 %v13062_v3  ;;  %v990_v2 = vld [vmem:[%s19829_s1 + $0x1c08] sm:$0xff]  ;;  %v12903_v41 = vcombine.high %v862_v46, %v866_v51  ;;  %v12902_v6 = vcombine.low %v862_v46, %v866_v51 }
 0x1db   :  { %19854 = vst [vmem:[#allocation5_spill] sm:$0xff] %v16299_v11  ;;  %6889 = vmatprep.subr.bf16.mxu0 %v12927_v5  ;;  %6932 = vmatprep.subr.bf16.mxu1 %v13055_v7  ;;  %v994_v28 = vld [vmem:[%s19829_s1 + $0x1c28] sm:$0xff] }
 0x1dc   :  { %v13031_v55 = vcombine.high %v990_v2, %v994_v28  ;;  %v982_v57 = vld [vmem:[%s19829_s1 + $0x1bc8] sm:$0xff]  ;;  %v13030_v47 = vcombine.low %v990_v2, %v994_v28 }
 0x1dd   :  { %v986_v61 = vld [vmem:[%s19829_s1 + $0x1be8] sm:$0xff] }
 0x1de   :  { %6890 = vmatpush1.bf16.msra.mxu0 %v12926_v22  ;;  %6933 = vmatpush1.bf16.msra.mxu1 %v13054_v48  ;;  %v1110_v3 = vld [vmem:[%s19829_s1 + $0x1fc8] sm:$0xff]  ;;  %v13023_v7 = vcombine.high %v982_v57, %v986_v61  ;;  %v13022_v48 = vcombine.low %v982_v57, %v986_v61 }
 0x1df   :  { %6891 = vmatprep.subr.bf16.mxu0 %v12919_v27  ;;  %6934 = vmatprep.subr.bf16.mxu1 %v13047_v17  ;;  %v1114_v5 = vld [vmem:[%s19829_s1 + $0x1fe8] sm:$0xff] }
 0x1e0   :  { %v13151_v9 = vcombine.high %v1110_v3, %v1114_v5  ;;  %v974_v10 = vld [vmem:[%s19829_s1 + $0x1b88] sm:$0xff]  ;;  %v13150_v27 = vcombine.low %v1110_v3, %v1114_v5 }
 0x1e1   :  { %v978_v12 = vld [vmem:[%s19829_s1 + $0x1ba8] sm:$0xff] }
 0x1e2   :  { %6892 = vmatpush1.bf16.msra.mxu0 %v12918_v38  ;;  %6935 = vmatpush1.bf16.msra.mxu1 %v13046_v39  ;;  %v1102_v16 = vld [vmem:[%s19829_s1 + $0x1f88] sm:$0xff]  ;;  %v13015_v17 = vcombine.high %v974_v10, %v978_v12  ;;  %v13014_v39 = vcombine.low %v974_v10, %v978_v12 }
 0x1e3   :  { %6893 = vmatprep.subr.bf16.mxu0 %v12911_v40  ;;  %6936 = vmatprep.subr.bf16.mxu1 %v13039_v44  ;;  %v1106_v22 = vld [vmem:[%s19829_s1 + $0x1fa8] sm:$0xff] }
 0x1e4   :  { %v13143_v31 = vcombine.high %v1102_v16, %v1106_v22  ;;  %v966_v32 = vld [vmem:[%s19829_s1 + $0x1b48] sm:$0xff]  ;;  %v13142_v40 = vcombine.low %v1102_v16, %v1106_v22 }
 0x1e5   :  { %v970_v35 = vld [vmem:[%s19829_s1 + $0x1b68] sm:$0xff] }
 0x1e6   :  { %6894 = vmatpush1.bf16.msra.mxu0 %v12910_v52  ;;  %6937 = vmatpush1.bf16.msra.mxu1 %v13038_v54  ;;  %v1094_v36 = vld [vmem:[%s19829_s1 + $0x1f48] sm:$0xff]  ;;  %v13007_v44 = vcombine.high %v966_v32, %v970_v35  ;;  %v13006_v54 = vcombine.low %v966_v32, %v970_v35 }
 0x1e7   :  { %6895 = vmatprep.subr.bf16.mxu0 %v12903_v41  ;;  %6938 = vmatprep.subr.bf16.mxu1 %v13031_v55  ;;  %v1098_v38 = vld [vmem:[%s19829_s1 + $0x1f68] sm:$0xff] }
 0x1e8   :  { %v13135_v46 = vcombine.high %v1094_v36, %v1098_v38  ;;  %v958_v51 = vld [vmem:[%s19829_s1 + $0x1b08] sm:$0xff]  ;;  %v13134_v41 = vcombine.low %v1094_v36, %v1098_v38 }
 0x1e9   :  { %v962_v2 = vld [vmem:[%s19829_s1 + $0x1b28] sm:$0xff] }
 0x1ea   :  { %6896 = vmatpush1.bf16.msra.mxu0 %v12902_v6  ;;  %6939 = vmatpush1.bf16.msra.mxu1 %v13030_v47  ;;  %v1086_v28 = vld [vmem:[%s19829_s1 + $0x1f08] sm:$0xff]  ;;  %v12999_v55 = vcombine.high %v958_v51, %v962_v2  ;;  %v12998_v47 = vcombine.low %v958_v51, %v962_v2 }
 0x1eb   :  { %6897 = vmatprep.subr.bf16.mxu0 %v13023_v7  ;;  %6940 = vmatprep.subr.bf16.mxu1 %v13151_v9  ;;  %v1090_v52 = vld [vmem:[%s19829_s1 + $0x1f28] sm:$0xff] }
 0x1ec   :  { %v13127_v57 = vcombine.high %v1086_v28, %v1090_v52  ;;  %v950_v61 = vld [vmem:[%s19829_s1 + $0x1ac8] sm:$0xff]  ;;  %v13126_v7 = vcombine.low %v1086_v28, %v1090_v52 }
 0x1ed   :  { %v954_v3 = vld [vmem:[%s19829_s1 + $0x1ae8] sm:$0xff] }
 0x1ee   :  { %6898 = vmatpush2.bf16.msra.mxu0 %v13022_v48  ;;  %6941 = vmatpush2.bf16.msra.mxu1 %v13150_v27  ;;  %v1078_v5 = vld [vmem:[%s19829_s1 + $0x1ec8] sm:$0xff]  ;;  %v12991_v9 = vcombine.high %v950_v61, %v954_v3  ;;  %v12990_v27 = vcombine.low %v950_v61, %v954_v3  ;;  %v151_v3 = vld [vmem:[%s19829_s1 + $0x1d0] sm:$0xff] }
 0x1ef   :  { %6899 = vmatprep.subr.bf16.mxu0 %v13015_v17  ;;  %6942 = vmatprep.subr.bf16.mxu1 %v13143_v31  ;;  %v1082_v6 = vld [vmem:[%s19829_s1 + $0x1ee8] sm:$0xff] }
 0x1f0   :  { %v13119_v10 = vcombine.high %v1078_v5, %v1082_v6  ;;  %v942_v12 = vld [vmem:[%s19829_s1 + $0x1a88] sm:$0xff]  ;;  %v13118_v17 = vcombine.low %v1078_v5, %v1082_v6  ;;  %v155_v5 = vld [vmem:[%s19829_s1 + $0x1f0] sm:$0xff] }
 0x1f1   :  { %v946_v16 = vld [vmem:[%s19829_s1 + $0x1aa8] sm:$0xff]  ;;  %v279_v6 = vld [vmem:[%s19829_s1 + $0x5d0] sm:$0xff] }
 0x1f2   :  { %6900 = vmatpush2.bf16.msra.mxu0 %v13014_v39  ;;  %6943 = vmatpush2.bf16.msra.mxu1 %v13142_v40  ;;  %v1070_v22 = vld [vmem:[%s19829_s1 + $0x1e88] sm:$0xff]  ;;  %v12983_v31 = vcombine.high %v942_v12, %v946_v16  ;;  %v12982_v40 = vcombine.low %v942_v12, %v946_v16  ;;  %v12193_v12 = vcombine.high %v151_v3, %v155_v5 }
 0x1f3   :  { %6901 = vmatprep.subr.bf16.mxu0 %v13007_v44  ;;  %6944 = vmatprep.subr.bf16.mxu1 %v13135_v46  ;;  %v1074_v48 = vld [vmem:[%s19829_s1 + $0x1ea8] sm:$0xff] }
 0x1f4   :  { %v13111_v32 = vcombine.high %v1070_v22, %v1074_v48  ;;  %v934_v35 = vld [vmem:[%s19829_s1 + $0x1a48] sm:$0xff]  ;;  %v13110_v44 = vcombine.low %v1070_v22, %v1074_v48  ;;  %v143_v22 = vld [vmem:[%s19829_s1 + $0x190] sm:$0xff] }
 0x1f5   :  { %v938_v36 = vld [vmem:[%s19829_s1 + $0x1a68] sm:$0xff]  ;;  %v147_v48 = vld [vmem:[%s19829_s1 + $0x1b0] sm:$0xff] }
 0x1f6   :  { %6902 = vmatpush2.bf16.msra.mxu0 %v13006_v54  ;;  %6945 = vmatpush2.bf16.msra.mxu1 %v13134_v41  ;;  %v1062_v38 = vld [vmem:[%s19829_s1 + $0x1e48] sm:$0xff]  ;;  %v12975_v46 = vcombine.high %v934_v35, %v938_v36  ;;  %v12974_v41 = vcombine.low %v934_v35, %v938_v36  ;;  %v12192_v35 = vcombine.low %v151_v3, %v155_v5  ;;  %v16458_v36 = vpop.f32.mrf.mxu0 }
 0x1f7   :  { %6903 = vmatprep.subr.bf16.mxu0 %v12999_v55  ;;  %6946 = vmatprep.subr.bf16.mxu1 %v13127_v57  ;;  %v1066_v39 = vld [vmem:[%s19829_s1 + $0x1e68] sm:$0xff]  ;;  %19856 = vst [vmem:[#allocation7_spill] sm:$0xff] %v16458_v36  ;;  %v635_v36 = vld [vmem:[%s19829_s1 + $0x10f0] sm:$0xff] }
 0x1f8   :  { %v13103_v51 = vcombine.high %v1062_v38, %v1066_v39  ;;  %v926_v2 = vld [vmem:[%s19829_s1 + $0x1a08] sm:$0xff]  ;;  %v13102_v55 = vcombine.low %v1062_v38, %v1066_v39  ;;  %v12185_v39 = vcombine.high %v143_v22, %v147_v48 }
 0x1f9   :  { %v930_v28 = vld [vmem:[%s19829_s1 + $0x1a28] sm:$0xff] }
 0x1fa   :  { %6904 = vmatpush2.bf16.msra.mxu0 %v12998_v47  ;;  %6947 = vmatpush2.bf16.msra.mxu1 %v13126_v7  ;;  %v1054_v52 = vld [vmem:[%s19829_s1 + $0x1e08] sm:$0xff]  ;;  %v12967_v57 = vcombine.high %v926_v2, %v930_v28  ;;  %v283_v47 = vld [vmem:[%s19829_s1 + $0x5f0] sm:$0xff]  ;;  %v12966_v7 = vcombine.low %v926_v2, %v930_v28 }
 0x1fb   :  { %6905 = vmatprep.subr.bf16.mxu0 %v12991_v9  ;;  %6948 = vmatprep.subr.bf16.mxu1 %v13119_v10  ;;  %v1058_v54 = vld [vmem:[%s19829_s1 + $0x1e28] sm:$0xff]  ;;  %v16440_v9 = vsub.s32 2, %v15570_v42  ;;  %v12321_v16 = vcombine.high %v279_v6, %v283_v47  ;;  %v12320_v38 = vcombine.low %v279_v6, %v283_v47  ;;  %v263_v28 = vld [vmem:[%s19829_s1 + $0x550] sm:$0xff] }
 0x1fc   :  { %v13095_v61 = vcombine.high %v1054_v52, %v1058_v54  ;;  %v13094_v10 = vcombine.low %v1054_v52, %v1058_v54  ;;  %v267_v52 = vld [vmem:[%s19829_s1 + $0x570] sm:$0xff] }
 0x1fd   :  { %19855 = vst [vmem:[#allocation6_spill] sm:$0xff] %v16440_v9  ;;  %v12305_v47 = vcombine.high %v263_v28, %v267_v52 }
 0x1fe   :  { %6906 = vmatpush2.bf16.msra.mxu0 %v12990_v27  ;;  %6949 = vmatpush2.bf16.msra.mxu1 %v13118_v17  ;;  %v271_v27 = vld [vmem:[%s19829_s1 + $0x590] sm:$0xff] }
 0x1ff   :  { %6907 = vmatprep.subr.bf16.mxu0 %v12983_v31  ;;  %6950 = vmatprep.subr.bf16.mxu1 %v13111_v32  ;;  %v275_v17 = vld [vmem:[%s19829_s1 + $0x5b0] sm:$0xff]  ;;  %v14599_v31 = vld [vmem:[%s19831_s2] sm:$0xff] }
 0x200   :  { %v1130_v32 = vrot.slane %v14599_v31, %v16440_v9  ;;  %v12304_v31 = vcombine.low %v263_v28, %v267_v52  ;;  %v375_v9 = vld [vmem:[%s19829_s1 + $0x8d0] sm:$0xff] }
 0x202   :  { %6908 = vmatpush2.bf16.msra.mxu0 %v12982_v40  ;;  %6951 = vmatpush2.bf16.msra.mxu1 %v13110_v44  ;;  %v16460_v40 = vpop.f32.mrf.mxu1  ;;  %v12313_v44 = vcombine.high %v271_v27, %v275_v17 }
 0x203   :  { %6909 = vmatprep.subr.bf16.mxu0 %v12975_v46  ;;  %6952 = vmatprep.subr.bf16.mxu1 %v13103_v51  ;;  %19857 = vst [vmem:[#allocation8_spill] sm:$0xff] %v16460_v40  ;;  %v135_v46 = vld [vmem:[%s19829_s1 + $0x150] sm:$0xff] }
 0x204   :  { %v139_v51 = vld [vmem:[%s19829_s1 + $0x170] sm:$0xff] }
 0x205   :  { %v12177_v3 = vcombine.high %v135_v46, %v139_v51 }
 0x206   :  { %6910 = vmatpush2.bf16.msra.mxu0 %v12974_v41  ;;  %6953 = vmatpush2.bf16.msra.mxu1 %v13102_v55  ;;  %v12184_v55 = vcombine.low %v143_v22, %v147_v48  ;;  %v259_v22 = vld [vmem:[%s19829_s1 + $0x530] sm:$0xff] }
 0x207   :  { %6911 = vmatprep.subr.bf16.mxu0 %v12967_v57  ;;  %6954 = vmatprep.subr.bf16.mxu1 %v13095_v61  ;;  %v12312_v61 = vcombine.low %v271_v27, %v275_v17  ;;  %v12176_v27 = vcombine.low %v135_v46, %v139_v51  ;;  %v251_v46 = vld [vmem:[%s19829_s1 + $0x4f0] sm:$0xff] }
 0x20a   :  { %6912 = vmatpush2.bf16.msra.mxu0 %v12966_v7  ;;  %6955 = vmatpush2.bf16.msra.mxu1 %v13094_v10  ;;  %v127_v7 = vld [vmem:[%s19829_s1 + $0x110] sm:$0xff] }
 0x20b   :  { %6967 = vmatprep.subr.bf16.mxu0 %v12193_v12  ;;  %7010 = vmatprep.subr.bf16.mxu1 %v12321_v16  ;;  %v131_v10 = vld [vmem:[%s19829_s1 + $0x130] sm:$0xff] }
 0x20c   :  { %v255_v16 = vld [vmem:[%s19829_s1 + $0x510] sm:$0xff]  ;;  %v12168_v51 = vcombine.low %v127_v7, %v131_v10 }
 0x20d   :  { %v6657_v2 = vpop.f32.mrf.mxu0  ;;  %6914 = vmatmul.mubr.bf16.vlgmr.msra.gmra.mxu0 %v15608_v4  ;;  %v6700_v41 = vpop.f32.mrf.mxu1  ;;  %6957 = vmatmul.mubr.bf16.vlgmr.msra.gmra.mxu1 %v15617_v8  ;;  %v12296_v28 = vcombine.low %v255_v16, %v259_v22 }
 0x20e   :  { %v6658_v54 = vadd.f32 %v6657_v2, %v1130_v32  ;;  %6968 = vmatpush1.bf16.msra.mxu0 %v12192_v35  ;;  %7011 = vmatpush1.bf16.msra.mxu1 %v12320_v38  ;;  %v12169_v35 = vcombine.high %v127_v7, %v131_v10  ;;  %v123_v2 = vld [vmem:[%s19829_s1 + $0xf0] sm:$0xff] }
 0x20f   :  { %v16476_v57 = vpop.f32.mrf.mxu0  ;;  %6969 = vmatprep.subr.bf16.mxu0 %v12185_v39  ;;  %v16480_v6 = vpop.f32.mrf.mxu1  ;;  %7012 = vmatprep.subr.bf16.mxu1 %v12313_v44  ;;  %v12297_v39 = vcombine.high %v255_v16, %v259_v22  ;;  %v119_v44 = vld [vmem:[%s19829_s1 + $0xd0] sm:$0xff] }
 0x210   :  { %v16478_v5 = vadd.f32 %v6700_v41, %v6658_v54  ;;  %6999 = vmatprep.mubr.bf16.mxu0 %v14772_v58  ;;  %7042 = vmatprep.mubr.bf16.mxu1 %v14786_v63  ;;  %v12161_v52 = vcombine.high %v119_v44, %v123_v2  ;;  %v111_v41 = vld [vmem:[%s19829_s1 + $0x90] sm:$0xff] }
 0x211   :  { %v6661_v12 = vpop.f32.mrf.mxu0  ;;  %v6704_v17 = vpop.f32.mrf.mxu1  ;;  %v103_v16 = vld [vmem:[%s19829_s1 + $0x50] sm:$0xff] }
 0x212   :  { %v6662_v48 = vadd.f32 %v6661_v12, %v1130_v32  ;;  %6970 = vmatpush1.bf16.msra.mxu0 %v12184_v55  ;;  %7013 = vmatpush1.bf16.msra.mxu1 %v12312_v61  ;;  %v247_v32 = vld [vmem:[%s19829_s1 + $0x4d0] sm:$0xff] }
 0x213   :  { %6971 = vmatprep.subr.bf16.mxu0 %v12177_v3  ;;  %7014 = vmatprep.subr.bf16.mxu1 %v12305_v47  ;;  %v12289_v54 = vcombine.high %v247_v32, %v251_v46  ;;  %v115_v55 = vld [vmem:[%s19829_s1 + $0xb0] sm:$0xff]  ;;  %v12160_v47 = vcombine.low %v119_v44, %v123_v2  ;;  %v12288_v7 = vcombine.low %v247_v32, %v251_v46 }
 0x214   :  { %v16496_v38 = vadd.f32 %v6704_v17, %v6662_v48  ;;  %v239_v61 = vld [vmem:[%s19829_s1 + $0x490] sm:$0xff]  ;;  %v12153_v10 = vcombine.high %v111_v41, %v115_v55  ;;  %v12152_v17 = vcombine.low %v111_v41, %v115_v55 }
 0x215   :  { %v243_v3 = vld [vmem:[%s19829_s1 + $0x4b0] sm:$0xff] }
 0x216   :  { %6972 = vmatpush1.bf16.msra.mxu0 %v12176_v27  ;;  %7015 = vmatpush1.bf16.msra.mxu1 %v12304_v31  ;;  %v12281_v12 = vcombine.high %v239_v61, %v243_v3  ;;  %v107_v22 = vld [vmem:[%s19829_s1 + $0x70] sm:$0xff]  ;;  %v12280_v31 = vcombine.low %v239_v61, %v243_v3 }
 0x217   :  { %6973 = vmatprep.subr.bf16.mxu0 %v12169_v35  ;;  %7016 = vmatprep.subr.bf16.mxu1 %v12297_v39  ;;  %v231_v48 = vld [vmem:[%s19829_s1 + $0x450] sm:$0xff]  ;;  %v12145_v35 = vcombine.high %v103_v16, %v107_v22 }
 0x218   :  { %v235_v27 = vld [vmem:[%s19829_s1 + $0x470] sm:$0xff] }
 0x219   :  { %v12273_v39 = vcombine.high %v231_v48, %v235_v27  ;;  %v95_v44 = vld [vmem:[%s19829_s1 + $0x10] sm:$0xff] }
 0x21a   :  { %6974 = vmatpush1.bf16.msra.mxu0 %v12168_v51  ;;  %7017 = vmatpush1.bf16.msra.mxu1 %v12296_v28  ;;  %v99_v2 = vld [vmem:[%s19829_s1 + $0x30] sm:$0xff]  ;;  %v12144_v51 = vcombine.low %v103_v16, %v107_v22  ;;  %v12272_v28 = vcombine.low %v231_v48, %v235_v27 }
 0x21b   :  { %6975 = vmatprep.subr.bf16.mxu0 %v12161_v52  ;;  %7018 = vmatprep.subr.bf16.mxu1 %v12289_v54  ;;  %v223_v32 = vld [vmem:[%s19829_s1 + $0x410] sm:$0xff]  ;;  %v12137_v52 = vcombine.high %v95_v44, %v99_v2 }
 0x21c   :  { %v227_v46 = vld [vmem:[%s19829_s1 + $0x430] sm:$0xff] }
 0x21d   :  { %v12265_v54 = vcombine.high %v223_v32, %v227_v46  ;;  %v215_v41 = vld [vmem:[%s19829_s1 + $0x3d0] sm:$0xff] }
 0x21e   :  { %6976 = vmatpush1.bf16.msra.mxu0 %v12160_v47  ;;  %7019 = vmatpush1.bf16.msra.mxu1 %v12288_v7  ;;  %v219_v55 = vld [vmem:[%s19829_s1 + $0x3f0] sm:$0xff]  ;;  %v12136_v47 = vcombine.low %v95_v44, %v99_v2  ;;  %v12264_v7 = vcombine.low %v223_v32, %v227_v46 }
 0x21f   :  { %6977 = vmatprep.subr.bf16.mxu0 %v12153_v10  ;;  %7020 = vmatprep.subr.bf16.mxu1 %v12281_v12  ;;  %v343_v61 = vld [vmem:[%s19829_s1 + $0x7d0] sm:$0xff]  ;;  %v12257_v10 = vcombine.high %v215_v41, %v219_v55 }
 0x220   :  { %v347_v3 = vld [vmem:[%s19829_s1 + $0x7f0] sm:$0xff] }
 0x221   :  { %v12385_v12 = vcombine.high %v343_v61, %v347_v3  ;;  %v207_v16 = vld [vmem:[%s19829_s1 + $0x390] sm:$0xff] }
 0x222   :  { %6978 = vmatpush1.bf16.msra.mxu0 %v12152_v17  ;;  %7021 = vmatpush1.bf16.msra.mxu1 %v12280_v31  ;;  %v211_v22 = vld [vmem:[%s19829_s1 + $0x3b0] sm:$0xff]  ;;  %v12256_v17 = vcombine.low %v215_v41, %v219_v55  ;;  %v12384_v31 = vcombine.low %v343_v61, %v347_v3 }
 0x223   :  { %6979 = vmatprep.subr.bf16.mxu0 %v12145_v35  ;;  %7022 = vmatprep.subr.bf16.mxu1 %v12273_v39  ;;  %v335_v48 = vld [vmem:[%s19829_s1 + $0x790] sm:$0xff]  ;;  %v12249_v35 = vcombine.high %v207_v16, %v211_v22 }
 0x224   :  { %v339_v27 = vld [vmem:[%s19829_s1 + $0x7b0] sm:$0xff] }
 0x225   :  { %v12377_v39 = vcombine.high %v335_v48, %v339_v27  ;;  %v199_v44 = vld [vmem:[%s19829_s1 + $0x350] sm:$0xff] }
 0x226   :  { %6980 = vmatpush1.bf16.msra.mxu0 %v12144_v51  ;;  %7023 = vmatpush1.bf16.msra.mxu1 %v12272_v28  ;;  %v203_v2 = vld [vmem:[%s19829_s1 + $0x370] sm:$0xff]  ;;  %v12248_v51 = vcombine.low %v207_v16, %v211_v22  ;;  %v12376_v28 = vcombine.low %v335_v48, %v339_v27 }
 0x227   :  { %6981 = vmatprep.subr.bf16.mxu0 %v12137_v52  ;;  %7024 = vmatprep.subr.bf16.mxu1 %v12265_v54  ;;  %v327_v32 = vld [vmem:[%s19829_s1 + $0x750] sm:$0xff]  ;;  %v12241_v52 = vcombine.high %v199_v44, %v203_v2 }
 0x228   :  { %v331_v46 = vld [vmem:[%s19829_s1 + $0x770] sm:$0xff] }
 0x229   :  { %v12369_v54 = vcombine.high %v327_v32, %v331_v46  ;;  %v191_v41 = vld [vmem:[%s19829_s1 + $0x310] sm:$0xff] }
 0x22a   :  { %6982 = vmatpush1.bf16.msra.mxu0 %v12136_v47  ;;  %7025 = vmatpush1.bf16.msra.mxu1 %v12264_v7  ;;  %v195_v55 = vld [vmem:[%s19829_s1 + $0x330] sm:$0xff]  ;;  %v12240_v47 = vcombine.low %v199_v44, %v203_v2  ;;  %v12368_v7 = vcombine.low %v327_v32, %v331_v46 }
 0x22b   :  { %6983 = vmatprep.subr.bf16.mxu0 %v12257_v10  ;;  %7026 = vmatprep.subr.bf16.mxu1 %v12385_v12  ;;  %v319_v61 = vld [vmem:[%s19829_s1 + $0x710] sm:$0xff]  ;;  %v12233_v10 = vcombine.high %v191_v41, %v195_v55 }
 0x22c   :  { %v323_v3 = vld [vmem:[%s19829_s1 + $0x730] sm:$0xff] }
 0x22d   :  { %v12361_v12 = vcombine.high %v319_v61, %v323_v3  ;;  %v183_v16 = vld [vmem:[%s19829_s1 + $0x2d0] sm:$0xff] }
 0x22e   :  { %6984 = vmatpush2.bf16.msra.mxu0 %v12256_v17  ;;  %7027 = vmatpush2.bf16.msra.mxu1 %v12384_v31  ;;  %v187_v22 = vld [vmem:[%s19829_s1 + $0x2f0] sm:$0xff]  ;;  %v12232_v17 = vcombine.low %v191_v41, %v195_v55  ;;  %v12360_v31 = vcombine.low %v319_v61, %v323_v3 }
 0x22f   :  { %6985 = vmatprep.subr.bf16.mxu0 %v12249_v35  ;;  %7028 = vmatprep.subr.bf16.mxu1 %v12377_v39  ;;  %v311_v48 = vld [vmem:[%s19829_s1 + $0x6d0] sm:$0xff]  ;;  %v12225_v35 = vcombine.high %v183_v16, %v187_v22 }
 0x230   :  { %v315_v27 = vld [vmem:[%s19829_s1 + $0x6f0] sm:$0xff] }
 0x231   :  { %v12353_v39 = vcombine.high %v311_v48, %v315_v27  ;;  %v175_v44 = vld [vmem:[%s19829_s1 + $0x290] sm:$0xff] }
 0x232   :  { %6986 = vmatpush2.bf16.msra.mxu0 %v12248_v51  ;;  %7029 = vmatpush2.bf16.msra.mxu1 %v12376_v28  ;;  %v179_v2 = vld [vmem:[%s19829_s1 + $0x2b0] sm:$0xff]  ;;  %v12224_v51 = vcombine.low %v183_v16, %v187_v22  ;;  %v12352_v28 = vcombine.low %v311_v48, %v315_v27 }
 0x233   :  { %6987 = vmatprep.subr.bf16.mxu0 %v12241_v52  ;;  %7030 = vmatprep.subr.bf16.mxu1 %v12369_v54  ;;  %v303_v32 = vld [vmem:[%s19829_s1 + $0x690] sm:$0xff]  ;;  %v12217_v52 = vcombine.high %v175_v44, %v179_v2 }
 0x234   :  { %v307_v46 = vld [vmem:[%s19829_s1 + $0x6b0] sm:$0xff] }
 0x235   :  { %v12345_v54 = vcombine.high %v303_v32, %v307_v46  ;;  %v167_v41 = vld [vmem:[%s19829_s1 + $0x250] sm:$0xff] }
 0x236   :  { %6988 = vmatpush2.bf16.msra.mxu0 %v12240_v47  ;;  %7031 = vmatpush2.bf16.msra.mxu1 %v12368_v7  ;;  %v171_v55 = vld [vmem:[%s19829_s1 + $0x270] sm:$0xff]  ;;  %v12216_v47 = vcombine.low %v175_v44, %v179_v2  ;;  %v12344_v7 = vcombine.low %v303_v32, %v307_v46 }
 0x237   :  { %6989 = vmatprep.subr.bf16.mxu0 %v12233_v10  ;;  %7032 = vmatprep.subr.bf16.mxu1 %v12361_v12  ;;  %v295_v61 = vld [vmem:[%s19829_s1 + $0x650] sm:$0xff]  ;;  %v12209_v10 = vcombine.high %v167_v41, %v171_v55 }
 0x238   :  { %v299_v3 = vld [vmem:[%s19829_s1 + $0x670] sm:$0xff] }
 0x239   :  { %v12337_v12 = vcombine.high %v295_v61, %v299_v3  ;;  %v159_v16 = vld [vmem:[%s19829_s1 + $0x210] sm:$0xff] }
 0x23a   :  { %6990 = vmatpush2.bf16.msra.mxu0 %v12232_v17  ;;  %7033 = vmatpush2.bf16.msra.mxu1 %v12360_v31  ;;  %v163_v22 = vld [vmem:[%s19829_s1 + $0x230] sm:$0xff]  ;;  %v12208_v17 = vcombine.low %v167_v41, %v171_v55  ;;  %v12336_v31 = vcombine.low %v295_v61, %v299_v3 }
 0x23b   :  { %6991 = vmatprep.subr.bf16.mxu0 %v12225_v35  ;;  %7034 = vmatprep.subr.bf16.mxu1 %v12353_v39  ;;  %v287_v48 = vld [vmem:[%s19829_s1 + $0x610] sm:$0xff]  ;;  %v12201_v35 = vcombine.high %v159_v16, %v163_v22 }
 0x23c   :  { %v291_v27 = vld [vmem:[%s19829_s1 + $0x630] sm:$0xff] }
 0x23d   :  { %v12329_v39 = vcombine.high %v287_v48, %v291_v27  ;;  %v407_v44 = vld [vmem:[%s19829_s1 + $0x9d0] sm:$0xff] }
 0x23e   :  { %6992 = vmatpush2.bf16.msra.mxu0 %v12224_v51  ;;  %7035 = vmatpush2.bf16.msra.mxu1 %v12352_v28  ;;  %v411_v2 = vld [vmem:[%s19829_s1 + $0x9f0] sm:$0xff]  ;;  %v12200_v51 = vcombine.low %v159_v16, %v163_v22  ;;  %v12328_v28 = vcombine.low %v287_v48, %v291_v27  ;;  %v16668_v16 = vpop.f32.mrf.mxu1 }
 0x23f   :  { %6993 = vmatprep.subr.bf16.mxu0 %v12217_v52  ;;  %7036 = vmatprep.subr.bf16.mxu1 %v12345_v54  ;;  %v535_v32 = vld [vmem:[%s19829_s1 + $0xdd0] sm:$0xff]  ;;  %v12449_v52 = vcombine.high %v407_v44, %v411_v2 }
 0x240   :  { %v539_v46 = vld [vmem:[%s19829_s1 + $0xdf0] sm:$0xff] }
 0x241   :  { %v12577_v54 = vcombine.high %v535_v32, %v539_v46  ;;  %v399_v41 = vld [vmem:[%s19829_s1 + $0x990] sm:$0xff] }
 0x242   :  { %6994 = vmatpush2.bf16.msra.mxu0 %v12216_v47  ;;  %7037 = vmatpush2.bf16.msra.mxu1 %v12344_v7  ;;  %v403_v55 = vld [vmem:[%s19829_s1 + $0x9b0] sm:$0xff]  ;;  %v12448_v47 = vcombine.low %v407_v44, %v411_v2  ;;  %v16666_v7 = vpop.f32.mrf.mxu0 }
 0x243   :  { %6995 = vmatprep.subr.bf16.mxu0 %v12209_v10  ;;  %7038 = vmatprep.subr.bf16.mxu1 %v12337_v12  ;;  %v527_v61 = vld [vmem:[%s19829_s1 + $0xd90] sm:$0xff]  ;;  %v12576_v10 = vcombine.low %v535_v32, %v539_v46  ;;  %v12441_v12 = vcombine.high %v399_v41, %v403_v55  ;;  %v12440_v2 = vcombine.low %v399_v41, %v403_v55 }
 0x244   :  { %v531_v3 = vld [vmem:[%s19829_s1 + $0xdb0] sm:$0xff] }
 0x245   :  { %v12569_v22 = vcombine.high %v527_v61, %v531_v3  ;;  %v391_v48 = vld [vmem:[%s19829_s1 + $0x950] sm:$0xff]  ;;  %v12568_v46 = vcombine.low %v527_v61, %v531_v3 }
 0x246   :  { %6996 = vmatpush2.bf16.msra.mxu0 %v12208_v17  ;;  %7039 = vmatpush2.bf16.msra.mxu1 %v12336_v31  ;;  %v395_v27 = vld [vmem:[%s19829_s1 + $0x970] sm:$0xff] }
 0x247   :  { %6997 = vmatprep.subr.bf16.mxu0 %v12201_v35  ;;  %7040 = vmatprep.subr.bf16.mxu1 %v12329_v39  ;;  %v519_v31 = vld [vmem:[%s19829_s1 + $0xd50] sm:$0xff] }
 0x248   :  { %v523_v35 = vld [vmem:[%s19829_s1 + $0xd70] sm:$0xff] }
 0x249   :  { %v387_v41 = vld [vmem:[%s19829_s1 + $0x930] sm:$0xff] }
 0x24a   :  { %6998 = vmatpush2.bf16.msra.mxu0 %v12200_v51  ;;  %7041 = vmatpush2.bf16.msra.mxu1 %v12328_v28  ;;  %v12433_v51 = vcombine.high %v391_v48, %v395_v27  ;;  %v511_v61 = vld [vmem:[%s19829_s1 + $0xd10] sm:$0xff] }
 0x24b   :  { %7053 = vmatprep.subr.bf16.mxu0 %v12449_v52  ;;  %7096 = vmatprep.subr.bf16.mxu1 %v12577_v54  ;;  %v12561_v54 = vcombine.high %v519_v31, %v523_v35  ;;  %v515_v3 = vld [vmem:[%s19829_s1 + $0xd30] sm:$0xff] }
 0x24d   :  { %v6743_v17 = vpop.f32.mrf.mxu0  ;;  %7000 = vmatmul.mubr.bf16.vlgmr.msra.gmra.mxu0 %v14919_v21  ;;  %v6786_v44 = vpop.f32.mrf.mxu1  ;;  %7043 = vmatmul.mubr.bf16.vlgmr.msra.gmra.mxu1 %v14930_v25 }
 0x24e   :  { %v6744_v39 = vadd.f32 %v6743_v17, %v16478_v5  ;;  %7054 = vmatpush1.bf16.msra.mxu0 %v12448_v47  ;;  %7097 = vmatpush1.bf16.msra.mxu1 %v12576_v10  ;;  %v383_v5 = vld [vmem:[%s19829_s1 + $0x910] sm:$0xff]  ;;  %v12432_v10 = vcombine.low %v391_v48, %v395_v27 }
 0x24f   :  { %v16685_v32 = vpop.f32.mrf.mxu0  ;;  %7055 = vmatprep.subr.bf16.mxu0 %v12441_v12  ;;  %v16689_v52 = vpop.f32.mrf.mxu1  ;;  %7098 = vmatprep.subr.bf16.mxu1 %v12569_v22  ;;  %v12560_v22 = vcombine.low %v519_v31, %v523_v35  ;;  %v12425_v17 = vcombine.high %v383_v5, %v387_v41  ;;  %v507_v48 = vld [vmem:[%s19829_s1 + $0xcf0] sm:$0xff]  ;;  %v12424_v27 = vcombine.low %v383_v5, %v387_v41 }
 0x250   :  { %v16687_v28 = vadd.f32 %v6786_v44, %v6744_v39  ;;  %7085 = vmatprep.mubr.bf16.mxu0 %v14944_v34  ;;  %7128 = vmatprep.mubr.bf16.mxu1 %v14953_v37  ;;  %v12553_v44 = vcombine.high %v511_v61, %v515_v3  ;;  %v12552_v31 = vcombine.low %v511_v61, %v515_v3  ;;  %v499_v5 = vld [vmem:[%s19829_s1 + $0xcb0] sm:$0xff] }
 0x251   :  { %v6747_v55 = vpop.f32.mrf.mxu0  ;;  %v6790_v12 = vpop.f32.mrf.mxu1  ;;  %v12417_v35 = vcombine.high %v375_v9, %v379_v53  ;;  %v12416_v41 = vcombine.low %v375_v9, %v379_v53  ;;  %v491_v53 = vld [vmem:[%s19829_s1 + $0xc70] sm:$0xff] }
 0x252   :  { %v6748_v47 = vadd.f32 %v6747_v55, %v16496_v38  ;;  %7056 = vmatpush1.bf16.msra.mxu0 %v12440_v2  ;;  %7099 = vmatpush1.bf16.msra.mxu1 %v12568_v46  ;;  %v503_v38 = vld [vmem:[%s19829_s1 + $0xcd0] sm:$0xff] }
 0x253   :  { %7057 = vmatprep.subr.bf16.mxu0 %v12433_v51  ;;  %7100 = vmatprep.subr.bf16.mxu1 %v12561_v54  ;;  %v12545_v2 = vcombine.high %v503_v38, %v507_v48  ;;  %v367_v46 = vld [vmem:[%s19829_s1 + $0x890] sm:$0xff]  ;;  %v12544_v55 = vcombine.low %v503_v38, %v507_v48 }
 0x254   :  { %v16706_v39 = vadd.f32 %v6790_v12, %v6748_v47  ;;  %v371_v51 = vld [vmem:[%s19829_s1 + $0x8b0] sm:$0xff] }
 0x255   :  { %v495_v54 = vld [vmem:[%s19829_s1 + $0xc90] sm:$0xff]  ;;  %v12409_v61 = vcombine.high %v367_v46, %v371_v51  ;;  %v12408_v9 = vcombine.low %v367_v46, %v371_v51 }
 0x256   :  { %7058 = vmatpush1.bf16.msra.mxu0 %v12432_v10  ;;  %7101 = vmatpush1.bf16.msra.mxu1 %v12560_v22  ;;  %v12537_v3 = vcombine.high %v495_v54, %v499_v5  ;;  %v359_v47 = vld [vmem:[%s19829_s1 + $0x850] sm:$0xff]  ;;  %v12536_v22 = vcombine.low %v495_v54, %v499_v5 }
 0x257   :  { %7059 = vmatprep.subr.bf16.mxu0 %v12425_v17  ;;  %7102 = vmatprep.subr.bf16.mxu1 %v12553_v44  ;;  %v363_v10 = vld [vmem:[%s19829_s1 + $0x870] sm:$0xff] }
 0x258   :  { %v487_v12 = vld [vmem:[%s19829_s1 + $0xc50] sm:$0xff]  ;;  %v12401_v17 = vcombine.high %v359_v47, %v363_v10 }
 0x259   :  { %v12529_v44 = vcombine.high %v487_v12, %v491_v53  ;;  %v351_v38 = vld [vmem:[%s19829_s1 + $0x810] sm:$0xff] }
 0x25a   :  { %7060 = vmatpush1.bf16.msra.mxu0 %v12424_v27  ;;  %7103 = vmatpush1.bf16.msra.mxu1 %v12552_v31  ;;  %v355_v48 = vld [vmem:[%s19829_s1 + $0x830] sm:$0xff] }
 0x25b   :  { %7061 = vmatprep.subr.bf16.mxu0 %v12417_v35  ;;  %7104 = vmatprep.subr.bf16.mxu1 %v12545_v2  ;;  %v479_v27 = vld [vmem:[%s19829_s1 + $0xc10] sm:$0xff]  ;;  %v12400_v35 = vcombine.low %v359_v47, %v363_v10  ;;  %v12528_v2 = vcombine.low %v487_v12, %v491_v53  ;;  %v12393_v46 = vcombine.high %v351_v38, %v355_v48 }
 0x25c   :  { %v483_v31 = vld [vmem:[%s19829_s1 + $0xc30] sm:$0xff] }
 0x25d   :  { %v12521_v51 = vcombine.high %v479_v27, %v483_v31  ;;  %v471_v54 = vld [vmem:[%s19829_s1 + $0xbd0] sm:$0xff] }
 0x25e   :  { %7062 = vmatpush1.bf16.msra.mxu0 %v12416_v41  ;;  %7105 = vmatpush1.bf16.msra.mxu1 %v12544_v55  ;;  %v475_v5 = vld [vmem:[%s19829_s1 + $0xbf0] sm:$0xff] }
 0x25f   :  { %7063 = vmatprep.subr.bf16.mxu0 %v12409_v61  ;;  %7106 = vmatprep.subr.bf16.mxu1 %v12537_v3  ;;  %v599_v41 = vld [vmem:[%s19829_s1 + $0xfd0] sm:$0xff]  ;;  %v12392_v61 = vcombine.low %v351_v38, %v355_v48  ;;  %v12520_v3 = vcombine.low %v479_v27, %v483_v31  ;;  %v12513_v47 = vcombine.high %v471_v54, %v475_v5 }
 0x260   :  { %v603_v55 = vld [vmem:[%s19829_s1 + $0xff0] sm:$0xff] }
 0x261   :  { %v12641_v10 = vcombine.high %v599_v41, %v603_v55  ;;  %v463_v12 = vld [vmem:[%s19829_s1 + $0xb90] sm:$0xff] }
 0x262   :  { %7064 = vmatpush1.bf16.msra.mxu0 %v12408_v9  ;;  %7107 = vmatpush1.bf16.msra.mxu1 %v12536_v22  ;;  %v467_v53 = vld [vmem:[%s19829_s1 + $0xbb0] sm:$0xff] }
 0x263   :  { %7065 = vmatprep.subr.bf16.mxu0 %v12401_v17  ;;  %7108 = vmatprep.subr.bf16.mxu1 %v12529_v44  ;;  %v591_v9 = vld [vmem:[%s19829_s1 + $0xf90] sm:$0xff]  ;;  %v12512_v17 = vcombine.low %v471_v54, %v475_v5  ;;  %v12640_v44 = vcombine.low %v599_v41, %v603_v55  ;;  %v12505_v38 = vcombine.high %v463_v12, %v467_v53 }
 0x264   :  { %v595_v22 = vld [vmem:[%s19829_s1 + $0xfb0] sm:$0xff] }
 0x265   :  { %v12633_v48 = vcombine.high %v591_v9, %v595_v22  ;;  %v455_v27 = vld [vmem:[%s19829_s1 + $0xb50] sm:$0xff] }
 0x266   :  { %7066 = vmatpush1.bf16.msra.mxu0 %v12400_v35  ;;  %7109 = vmatpush1.bf16.msra.mxu1 %v12528_v2  ;;  %v459_v31 = vld [vmem:[%s19829_s1 + $0xb70] sm:$0xff] }
 0x267   :  { %7067 = vmatprep.subr.bf16.mxu0 %v12393_v46  ;;  %7110 = vmatprep.subr.bf16.mxu1 %v12521_v51  ;;  %v583_v35 = vld [vmem:[%s19829_s1 + $0xf50] sm:$0xff]  ;;  %v12504_v46 = vcombine.low %v463_v12, %v467_v53  ;;  %v12632_v51 = vcombine.low %v591_v9, %v595_v22  ;;  %v12497_v54 = vcombine.high %v455_v27, %v459_v31 }
 0x268   :  { %v587_v2 = vld [vmem:[%s19829_s1 + $0xf70] sm:$0xff] }
 0x269   :  { %v12625_v5 = vcombine.high %v583_v35, %v587_v2  ;;  %v447_v41 = vld [vmem:[%s19829_s1 + $0xb10] sm:$0xff] }
 0x26a   :  { %7068 = vmatpush1.bf16.msra.mxu0 %v12392_v61  ;;  %7111 = vmatpush1.bf16.msra.mxu1 %v12520_v3  ;;  %v451_v55 = vld [vmem:[%s19829_s1 + $0xb30] sm:$0xff] }
 0x26b   :  { %7069 = vmatprep.subr.bf16.mxu0 %v12513_v47  ;;  %7112 = vmatprep.subr.bf16.mxu1 %v12641_v10  ;;  %v575_v61 = vld [vmem:[%s19829_s1 + $0xf10] sm:$0xff]  ;;  %v12496_v47 = vcombine.low %v455_v27, %v459_v31  ;;  %v12624_v10 = vcombine.low %v583_v35, %v587_v2  ;;  %v12489_v12 = vcombine.high %v447_v41, %v451_v55 }
 0x26c   :  { %v579_v3 = vld [vmem:[%s19829_s1 + $0xf30] sm:$0xff] }
 0x26d   :  { %v12617_v53 = vcombine.high %v575_v61, %v579_v3  ;;  %v439_v9 = vld [vmem:[%s19829_s1 + $0xad0] sm:$0xff] }
 0x26e   :  { %7070 = vmatpush2.bf16.msra.mxu0 %v12512_v17  ;;  %7113 = vmatpush2.bf16.msra.mxu1 %v12640_v44  ;;  %v443_v22 = vld [vmem:[%s19829_s1 + $0xaf0] sm:$0xff] }
 0x26f   :  { %7071 = vmatprep.subr.bf16.mxu0 %v12505_v38  ;;  %7114 = vmatprep.subr.bf16.mxu1 %v12633_v48  ;;  %v567_v17 = vld [vmem:[%s19829_s1 + $0xed0] sm:$0xff]  ;;  %v12488_v38 = vcombine.low %v447_v41, %v451_v55  ;;  %v12616_v48 = vcombine.low %v575_v61, %v579_v3  ;;  %v12481_v27 = vcombine.high %v439_v9, %v443_v22 }
 0x270   :  { %v571_v44 = vld [vmem:[%s19829_s1 + $0xef0] sm:$0xff] }
 0x271   :  { %v12609_v31 = vcombine.high %v567_v17, %v571_v44  ;;  %v431_v35 = vld [vmem:[%s19829_s1 + $0xa90] sm:$0xff] }
 0x272   :  { %7072 = vmatpush2.bf16.msra.mxu0 %v12504_v46  ;;  %7115 = vmatpush2.bf16.msra.mxu1 %v12632_v51  ;;  %v435_v2 = vld [vmem:[%s19829_s1 + $0xab0] sm:$0xff] }
 0x273   :  { %7073 = vmatprep.subr.bf16.mxu0 %v12497_v54  ;;  %7116 = vmatprep.subr.bf16.mxu1 %v12625_v5  ;;  %v559_v46 = vld [vmem:[%s19829_s1 + $0xe90] sm:$0xff]  ;;  %v12480_v54 = vcombine.low %v439_v9, %v443_v22  ;;  %v12608_v5 = vcombine.low %v567_v17, %v571_v44  ;;  %v12473_v41 = vcombine.high %v431_v35, %v435_v2 }
 0x274   :  { %v563_v51 = vld [vmem:[%s19829_s1 + $0xeb0] sm:$0xff] }
 0x275   :  { %v12601_v55 = vcombine.high %v559_v46, %v563_v51  ;;  %v423_v61 = vld [vmem:[%s19829_s1 + $0xa50] sm:$0xff] }
 0x276   :  { %7074 = vmatpush2.bf16.msra.mxu0 %v12496_v47  ;;  %7117 = vmatpush2.bf16.msra.mxu1 %v12624_v10  ;;  %v427_v3 = vld [vmem:[%s19829_s1 + $0xa70] sm:$0xff] }
 0x277   :  { %7075 = vmatprep.subr.bf16.mxu0 %v12489_v12  ;;  %7118 = vmatprep.subr.bf16.mxu1 %v12617_v53  ;;  %v551_v47 = vld [vmem:[%s19829_s1 + $0xe50] sm:$0xff]  ;;  %v12472_v12 = vcombine.low %v431_v35, %v435_v2  ;;  %v12600_v53 = vcombine.low %v559_v46, %v563_v51  ;;  %v12465_v9 = vcombine.high %v423_v61, %v427_v3 }
 0x278   :  { %v555_v10 = vld [vmem:[%s19829_s1 + $0xe70] sm:$0xff] }
 0x279   :  { %v12593_v22 = vcombine.high %v551_v47, %v555_v10  ;;  %v415_v17 = vld [vmem:[%s19829_s1 + $0xa10] sm:$0xff] }
 0x27a   :  { %7076 = vmatpush2.bf16.msra.mxu0 %v12488_v38  ;;  %7119 = vmatpush2.bf16.msra.mxu1 %v12616_v48  ;;  %v419_v44 = vld [vmem:[%s19829_s1 + $0xa30] sm:$0xff] }
 0x27b   :  { %7077 = vmatprep.subr.bf16.mxu0 %v12481_v27  ;;  %7120 = vmatprep.subr.bf16.mxu1 %v12609_v31  ;;  %v543_v38 = vld [vmem:[%s19829_s1 + $0xe10] sm:$0xff]  ;;  %v12464_v27 = vcombine.low %v423_v61, %v427_v3  ;;  %v12592_v31 = vcombine.low %v551_v47, %v555_v10  ;;  %v12457_v35 = vcombine.high %v415_v17, %v419_v44 }
 0x27c   :  { %v547_v48 = vld [vmem:[%s19829_s1 + $0xe30] sm:$0xff] }
 0x27d   :  { %v12585_v2 = vcombine.high %v543_v38, %v547_v48  ;;  %v663_v46 = vld [vmem:[%s19829_s1 + $0x11d0] sm:$0xff] }
 0x27e   :  { %7078 = vmatpush2.bf16.msra.mxu0 %v12480_v54  ;;  %7121 = vmatpush2.bf16.msra.mxu1 %v12608_v5  ;;  %v667_v51 = vld [vmem:[%s19829_s1 + $0x11f0] sm:$0xff] }
 0x27f   :  { %7079 = vmatprep.subr.bf16.mxu0 %v12473_v41  ;;  %7122 = vmatprep.subr.bf16.mxu1 %v12601_v55  ;;  %v791_v54 = vld [vmem:[%s19829_s1 + $0x15d0] sm:$0xff]  ;;  %v12456_v41 = vcombine.low %v415_v17, %v419_v44  ;;  %v12584_v55 = vcombine.low %v543_v38, %v547_v48  ;;  %v12705_v61 = vcombine.high %v663_v46, %v667_v51  ;;  %v16878_v38 = vpop.f32.mrf.mxu1 }
 0x280   :  { %v795_v5 = vld [vmem:[%s19829_s1 + $0x15f0] sm:$0xff] }
 0x281   :  { %v12833_v3 = vcombine.high %v791_v54, %v795_v5  ;;  %v655_v47 = vld [vmem:[%s19829_s1 + $0x1190] sm:$0xff]  ;;  %v12832_v17 = vcombine.low %v791_v54, %v795_v5 }
 0x282   :  { %7080 = vmatpush2.bf16.msra.mxu0 %v12472_v12  ;;  %7123 = vmatpush2.bf16.msra.mxu1 %v12600_v53  ;;  %v659_v10 = vld [vmem:[%s19829_s1 + $0x11b0] sm:$0xff] }
 0x283   :  { %7081 = vmatprep.subr.bf16.mxu0 %v12465_v9  ;;  %7124 = vmatprep.subr.bf16.mxu1 %v12593_v22  ;;  %v783_v12 = vld [vmem:[%s19829_s1 + $0x1590] sm:$0xff]  ;;  %v12704_v9 = vcombine.low %v663_v46, %v667_v51  ;;  %v16876_v22 = vpop.f32.mrf.mxu0  ;;  %v12697_v44 = vcombine.high %v655_v47, %v659_v10  ;;  %v12696_v5 = vcombine.low %v655_v47, %v659_v10 }
 0x284   :  { %v787_v53 = vld [vmem:[%s19829_s1 + $0x15b0] sm:$0xff] }
 0x285   :  { %v12825_v48 = vcombine.high %v783_v12, %v787_v53  ;;  %v779_v46 = vld [vmem:[%s19829_s1 + $0x1570] sm:$0xff] }
 0x286   :  { %7082 = vmatpush2.bf16.msra.mxu0 %v12464_v27  ;;  %7125 = vmatpush2.bf16.msra.mxu1 %v12592_v31  ;;  %v647_v27 = vld [vmem:[%s19829_s1 + $0x1150] sm:$0xff] }
 0x287   :  { %7083 = vmatprep.subr.bf16.mxu0 %v12457_v35  ;;  %7126 = vmatprep.subr.bf16.mxu1 %v12585_v2  ;;  %v651_v31 = vld [vmem:[%s19829_s1 + $0x1170] sm:$0xff] }
 0x288   :  { %v775_v2 = vld [vmem:[%s19829_s1 + $0x1550] sm:$0xff] }
 0x289   :  { %v12817_v40 = vcombine.high %v775_v2, %v779_v46  ;;  %v643_v47 = vld [vmem:[%s19829_s1 + $0x1130] sm:$0xff] }
 0x28a   :  { %7084 = vmatpush2.bf16.msra.mxu0 %v12456_v41  ;;  %7127 = vmatpush2.bf16.msra.mxu1 %v12584_v55  ;;  %v12824_v55 = vcombine.low %v783_v12, %v787_v53  ;;  %v767_v12 = vld [vmem:[%s19829_s1 + $0x1510] sm:$0xff] }
 0x28b   :  { %7139 = vmatprep.subr.bf16.mxu0 %v12705_v61  ;;  %7182 = vmatprep.subr.bf16.mxu1 %v12833_v3  ;;  %v12689_v61 = vcombine.high %v647_v27, %v651_v31  ;;  %v771_v53 = vld [vmem:[%s19829_s1 + $0x1530] sm:$0xff] }
 0x28d   :  { %v6829_v35 = vpop.f32.mrf.mxu0  ;;  %7086 = vmatmul.mubr.bf16.vlgmr.msra.gmra.mxu0 %v15147_v45  ;;  %v6872_v54 = vpop.f32.mrf.mxu1  ;;  %7129 = vmatmul.mubr.bf16.vlgmr.msra.gmra.mxu1 %v15158_v49 }
 0x28e   :  { %v6830_v51 = vadd.f32 %v6829_v35, %v16687_v28  ;;  %7140 = vmatpush1.bf16.msra.mxu0 %v12704_v9  ;;  %7183 = vmatpush1.bf16.msra.mxu1 %v12832_v17  ;;  %v639_v28 = vld [vmem:[%s19829_s1 + $0x1110] sm:$0xff]  ;;  %v12688_v17 = vcombine.low %v647_v27, %v651_v31 }
 0x28f   :  { %v16895_v41 = vpop.f32.mrf.mxu0  ;;  %7141 = vmatprep.subr.bf16.mxu0 %v12697_v44  ;;  %v16899_v11 = vpop.f32.mrf.mxu1  ;;  %7184 = vmatprep.subr.bf16.mxu1 %v12825_v48  ;;  %v12816_v48 = vcombine.low %v775_v2, %v779_v46  ;;  %v12681_v35 = vcombine.high %v639_v28, %v643_v47  ;;  %v763_v27 = vld [vmem:[%s19829_s1 + $0x14f0] sm:$0xff]  ;;  %v12680_v31 = vcombine.low %v639_v28, %v643_v47 }
 0x290   :  { %v16897_v3 = vadd.f32 %v6872_v54, %v6830_v51  ;;  %19858 = vst [vmem:[#allocation9_spill] sm:$0xff] %v16899_v11  ;;  %7171 = vmatprep.mubr.bf16.mxu0 %v15172_v59  ;;  %7214 = vmatprep.mubr.bf16.mxu1 %v15181_v62  ;;  %v12809_v54 = vcombine.high %v767_v12, %v771_v53  ;;  %v755_v28 = vld [vmem:[%s19829_s1 + $0x14b0] sm:$0xff] }
 0x291   :  { %v6833_v10 = vpop.f32.mrf.mxu0  ;;  %v6876_v44 = vpop.f32.mrf.mxu1  ;;  %v12673_v2 = vcombine.high %v631_v23, %v635_v36  ;;  %v12672_v47 = vcombine.low %v631_v23, %v635_v36  ;;  %v747_v23 = vld [vmem:[%s19829_s1 + $0x1470] sm:$0xff] }
 0x292   :  { %v6834_v9 = vadd.f32 %v6833_v10, %v16706_v39  ;;  %7142 = vmatpush1.bf16.msra.mxu0 %v12696_v5  ;;  %7185 = vmatpush1.bf16.msra.mxu1 %v12824_v55  ;;  %v759_v39 = vld [vmem:[%s19829_s1 + $0x14d0] sm:$0xff] }
 0x293   :  { %7143 = vmatprep.subr.bf16.mxu0 %v12689_v61  ;;  %7186 = vmatprep.subr.bf16.mxu1 %v12817_v40  ;;  %v12808_v40 = vcombine.low %v767_v12, %v771_v53  ;;  %v12801_v46 = vcombine.high %v759_v39, %v763_v27  ;;  %v623_v5 = vld [vmem:[%s19829_s1 + $0x1090] sm:$0xff]  ;;  %v12800_v10 = vcombine.low %v759_v39, %v763_v27 }
 0x294   :  { %v16916_v51 = vadd.f32 %v6876_v44, %v6834_v9  ;;  %v627_v55 = vld [vmem:[%s19829_s1 + $0x10b0] sm:$0xff] }
 0x295   :  { %v751_v61 = vld [vmem:[%s19829_s1 + $0x1490] sm:$0xff]  ;;  %v12665_v12 = vcombine.high %v623_v5, %v627_v55  ;;  %v12664_v36 = vcombine.low %v623_v5, %v627_v55 }
 0x296   :  { %7144 = vmatpush1.bf16.msra.mxu0 %v12688_v17  ;;  %7187 = vmatpush1.bf16.msra.mxu1 %v12816_v48  ;;  %v12793_v53 = vcombine.high %v751_v61, %v755_v28  ;;  %v615_v9 = vld [vmem:[%s19829_s1 + $0x1050] sm:$0xff]  ;;  %v12792_v48 = vcombine.low %v751_v61, %v755_v28 }
 0x297   :  { %7145 = vmatprep.subr.bf16.mxu0 %v12681_v35  ;;  %7188 = vmatprep.subr.bf16.mxu1 %v12809_v54  ;;  %v619_v17 = vld [vmem:[%s19829_s1 + $0x1070] sm:$0xff] }
 0x298   :  { %v743_v44 = vld [vmem:[%s19829_s1 + $0x1450] sm:$0xff]  ;;  %v12657_v35 = vcombine.high %v615_v9, %v619_v17 }
 0x299   :  { %v12785_v54 = vcombine.high %v743_v44, %v747_v23  ;;  %v607_v39 = vld [vmem:[%s19829_s1 + $0x1010] sm:$0xff] }
 0x29a   :  { %7146 = vmatpush1.bf16.msra.mxu0 %v12680_v31  ;;  %7189 = vmatpush1.bf16.msra.mxu1 %v12808_v40  ;;  %v611_v27 = vld [vmem:[%s19829_s1 + $0x1030] sm:$0xff] }
 0x29b   :  { %7147 = vmatprep.subr.bf16.mxu0 %v12673_v2  ;;  %7190 = vmatprep.subr.bf16.mxu1 %v12801_v46  ;;  %v735_v31 = vld [vmem:[%s19829_s1 + $0x1410] sm:$0xff]  ;;  %v12656_v2 = vcombine.low %v615_v9, %v619_v17  ;;  %v12784_v46 = vcombine.low %v743_v44, %v747_v23  ;;  %v12649_v5 = vcombine.high %v607_v39, %v611_v27 }
 0x29c   :  { %v739_v40 = vld [vmem:[%s19829_s1 + $0x1430] sm:$0xff] }
 0x29d   :  { %v12777_v55 = vcombine.high %v735_v31, %v739_v40  ;;  %v727_v61 = vld [vmem:[%s19829_s1 + $0x13d0] sm:$0xff] }
 0x29e   :  { %7148 = vmatpush1.bf16.msra.mxu0 %v12672_v47  ;;  %7191 = vmatpush1.bf16.msra.mxu1 %v12800_v10  ;;  %v731_v28 = vld [vmem:[%s19829_s1 + $0x13f0] sm:$0xff] }
 0x29f   :  { %7149 = vmatprep.subr.bf16.mxu0 %v12665_v12  ;;  %7192 = vmatprep.subr.bf16.mxu1 %v12793_v53  ;;  %v855_v47 = vld [vmem:[%s19829_s1 + $0x17d0] sm:$0xff]  ;;  %v12648_v12 = vcombine.low %v607_v39, %v611_v27  ;;  %v12776_v53 = vcombine.low %v735_v31, %v739_v40  ;;  %v12769_v9 = vcombine.high %v727_v61, %v731_v28 }
 0x2a0   :  { %v859_v10 = vld [vmem:[%s19829_s1 + $0x17f0] sm:$0xff] }
 0x2a1   :  { %v12897_v17 = vcombine.high %v855_v47, %v859_v10  ;;  %v719_v44 = vld [vmem:[%s19829_s1 + $0x1390] sm:$0xff] }
 0x2a2   :  { %7150 = vmatpush1.bf16.msra.mxu0 %v12664_v36  ;;  %7193 = vmatpush1.bf16.msra.mxu1 %v12792_v48  ;;  %v723_v23 = vld [vmem:[%s19829_s1 + $0x13b0] sm:$0xff] }
 0x2a3   :  { %7151 = vmatprep.subr.bf16.mxu0 %v12657_v35  ;;  %7194 = vmatprep.subr.bf16.mxu1 %v12785_v54  ;;  %v847_v36 = vld [vmem:[%s19829_s1 + $0x1790] sm:$0xff]  ;;  %v12768_v35 = vcombine.low %v727_v61, %v731_v28  ;;  %v12896_v54 = vcombine.low %v855_v47, %v859_v10  ;;  %v12761_v39 = vcombine.high %v719_v44, %v723_v23 }
 0x2a4   :  { %v851_v48 = vld [vmem:[%s19829_s1 + $0x17b0] sm:$0xff] }
 0x2a5   :  { %v12889_v27 = vcombine.high %v847_v36, %v851_v48  ;;  %v711_v31 = vld [vmem:[%s19829_s1 + $0x1350] sm:$0xff] }
 0x2a6   :  { %7152 = vmatpush1.bf16.msra.mxu0 %v12656_v2  ;;  %7195 = vmatpush1.bf16.msra.mxu1 %v12784_v46  ;;  %v715_v40 = vld [vmem:[%s19829_s1 + $0x1370] sm:$0xff] }
 0x2a7   :  { %7153 = vmatprep.subr.bf16.mxu0 %v12649_v5  ;;  %7196 = vmatprep.subr.bf16.mxu1 %v12777_v55  ;;  %v839_v2 = vld [vmem:[%s19829_s1 + $0x1750] sm:$0xff]  ;;  %v12760_v5 = vcombine.low %v719_v44, %v723_v23  ;;  %v12888_v55 = vcombine.low %v847_v36, %v851_v48  ;;  %v12753_v61 = vcombine.high %v711_v31, %v715_v40 }
 0x2a8   :  { %v843_v46 = vld [vmem:[%s19829_s1 + $0x1770] sm:$0xff] }
 0x2a9   :  { %v12881_v28 = vcombine.high %v839_v2, %v843_v46  ;;  %v703_v47 = vld [vmem:[%s19829_s1 + $0x1310] sm:$0xff] }
 0x2aa   :  { %7154 = vmatpush1.bf16.msra.mxu0 %v12648_v12  ;;  %7197 = vmatpush1.bf16.msra.mxu1 %v12776_v53  ;;  %v707_v10 = vld [vmem:[%s19829_s1 + $0x1330] sm:$0xff] }
 0x2ab   :  { %7155 = vmatprep.subr.bf16.mxu0 %v12769_v9  ;;  %7198 = vmatprep.subr.bf16.mxu1 %v12897_v17  ;;  %v831_v12 = vld [vmem:[%s19829_s1 + $0x1710] sm:$0xff]  ;;  %v12752_v9 = vcombine.low %v711_v31, %v715_v40  ;;  %v12880_v17 = vcombine.low %v839_v2, %v843_v46  ;;  %v12745_v44 = vcombine.high %v703_v47, %v707_v10 }
 0x2ac   :  { %v835_v53 = vld [vmem:[%s19829_s1 + $0x1730] sm:$0xff] }
 0x2ad   :  { %v12873_v23 = vcombine.high %v831_v12, %v835_v53  ;;  %v695_v36 = vld [vmem:[%s19829_s1 + $0x12d0] sm:$0xff] }
 0x2ae   :  { %7156 = vmatpush2.bf16.msra.mxu0 %v12768_v35  ;;  %7199 = vmatpush2.bf16.msra.mxu1 %v12896_v54  ;;  %v699_v48 = vld [vmem:[%s19829_s1 + $0x12f0] sm:$0xff] }
 0x2af   :  { %7157 = vmatprep.subr.bf16.mxu0 %v12761_v39  ;;  %7200 = vmatprep.subr.bf16.mxu1 %v12889_v27  ;;  %v823_v35 = vld [vmem:[%s19829_s1 + $0x16d0] sm:$0xff]  ;;  %v12744_v39 = vcombine.low %v703_v47, %v707_v10  ;;  %v12872_v27 = vcombine.low %v831_v12, %v835_v53  ;;  %v12737_v31 = vcombine.high %v695_v36, %v699_v48 }
 0x2b0   :  { %v827_v54 = vld [vmem:[%s19829_s1 + $0x16f0] sm:$0xff] }
 0x2b1   :  { %v12865_v40 = vcombine.high %v823_v35, %v827_v54  ;;  %v687_v2 = vld [vmem:[%s19829_s1 + $0x1290] sm:$0xff] }
 0x2b2   :  { %7158 = vmatpush2.bf16.msra.mxu0 %v12760_v5  ;;  %7201 = vmatpush2.bf16.msra.mxu1 %v12888_v55  ;;  %v691_v46 = vld [vmem:[%s19829_s1 + $0x12b0] sm:$0xff] }
 0x2b3   :  { %7159 = vmatprep.subr.bf16.mxu0 %v12753_v61  ;;  %7202 = vmatprep.subr.bf16.mxu1 %v12881_v28  ;;  %v815_v5 = vld [vmem:[%s19829_s1 + $0x1690] sm:$0xff]  ;;  %v12736_v61 = vcombine.low %v695_v36, %v699_v48  ;;  %v12864_v28 = vcombine.low %v823_v35, %v827_v54  ;;  %v12729_v47 = vcombine.high %v687_v2, %v691_v46 }
 0x2b4   :  { %v819_v55 = vld [vmem:[%s19829_s1 + $0x16b0] sm:$0xff] }
 0x2b5   :  { %v12857_v10 = vcombine.high %v815_v5, %v819_v55  ;;  %v679_v12 = vld [vmem:[%s19829_s1 + $0x1250] sm:$0xff] }
 0x2b6   :  { %7160 = vmatpush2.bf16.msra.mxu0 %v12752_v9  ;;  %7203 = vmatpush2.bf16.msra.mxu1 %v12880_v17  ;;  %v683_v53 = vld [vmem:[%s19829_s1 + $0x1270] sm:$0xff] }
 0x2b7   :  { %7161 = vmatprep.subr.bf16.mxu0 %v12745_v44  ;;  %7204 = vmatprep.subr.bf16.mxu1 %v12873_v23  ;;  %v807_v9 = vld [vmem:[%s19829_s1 + $0x1650] sm:$0xff]  ;;  %v12728_v44 = vcombine.low %v687_v2, %v691_v46  ;;  %v12856_v23 = vcombine.low %v815_v5, %v819_v55  ;;  %v12721_v36 = vcombine.high %v679_v12, %v683_v53 }
 0x2b8   :  { %v811_v17 = vld [vmem:[%s19829_s1 + $0x1670] sm:$0xff] }
 0x2b9   :  { %v12849_v48 = vcombine.high %v807_v9, %v811_v17  ;;  %v671_v35 = vld [vmem:[%s19829_s1 + $0x1210] sm:$0xff] }
 0x2ba   :  { %7162 = vmatpush2.bf16.msra.mxu0 %v12744_v39  ;;  %7205 = vmatpush2.bf16.msra.mxu1 %v12872_v27  ;;  %v675_v54 = vld [vmem:[%s19829_s1 + $0x1230] sm:$0xff] }
 0x2bb   :  { %7163 = vmatprep.subr.bf16.mxu0 %v12737_v31  ;;  %7206 = vmatprep.subr.bf16.mxu1 %v12865_v40  ;;  %v799_v39 = vld [vmem:[%s19829_s1 + $0x1610] sm:$0xff]  ;;  %v12720_v31 = vcombine.low %v679_v12, %v683_v53  ;;  %v12848_v40 = vcombine.low %v807_v9, %v811_v17  ;;  %v12713_v2 = vcombine.high %v671_v35, %v675_v54 }
 0x2bc   :  { %v803_v27 = vld [vmem:[%s19829_s1 + $0x1630] sm:$0xff] }
 0x2bd   :  { %v12841_v46 = vcombine.high %v799_v39, %v803_v27  ;;  %v919_v5 = vld [vmem:[%s19829_s1 + $0x19d0] sm:$0xff] }
 0x2be   :  { %7164 = vmatpush2.bf16.msra.mxu0 %v12736_v61  ;;  %7207 = vmatpush2.bf16.msra.mxu1 %v12864_v28  ;;  %v923_v55 = vld [vmem:[%s19829_s1 + $0x19f0] sm:$0xff] }
 0x2bf   :  { %7165 = vmatprep.subr.bf16.mxu0 %v12729_v47  ;;  %7208 = vmatprep.subr.bf16.mxu1 %v12857_v10  ;;  %v1047_v61 = vld [vmem:[%s19829_s1 + $0x1dd0] sm:$0xff]  ;;  %v12712_v47 = vcombine.low %v671_v35, %v675_v54  ;;  %v12840_v10 = vcombine.low %v799_v39, %v803_v27  ;;  %v12961_v12 = vcombine.high %v919_v5, %v923_v55  ;;  %v17088_v39 = vpop.f32.mrf.mxu1 }
 0x2c0   :  { %v1051_v28 = vld [vmem:[%s19829_s1 + $0x1df0] sm:$0xff]  ;;  %19859 = vst [vmem:[#allocation10_spill] sm:$0xff] %v17088_v39 }
 0x2c1   :  { %v13089_v53 = vcombine.high %v1047_v61, %v1051_v28  ;;  %v911_v9 = vld [vmem:[%s19829_s1 + $0x1990] sm:$0xff]  ;;  %v13088_v35 = vcombine.low %v1047_v61, %v1051_v28 }
 0x2c2   :  { %7166 = vmatpush2.bf16.msra.mxu0 %v12728_v44  ;;  %7209 = vmatpush2.bf16.msra.mxu1 %v12856_v23  ;;  %v915_v17 = vld [vmem:[%s19829_s1 + $0x19b0] sm:$0xff] }
 0x2c3   :  { %7167 = vmatprep.subr.bf16.mxu0 %v12721_v36  ;;  %7210 = vmatprep.subr.bf16.mxu1 %v12849_v48  ;;  %v1039_v44 = vld [vmem:[%s19829_s1 + $0x1d90] sm:$0xff]  ;;  %v12960_v36 = vcombine.low %v919_v5, %v923_v55  ;;  %v17086_v48 = vpop.f32.mrf.mxu0  ;;  %v12953_v54 = vcombine.high %v911_v9, %v915_v17  ;;  %v12952_v28 = vcombine.low %v911_v9, %v915_v17 }
 0x2c4   :  { %v1043_v23 = vld [vmem:[%s19829_s1 + $0x1db0] sm:$0xff] }
 0x2c5   :  { %v13081_v27 = vcombine.high %v1039_v44, %v1043_v23  ;;  %v1035_v5 = vld [vmem:[%s19829_s1 + $0x1d70] sm:$0xff] }
 0x2c6   :  { %7168 = vmatpush2.bf16.msra.mxu0 %v12720_v31  ;;  %7211 = vmatpush2.bf16.msra.mxu1 %v12848_v40  ;;  %v903_v31 = vld [vmem:[%s19829_s1 + $0x1950] sm:$0xff] }
 0x2c7   :  { %7169 = vmatprep.subr.bf16.mxu0 %v12713_v2  ;;  %7212 = vmatprep.subr.bf16.mxu1 %v12841_v46  ;;  %v907_v40 = vld [vmem:[%s19829_s1 + $0x1970] sm:$0xff] }
 0x2c8   :  { %v1031_v46 = vld [vmem:[%s19829_s1 + $0x1d50] sm:$0xff] }
 0x2c9   :  { %v13073_v14 = vcombine.high %v1031_v46, %v1035_v5  ;;  %v1023_v17 = vld [vmem:[%s19829_s1 + $0x1d10] sm:$0xff] }
 0x2ca   :  { %7170 = vmatpush2.bf16.msra.mxu0 %v12712_v47  ;;  %7213 = vmatpush2.bf16.msra.mxu1 %v12840_v10  ;;  %v13080_v10 = vcombine.low %v1039_v44, %v1043_v23  ;;  %v1027_v44 = vld [vmem:[%s19829_s1 + $0x1d30] sm:$0xff] }
 0x2cb   :  { %7225 = vmatprep.subr.bf16.mxu0 %v12961_v12  ;;  %7268 = vmatprep.subr.bf16.mxu1 %v13089_v53  ;;  %v12945_v12 = vcombine.high %v903_v31, %v907_v40  ;;  %v891_v11 = vld [vmem:[%s19829_s1 + $0x18f0] sm:$0xff] }
 0x2cd   :  { %v6915_v2 = vpop.f32.mrf.mxu0  ;;  %7172 = vmatmul.mubr.bf16.vlgmr.msra.gmra.mxu0 %v15375_v15  ;;  %v6958_v61 = vpop.f32.mrf.mxu1  ;;  %7215 = vmatmul.mubr.bf16.vlgmr.msra.gmra.mxu1 %v15386_v19 }
 0x2ce   :  { %v6916_v55 = vadd.f32 %v6915_v2, %v16897_v3  ;;  %7226 = vmatpush1.bf16.msra.mxu0 %v12960_v36  ;;  %7269 = vmatpush1.bf16.msra.mxu1 %v13088_v35  ;;  %v895_v3 = vld [vmem:[%s19829_s1 + $0x1910] sm:$0xff]  ;;  %v12944_v35 = vcombine.low %v903_v31, %v907_v40 }
 0x2cf   :  { %v17105_v47 = vpop.f32.mrf.mxu0  ;;  %7227 = vmatprep.subr.bf16.mxu0 %v12953_v54  ;;  %v17107_v39 = vpop.f32.mrf.mxu1  ;;  %7270 = vmatprep.subr.bf16.mxu1 %v13081_v27  ;;  %v899_v36 = vld [vmem:[%s19829_s1 + $0x1930] sm:$0xff]  ;;  %v13072_v27 = vcombine.low %v1031_v46, %v1035_v5  ;;  %v13064_v46 = vcombine.low %v1023_v17, %v1027_v44 }
 0x2d0   :  { %19860 = vst [vmem:[#allocation11_spill] sm:$0xff] %v17105_v47  ;;  %v6959_v53 = vadd.f32 %v6958_v61, %v6916_v55  ;;  %19861 = vst [vmem:[#allocation12_spill] sm:$0xff] %v17107_v39  ;;  %7257 = vmatprep.mubr.bf16.mxu0 %v15400_v30  ;;  %7300 = vmatprep.mubr.bf16.mxu1 %v15409_v33  ;;  %v12937_v2 = vcombine.high %v895_v3, %v899_v36  ;;  %v887_v47 = vld [vmem:[%s19829_s1 + $0x18d0] sm:$0xff] }
 0x2d1   :  { %v6919_v9 = vpop.f32.mrf.mxu0  ;;  %v6962_v54 = vpop.f32.mrf.mxu1  ;;  %v13065_v39 = vcombine.high %v1023_v17, %v1027_v44  ;;  %v1019_v31 = vld [vmem:[%s19829_s1 + $0x1cf0] sm:$0xff]  ;;  %v12936_v40 = vcombine.low %v895_v3, %v899_v36  ;;  %v12929_v5 = vcombine.high %v887_v47, %v891_v11 }
 0x2d2   :  { %v6920_v23 = vadd.f32 %v6919_v9, %v16916_v51  ;;  %7228 = vmatpush1.bf16.msra.mxu0 %v12952_v28  ;;  %7271 = vmatpush1.bf16.msra.mxu1 %v13080_v10  ;;  %v7673_v55 = vmul.f32 0.2, %v6959_v53  ;;  %vm7657_vm2 = vcmp.gt.f32.partialorder %v6959_v53, 0.0  ;;  %v1015_v51 = vld [vmem:[%s19829_s1 + $0x1cd0] sm:$0xff] }
 0x2d3   :  { %7229 = vmatprep.subr.bf16.mxu0 %v12945_v12  ;;  %7272 = vmatprep.subr.bf16.mxu1 %v13073_v14  ;;  %v13057_v12 = vcombine.high %v1015_v51, %v1019_v31  ;;  %v879_v9 = vld [vmem:[%s19829_s1 + $0x1890] sm:$0xff]  ;;  %v13056_v36 = vcombine.low %v1015_v51, %v1019_v31 }
 0x2d4   :  { %v6963_v61 = vadd.f32 %v6962_v54, %v6920_v23  ;;  %v7689_v28 = vsel %vm7657_vm2, %v6959_v53, %v7673_v55  ;;  %v883_v23 = vld [vmem:[%s19829_s1 + $0x18b0] sm:$0xff] }
 0x2d5   :  { %v1007_v3 = vld [vmem:[%s19829_s1 + $0x1c90] sm:$0xff]  ;;  %v12921_v17 = vcombine.high %v879_v9, %v883_v23 }
 0x2d6   :  { %vm7665_vm3 = vcmp.gt.f32.partialorder %v6963_v61, 0.0  ;;  %v7681_v14 = vmul.f32 0.2, %v6963_v61  ;;  %7230 = vmatpush1.bf16.msra.mxu0 %v12944_v35  ;;  %7273 = vmatpush1.bf16.msra.mxu1 %v13072_v27  ;;  %v1011_v53 = vld [vmem:[%s19829_s1 + $0x1cb0] sm:$0xff] }
 0x2d7   :  { %7231 = vmatprep.subr.bf16.mxu0 %v12937_v2  ;;  %7274 = vmatprep.subr.bf16.mxu1 %v13065_v39  ;;  %v12928_v39 = vcombine.low %v887_v47, %v891_v11  ;;  %v13049_v44 = vcombine.high %v1007_v3, %v1011_v53  ;;  %v871_v35 = vld [vmem:[%s19829_s1 + $0x1850] sm:$0xff]  ;;  %v12920_v47 = vcombine.low %v879_v9, %v883_v23 }
 0x2d8   :  { %v7697_v10 = vsel %vm7665_vm3, %v6963_v61, %v7681_v14  ;;  %v875_v27 = vld [vmem:[%s19829_s1 + $0x1870] sm:$0xff]  ;;  %v13048_v55 = vcombine.low %v1007_v3, %v1011_v53 }
 0x2d9   :  { %v17142_v54 = vpack.c.bf16 %v7697_v10, %v7689_v28  ;;  %v999_v2 = vld [vmem:[%s19829_s1 + $0x1c50] sm:$0xff]  ;;  %v12913_v61 = vcombine.high %v871_v35, %v875_v27 }
 0x2da   :  { %7232 = vmatpush1.bf16.msra.mxu0 %v12936_v40  ;;  %7275 = vmatpush1.bf16.msra.mxu1 %v13064_v46  ;;  %v1003_v11 = vld [vmem:[%s19829_s1 + $0x1c70] sm:$0xff] }
 0x2db   :  { %19862 = vst [vmem:[#allocation13_spill] sm:$0xff] %v17142_v54  ;;  %7233 = vmatprep.subr.bf16.mxu0 %v12929_v5  ;;  %7276 = vmatprep.subr.bf16.mxu1 %v13057_v12  ;;  %v13041_v51 = vcombine.high %v999_v2, %v1003_v11  ;;  %v863_v31 = vld [vmem:[%s19829_s1 + $0x1810] sm:$0xff]  ;;  %v12912_v5 = vcombine.low %v871_v35, %v875_v27 }
 0x2dc   :  { %v867_v14 = vld [vmem:[%s19829_s1 + $0x1830] sm:$0xff]  ;;  %v13040_v28 = vcombine.low %v999_v2, %v1003_v11 }
 0x2dd   :  { %v991_v40 = vld [vmem:[%s19829_s1 + $0x1c10] sm:$0xff]  ;;  %v12905_v10 = vcombine.high %v863_v31, %v867_v14 }
 0x2de   :  { %7234 = vmatpush1.bf16.msra.mxu0 %v12928_v39  ;;  %7277 = vmatpush1.bf16.msra.mxu1 %v13056_v36  ;;  %v995_v46 = vld [vmem:[%s19829_s1 + $0x1c30] sm:$0xff]  ;;  %v12904_v39 = vcombine.low %v863_v31, %v867_v14 }
 0x2df   :  { %7235 = vmatprep.subr.bf16.mxu0 %v12921_v17  ;;  %7278 = vmatprep.subr.bf16.mxu1 %v13049_v44  ;;  %v13033_v12 = vcombine.high %v991_v40, %v995_v46  ;;  %v983_v9 = vld [vmem:[%s19829_s1 + $0x1bd0] sm:$0xff]  ;;  %v13032_v36 = vcombine.low %v991_v40, %v995_v46 }
 0x2e0   :  { %v987_v23 = vld [vmem:[%s19829_s1 + $0x1bf0] sm:$0xff] }
 0x2e1   :  { %v1111_v3 = vld [vmem:[%s19829_s1 + $0x1fd0] sm:$0xff]  ;;  %v13025_v17 = vcombine.high %v983_v9, %v987_v23 }
 0x2e2   :  { %7236 = vmatpush1.bf16.msra.mxu0 %v12920_v47  ;;  %7279 = vmatpush1.bf16.msra.mxu1 %v13048_v55  ;;  %v1115_v53 = vld [vmem:[%s19829_s1 + $0x1ff0] sm:$0xff]  ;;  %v13024_v47 = vcombine.low %v983_v9, %v987_v23 }
 0x2e3   :  { %7237 = vmatprep.subr.bf16.mxu0 %v12913_v61  ;;  %7280 = vmatprep.subr.bf16.mxu1 %v13041_v51  ;;  %v13153_v44 = vcombine.high %v1111_v3, %v1115_v53  ;;  %v975_v35 = vld [vmem:[%s19829_s1 + $0x1b90] sm:$0xff]  ;;  %v13152_v55 = vcombine.low %v1111_v3, %v1115_v53 }
 0x2e4   :  { %v979_v27 = vld [vmem:[%s19829_s1 + $0x1bb0] sm:$0xff] }
 0x2e5   :  { %v1103_v2 = vld [vmem:[%s19829_s1 + $0x1f90] sm:$0xff]  ;;  %v13017_v61 = vcombine.high %v975_v35, %v979_v27 }
 0x2e6   :  { %7238 = vmatpush1.bf16.msra.mxu0 %v12912_v5  ;;  %7281 = vmatpush1.bf16.msra.mxu1 %v13040_v28  ;;  %v1107_v11 = vld [vmem:[%s19829_s1 + $0x1fb0] sm:$0xff]  ;;  %v13016_v5 = vcombine.low %v975_v35, %v979_v27 }
 0x2e7   :  { %7239 = vmatprep.subr.bf16.mxu0 %v12905_v10  ;;  %7282 = vmatprep.subr.bf16.mxu1 %v13033_v12  ;;  %v13145_v51 = vcombine.high %v1103_v2, %v1107_v11  ;;  %v967_v31 = vld [vmem:[%s19829_s1 + $0x1b50] sm:$0xff]  ;;  %v13144_v28 = vcombine.low %v1103_v2, %v1107_v11 }
 0x2e8   :  { %v971_v14 = vld [vmem:[%s19829_s1 + $0x1b70] sm:$0xff] }
 0x2e9   :  { %v1095_v40 = vld [vmem:[%s19829_s1 + $0x1f50] sm:$0xff]  ;;  %v13009_v10 = vcombine.high %v967_v31, %v971_v14 }
 0x2ea   :  { %7240 = vmatpush1.bf16.msra.mxu0 %v12904_v39  ;;  %7283 = vmatpush1.bf16.msra.mxu1 %v13032_v36  ;;  %v1099_v46 = vld [vmem:[%s19829_s1 + $0x1f70] sm:$0xff]  ;;  %v13008_v39 = vcombine.low %v967_v31, %v971_v14 }
 0x2eb   :  { %7241 = vmatprep.subr.bf16.mxu0 %v13025_v17  ;;  %7284 = vmatprep.subr.bf16.mxu1 %v13153_v44  ;;  %v13137_v12 = vcombine.high %v1095_v40, %v1099_v46  ;;  %v959_v9 = vld [vmem:[%s19829_s1 + $0x1b10] sm:$0xff]  ;;  %v13136_v36 = vcombine.low %v1095_v40, %v1099_v46 }
 0x2ec   :  { %v963_v23 = vld [vmem:[%s19829_s1 + $0x1b30] sm:$0xff] }
 0x2ed   :  { %v1087_v3 = vld [vmem:[%s19829_s1 + $0x1f10] sm:$0xff]  ;;  %v13001_v17 = vcombine.high %v959_v9, %v963_v23 }
 0x2ee   :  { %7242 = vmatpush2.bf16.msra.mxu0 %v13024_v47  ;;  %7285 = vmatpush2.bf16.msra.mxu1 %v13152_v55  ;;  %v1091_v53 = vld [vmem:[%s19829_s1 + $0x1f30] sm:$0xff]  ;;  %v13000_v47 = vcombine.low %v959_v9, %v963_v23 }
 0x2ef   :  { %7243 = vmatprep.subr.bf16.mxu0 %v13017_v61  ;;  %7286 = vmatprep.subr.bf16.mxu1 %v13145_v51  ;;  %v13129_v44 = vcombine.high %v1087_v3, %v1091_v53  ;;  %v951_v35 = vld [vmem:[%s19829_s1 + $0x1ad0] sm:$0xff]  ;;  %v13128_v55 = vcombine.low %v1087_v3, %v1091_v53 }
 0x2f0   :  { %v955_v27 = vld [vmem:[%s19829_s1 + $0x1af0] sm:$0xff] }
 0x2f1   :  { %v1079_v2 = vld [vmem:[%s19829_s1 + $0x1ed0] sm:$0xff]  ;;  %v12993_v61 = vcombine.high %v951_v35, %v955_v27 }
 0x2f2   :  { %7244 = vmatpush2.bf16.msra.mxu0 %v13016_v5  ;;  %7287 = vmatpush2.bf16.msra.mxu1 %v13144_v28  ;;  %v1083_v11 = vld [vmem:[%s19829_s1 + $0x1ef0] sm:$0xff]  ;;  %v12992_v5 = vcombine.low %v951_v35, %v955_v27 }
 0x2f3   :  { %7245 = vmatprep.subr.bf16.mxu0 %v13009_v10  ;;  %7288 = vmatprep.subr.bf16.mxu1 %v13137_v12  ;;  %v13121_v51 = vcombine.high %v1079_v2, %v1083_v11  ;;  %v943_v31 = vld [vmem:[%s19829_s1 + $0x1a90] sm:$0xff]  ;;  %v13120_v28 = vcombine.low %v1079_v2, %v1083_v11 }
 0x2f4   :  { %v947_v14 = vld [vmem:[%s19829_s1 + $0x1ab0] sm:$0xff] }
 0x2f5   :  { %v1071_v40 = vld [vmem:[%s19829_s1 + $0x1e90] sm:$0xff]  ;;  %v12985_v10 = vcombine.high %v943_v31, %v947_v14 }
 0x2f6   :  { %7246 = vmatpush2.bf16.msra.mxu0 %v13008_v39  ;;  %7289 = vmatpush2.bf16.msra.mxu1 %v13136_v36  ;;  %v1075_v46 = vld [vmem:[%s19829_s1 + $0x1eb0] sm:$0xff]  ;;  %v12984_v39 = vcombine.low %v943_v31, %v947_v14  ;;  %v152_v31 = vld [vmem:[%s19829_s1 + $0x1d8] sm:$0xff] }
 0x2f7   :  { %7247 = vmatprep.subr.bf16.mxu0 %v13001_v17  ;;  %7290 = vmatprep.subr.bf16.mxu1 %v13129_v44  ;;  %v13113_v12 = vcombine.high %v1071_v40, %v1075_v46  ;;  %v935_v9 = vld [vmem:[%s19829_s1 + $0x1a50] sm:$0xff]  ;;  %v13112_v36 = vcombine.low %v1071_v40, %v1075_v46  ;;  %v156_v14 = vld [vmem:[%s19829_s1 + $0x1f8] sm:$0xff] }
 0x2f8   :  { %v939_v23 = vld [vmem:[%s19829_s1 + $0x1a70] sm:$0xff]  ;;  %v280_v40 = vld [vmem:[%s19829_s1 + $0x5d8] sm:$0xff] }
 0x2f9   :  { %v1063_v3 = vld [vmem:[%s19829_s1 + $0x1e50] sm:$0xff]  ;;  %v12977_v17 = vcombine.high %v935_v9, %v939_v23  ;;  %v284_v46 = vld [vmem:[%s19829_s1 + $0x5f8] sm:$0xff] }
 0x2fa   :  { %7248 = vmatpush2.bf16.msra.mxu0 %v13000_v47  ;;  %7291 = vmatpush2.bf16.msra.mxu1 %v13128_v55  ;;  %v1067_v53 = vld [vmem:[%s19829_s1 + $0x1e70] sm:$0xff]  ;;  %v12976_v47 = vcombine.low %v935_v9, %v939_v23  ;;  %v12323_v9 = vcombine.high %v280_v40, %v284_v46  ;;  %v144_v23 = vld [vmem:[%s19829_s1 + $0x198] sm:$0xff] }
 0x2fb   :  { %7249 = vmatprep.subr.bf16.mxu0 %v12993_v61  ;;  %7292 = vmatprep.subr.bf16.mxu1 %v13121_v51  ;;  %v13105_v44 = vcombine.high %v1063_v3, %v1067_v53  ;;  %v927_v35 = vld [vmem:[%s19829_s1 + $0x1a10] sm:$0xff]  ;;  %v13104_v55 = vcombine.low %v1063_v3, %v1067_v53  ;;  %v148_v3 = vld [vmem:[%s19829_s1 + $0x1b8] sm:$0xff] }
 0x2fc   :  { %v931_v27 = vld [vmem:[%s19829_s1 + $0x1a30] sm:$0xff]  ;;  %v272_v53 = vld [vmem:[%s19829_s1 + $0x598] sm:$0xff] }
 0x2fd   :  { %v1055_v2 = vld [vmem:[%s19829_s1 + $0x1e10] sm:$0xff]  ;;  %v12969_v61 = vcombine.high %v927_v35, %v931_v27 }
 0x2fe   :  { %7250 = vmatpush2.bf16.msra.mxu0 %v12992_v5  ;;  %7293 = vmatpush2.bf16.msra.mxu1 %v13120_v28  ;;  %v1059_v11 = vld [vmem:[%s19829_s1 + $0x1e30] sm:$0xff]  ;;  %v12968_v5 = vcombine.low %v927_v35, %v931_v27  ;;  %v19848_v28 = vsub.s32 4, %v15570_v42  ;;  %v17300_v35 = vpop.f32.mrf.mxu0  ;;  %v12322_v27 = vcombine.low %v280_v40, %v284_v46 }
 0x2ff   :  { %7251 = vmatprep.subr.bf16.mxu0 %v12985_v10  ;;  %7294 = vmatprep.subr.bf16.mxu1 %v13113_v12  ;;  %v13097_v51 = vcombine.high %v1055_v2, %v1059_v11  ;;  %v13096_v10 = vcombine.low %v1055_v2, %v1059_v11  ;;  %v12195_v12 = vcombine.high %v152_v31, %v156_v14  ;;  %v17302_v11 = vpop.f32.mrf.mxu1 }
 0x300   :  { %v12187_v2 = vcombine.high %v144_v23, %v148_v3 }
 0x302   :  { %7252 = vmatpush2.bf16.msra.mxu0 %v12984_v39  ;;  %7295 = vmatpush2.bf16.msra.mxu1 %v13112_v36  ;;  %v276_v39 = vld [vmem:[%s19829_s1 + $0x5b8] sm:$0xff]  ;;  %v14600_v36 = vld [vmem:[%s19831_s2] sm:$0xff] }
 0x303   :  { %7253 = vmatprep.subr.bf16.mxu0 %v12977_v17  ;;  %7296 = vmatprep.subr.bf16.mxu1 %v13105_v44  ;;  %v1138_v17 = vrot.slane %v14600_v36, %v19848_v28  ;;  %v12194_v44 = vcombine.low %v152_v31, %v156_v14  ;;  %v264_v31 = vld [vmem:[%s19829_s1 + $0x558] sm:$0xff] }
 0x304   :  { %v268_v14 = vld [vmem:[%s19829_s1 + $0x578] sm:$0xff] }
 0x305   :  { %v12307_v54 = vcombine.high %v264_v31, %v268_v14 }
 0x306   :  { %7254 = vmatpush2.bf16.msra.mxu0 %v12976_v47  ;;  %7297 = vmatpush2.bf16.msra.mxu1 %v13104_v55  ;;  %v12315_v47 = vcombine.high %v272_v53, %v276_v39  ;;  %v136_v55 = vld [vmem:[%s19829_s1 + $0x158] sm:$0xff] }
 0x307   :  { %7255 = vmatprep.subr.bf16.mxu0 %v12969_v61  ;;  %7298 = vmatprep.subr.bf16.mxu1 %v13097_v51  ;;  %v140_v61 = vld [vmem:[%s19829_s1 + $0x178] sm:$0xff] }
 0x30a   :  { %7256 = vmatpush2.bf16.msra.mxu0 %v12968_v5  ;;  %7299 = vmatpush2.bf16.msra.mxu1 %v13096_v10  ;;  %v12186_v5 = vcombine.low %v144_v23, %v148_v3  ;;  %v132_v23 = vld [vmem:[%s19829_s1 + $0x138] sm:$0xff] }
 0x30b   :  { %7311 = vmatprep.subr.bf16.mxu0 %v12195_v12  ;;  %7354 = vmatprep.subr.bf16.mxu1 %v12323_v9  ;;  %v12314_v12 = vcombine.low %v272_v53, %v276_v39  ;;  %v12179_v9 = vcombine.high %v136_v55, %v140_v61  ;;  %v256_v53 = vld [vmem:[%s19829_s1 + $0x518] sm:$0xff] }
 0x30c   :  { %v260_v39 = vld [vmem:[%s19829_s1 + $0x538] sm:$0xff] }
 0x30d   :  { %v7001_v51 = vpop.f32.mrf.mxu0  ;;  %7258 = vmatmul.mubr.bf16.vlgmr.msra.gmra.mxu0 %v15608_v4  ;;  %v7044_v46 = vpop.f32.mrf.mxu1  ;;  %7301 = vmatmul.mubr.bf16.vlgmr.msra.gmra.mxu1 %v15617_v8 }
 0x30e   :  { %v7002_v40 = vadd.f32 %v7001_v51, %v1138_v17  ;;  %7312 = vmatpush1.bf16.msra.mxu0 %v12194_v44  ;;  %7355 = vmatpush1.bf16.msra.mxu1 %v12322_v27  ;;  %v128_v51 = vld [vmem:[%s19829_s1 + $0x118] sm:$0xff]  ;;  %v12178_v27 = vcombine.low %v136_v55, %v140_v61 }
 0x30f   :  { %v17318_v10 = vpop.f32.mrf.mxu0  ;;  %7313 = vmatprep.subr.bf16.mxu0 %v12187_v2  ;;  %v17322_v28 = vpop.f32.mrf.mxu1  ;;  %7356 = vmatprep.subr.bf16.mxu1 %v12315_v47  ;;  %v12306_v47 = vcombine.low %v264_v31, %v268_v14  ;;  %v252_v55 = vld [vmem:[%s19829_s1 + $0x4f8] sm:$0xff]  ;;  %v12170_v61 = vcombine.low %v128_v51, %v132_v23 }
 0x310   :  { %v17320_v36 = vadd.f32 %v7044_v46, %v7002_v40  ;;  %19863 = vst [vmem:[#allocation14_spill] sm:$0xff] %v17322_v28  ;;  %7343 = vmatprep.mubr.bf16.mxu0 %v14772_v58  ;;  %7386 = vmatprep.mubr.bf16.mxu1 %v14786_v63  ;;  %v12171_v40 = vcombine.high %v128_v51, %v132_v23  ;;  %v120_v28 = vld [vmem:[%s19829_s1 + $0xd8] sm:$0xff] }
 0x311   :  { %v7005_v3 = vpop.f32.mrf.mxu0  ;;  %v7048_v2 = vpop.f32.mrf.mxu1  ;;  %v12299_v46 = vcombine.high %v256_v53, %v260_v39  ;;  %v124_v63 = vld [vmem:[%s19829_s1 + $0xf8] sm:$0xff] }
 0x312   :  { %v7006_v44 = vadd.f32 %v7005_v3, %v1138_v17  ;;  %7314 = vmatpush1.bf16.msra.mxu0 %v12186_v5  ;;  %7357 = vmatpush1.bf16.msra.mxu1 %v12314_v12  ;;  %v248_v17 = vld [vmem:[%s19829_s1 + $0x4d8] sm:$0xff]  ;;  %v12163_v31 = vcombine.high %v120_v28, %v124_v63  ;;  %v12162_v23 = vcombine.low %v120_v28, %v124_v63 }
 0x313   :  { %7315 = vmatprep.subr.bf16.mxu0 %v12179_v9  ;;  %7358 = vmatprep.subr.bf16.mxu1 %v12307_v54  ;;  %v12298_v54 = vcombine.low %v256_v53, %v260_v39  ;;  %v12291_v14 = vcombine.high %v248_v17, %v252_v55  ;;  %v112_v5 = vld [vmem:[%s19829_s1 + $0x98] sm:$0xff]  ;;  %v12290_v3 = vcombine.low %v248_v17, %v252_v55 }
 0x314   :  { %v17338_v58 = vadd.f32 %v7048_v2, %v7006_v44  ;;  %v116_v12 = vld [vmem:[%s19829_s1 + $0xb8] sm:$0xff] }
 0x315   :  { %v240_v9 = vld [vmem:[%s19829_s1 + $0x498] sm:$0xff]  ;;  %v12155_v53 = vcombine.high %v112_v5, %v116_v12 }
 0x316   :  { %7316 = vmatpush1.bf16.msra.mxu0 %v12178_v27  ;;  %7359 = vmatpush1.bf16.msra.mxu1 %v12306_v47  ;;  %v244_v51 = vld [vmem:[%s19829_s1 + $0x4b8] sm:$0xff]  ;;  %v12154_v47 = vcombine.low %v112_v5, %v116_v12 }
 0x317   :  { %7317 = vmatprep.subr.bf16.mxu0 %v12171_v40  ;;  %7360 = vmatprep.subr.bf16.mxu1 %v12299_v46  ;;  %v12283_v39 = vcombine.high %v240_v9, %v244_v51  ;;  %v104_v44 = vld [vmem:[%s19829_s1 + $0x58] sm:$0xff]  ;;  %v12282_v40 = vcombine.low %v240_v9, %v244_v51 }
 0x318   :  { %v108_v27 = vld [vmem:[%s19829_s1 + $0x78] sm:$0xff] }
 0x319   :  { %v232_v2 = vld [vmem:[%s19829_s1 + $0x458] sm:$0xff]  ;;  %v12147_v46 = vcombine.high %v104_v44, %v108_v27 }
 0x31a   :  { %7318 = vmatpush1.bf16.msra.mxu0 %v12170_v61  ;;  %7361 = vmatpush1.bf16.msra.mxu1 %v12298_v54  ;;  %v236_v28 = vld [vmem:[%s19829_s1 + $0x478] sm:$0xff] }
 0x31b   :  { %7319 = vmatprep.subr.bf16.mxu0 %v12163_v31  ;;  %7362 = vmatprep.subr.bf16.mxu1 %v12291_v14  ;;  %v12275_v63 = vcombine.high %v232_v2, %v236_v28  ;;  %v96_v17 = vld [vmem:[%s19829_s1 + $0x18] sm:$0xff]  ;;  %v12146_v31 = vcombine.low %v104_v44, %v108_v27  ;;  %v12274_v14 = vcombine.low %v232_v2, %v236_v28 }
 0x31c   :  { %v100_v55 = vld [vmem:[%s19829_s1 + $0x38] sm:$0xff] }
 0x31d   :  { %v224_v61 = vld [vmem:[%s19829_s1 + $0x418] sm:$0xff]  ;;  %v12139_v5 = vcombine.high %v96_v17, %v100_v55 }
 0x31e   :  { %7320 = vmatpush1.bf16.msra.mxu0 %v12162_v23  ;;  %7363 = vmatpush1.bf16.msra.mxu1 %v12290_v3  ;;  %v228_v54 = vld [vmem:[%s19829_s1 + $0x438] sm:$0xff] }
 0x31f   :  { %7321 = vmatprep.subr.bf16.mxu0 %v12155_v53  ;;  %7364 = vmatprep.subr.bf16.mxu1 %v12283_v39  ;;  %v12267_v12 = vcombine.high %v224_v61, %v228_v54  ;;  %v216_v9 = vld [vmem:[%s19829_s1 + $0x3d8] sm:$0xff]  ;;  %v12138_v53 = vcombine.low %v96_v17, %v100_v55  ;;  %v12266_v39 = vcombine.low %v224_v61, %v228_v54 }
 0x320   :  { %v220_v51 = vld [vmem:[%s19829_s1 + $0x3f8] sm:$0xff] }
 0x321   :  { %v344_v23 = vld [vmem:[%s19829_s1 + $0x7d8] sm:$0xff]  ;;  %v12259_v44 = vcombine.high %v216_v9, %v220_v51 }
 0x322   :  { %7322 = vmatpush1.bf16.msra.mxu0 %v12154_v47  ;;  %7365 = vmatpush1.bf16.msra.mxu1 %v12282_v40  ;;  %v348_v3 = vld [vmem:[%s19829_s1 + $0x7f8] sm:$0xff] }
 0x323   :  { %7323 = vmatprep.subr.bf16.mxu0 %v12147_v46  ;;  %7366 = vmatprep.subr.bf16.mxu1 %v12275_v63  ;;  %v12387_v27 = vcombine.high %v344_v23, %v348_v3  ;;  %v208_v2 = vld [vmem:[%s19829_s1 + $0x398] sm:$0xff]  ;;  %v12258_v46 = vcombine.low %v216_v9, %v220_v51  ;;  %v12386_v63 = vcombine.low %v344_v23, %v348_v3 }
 0x324   :  { %v212_v28 = vld [vmem:[%s19829_s1 + $0x3b8] sm:$0xff] }
 0x325   :  { %v336_v47 = vld [vmem:[%s19829_s1 + $0x798] sm:$0xff]  ;;  %v12251_v17 = vcombine.high %v208_v2, %v212_v28 }
 0x326   :  { %7324 = vmatpush1.bf16.msra.mxu0 %v12146_v31  ;;  %7367 = vmatpush1.bf16.msra.mxu1 %v12274_v14  ;;  %v340_v40 = vld [vmem:[%s19829_s1 + $0x7b8] sm:$0xff] }
 0x327   :  { %7325 = vmatprep.subr.bf16.mxu0 %v12139_v5  ;;  %7368 = vmatprep.subr.bf16.mxu1 %v12267_v12  ;;  %v12379_v55 = vcombine.high %v336_v47, %v340_v40  ;;  %v200_v61 = vld [vmem:[%s19829_s1 + $0x358] sm:$0xff]  ;;  %v12250_v5 = vcombine.low %v208_v2, %v212_v28  ;;  %v12378_v12 = vcombine.low %v336_v47, %v340_v40 }
 0x328   :  { %v204_v54 = vld [vmem:[%s19829_s1 + $0x378] sm:$0xff] }
 0x329   :  { %v328_v31 = vld [vmem:[%s19829_s1 + $0x758] sm:$0xff]  ;;  %v12243_v9 = vcombine.high %v200_v61, %v204_v54 }
 0x32a   :  { %7326 = vmatpush1.bf16.msra.mxu0 %v12138_v53  ;;  %7369 = vmatpush1.bf16.msra.mxu1 %v12266_v39  ;;  %v332_v14 = vld [vmem:[%s19829_s1 + $0x778] sm:$0xff] }
 0x32b   :  { %7327 = vmatprep.subr.bf16.mxu0 %v12259_v44  ;;  %7370 = vmatprep.subr.bf16.mxu1 %v12387_v27  ;;  %v12371_v51 = vcombine.high %v328_v31, %v332_v14  ;;  %v192_v23 = vld [vmem:[%s19829_s1 + $0x318] sm:$0xff]  ;;  %v12242_v44 = vcombine.low %v200_v61, %v204_v54  ;;  %v12370_v27 = vcombine.low %v328_v31, %v332_v14 }
 0x32c   :  { %v196_v3 = vld [vmem:[%s19829_s1 + $0x338] sm:$0xff] }
 0x32d   :  { %v320_v53 = vld [vmem:[%s19829_s1 + $0x718] sm:$0xff]  ;;  %v12235_v2 = vcombine.high %v192_v23, %v196_v3 }
 0x32e   :  { %7328 = vmatpush2.bf16.msra.mxu0 %v12258_v46  ;;  %7371 = vmatpush2.bf16.msra.mxu1 %v12386_v63  ;;  %v324_v39 = vld [vmem:[%s19829_s1 + $0x738] sm:$0xff] }
 0x32f   :  { %7329 = vmatprep.subr.bf16.mxu0 %v12251_v17  ;;  %7372 = vmatprep.subr.bf16.mxu1 %v12379_v55  ;;  %v12363_v28 = vcombine.high %v320_v53, %v324_v39  ;;  %v184_v47 = vld [vmem:[%s19829_s1 + $0x2d8] sm:$0xff]  ;;  %v12234_v17 = vcombine.low %v192_v23, %v196_v3  ;;  %v12362_v55 = vcombine.low %v320_v53, %v324_v39 }
 0x330   :  { %v188_v40 = vld [vmem:[%s19829_s1 + $0x2f8] sm:$0xff] }
 0x331   :  { %v312_v46 = vld [vmem:[%s19829_s1 + $0x6d8] sm:$0xff]  ;;  %v12227_v61 = vcombine.high %v184_v47, %v188_v40 }
 0x332   :  { %7330 = vmatpush2.bf16.msra.mxu0 %v12250_v5  ;;  %7373 = vmatpush2.bf16.msra.mxu1 %v12378_v12  ;;  %v316_v63 = vld [vmem:[%s19829_s1 + $0x6f8] sm:$0xff] }
 0x333   :  { %7331 = vmatprep.subr.bf16.mxu0 %v12243_v9  ;;  %7374 = vmatprep.subr.bf16.mxu1 %v12371_v51  ;;  %v12355_v54 = vcombine.high %v312_v46, %v316_v63  ;;  %v176_v31 = vld [vmem:[%s19829_s1 + $0x298] sm:$0xff]  ;;  %v12226_v9 = vcombine.low %v184_v47, %v188_v40  ;;  %v12354_v51 = vcombine.low %v312_v46, %v316_v63 }
 0x334   :  { %v180_v14 = vld [vmem:[%s19829_s1 + $0x2b8] sm:$0xff] }
 0x335   :  { %v304_v5 = vld [vmem:[%s19829_s1 + $0x698] sm:$0xff]  ;;  %v12219_v23 = vcombine.high %v176_v31, %v180_v14 }
 0x336   :  { %7332 = vmatpush2.bf16.msra.mxu0 %v12242_v44  ;;  %7375 = vmatpush2.bf16.msra.mxu1 %v12370_v27  ;;  %v308_v12 = vld [vmem:[%s19829_s1 + $0x6b8] sm:$0xff] }
 0x337   :  { %7333 = vmatprep.subr.bf16.mxu0 %v12235_v2  ;;  %7376 = vmatprep.subr.bf16.mxu1 %v12363_v28  ;;  %v12347_v3 = vcombine.high %v304_v5, %v308_v12  ;;  %v168_v53 = vld [vmem:[%s19829_s1 + $0x258] sm:$0xff]  ;;  %v12218_v2 = vcombine.low %v176_v31, %v180_v14  ;;  %v12346_v28 = vcombine.low %v304_v5, %v308_v12 }
 0x338   :  { %v172_v39 = vld [vmem:[%s19829_s1 + $0x278] sm:$0xff] }
 0x339   :  { %v296_v44 = vld [vmem:[%s19829_s1 + $0x658] sm:$0xff]  ;;  %v12211_v47 = vcombine.high %v168_v53, %v172_v39 }
 0x33a   :  { %7334 = vmatpush2.bf16.msra.mxu0 %v12234_v17  ;;  %7377 = vmatpush2.bf16.msra.mxu1 %v12362_v55  ;;  %v300_v27 = vld [vmem:[%s19829_s1 + $0x678] sm:$0xff] }
 0x33b   :  { %7335 = vmatprep.subr.bf16.mxu0 %v12227_v61  ;;  %7378 = vmatprep.subr.bf16.mxu1 %v12355_v54  ;;  %v12339_v40 = vcombine.high %v296_v44, %v300_v27  ;;  %v160_v46 = vld [vmem:[%s19829_s1 + $0x218] sm:$0xff]  ;;  %v12210_v61 = vcombine.low %v168_v53, %v172_v39  ;;  %v12338_v54 = vcombine.low %v296_v44, %v300_v27 }
 0x33c   :  { %v164_v63 = vld [vmem:[%s19829_s1 + $0x238] sm:$0xff] }
 0x33d   :  { %v288_v17 = vld [vmem:[%s19829_s1 + $0x618] sm:$0xff]  ;;  %v12203_v31 = vcombine.high %v160_v46, %v164_v63 }
 0x33e   :  { %7336 = vmatpush2.bf16.msra.mxu0 %v12226_v9  ;;  %7379 = vmatpush2.bf16.msra.mxu1 %v12354_v51  ;;  %v292_v55 = vld [vmem:[%s19829_s1 + $0x638] sm:$0xff] }
 0x33f   :  { %7337 = vmatprep.subr.bf16.mxu0 %v12219_v23  ;;  %7380 = vmatprep.subr.bf16.mxu1 %v12347_v3  ;;  %v12331_v14 = vcombine.high %v288_v17, %v292_v55  ;;  %v408_v5 = vld [vmem:[%s19829_s1 + $0x9d8] sm:$0xff]  ;;  %v12202_v23 = vcombine.low %v160_v46, %v164_v63  ;;  %v12330_v3 = vcombine.low %v288_v17, %v292_v55  ;;  %v17510_v17 = vpop.f32.mrf.mxu1 }
 0x340   :  { %v412_v12 = vld [vmem:[%s19829_s1 + $0x9f8] sm:$0xff]  ;;  %19864 = vst [vmem:[#allocation15_spill] sm:$0xff] %v17510_v17 }
 0x341   :  { %v536_v9 = vld [vmem:[%s19829_s1 + $0xdd8] sm:$0xff]  ;;  %v12451_v53 = vcombine.high %v408_v5, %v412_v12 }
 0x342   :  { %7338 = vmatpush2.bf16.msra.mxu0 %v12218_v2  ;;  %7381 = vmatpush2.bf16.msra.mxu1 %v12346_v28  ;;  %v540_v51 = vld [vmem:[%s19829_s1 + $0xdf8] sm:$0xff] }
 0x343   :  { %7339 = vmatprep.subr.bf16.mxu0 %v12211_v47  ;;  %7382 = vmatprep.subr.bf16.mxu1 %v12339_v40  ;;  %v12579_v39 = vcombine.high %v536_v9, %v540_v51  ;;  %v400_v44 = vld [vmem:[%s19829_s1 + $0x998] sm:$0xff]  ;;  %v12450_v47 = vcombine.low %v408_v5, %v412_v12  ;;  %v17508_v40 = vpop.f32.mrf.mxu0  ;;  %v12578_v46 = vcombine.low %v536_v9, %v540_v51 }
 0x344   :  { %v404_v27 = vld [vmem:[%s19829_s1 + $0x9b8] sm:$0xff] }
 0x345   :  { %v528_v2 = vld [vmem:[%s19829_s1 + $0xd98] sm:$0xff]  ;;  %v12443_v63 = vcombine.high %v400_v44, %v404_v27  ;;  %v12442_v51 = vcombine.low %v400_v44, %v404_v27 }
 0x346   :  { %7340 = vmatpush2.bf16.msra.mxu0 %v12210_v61  ;;  %7383 = vmatpush2.bf16.msra.mxu1 %v12338_v54  ;;  %v532_v28 = vld [vmem:[%s19829_s1 + $0xdb8] sm:$0xff] }
 0x347   :  { %7341 = vmatprep.subr.bf16.mxu0 %v12203_v31  ;;  %7384 = vmatprep.subr.bf16.mxu1 %v12331_v14  ;;  %v12571_v55 = vcombine.high %v528_v2, %v532_v28  ;;  %v392_v61 = vld [vmem:[%s19829_s1 + $0x958] sm:$0xff] }
 0x348   :  { %v396_v54 = vld [vmem:[%s19829_s1 + $0x978] sm:$0xff] }
 0x349   :  { %v520_v14 = vld [vmem:[%s19829_s1 + $0xd58] sm:$0xff] }
 0x34a   :  { %7342 = vmatpush2.bf16.msra.mxu0 %v12202_v23  ;;  %7385 = vmatpush2.bf16.msra.mxu1 %v12330_v3  ;;  %v524_v5 = vld [vmem:[%s19829_s1 + $0xd78] sm:$0xff]  ;;  %v12435_v3 = vcombine.high %v392_v61, %v396_v54 }
 0x34b   :  { %7397 = vmatprep.subr.bf16.mxu0 %v12451_v53  ;;  %7440 = vmatprep.subr.bf16.mxu1 %v12579_v39  ;;  %v12563_v17 = vcombine.high %v520_v14, %v524_v5  ;;  %v512_v27 = vld [vmem:[%s19829_s1 + $0xd18] sm:$0xff] }
 0x34d   :  { %v7087_v31 = vpop.f32.mrf.mxu0  ;;  %7344 = vmatmul.mubr.bf16.vlgmr.msra.gmra.mxu0 %v14919_v21  ;;  %v7130_v9 = vpop.f32.mrf.mxu1  ;;  %7387 = vmatmul.mubr.bf16.vlgmr.msra.gmra.mxu1 %v14930_v25  ;;  %v12570_v21 = vcombine.low %v528_v2, %v532_v28  ;;  %v388_v25 = vld [vmem:[%s19829_s1 + $0x938] sm:$0xff] }
 0x34e   :  { %v7088_v12 = vadd.f32 %v7087_v31, %v17320_v36  ;;  %7398 = vmatpush1.bf16.msra.mxu0 %v12450_v47  ;;  %7441 = vmatpush1.bf16.msra.mxu1 %v12578_v46  ;;  %v384_v36 = vld [vmem:[%s19829_s1 + $0x918] sm:$0xff]  ;;  %v12434_v47 = vcombine.low %v392_v61, %v396_v54 }
 0x34f   :  { %v17527_v23 = vpop.f32.mrf.mxu0  ;;  %7399 = vmatprep.subr.bf16.mxu0 %v12443_v63  ;;  %v17531_v39 = vpop.f32.mrf.mxu1  ;;  %7442 = vmatprep.subr.bf16.mxu1 %v12571_v55  ;;  %v516_v2 = vld [vmem:[%s19829_s1 + $0xd38] sm:$0xff]  ;;  %v12562_v63 = vcombine.low %v520_v14, %v524_v5  ;;  %v12426_v54 = vcombine.low %v384_v36, %v388_v25 }
 0x350   :  { %v17529_v53 = vadd.f32 %v7130_v9, %v7088_v12  ;;  %7429 = vmatprep.mubr.bf16.mxu0 %v14944_v34  ;;  %7472 = vmatprep.mubr.bf16.mxu1 %v14953_v37  ;;  %v12427_v34 = vcombine.high %v384_v36, %v388_v25  ;;  %v12555_v31 = vcombine.high %v512_v27, %v516_v2  ;;  %v376_v12 = vld [vmem:[%s19829_s1 + $0x8d8] sm:$0xff] }
 0x351   :  { %v7091_v44 = vpop.f32.mrf.mxu0  ;;  %v7134_v46 = vpop.f32.mrf.mxu1  ;;  %v380_v37 = vld [vmem:[%s19829_s1 + $0x8f8] sm:$0xff] }
 0x352   :  { %v7092_v28 = vadd.f32 %v7091_v44, %v17338_v58  ;;  %7400 = vmatpush1.bf16.msra.mxu0 %v12442_v51  ;;  %7443 = vmatpush1.bf16.msra.mxu1 %v12570_v21  ;;  %v504_v58 = vld [vmem:[%s19829_s1 + $0xcd8] sm:$0xff]  ;;  %v12419_v14 = vcombine.high %v376_v12, %v380_v37  ;;  %v12418_v36 = vcombine.low %v376_v12, %v380_v37 }
 0x353   :  { %7401 = vmatprep.subr.bf16.mxu0 %v12435_v3  ;;  %7444 = vmatprep.subr.bf16.mxu1 %v12563_v17  ;;  %v508_v61 = vld [vmem:[%s19829_s1 + $0xcf8] sm:$0xff]  ;;  %v12554_v17 = vcombine.low %v512_v27, %v516_v2 }
 0x354   :  { %v17548_v55 = vadd.f32 %v7134_v46, %v7092_v28  ;;  %v12547_v5 = vcombine.high %v504_v58, %v508_v61  ;;  %v368_v9 = vld [vmem:[%s19829_s1 + $0x898] sm:$0xff]  ;;  %v12546_v25 = vcombine.low %v504_v58, %v508_v61 }
 0x355   :  { %v372_v51 = vld [vmem:[%s19829_s1 + $0x8b8] sm:$0xff] }
 0x356   :  { %7402 = vmatpush1.bf16.msra.mxu0 %v12434_v47  ;;  %7445 = vmatpush1.bf16.msra.mxu1 %v12562_v63  ;;  %v496_v21 = vld [vmem:[%s19829_s1 + $0xc98] sm:$0xff]  ;;  %v12411_v44 = vcombine.high %v368_v9, %v372_v51  ;;  %v12410_v63 = vcombine.low %v368_v9, %v372_v51 }
 0x357   :  { %7403 = vmatprep.subr.bf16.mxu0 %v12427_v34  ;;  %7446 = vmatprep.subr.bf16.mxu1 %v12555_v31  ;;  %v500_v3 = vld [vmem:[%s19829_s1 + $0xcb8] sm:$0xff] }
 0x358   :  { %v12539_v27 = vcombine.high %v496_v21, %v500_v3  ;;  %v360_v2 = vld [vmem:[%s19829_s1 + $0x858] sm:$0xff]  ;;  %v12538_v34 = vcombine.low %v496_v21, %v500_v3 }
 0x359   :  { %v364_v28 = vld [vmem:[%s19829_s1 + $0x878] sm:$0xff] }
 0x35a   :  { %7404 = vmatpush1.bf16.msra.mxu0 %v12426_v54  ;;  %7447 = vmatpush1.bf16.msra.mxu1 %v12554_v17  ;;  %v488_v47 = vld [vmem:[%s19829_s1 + $0xc58] sm:$0xff]  ;;  %v12403_v31 = vcombine.high %v360_v2, %v364_v28  ;;  %v12402_v17 = vcombine.low %v360_v2, %v364_v28 }
 0x35b   :  { %7405 = vmatprep.subr.bf16.mxu0 %v12419_v14  ;;  %7448 = vmatprep.subr.bf16.mxu1 %v12547_v5  ;;  %v492_v46 = vld [vmem:[%s19829_s1 + $0xc78] sm:$0xff] }
 0x35c   :  { %v12531_v12 = vcombine.high %v488_v47, %v492_v46  ;;  %v352_v37 = vld [vmem:[%s19829_s1 + $0x818] sm:$0xff]  ;;  %v12530_v14 = vcombine.low %v488_v47, %v492_v46 }
 0x35d   :  { %v356_v58 = vld [vmem:[%s19829_s1 + $0x838] sm:$0xff] }
 0x35e   :  { %7406 = vmatpush1.bf16.msra.mxu0 %v12418_v36  ;;  %7449 = vmatpush1.bf16.msra.mxu1 %v12546_v25  ;;  %v480_v61 = vld [vmem:[%s19829_s1 + $0xc18] sm:$0xff]  ;;  %v12395_v5 = vcombine.high %v352_v37, %v356_v58  ;;  %v12394_v25 = vcombine.low %v352_v37, %v356_v58 }
 0x35f   :  { %7407 = vmatprep.subr.bf16.mxu0 %v12411_v44  ;;  %7450 = vmatprep.subr.bf16.mxu1 %v12539_v27  ;;  %v484_v54 = vld [vmem:[%s19829_s1 + $0xc38] sm:$0xff] }
 0x360   :  { %v12523_v9 = vcombine.high %v480_v61, %v484_v54  ;;  %v472_v51 = vld [vmem:[%s19829_s1 + $0xbd8] sm:$0xff]  ;;  %v12522_v44 = vcombine.low %v480_v61, %v484_v54 }
 0x361   :  { %v476_v21 = vld [vmem:[%s19829_s1 + $0xbf8] sm:$0xff] }
 0x362   :  { %7408 = vmatpush1.bf16.msra.mxu0 %v12410_v63  ;;  %7451 = vmatpush1.bf16.msra.mxu1 %v12538_v34  ;;  %v600_v3 = vld [vmem:[%s19829_s1 + $0xfd8] sm:$0xff]  ;;  %v12515_v27 = vcombine.high %v472_v51, %v476_v21  ;;  %v12514_v34 = vcombine.low %v472_v51, %v476_v21 }
 0x363   :  { %7409 = vmatprep.subr.bf16.mxu0 %v12403_v31  ;;  %7452 = vmatprep.subr.bf16.mxu1 %v12531_v12  ;;  %v604_v36 = vld [vmem:[%s19829_s1 + $0xff8] sm:$0xff] }
 0x364   :  { %v12643_v2 = vcombine.high %v600_v3, %v604_v36  ;;  %v464_v28 = vld [vmem:[%s19829_s1 + $0xb98] sm:$0xff]  ;;  %v12642_v31 = vcombine.low %v600_v3, %v604_v36 }
 0x365   :  { %v468_v47 = vld [vmem:[%s19829_s1 + $0xbb8] sm:$0xff] }
 0x366   :  { %7410 = vmatpush1.bf16.msra.mxu0 %v12402_v17  ;;  %7453 = vmatpush1.bf16.msra.mxu1 %v12530_v14  ;;  %v592_v46 = vld [vmem:[%s19829_s1 + $0xf98] sm:$0xff]  ;;  %v12507_v12 = vcombine.high %v464_v28, %v468_v47  ;;  %v12506_v14 = vcombine.low %v464_v28, %v468_v47 }
 0x367   :  { %7411 = vmatprep.subr.bf16.mxu0 %v12395_v5  ;;  %7454 = vmatprep.subr.bf16.mxu1 %v12523_v9  ;;  %v596_v63 = vld [vmem:[%s19829_s1 + $0xfb8] sm:$0xff] }
 0x368   :  { %v12635_v37 = vcombine.high %v592_v46, %v596_v63  ;;  %v456_v58 = vld [vmem:[%s19829_s1 + $0xb58] sm:$0xff]  ;;  %v12634_v5 = vcombine.low %v592_v46, %v596_v63 }
 0x369   :  { %v460_v61 = vld [vmem:[%s19829_s1 + $0xb78] sm:$0xff] }
 0x36a   :  { %7412 = vmatpush1.bf16.msra.mxu0 %v12394_v25  ;;  %7455 = vmatpush1.bf16.msra.mxu1 %v12522_v44  ;;  %v584_v54 = vld [vmem:[%s19829_s1 + $0xf58] sm:$0xff]  ;;  %v12499_v9 = vcombine.high %v456_v58, %v460_v61  ;;  %v12498_v44 = vcombine.low %v456_v58, %v460_v61 }
 0x36b   :  { %7413 = vmatprep.subr.bf16.mxu0 %v12515_v27  ;;  %7456 = vmatprep.subr.bf16.mxu1 %v12643_v2  ;;  %v588_v17 = vld [vmem:[%s19829_s1 + $0xf78] sm:$0xff] }
 0x36c   :  { %v12627_v51 = vcombine.high %v584_v54, %v588_v17  ;;  %v448_v21 = vld [vmem:[%s19829_s1 + $0xb18] sm:$0xff]  ;;  %v12626_v27 = vcombine.low %v584_v54, %v588_v17 }
 0x36d   :  { %v452_v3 = vld [vmem:[%s19829_s1 + $0xb38] sm:$0xff] }
 0x36e   :  { %7414 = vmatpush2.bf16.msra.mxu0 %v12514_v34  ;;  %7457 = vmatpush2.bf16.msra.mxu1 %v12642_v31  ;;  %v576_v36 = vld [vmem:[%s19829_s1 + $0xf18] sm:$0xff]  ;;  %v12491_v2 = vcombine.high %v448_v21, %v452_v3  ;;  %v12490_v31 = vcombine.low %v448_v21, %v452_v3 }
 0x36f   :  { %7415 = vmatprep.subr.bf16.mxu0 %v12507_v12  ;;  %7458 = vmatprep.subr.bf16.mxu1 %v12635_v37  ;;  %v580_v25 = vld [vmem:[%s19829_s1 + $0xf38] sm:$0xff] }
 0x370   :  { %v12619_v28 = vcombine.high %v576_v36, %v580_v25  ;;  %v440_v47 = vld [vmem:[%s19829_s1 + $0xad8] sm:$0xff]  ;;  %v12618_v12 = vcombine.low %v576_v36, %v580_v25 }
 0x371   :  { %v444_v46 = vld [vmem:[%s19829_s1 + $0xaf8] sm:$0xff] }
 0x372   :  { %7416 = vmatpush2.bf16.msra.mxu0 %v12506_v14  ;;  %7459 = vmatpush2.bf16.msra.mxu1 %v12634_v5  ;;  %v568_v63 = vld [vmem:[%s19829_s1 + $0xed8] sm:$0xff]  ;;  %v12483_v37 = vcombine.high %v440_v47, %v444_v46  ;;  %v12482_v5 = vcombine.low %v440_v47, %v444_v46 }
 0x373   :  { %7417 = vmatprep.subr.bf16.mxu0 %v12499_v9  ;;  %7460 = vmatprep.subr.bf16.mxu1 %v12627_v51  ;;  %v572_v34 = vld [vmem:[%s19829_s1 + $0xef8] sm:$0xff] }
 0x374   :  { %v12611_v58 = vcombine.high %v568_v63, %v572_v34  ;;  %v432_v61 = vld [vmem:[%s19829_s1 + $0xa98] sm:$0xff]  ;;  %v12610_v9 = vcombine.low %v568_v63, %v572_v34 }
 0x375   :  { %v436_v54 = vld [vmem:[%s19829_s1 + $0xab8] sm:$0xff] }
 0x376   :  { %7418 = vmatpush2.bf16.msra.mxu0 %v12498_v44  ;;  %7461 = vmatpush2.bf16.msra.mxu1 %v12626_v27  ;;  %v560_v17 = vld [vmem:[%s19829_s1 + $0xe98] sm:$0xff]  ;;  %v12475_v51 = vcombine.high %v432_v61, %v436_v54  ;;  %v12474_v27 = vcombine.low %v432_v61, %v436_v54 }
 0x377   :  { %7419 = vmatprep.subr.bf16.mxu0 %v12491_v2  ;;  %7462 = vmatprep.subr.bf16.mxu1 %v12619_v28  ;;  %v564_v14 = vld [vmem:[%s19829_s1 + $0xeb8] sm:$0xff] }
 0x378   :  { %v12603_v21 = vcombine.high %v560_v17, %v564_v14  ;;  %v424_v3 = vld [vmem:[%s19829_s1 + $0xa58] sm:$0xff]  ;;  %v12602_v2 = vcombine.low %v560_v17, %v564_v14 }
 0x379   :  { %v428_v36 = vld [vmem:[%s19829_s1 + $0xa78] sm:$0xff] }
 0x37a   :  { %7420 = vmatpush2.bf16.msra.mxu0 %v12490_v31  ;;  %7463 = vmatpush2.bf16.msra.mxu1 %v12618_v12  ;;  %v552_v25 = vld [vmem:[%s19829_s1 + $0xe58] sm:$0xff]  ;;  %v12467_v28 = vcombine.high %v424_v3, %v428_v36  ;;  %v12466_v12 = vcombine.low %v424_v3, %v428_v36 }
 0x37b   :  { %7421 = vmatprep.subr.bf16.mxu0 %v12483_v37  ;;  %7464 = vmatprep.subr.bf16.mxu1 %v12611_v58  ;;  %v556_v44 = vld [vmem:[%s19829_s1 + $0xe78] sm:$0xff] }
 0x37c   :  { %v12595_v47 = vcombine.high %v552_v25, %v556_v44  ;;  %v416_v46 = vld [vmem:[%s19829_s1 + $0xa18] sm:$0xff]  ;;  %v12594_v37 = vcombine.low %v552_v25, %v556_v44 }
 0x37d   :  { %v420_v63 = vld [vmem:[%s19829_s1 + $0xa38] sm:$0xff] }
 0x37e   :  { %7422 = vmatpush2.bf16.msra.mxu0 %v12482_v5  ;;  %7465 = vmatpush2.bf16.msra.mxu1 %v12610_v9  ;;  %v544_v34 = vld [vmem:[%s19829_s1 + $0xe18] sm:$0xff]  ;;  %v12459_v58 = vcombine.high %v416_v46, %v420_v63  ;;  %v12458_v9 = vcombine.low %v416_v46, %v420_v63 }
 0x37f   :  { %7423 = vmatprep.subr.bf16.mxu0 %v12475_v51  ;;  %7466 = vmatprep.subr.bf16.mxu1 %v12603_v21  ;;  %v548_v31 = vld [vmem:[%s19829_s1 + $0xe38] sm:$0xff] }
 0x380   :  { %v12587_v61 = vcombine.high %v544_v34, %v548_v31  ;;  %v664_v54 = vld [vmem:[%s19829_s1 + $0x11d8] sm:$0xff]  ;;  %v12586_v51 = vcombine.low %v544_v34, %v548_v31  ;;  %v17726_v31 = vpop.f32.mrf.mxu1 }
 0x381   :  { %v668_v17 = vld [vmem:[%s19829_s1 + $0x11f8] sm:$0xff] }
 0x382   :  { %7424 = vmatpush2.bf16.msra.mxu0 %v12474_v27  ;;  %7467 = vmatpush2.bf16.msra.mxu1 %v12602_v2  ;;  %v792_v14 = vld [vmem:[%s19829_s1 + $0x15d8] sm:$0xff]  ;;  %v12707_v21 = vcombine.high %v664_v54, %v668_v17  ;;  %v12706_v2 = vcombine.low %v664_v54, %v668_v17 }
 0x383   :  { %7425 = vmatprep.subr.bf16.mxu0 %v12467_v28  ;;  %7468 = vmatprep.subr.bf16.mxu1 %v12595_v47  ;;  %v796_v5 = vld [vmem:[%s19829_s1 + $0x15f8] sm:$0xff]  ;;  %v17718_v28 = vpop.f32.mrf.mxu0 }
 0x384   :  { %v12835_v3 = vcombine.high %v792_v14, %v796_v5  ;;  %v656_v36 = vld [vmem:[%s19829_s1 + $0x1198] sm:$0xff]  ;;  %v12834_v47 = vcombine.low %v792_v14, %v796_v5 }
 0x385   :  { %v660_v25 = vld [vmem:[%s19829_s1 + $0x11b8] sm:$0xff] }
 0x386   :  { %7426 = vmatpush2.bf16.msra.mxu0 %v12466_v12  ;;  %7469 = vmatpush2.bf16.msra.mxu1 %v12594_v37  ;;  %v784_v44 = vld [vmem:[%s19829_s1 + $0x1598] sm:$0xff]  ;;  %v12699_v46 = vcombine.high %v656_v36, %v660_v25  ;;  %v12698_v14 = vcombine.low %v656_v36, %v660_v25 }
 0x387   :  { %7427 = vmatprep.subr.bf16.mxu0 %v12459_v58  ;;  %7470 = vmatprep.subr.bf16.mxu1 %v12587_v61  ;;  %v788_v27 = vld [vmem:[%s19829_s1 + $0x15b8] sm:$0xff] }
 0x388   :  { %v648_v63 = vld [vmem:[%s19829_s1 + $0x1158] sm:$0xff]  ;;  %v12827_v12 = vcombine.high %v784_v44, %v788_v27 }
 0x389   :  { %v652_v34 = vld [vmem:[%s19829_s1 + $0x1178] sm:$0xff] }
 0x38a   :  { %7428 = vmatpush2.bf16.msra.mxu0 %v12458_v9  ;;  %7471 = vmatpush2.bf16.msra.mxu1 %v12586_v51  ;;  %v776_v37 = vld [vmem:[%s19829_s1 + $0x1558] sm:$0xff]  ;;  %v12826_v51 = vcombine.low %v784_v44, %v788_v27  ;;  %v12690_v27 = vcombine.low %v648_v63, %v652_v34 }
 0x38b   :  { %7483 = vmatprep.subr.bf16.mxu0 %v12707_v21  ;;  %7526 = vmatprep.subr.bf16.mxu1 %v12835_v3  ;;  %v780_v61 = vld [vmem:[%s19829_s1 + $0x1578] sm:$0xff]  ;;  %v12691_v21 = vcombine.high %v648_v63, %v652_v34 }
 0x38c   :  { %v640_v5 = vld [vmem:[%s19829_s1 + $0x1118] sm:$0xff] }
 0x38d   :  { %v7173_v58 = vpop.f32.mrf.mxu0  ;;  %7430 = vmatmul.mubr.bf16.vlgmr.msra.gmra.mxu0 %v15147_v45  ;;  %v7216_v17 = vpop.f32.mrf.mxu1  ;;  %7473 = vmatmul.mubr.bf16.vlgmr.msra.gmra.mxu1 %v15158_v49  ;;  %v644_v9 = vld [vmem:[%s19829_s1 + $0x1138] sm:$0xff]  ;;  %v12819_v49 = vcombine.high %v776_v37, %v780_v61 }
 0x38e   :  { %v7174_v54 = vadd.f32 %v7173_v58, %v17529_v53  ;;  %7484 = vmatpush1.bf16.msra.mxu0 %v12706_v2  ;;  %7527 = vmatpush1.bf16.msra.mxu1 %v12834_v47  ;;  %v768_v25 = vld [vmem:[%s19829_s1 + $0x1518] sm:$0xff]  ;;  %v12683_v58 = vcombine.high %v640_v5, %v644_v9  ;;  %v12682_v34 = vcombine.low %v640_v5, %v644_v9 }
 0x38f   :  { %v17743_v45 = vpop.f32.mrf.mxu0  ;;  %7485 = vmatprep.subr.bf16.mxu0 %v12699_v46  ;;  %v17747_v3 = vpop.f32.mrf.mxu1  ;;  %7528 = vmatprep.subr.bf16.mxu1 %v12827_v12  ;;  %v772_v2 = vld [vmem:[%s19829_s1 + $0x1538] sm:$0xff]  ;;  %v12818_v12 = vcombine.low %v776_v37, %v780_v61 }
 0x390   :  { %v17745_v53 = vadd.f32 %v7216_v17, %v7174_v54  ;;  %7515 = vmatprep.mubr.bf16.mxu0 %v15172_v59  ;;  %7558 = vmatprep.mubr.bf16.mxu1 %v15181_v62  ;;  %v632_v47 = vld [vmem:[%s19829_s1 + $0x10d8] sm:$0xff]  ;;  %v12811_v62 = vcombine.high %v768_v25, %v772_v2  ;;  %v12810_v17 = vcombine.low %v768_v25, %v772_v2 }
 0x391   :  { %v7177_v36 = vpop.f32.mrf.mxu0  ;;  %v636_v59 = vld [vmem:[%s19829_s1 + $0x10f8] sm:$0xff]  ;;  %v7220_v46 = vpop.f32.mrf.mxu1 }
 0x392   :  { %v7178_v44 = vadd.f32 %v7177_v36, %v17548_v55  ;;  %7486 = vmatpush1.bf16.msra.mxu0 %v12698_v14  ;;  %7529 = vmatpush1.bf16.msra.mxu1 %v12826_v51  ;;  %v760_v55 = vld [vmem:[%s19829_s1 + $0x14d8] sm:$0xff]  ;;  %v12675_v14 = vcombine.high %v632_v47, %v636_v59  ;;  %v12674_v9 = vcombine.low %v632_v47, %v636_v59 }
 0x393   :  { %7487 = vmatprep.subr.bf16.mxu0 %v12691_v21  ;;  %7530 = vmatprep.subr.bf16.mxu1 %v12819_v49  ;;  %v764_v63 = vld [vmem:[%s19829_s1 + $0x14f8] sm:$0xff] }
 0x394   :  { %v17764_v54 = vadd.f32 %v7220_v46, %v7178_v44  ;;  %v624_v37 = vld [vmem:[%s19829_s1 + $0x1098] sm:$0xff]  ;;  %v12803_v21 = vcombine.high %v760_v55, %v764_v63  ;;  %v12802_v49 = vcombine.low %v760_v55, %v764_v63 }
 0x395   :  { %v628_v61 = vld [vmem:[%s19829_s1 + $0x10b8] sm:$0xff] }
 0x396   :  { %7488 = vmatpush1.bf16.msra.mxu0 %v12690_v27  ;;  %7531 = vmatpush1.bf16.msra.mxu1 %v12818_v12  ;;  %v752_v51 = vld [vmem:[%s19829_s1 + $0x1498] sm:$0xff]  ;;  %v12667_v36 = vcombine.high %v624_v37, %v628_v61  ;;  %v12666_v59 = vcombine.low %v624_v37, %v628_v61 }
 0x397   :  { %7489 = vmatprep.subr.bf16.mxu0 %v12683_v58  ;;  %7532 = vmatprep.subr.bf16.mxu1 %v12811_v62  ;;  %v756_v5 = vld [vmem:[%s19829_s1 + $0x14b8] sm:$0xff] }
 0x398   :  { %v616_v25 = vld [vmem:[%s19829_s1 + $0x1058] sm:$0xff]  ;;  %v12795_v27 = vcombine.high %v752_v51, %v756_v5  ;;  %v12794_v46 = vcombine.low %v752_v51, %v756_v5 }
 0x399   :  { %v620_v2 = vld [vmem:[%s19829_s1 + $0x1078] sm:$0xff] }
 0x39a   :  { %7490 = vmatpush1.bf16.msra.mxu0 %v12682_v34  ;;  %7533 = vmatpush1.bf16.msra.mxu1 %v12810_v17  ;;  %v744_v44 = vld [vmem:[%s19829_s1 + $0x1458] sm:$0xff]  ;;  %v12659_v12 = vcombine.high %v616_v25, %v620_v2  ;;  %v12658_v17 = vcombine.low %v616_v25, %v620_v2 }
 0x39b   :  { %7491 = vmatprep.subr.bf16.mxu0 %v12675_v14  ;;  %7534 = vmatprep.subr.bf16.mxu1 %v12803_v21  ;;  %v748_v47 = vld [vmem:[%s19829_s1 + $0x1478] sm:$0xff] }
 0x39c   :  { %v608_v58 = vld [vmem:[%s19829_s1 + $0x1018] sm:$0xff]  ;;  %v12787_v63 = vcombine.high %v744_v44, %v748_v47  ;;  %v12786_v14 = vcombine.low %v744_v44, %v748_v47 }
 0x39d   :  { %v612_v62 = vld [vmem:[%s19829_s1 + $0x1038] sm:$0xff] }
 0x39e   :  { %7492 = vmatpush1.bf16.msra.mxu0 %v12674_v9  ;;  %7535 = vmatpush1.bf16.msra.mxu1 %v12802_v49  ;;  %v736_v55 = vld [vmem:[%s19829_s1 + $0x1418] sm:$0xff]  ;;  %v12651_v37 = vcombine.high %v608_v58, %v612_v62  ;;  %v12650_v49 = vcombine.low %v608_v58, %v612_v62 }
 0x39f   :  { %7493 = vmatprep.subr.bf16.mxu0 %v12667_v36  ;;  %7536 = vmatprep.subr.bf16.mxu1 %v12795_v27  ;;  %v740_v34 = vld [vmem:[%s19829_s1 + $0x1438] sm:$0xff] }
 0x3a0   :  { %v728_v61 = vld [vmem:[%s19829_s1 + $0x13d8] sm:$0xff]  ;;  %v12779_v5 = vcombine.high %v736_v55, %v740_v34  ;;  %v12778_v36 = vcombine.low %v736_v55, %v740_v34 }
 0x3a1   :  { %v732_v51 = vld [vmem:[%s19829_s1 + $0x13f8] sm:$0xff] }
 0x3a2   :  { %7494 = vmatpush1.bf16.msra.mxu0 %v12666_v59  ;;  %7537 = vmatpush1.bf16.msra.mxu1 %v12794_v46  ;;  %v856_v21 = vld [vmem:[%s19829_s1 + $0x17d8] sm:$0xff]  ;;  %v12771_v25 = vcombine.high %v728_v61, %v732_v51  ;;  %v12770_v46 = vcombine.low %v728_v61, %v732_v51 }
 0x3a3   :  { %7495 = vmatprep.subr.bf16.mxu0 %v12659_v12  ;;  %7538 = vmatprep.subr.bf16.mxu1 %v12787_v63  ;;  %v860_v9 = vld [vmem:[%s19829_s1 + $0x17f8] sm:$0xff] }
 0x3a4   :  { %v720_v2 = vld [vmem:[%s19829_s1 + $0x1398] sm:$0xff]  ;;  %v12899_v47 = vcombine.high %v856_v21, %v860_v9  ;;  %v12898_v12 = vcombine.low %v856_v21, %v860_v9 }
 0x3a5   :  { %v724_v44 = vld [vmem:[%s19829_s1 + $0x13b8] sm:$0xff] }
 0x3a6   :  { %7496 = vmatpush1.bf16.msra.mxu0 %v12658_v17  ;;  %7539 = vmatpush1.bf16.msra.mxu1 %v12786_v14  ;;  %v848_v27 = vld [vmem:[%s19829_s1 + $0x1798] sm:$0xff]  ;;  %v12763_v58 = vcombine.high %v720_v2, %v724_v44  ;;  %v12762_v14 = vcombine.low %v720_v2, %v724_v44 }
 0x3a7   :  { %7497 = vmatprep.subr.bf16.mxu0 %v12651_v37  ;;  %7540 = vmatprep.subr.bf16.mxu1 %v12779_v5  ;;  %v852_v59 = vld [vmem:[%s19829_s1 + $0x17b8] sm:$0xff] }
 0x3a8   :  { %v712_v62 = vld [vmem:[%s19829_s1 + $0x1358] sm:$0xff]  ;;  %v12891_v34 = vcombine.high %v848_v27, %v852_v59  ;;  %v12890_v37 = vcombine.low %v848_v27, %v852_v59 }
 0x3a9   :  { %v716_v55 = vld [vmem:[%s19829_s1 + $0x1378] sm:$0xff] }
 0x3aa   :  { %7498 = vmatpush1.bf16.msra.mxu0 %v12650_v49  ;;  %7541 = vmatpush1.bf16.msra.mxu1 %v12778_v36  ;;  %v840_v63 = vld [vmem:[%s19829_s1 + $0x1758] sm:$0xff]  ;;  %v12755_v61 = vcombine.high %v712_v62, %v716_v55  ;;  %v12754_v36 = vcombine.low %v712_v62, %v716_v55 }
 0x3ab   :  { %7499 = vmatprep.subr.bf16.mxu0 %v12771_v25  ;;  %7542 = vmatprep.subr.bf16.mxu1 %v12899_v47  ;;  %v844_v17 = vld [vmem:[%s19829_s1 + $0x1778] sm:$0xff] }
 0x3ac   :  { %v704_v51 = vld [vmem:[%s19829_s1 + $0x1318] sm:$0xff]  ;;  %v12883_v9 = vcombine.high %v840_v63, %v844_v17  ;;  %v12882_v25 = vcombine.low %v840_v63, %v844_v17 }
 0x3ad   :  { %v708_v21 = vld [vmem:[%s19829_s1 + $0x1338] sm:$0xff] }
 0x3ae   :  { %7500 = vmatpush2.bf16.msra.mxu0 %v12770_v46  ;;  %7543 = vmatpush2.bf16.msra.mxu1 %v12898_v12  ;;  %v832_v5 = vld [vmem:[%s19829_s1 + $0x1718] sm:$0xff]  ;;  %v12747_v2 = vcombine.high %v704_v51, %v708_v21  ;;  %v12746_v12 = vcombine.low %v704_v51, %v708_v21 }
 0x3af   :  { %7501 = vmatprep.subr.bf16.mxu0 %v12763_v58  ;;  %7544 = vmatprep.subr.bf16.mxu1 %v12891_v34  ;;  %v836_v49 = vld [vmem:[%s19829_s1 + $0x1738] sm:$0xff] }
 0x3b0   :  { %v696_v44 = vld [vmem:[%s19829_s1 + $0x12d8] sm:$0xff]  ;;  %v12875_v59 = vcombine.high %v832_v5, %v836_v49  ;;  %v12874_v58 = vcombine.low %v832_v5, %v836_v49 }
 0x3b1   :  { %v700_v27 = vld [vmem:[%s19829_s1 + $0x12f8] sm:$0xff] }
 0x3b2   :  { %7502 = vmatpush2.bf16.msra.mxu0 %v12762_v14  ;;  %7545 = vmatpush2.bf16.msra.mxu1 %v12890_v37  ;;  %v824_v47 = vld [vmem:[%s19829_s1 + $0x16d8] sm:$0xff]  ;;  %v12739_v62 = vcombine.high %v696_v44, %v700_v27  ;;  %v12738_v37 = vcombine.low %v696_v44, %v700_v27 }
 0x3b3   :  { %7503 = vmatprep.subr.bf16.mxu0 %v12755_v61  ;;  %7546 = vmatprep.subr.bf16.mxu1 %v12883_v9  ;;  %v828_v46 = vld [vmem:[%s19829_s1 + $0x16f8] sm:$0xff] }
 0x3b4   :  { %v688_v55 = vld [vmem:[%s19829_s1 + $0x1298] sm:$0xff]  ;;  %v12867_v17 = vcombine.high %v824_v47, %v828_v46  ;;  %v12866_v61 = vcombine.low %v824_v47, %v828_v46 }
 0x3b5   :  { %v692_v63 = vld [vmem:[%s19829_s1 + $0x12b8] sm:$0xff] }
 0x3b6   :  { %7504 = vmatpush2.bf16.msra.mxu0 %v12754_v36  ;;  %7547 = vmatpush2.bf16.msra.mxu1 %v12882_v25  ;;  %v816_v34 = vld [vmem:[%s19829_s1 + $0x1698] sm:$0xff]  ;;  %v12731_v51 = vcombine.high %v688_v55, %v692_v63  ;;  %v12730_v25 = vcombine.low %v688_v55, %v692_v63 }
 0x3b7   :  { %7505 = vmatprep.subr.bf16.mxu0 %v12747_v2  ;;  %7548 = vmatprep.subr.bf16.mxu1 %v12875_v59  ;;  %v820_v14 = vld [vmem:[%s19829_s1 + $0x16b8] sm:$0xff] }
 0x3b8   :  { %v680_v21 = vld [vmem:[%s19829_s1 + $0x1258] sm:$0xff]  ;;  %v12859_v49 = vcombine.high %v816_v34, %v820_v14  ;;  %v12858_v2 = vcombine.low %v816_v34, %v820_v14 }
 0x3b9   :  { %v684_v5 = vld [vmem:[%s19829_s1 + $0x1278] sm:$0xff] }
 0x3ba   :  { %7506 = vmatpush2.bf16.msra.mxu0 %v12746_v12  ;;  %7549 = vmatpush2.bf16.msra.mxu1 %v12874_v58  ;;  %v808_v9 = vld [vmem:[%s19829_s1 + $0x1658] sm:$0xff]  ;;  %v12723_v44 = vcombine.high %v680_v21, %v684_v5  ;;  %v12722_v58 = vcombine.low %v680_v21, %v684_v5 }
 0x3bb   :  { %7507 = vmatprep.subr.bf16.mxu0 %v12739_v62  ;;  %7550 = vmatprep.subr.bf16.mxu1 %v12867_v17  ;;  %v812_v36 = vld [vmem:[%s19829_s1 + $0x1678] sm:$0xff] }
 0x3bc   :  { %v672_v27 = vld [vmem:[%s19829_s1 + $0x1218] sm:$0xff]  ;;  %v12851_v46 = vcombine.high %v808_v9, %v812_v36  ;;  %v12850_v62 = vcombine.low %v808_v9, %v812_v36 }
 0x3bd   :  { %v676_v47 = vld [vmem:[%s19829_s1 + $0x1238] sm:$0xff] }
 0x3be   :  { %7508 = vmatpush2.bf16.msra.mxu0 %v12738_v37  ;;  %7551 = vmatpush2.bf16.msra.mxu1 %v12866_v61  ;;  %v800_v59 = vld [vmem:[%s19829_s1 + $0x1618] sm:$0xff]  ;;  %v12715_v55 = vcombine.high %v672_v27, %v676_v47  ;;  %v12714_v61 = vcombine.low %v672_v27, %v676_v47  ;;  %v17934_v47 = vpop.f32.mrf.mxu0 }
 0x3bf   :  { %7509 = vmatprep.subr.bf16.mxu0 %v12731_v51  ;;  %7552 = vmatprep.subr.bf16.mxu1 %v12859_v49  ;;  %v804_v12 = vld [vmem:[%s19829_s1 + $0x1638] sm:$0xff] }
 0x3c0   :  { %v920_v63 = vld [vmem:[%s19829_s1 + $0x19d8] sm:$0xff]  ;;  %v12843_v14 = vcombine.high %v800_v59, %v804_v12  ;;  %v12842_v51 = vcombine.low %v800_v59, %v804_v12 }
 0x3c1   :  { %v924_v34 = vld [vmem:[%s19829_s1 + $0x19f8] sm:$0xff] }
 0x3c2   :  { %7510 = vmatpush2.bf16.msra.mxu0 %v12730_v25  ;;  %7553 = vmatpush2.bf16.msra.mxu1 %v12858_v2  ;;  %v1048_v17 = vld [vmem:[%s19829_s1 + $0x1dd8] sm:$0xff]  ;;  %v12963_v21 = vcombine.high %v920_v63, %v924_v34  ;;  %v12962_v2 = vcombine.low %v920_v63, %v924_v34 }
 0x3c3   :  { %7511 = vmatprep.subr.bf16.mxu0 %v12723_v44  ;;  %7554 = vmatprep.subr.bf16.mxu1 %v12851_v46  ;;  %v1052_v37 = vld [vmem:[%s19829_s1 + $0x1df8] sm:$0xff] }
 0x3c4   :  { %v912_v5 = vld [vmem:[%s19829_s1 + $0x1998] sm:$0xff]  ;;  %v13091_v36 = vcombine.high %v1048_v17, %v1052_v37  ;;  %v13090_v59 = vcombine.low %v1048_v17, %v1052_v37 }
 0x3c5   :  { %v916_v9 = vld [vmem:[%s19829_s1 + $0x19b8] sm:$0xff] }
 0x3c6   :  { %7512 = vmatpush2.bf16.msra.mxu0 %v12722_v58  ;;  %7555 = vmatpush2.bf16.msra.mxu1 %v12850_v62  ;;  %v1040_v49 = vld [vmem:[%s19829_s1 + $0x1d98] sm:$0xff]  ;;  %v12955_v46 = vcombine.high %v912_v5, %v916_v9  ;;  %v17939_v58 = vpop.f32.mrf.mxu1  ;;  %v12954_v17 = vcombine.low %v912_v5, %v916_v9 }
 0x3c7   :  { %7513 = vmatprep.subr.bf16.mxu0 %v12715_v55  ;;  %7556 = vmatprep.subr.bf16.mxu1 %v12843_v14  ;;  %v1044_v25 = vld [vmem:[%s19829_s1 + $0x1db8] sm:$0xff] }
 0x3c8   :  { %v904_v44 = vld [vmem:[%s19829_s1 + $0x1958] sm:$0xff]  ;;  %v13083_v62 = vcombine.high %v1040_v49, %v1044_v25 }
 0x3c9   :  { %v908_v27 = vld [vmem:[%s19829_s1 + $0x1978] sm:$0xff] }
 0x3ca   :  { %7514 = vmatpush2.bf16.msra.mxu0 %v12714_v61  ;;  %7557 = vmatpush2.bf16.msra.mxu1 %v12842_v51  ;;  %v1032_v12 = vld [vmem:[%s19829_s1 + $0x1d58] sm:$0xff]  ;;  %v13082_v51 = vcombine.low %v1040_v49, %v1044_v25  ;;  %v12946_v25 = vcombine.low %v904_v44, %v908_v27 }
 0x3cb   :  { %7569 = vmatprep.subr.bf16.mxu0 %v12963_v21  ;;  %7612 = vmatprep.subr.bf16.mxu1 %v13091_v36  ;;  %v1036_v63 = vld [vmem:[%s19829_s1 + $0x1d78] sm:$0xff]  ;;  %v12947_v21 = vcombine.high %v904_v44, %v908_v27 }
 0x3cc   :  { %v896_v37 = vld [vmem:[%s19829_s1 + $0x1918] sm:$0xff]  ;;  %v13075_v9 = vcombine.high %v1032_v12, %v1036_v63 }
 0x3cd   :  { %v7259_v55 = vpop.f32.mrf.mxu0  ;;  %7516 = vmatmul.mubr.bf16.vlgmr.msra.gmra.mxu0 %v15375_v15  ;;  %v7302_v14 = vpop.f32.mrf.mxu1  ;;  %7559 = vmatmul.mubr.bf16.vlgmr.msra.gmra.mxu1 %v15386_v19  ;;  %v900_v61 = vld [vmem:[%s19829_s1 + $0x1938] sm:$0xff] }
 0x3ce   :  { %v7260_v34 = vadd.f32 %v7259_v55, %v17745_v53  ;;  %7570 = vmatpush1.bf16.msra.mxu0 %v12962_v2  ;;  %7613 = vmatpush1.bf16.msra.mxu1 %v13090_v59  ;;  %v1024_v19 = vld [vmem:[%s19829_s1 + $0x1d18] sm:$0xff]  ;;  %v12939_v55 = vcombine.high %v896_v37, %v900_v61 }
 0x3cf   :  { %v17953_v15 = vpop.f32.mrf.mxu0  ;;  %7571 = vmatprep.subr.bf16.mxu0 %v12955_v46  ;;  %v17958_v5 = vpop.f32.mrf.mxu1  ;;  %7614 = vmatprep.subr.bf16.mxu1 %v13083_v62  ;;  %v1028_v2 = vld [vmem:[%s19829_s1 + $0x1d38] sm:$0xff]  ;;  %v13074_v62 = vcombine.low %v1032_v12, %v1036_v63 }
 0x3d0   :  { %v7303_v53 = vadd.f32 %v7302_v14, %v7260_v34  ;;  %7601 = vmatprep.mubr.bf16.mxu0 %v15400_v30  ;;  %7644 = vmatprep.mubr.bf16.mxu1 %v15409_v33  ;;  %v888_v59 = vld [vmem:[%s19829_s1 + $0x18d8] sm:$0xff]  ;;  %v13067_v44 = vcombine.high %v1024_v19, %v1028_v2 }
 0x3d1   :  { %v7263_v36 = vpop.f32.mrf.mxu0  ;;  %v892_v46 = vld [vmem:[%s19829_s1 + $0x18f8] sm:$0xff]  ;;  %v7306_v30 = vpop.f32.mrf.mxu1 }
 0x3d2   :  { %v7264_v49 = vadd.f32 %v7263_v36, %v17764_v54  ;;  %7572 = vmatpush1.bf16.msra.mxu0 %v12954_v17  ;;  %7615 = vmatpush1.bf16.msra.mxu1 %v13082_v51  ;;  %v1016_v33 = vld [vmem:[%s19829_s1 + $0x1cd8] sm:$0xff]  ;;  %v7675_v54 = vmul.f32 0.2, %v7303_v53  ;;  %vm7659_vm4 = vcmp.gt.f32.partialorder %v7303_v53, 0.0  ;;  %v12938_v17 = vcombine.low %v896_v37, %v900_v61 }
 0x3d3   :  { %7573 = vmatprep.subr.bf16.mxu0 %v12947_v21  ;;  %7616 = vmatprep.subr.bf16.mxu1 %v13075_v9  ;;  %v1020_v27 = vld [vmem:[%s19829_s1 + $0x1cf8] sm:$0xff]  ;;  %v13066_v51 = vcombine.low %v1024_v19, %v1028_v2  ;;  %v12931_v21 = vcombine.high %v888_v59, %v892_v46 }
 0x3d4   :  { %v7307_v34 = vadd.f32 %v7306_v30, %v7264_v49  ;;  %v880_v12 = vld [vmem:[%s19829_s1 + $0x1898] sm:$0xff]  ;;  %v7691_v61 = vsel %vm7659_vm4, %v7303_v53, %v7675_v54  ;;  %v13059_v49 = vcombine.high %v1016_v33, %v1020_v27  ;;  %v12930_v30 = vcombine.low %v888_v59, %v892_v46 }
 0x3d5   :  { %v884_v63 = vld [vmem:[%s19829_s1 + $0x18b8] sm:$0xff] }
 0x3d6   :  { %vm7667_vm5 = vcmp.gt.f32.partialorder %v7307_v34, 0.0  ;;  %v7683_v14 = vmul.f32 0.2, %v7307_v34  ;;  %7574 = vmatpush1.bf16.msra.mxu0 %v12946_v25  ;;  %7617 = vmatpush1.bf16.msra.mxu1 %v13074_v62  ;;  %v1008_v9 = vld [vmem:[%s19829_s1 + $0x1c98] sm:$0xff]  ;;  %v13058_v62 = vcombine.low %v1016_v33, %v1020_v27  ;;  %v12922_v54 = vcombine.low %v880_v12, %v884_v63 }
 0x3d7   :  { %7575 = vmatprep.subr.bf16.mxu0 %v12939_v55  ;;  %v1012_v37 = vld [vmem:[%s19829_s1 + $0x1cb8] sm:$0xff]  ;;  %7618 = vmatprep.subr.bf16.mxu1 %v13067_v44  ;;  %v12923_v55 = vcombine.high %v880_v12, %v884_v63  ;;  %v18011_v44 = vsub.s32 1, %v15570_v42  ;;  %v19850_v63 = vsub.s32 3, %v15570_v42 }
 0x3d8   :  { %v7699_v36 = vsel %vm7667_vm5, %v7307_v34, %v7683_v14  ;;  %v872_v19 = vld [vmem:[%s19829_s1 + $0x1858] sm:$0xff]  ;;  %v13051_v46 = vcombine.high %v1008_v9, %v1012_v37  ;;  %v13050_v27 = vcombine.low %v1008_v9, %v1012_v37  ;;  %v18029_v37 = vld [vmem:[%s19831_s2] sm:$0xff] }
 0x3d9   :  { %v17990_v25 = vpack.c.bf16 %v7699_v36, %v7691_v61  ;;  %v876_v2 = vld [vmem:[%s19829_s1 + $0x1878] sm:$0xff]  ;;  %v1126_v36 = vrot.slane %v18029_v37, %v18011_v44 }
 0x3da   :  { %7576 = vmatpush1.bf16.msra.mxu0 %v12938_v17  ;;  %7619 = vmatpush1.bf16.msra.mxu1 %v13066_v51  ;;  %v1000_v53 = vld [vmem:[%s19829_s1 + $0x1c58] sm:$0xff]  ;;  %v12915_v14 = vcombine.high %v872_v19, %v876_v2 }
 0x3db   :  { %7577 = vmatprep.subr.bf16.mxu0 %v12931_v21  ;;  %v1004_v59 = vld [vmem:[%s19829_s1 + $0x1c78] sm:$0xff]  ;;  %7620 = vmatprep.subr.bf16.mxu1 %v13059_v49  ;;  %v12914_v21 = vcombine.low %v872_v19, %v876_v2 }
 0x3dc   :  { %v864_v34 = vld [vmem:[%s19829_s1 + $0x1818] sm:$0xff]  ;;  %v13043_v51 = vcombine.high %v1000_v53, %v1004_v59  ;;  %v13042_v49 = vcombine.low %v1000_v53, %v1004_v59 }
 0x3dd   :  { %v868_v33 = vld [vmem:[%s19829_s1 + $0x1838] sm:$0xff] }
 0x3de   :  { %7578 = vmatpush1.bf16.msra.mxu0 %v12930_v30  ;;  %7621 = vmatpush1.bf16.msra.mxu1 %v13058_v62  ;;  %v992_v17 = vld [vmem:[%s19829_s1 + $0x1c18] sm:$0xff]  ;;  %v12907_v30 = vcombine.high %v864_v34, %v868_v33  ;;  %v1134_v62 = vrot.slane %v18029_v37, %v19850_v63 }
 0x3df   :  { %7579 = vmatprep.subr.bf16.mxu0 %v12923_v55  ;;  %v996_v12 = vld [vmem:[%s19829_s1 + $0x1c38] sm:$0xff]  ;;  %7622 = vmatprep.subr.bf16.mxu1 %v13051_v46  ;;  %v12906_v46 = vcombine.low %v864_v34, %v868_v33  ;;  %v6320_v33 = vadd.f32 %v15823_v20, %v1126_v36 }
 0x3e0   :  { %v984_v61 = vld [vmem:[%s19829_s1 + $0x1bd8] sm:$0xff]  ;;  %v13035_v55 = vcombine.high %v992_v17, %v996_v12 }
 0x3e1   :  { %v988_v9 = vld [vmem:[%s19829_s1 + $0x1bf8] sm:$0xff] }
 0x3e2   :  { %7580 = vmatpush1.bf16.msra.mxu0 %v12922_v54  ;;  %7623 = vmatpush1.bf16.msra.mxu1 %v13050_v27  ;;  %v1112_v19 = vld [vmem:[%s19829_s1 + $0x1fd8] sm:$0xff]  ;;  %v6316_v54 = vadd.f32 %v15633_v24, %v1126_v36  ;;  %v13034_v27 = vcombine.low %v992_v17, %v996_v12  ;;  %v6664_v24 = vadd.f32 %v16666_v7, %v1134_v62 }
 0x3e3   :  { %7581 = vmatprep.subr.bf16.mxu0 %v12915_v14  ;;  %v1116_v2 = vld [vmem:[%s19829_s1 + $0x1ff8] sm:$0xff]  ;;  %7624 = vmatprep.subr.bf16.mxu1 %v13043_v51  ;;  %v13027_v14 = vcombine.high %v984_v61, %v988_v9 }
 0x3e4   :  { %v976_v53 = vld [vmem:[%s19829_s1 + $0x1b98] sm:$0xff]  ;;  %v13155_v63 = vcombine.high %v1112_v19, %v1116_v2  ;;  %v13154_v20 = vcombine.low %v1112_v19, %v1116_v2  ;;  %v6707_v19 = vadd.f32 %v16668_v16, %v6664_v24 }
 0x3e5   :  { %v980_v59 = vld [vmem:[%s19829_s1 + $0x1bb8] sm:$0xff] }
 0x3e6   :  { %7582 = vmatpush1.bf16.msra.mxu0 %v12914_v21  ;;  %7625 = vmatpush1.bf16.msra.mxu1 %v13042_v49  ;;  %v1104_v51 = vld [vmem:[%s19829_s1 + $0x1f98] sm:$0xff]  ;;  %v6660_v21 = vadd.f32 %v16476_v57, %v1134_v62  ;;  %v13026_v49 = vcombine.low %v984_v61, %v988_v9  ;;  %v13019_v57 = vcombine.high %v976_v53, %v980_v59 }
 0x3e7   :  { %7583 = vmatprep.subr.bf16.mxu0 %v12907_v30  ;;  %v1108_v34 = vld [vmem:[%s19829_s1 + $0x1fb8] sm:$0xff]  ;;  %7626 = vmatprep.subr.bf16.mxu1 %v13035_v55  ;;  %v6359_v30 = vadd.f32 %v15637_v29, %v6316_v54  ;;  %v6363_v9 = vadd.f32 %v15825_v26, %v6320_v33 }
 0x3e8   :  { %v968_v17 = vld [vmem:[%s19829_s1 + $0x1b58] sm:$0xff]  ;;  %v6703_v36 = vadd.f32 %v16480_v6, %v6660_v21  ;;  %v13147_v62 = vcombine.high %v1104_v51, %v1108_v34  ;;  %v13146_v6 = vcombine.low %v1104_v51, %v1108_v34 }
 0x3e9   :  { %v972_v12 = vld [vmem:[%s19829_s1 + $0x1b78] sm:$0xff]  ;;  %v6402_v29 = vadd.f32 %v15842_v43, %v6359_v30  ;;  %v6406_v55 = vadd.f32 %v16033_v60, %v6363_v9 }
 0x3ea   :  { %7584 = vmatpush1.bf16.msra.mxu0 %v12906_v46  ;;  %7627 = vmatpush1.bf16.msra.mxu1 %v13034_v27  ;;  %v1096_v7 = vld [vmem:[%s19829_s1 + $0x1f58] sm:$0xff]  ;;  %v6746_v2 = vadd.f32 %v16685_v32, %v6703_v36  ;;  %v13018_v46 = vcombine.low %v976_v53, %v980_v59  ;;  %v13011_v43 = vcombine.high %v968_v17, %v972_v12 }
 0x3eb   :  { %7585 = vmatprep.subr.bf16.mxu0 %v13027_v14  ;;  %v1100_v61 = vld [vmem:[%s19829_s1 + $0x1f78] sm:$0xff]  ;;  %7628 = vmatprep.subr.bf16.mxu1 %v13155_v63  ;;  %v6750_v32 = vadd.f32 %v16876_v22, %v6707_v19  ;;  %v6445_v53 = vadd.f32 %v15846_v50, %v6402_v29  ;;  %v6449_v59 = vadd.f32 %v16035_v1, %v6406_v55  ;;  %v19867_v29 = vld [vmem:[#allocation7_spill] sm:$0xff]  ;;  %v19868_v19 = vld [vmem:[#allocation10_spill] sm:$0xff] }
 0x3ec   :  { %v960_v54 = vld [vmem:[%s19829_s1 + $0x1b18] sm:$0xff]  ;;  %v13139_v63 = vcombine.high %v1096_v7, %v1100_v61  ;;  %v6789_v27 = vadd.f32 %v16689_v52, %v6746_v2  ;;  %v13010_v14 = vcombine.low %v968_v17, %v972_v12  ;;  %v13138_v33 = vcombine.low %v1096_v7, %v1100_v61 }
 0x3ed   :  { %v964_v26 = vld [vmem:[%s19829_s1 + $0x1b38] sm:$0xff]  ;;  %v6488_v22 = vadd.f32 %v16052_v13, %v6445_v53  ;;  %v6492_v21 = vadd.f32 %v16243_v56, %v6449_v59  ;;  %v6793_v24 = vadd.f32 %v16878_v38, %v6750_v32  ;;  %v19870_v59 = vld [vmem:[#allocation4_spill] sm:$0xff] }
 0x3ee   :  { %7586 = vmatpush2.bf16.msra.mxu0 %v13026_v49  ;;  %7629 = vmatpush2.bf16.msra.mxu1 %v13154_v20  ;;  %v1088_v60 = vld [vmem:[%s19829_s1 + $0x1f18] sm:$0xff]  ;;  %v13003_v50 = vcombine.high %v960_v54, %v964_v26  ;;  %v6832_v49 = vadd.f32 %v16895_v41, %v6789_v27  ;;  %v13002_v12 = vcombine.low %v960_v54, %v964_v26 }
 0x3ef   :  { %7587 = vmatprep.subr.bf16.mxu0 %v13019_v57  ;;  %v1092_v16 = vld [vmem:[%s19829_s1 + $0x1f38] sm:$0xff]  ;;  %7630 = vmatprep.subr.bf16.mxu1 %v13147_v62  ;;  %v6836_v17 = vadd.f32 %v17086_v48, %v6793_v24  ;;  %v6531_v56 = vadd.f32 %v16056_v18, %v6488_v22  ;;  %v6535_v7 = vadd.f32 %v16245_v0, %v6492_v21  ;;  %v19866_v62 = vld [vmem:[#allocation3_spill] sm:$0xff] }
 0x3f0   :  { %v952_v51 = vld [vmem:[%s19829_s1 + $0x1ad8] sm:$0xff]  ;;  %v13131_v13 = vcombine.high %v1088_v60, %v1092_v16  ;;  %v13130_v38 = vcombine.low %v1088_v60, %v1092_v16 }
 0x3f1   :  { %v956_v34 = vld [vmem:[%s19829_s1 + $0x1af8] sm:$0xff]  ;;  %v6574_v18 = vadd.f32 %v19866_v62, %v6531_v56  ;;  %v6578_v55 = vadd.f32 %v19867_v29, %v6535_v7  ;;  %v6879_v2 = vadd.f32 %v19868_v19, %v6836_v17 }
 0x3f2   :  { %7588 = vmatpush2.bf16.msra.mxu0 %v13018_v46  ;;  %7631 = vmatpush2.bf16.msra.mxu1 %v13146_v6  ;;  %v1080_v1 = vld [vmem:[%s19829_s1 + $0x1ed8] sm:$0xff]  ;;  %v12995_v41 = vcombine.high %v952_v51, %v956_v34  ;;  %v19869_v46 = vld [vmem:[#allocation11_spill] sm:$0xff]  ;;  %v12994_v26 = vcombine.low %v952_v51, %v956_v34  ;;  %v19872_v34 = vld [vmem:[#allocation12_spill] sm:$0xff] }
 0x3f3   :  { %7589 = vmatprep.subr.bf16.mxu0 %v13011_v43  ;;  %v1084_v52 = vld [vmem:[%s19829_s1 + $0x1ef8] sm:$0xff]  ;;  %7632 = vmatprep.subr.bf16.mxu1 %v13139_v63  ;;  %v6922_v63 = vadd.f32 %v17300_v35, %v6879_v2  ;;  %v6617_v27 = vadd.f32 %v19870_v59, %v6574_v18  ;;  %v13895_v18 = vld [vmem:[%s19832_s3 + $0xf4] ss:$20 sps:$4 sm:$0xff]   ;;  %v13893_v2 = vld [vmem:[%s19832_s3 + $0xf0] ss:$20 sps:$4 sm:$0xff]  }
 0x3f4   :  { %v944_v30 = vld [vmem:[%s19829_s1 + $0x1a98] sm:$0xff]  ;;  %v13123_v36 = vcombine.high %v1080_v1, %v1084_v52  ;;  %v13122_v43 = vcombine.low %v1080_v1, %v1084_v52 }
 0x3f5   :  { %v948_v20 = vld [vmem:[%s19829_s1 + $0x1ab8] sm:$0xff]  ;;  %v7672_v17 = vmul.f32 0.2, %v6617_v27  ;;  %vm7656_vm8 = vcmp.gt.f32.partialorder %v6617_v27, 0.0 }
 0x3f6   :  { %7590 = vmatpush2.bf16.msra.mxu0 %v13010_v14  ;;  %7633 = vmatpush2.bf16.msra.mxu1 %v13138_v33  ;;  %v1072_v48 = vld [vmem:[%s19829_s1 + $0x1e98] sm:$0xff]  ;;  %v12987_v60 = vcombine.high %v944_v30, %v948_v20  ;;  %v19871_v14 = vld [vmem:[#allocation8_spill] sm:$0xff]  ;;  %v12986_v33 = vcombine.low %v944_v30, %v948_v20 }
 0x3f7   :  { %7591 = vmatprep.subr.bf16.mxu0 %v13003_v50  ;;  %v1076_v57 = vld [vmem:[%s19829_s1 + $0x1eb8] sm:$0xff]  ;;  %7634 = vmatprep.subr.bf16.mxu1 %v13131_v13  ;;  %v6621_v51 = vadd.f32 %v19871_v14, %v6578_v55  ;;  %v13898_v55 = vld [vmem:[%s19832_s3 + $0x374] ss:$20 sps:$4 sm:$0xff]   ;;  %v7688_v19 = vsel %vm7656_vm8, %v6617_v27, %v7672_v17  ;;  %v1141_v27 = vsub.s32 5, %v15570_v42  ;;  %vm14605_vm8 = vmmov 0  }
 0x3f8   :  { %v19865_v61 = vld [vmem:[#allocation9_spill] sm:$0xff]  ;;  %v13115_v53 = vcombine.high %v1072_v48, %v1076_v57  ;;  %v13114_v35 = vcombine.low %v1072_v48, %v1076_v57  ;;  %v13932_v17 = vld [vmem:[%s19832_s3 + $0x280] ss:$20 sps:$4 sm:$0xff]  }
 0x3f9   :  { %v6875_v9 = vadd.f32 %v19865_v61, %v6832_v49  ;;  %v936_v6 = vld [vmem:[%s19829_s1 + $0x1a58] sm:$0xff]  ;;  %v6965_v49 = vadd.f32 %v17302_v11, %v6922_v63  ;;  %vm7664_vm6 = vcmp.gt.f32.partialorder %v6621_v51, 0.0  ;;  %v13908_v63 = vld [vmem:[%s19832_s3 + $0x320] ss:$20 sps:$4 sm:$0xff]  }
 0x3fa   :  { %7592 = vmatpush2.bf16.msra.mxu0 %v13002_v12  ;;  %v940_v0 = vld [vmem:[%s19829_s1 + $0x1a78] sm:$0xff]  ;;  %7635 = vmatpush2.bf16.msra.mxu1 %v13130_v38  ;;  %v7680_v12 = vmul.f32 0.2, %v6621_v51 }
 0x3fb   :  { %v6918_v54 = vadd.f32 %v19869_v46, %v6875_v9  ;;  %7593 = vmatprep.subr.bf16.mxu0 %v12995_v41  ;;  %v1064_v16 = vld [vmem:[%s19829_s1 + $0x1e58] sm:$0xff]  ;;  %7636 = vmatprep.subr.bf16.mxu1 %v13123_v36  ;;  %v12979_v52 = vcombine.high %v936_v6, %v940_v0  ;;  %v12978_v20 = vcombine.low %v936_v6, %v940_v0  ;;  %v7682_v41 = vmul.f32 0.2, %v6965_v49  ;;  %v13901_v6 = vld [vmem:[%s19832_s3 + $0xcc] ss:$20 sps:$4 sm:$0xff]  }
 0x3fc   :  { %v1068_v32 = vld [vmem:[%s19829_s1 + $0x1e78] sm:$0xff]  ;;  %vm7666_vm7 = vcmp.gt.f32.partialorder %v6965_v49, 0.0  ;;  %v7696_v62 = vsel %vm7664_vm6, %v6621_v51, %v7680_v12 }
 0x3fd   :  { %v6961_v22 = vadd.f32 %v19872_v34, %v6918_v54  ;;  %v928_v50 = vld [vmem:[%s19829_s1 + $0x1a18] sm:$0xff]  ;;  %v13107_v13 = vcombine.high %v1064_v16, %v1068_v32  ;;  %v13106_v56 = vcombine.low %v1064_v16, %v1068_v32  ;;  %v7698_v29 = vsel %vm7666_vm7, %v6965_v49, %v7682_v41  ;;  %v13905_v32 = vld [vmem:[%s19832_s3 + $0xa0] ss:$20 sps:$4 sm:$0xff]  }
 0x3fe   :  { %7594 = vmatpush2.bf16.msra.mxu0 %v12994_v26  ;;  %v932_v1 = vld [vmem:[%s19829_s1 + $0x1a38] sm:$0xff]  ;;  %7637 = vmatpush2.bf16.msra.mxu1 %v13122_v43  ;;  %v18180_v46 = vpack.c.bf16 %v7696_v62, %v7688_v19  ;;  %v13896_v26 = vld [vmem:[%s19832_s3 + $0x370] ss:$20 sps:$4 sm:$0xff]   ;;  %v13919_v34 = vld [vmem:[%s19832_s3 + $0x54] ss:$20 sps:$4 sm:$0xff]  }
 0x3ff   :  { %7595 = vmatprep.subr.bf16.mxu0 %v12987_v60  ;;  %v1056_v21 = vld [vmem:[%s19829_s1 + $0x1e18] sm:$0xff]  ;;  %7638 = vmatprep.subr.bf16.mxu1 %v13115_v53  ;;  %v7674_v30 = vmul.f32 0.2, %v6961_v22  ;;  %v12971_v38 = vcombine.high %v928_v50, %v932_v1  ;;  %v12970_v57 = vcombine.low %v928_v50, %v932_v1  ;;  %vm7658_vm9 = vcmp.gt.f32.partialorder %v6961_v22, 0.0  ;;  %v13920_v50 = vld [vmem:[%s19832_s3 + $0x2d0] ss:$20 sps:$4 sm:$0xff]  }
 0x400   :  { %v1060_v24 = vld [vmem:[%s19829_s1 + $0x1e38] sm:$0xff]  ;;  %v13925_v1 = vld [vmem:[%s19832_s3 + $0x2c] ss:$20 sps:$4 sm:$0xff]   ;;  %v13943_v41 = vld [vmem:[%s19832_s3 + $0x234] ss:$20 sps:$4 sm:$0xff]  }
 0x401   :  { %v13099_v48 = vcombine.high %v1056_v21, %v1060_v24  ;;  %v13889_v11 = vld [vmem:[%s19832_s3 + $0x11c] ss:$20 sps:$4 sm:$0xff]   ;;  %v13098_v61 = vcombine.low %v1056_v21, %v1060_v24  ;;  %v13887_v9 = vld [vmem:[%s19832_s3 + $0x118] ss:$20 sps:$4 sm:$0xff]   ;;  %v7690_v54 = vsel %vm7658_vm9, %v6961_v22, %v7674_v30  ;;  %v13922_v22 = vld [vmem:[%s19832_s3 + $0x2d4] ss:$20 sps:$4 sm:$0xff]  }
 0x402   :  { %7596 = vmatpush2.bf16.msra.mxu0 %v12986_v33  ;;  %7639 = vmatpush2.bf16.msra.mxu1 %v13114_v35  ;;  %v13892_v7 = vld [vmem:[%s19832_s3 + $0x39c] ss:$20 sps:$4 sm:$0xff]   ;;  %v13890_v36 = vld [vmem:[%s19832_s3 + $0x398] ss:$20 sps:$4 sm:$0xff]   ;;  %v18189_v0 = vpack.c.bf16 %v7698_v29, %v7690_v54 }
 0x403   :  { %7597 = vmatprep.subr.bf16.mxu0 %v12979_v52  ;;  %7640 = vmatprep.subr.bf16.mxu1 %v13107_v13  ;;  %v13899_v43 = vld [vmem:[%s19832_s3 + $0xc8] ss:$20 sps:$4 sm:$0xff]   ;;  %v13907_v60 = vld [vmem:[%s19832_s3 + $0xa4] ss:$20 sps:$4 sm:$0xff]   ;;  %v13928_v35 = vld [vmem:[%s19832_s3 + $0x2ac] ss:$20 sps:$4 sm:$0xff]  }
 0x404   :  { %v13910_v16 = vld [vmem:[%s19832_s3 + $0x324] ss:$20 sps:$4 sm:$0xff]   ;;  %v13913_v53 = vld [vmem:[%s19832_s3 + $0x7c] ss:$20 sps:$4 sm:$0xff]   ;;  %v13929_v13 = vld [vmem:[%s19832_s3] ss:$20 sps:$4 sm:$0xff]  }
 0x405   :  { %v13916_v59 = vld [vmem:[%s19832_s3 + $0x2fc] ss:$20 sps:$4 sm:$0xff]   ;;  %v13911_v14 = vld [vmem:[%s19832_s3 + $0x78] ss:$20 sps:$4 sm:$0xff]  }
 0x406   :  { %7598 = vmatpush2.bf16.msra.mxu0 %v12978_v20  ;;  %7641 = vmatpush2.bf16.msra.mxu1 %v13106_v56  ;;  %v13914_v51 = vld [vmem:[%s19832_s3 + $0x2f8] ss:$20 sps:$4 sm:$0xff]   ;;  %v13917_v33 = vld [vmem:[%s19832_s3 + $0x50] ss:$20 sps:$4 sm:$0xff]   ;;  %v13923_v52 = vld [vmem:[%s19832_s3 + $0x28] ss:$20 sps:$4 sm:$0xff]   ;;  %v1142_v20 = vrot.slane %v18029_v37, %v1141_v27 }
 0x407   :  { %7599 = vmatprep.subr.bf16.mxu0 %v12971_v38  ;;  %7642 = vmatprep.subr.bf16.mxu1 %v13099_v48  ;;  %v13926_v21 = vld [vmem:[%s19832_s3 + $0x2a8] ss:$20 sps:$4 sm:$0xff]   ;;  %v13931_v24 = vld [vmem:[%s19832_s3 + $0x4] ss:$20 sps:$4 sm:$0xff]  }
 0x408   :  { %v13934_v49 = vld [vmem:[%s19832_s3 + $0x284] ss:$20 sps:$4 sm:$0xff]   ;;  %v13937_v12 = vld [vmem:[%s19832_s3 + $0x25c] ss:$20 sps:$4 sm:$0xff]   ;;  %v13946_v48 = vld [vmem:[%s19832_s3 + $0x4b4] ss:$20 sps:$4 sm:$0xff]   ;;  %v7008_v37 = vadd.f32 %v17508_v40, %v1142_v20 }
 0x409   :  { %v13940_v30 = vld [vmem:[%s19832_s3 + $0x4dc] ss:$20 sps:$4 sm:$0xff]   ;;  %v13935_v56 = vld [vmem:[%s19832_s3 + $0x258] ss:$20 sps:$4 sm:$0xff]  }
 0x40a   :  { %7600 = vmatpush2.bf16.msra.mxu0 %v12970_v57  ;;  %7643 = vmatpush2.bf16.msra.mxu1 %v13098_v61  ;;  %v13938_v38 = vld [vmem:[%s19832_s3 + $0x4d8] ss:$20 sps:$4 sm:$0xff]   ;;  %v7004_v57 = vadd.f32 %v17318_v10, %v1142_v20  ;;  %v13947_v29 = vld [vmem:[%s19832_s3 + $0x208] ss:$20 sps:$4 sm:$0xff]   ;;  %v13968_v27 = vld [vmem:[%s19832_s3 + $0x410] ss:$20 sps:$4 sm:$0xff]  }
 0x40b   :  { %9786 = vmatprep.subr.bf16.mxu0 %v13889_v11  ;;  %9829 = vmatprep.subr.bf16.mxu1 %v13892_v7  ;;  %v13941_v11 = vld [vmem:[%s19832_s3 + $0x230] ss:$20 sps:$4 sm:$0xff]   ;;  %v13949_v61 = vld [vmem:[%s19832_s3 + $0x20c] ss:$20 sps:$4 sm:$0xff]  }
 0x40c   :  { %v13944_v7 = vld [vmem:[%s19832_s3 + $0x4b0] ss:$20 sps:$4 sm:$0xff]   ;;  %v13952_v40 = vld [vmem:[%s19832_s3 + $0x48c] ss:$20 sps:$4 sm:$0xff]  }
 0x40d   :  { %7602 = vmatmul.mubr.bf16.vlgmr.msra.gmra.mxu0 %v15608_v4  ;;  %7645 = vmatmul.mubr.bf16.vlgmr.msra.gmra.mxu1 %v15617_v8  ;;  %v13904_v4 = vld [vmem:[%s19832_s3 + $0x34c] ss:$20 sps:$4 sm:$0xff]   ;;  %v13902_v8 = vld [vmem:[%s19832_s3 + $0x348] ss:$20 sps:$4 sm:$0xff]   ;;  %v13955_v19 = vld [vmem:[%s19832_s3 + $0x1e4] ss:$20 sps:$4 sm:$0xff]  }
 0x40e   :  { %9787 = vmatpush1.bf16.msra.mxu0 %v13887_v9  ;;  %9818 = vmatprep.mubr.bf16.mxu0 %v18180_v46  ;;  %v19873_v10 = vld [vmem:[#allocation15_spill] sm:$0xff] }
 0x40f   :  { %9830 = vmatpush1.bf16.msra.mxu1 %v13890_v36  ;;  %9861 = vmatprep.mubr.bf16.mxu1 %v18189_v0  ;;  %v7051_v9 = vadd.f32 %v19873_v10, %v7008_v37  ;;  %v19874_v36 = vld [vmem:[#allocation14_spill] sm:$0xff]  ;;  %v14043_v20 = vld [vmem:[%s19832_s3 + $0x898] ss:$20 sps:$4 sm:$0xff]   ;;  %v14055_v10 = vld [vmem:[%s19832_s3 + $0x848] ss:$20 sps:$4 sm:$0xff]  }
 0x410   :  { %9788 = vmatprep.subr.bf16.mxu0 %v13895_v18  ;;  %9831 = vmatprep.subr.bf16.mxu1 %v13898_v55  ;;  %v7047_v62 = vadd.f32 %v19874_v36, %v7004_v57  ;;  %v13950_v55 = vld [vmem:[%s19832_s3 + $0x488] ss:$20 sps:$4 sm:$0xff]   ;;  %v13986_v37 = vld [vmem:[%s19832_s3 + $0x5f0] ss:$20 sps:$4 sm:$0xff]   ;;  %v13991_v57 = vld [vmem:[%s19832_s3 + $0x5cc] ss:$20 sps:$4 sm:$0xff]  }
 0x411   :  { %v7094_v18 = vadd.f32 %v17718_v28, %v7051_v9  ;;  %v14063_v9 = vld [vmem:[%s19832_s3 + $0x824] ss:$20 sps:$4 sm:$0xff]   ;;  %v13992_v36 = vld [vmem:[%s19832_s3 + $0x5a0] ss:$20 sps:$4 sm:$0xff]  }
 0x412   :  { %9789 = vmatpush1.bf16.msra.mxu0 %v13893_v2  ;;  %v13958_v2 = vld [vmem:[%s19832_s3 + $0x464] ss:$20 sps:$4 sm:$0xff]   ;;  %v7090_v28 = vadd.f32 %v17527_v23, %v7047_v62  ;;  %v13964_v23 = vld [vmem:[%s19832_s3 + $0x43c] ss:$20 sps:$4 sm:$0xff]  }
 0x413   :  { %9832 = vmatpush1.bf16.msra.mxu1 %v13896_v26  ;;  %9790 = vmatprep.subr.bf16.mxu0 %v13901_v6  ;;  %v7137_v54 = vadd.f32 %v17726_v31, %v7094_v18  ;;  %v13953_v26 = vld [vmem:[%s19832_s3 + $0x1e0] ss:$20 sps:$4 sm:$0xff]   ;;  %v13997_v62 = vld [vmem:[%s19832_s3 + $0x57c] ss:$20 sps:$4 sm:$0xff]  }
 0x414   :  { %9833 = vmatprep.subr.bf16.mxu1 %v13904_v4  ;;  %v13956_v6 = vld [vmem:[%s19832_s3 + $0x460] ss:$20 sps:$4 sm:$0xff]   ;;  %v13961_v4 = vld [vmem:[%s19832_s3 + $0x1bc] ss:$20 sps:$4 sm:$0xff]   ;;  %v7133_v31 = vadd.f32 %v17531_v39, %v7090_v28 }
 0x415   :  { %v13967_v39 = vld [vmem:[%s19832_s3 + $0x194] ss:$20 sps:$4 sm:$0xff]  }
 0x416   :  { %9791 = vmatpush1.bf16.msra.mxu0 %v13899_v43  ;;  %v7180_v43 = vadd.f32 %v17934_v47, %v7137_v54  ;;  %v14061_v18 = vld [vmem:[%s19832_s3 + $0x820] ss:$20 sps:$4 sm:$0xff]   ;;  %v13998_v54 = vld [vmem:[%s19832_s3 + $0x550] ss:$20 sps:$4 sm:$0xff]  }
 0x417   :  { %9834 = vmatpush1.bf16.msra.mxu1 %v13902_v8  ;;  %9792 = vmatprep.subr.bf16.mxu0 %v13907_v60  ;;  %v7176_v8 = vadd.f32 %v17743_v45, %v7133_v31  ;;  %v13959_v60 = vld [vmem:[%s19832_s3 + $0x1b8] ss:$20 sps:$4 sm:$0xff]   ;;  %v13970_v45 = vld [vmem:[%s19832_s3 + $0x414] ss:$20 sps:$4 sm:$0xff]  }
 0x418   :  { %9835 = vmatprep.subr.bf16.mxu1 %v13910_v16  ;;  %v7265_v16 = vpop.f32.mrf.mxu0  ;;  %v7223_v47 = vadd.f32 %v17939_v58, %v7180_v43  ;;  %v13973_v58 = vld [vmem:[%s19832_s3 + $0x16c] ss:$20 sps:$4 sm:$0xff]   ;;  %v14075_v28 = vld [vmem:[%s19832_s3 + $0x7d4] ss:$20 sps:$4 sm:$0xff]   ;;  %v14006_v31 = vld [vmem:[%s19832_s3 + $0x504] ss:$20 sps:$4 sm:$0xff]  }
 0x419   :  { %v14079_v43 = vld [vmem:[%s19832_s3 + $0x7a8] ss:$20 sps:$4 sm:$0xff]  }
 0x41a   :  { %9793 = vmatpush1.bf16.msra.mxu0 %v13905_v32  ;;  %v13962_v32 = vld [vmem:[%s19832_s3 + $0x438] ss:$20 sps:$4 sm:$0xff]  }
 0x41b   :  { %9836 = vmatpush1.bf16.msra.mxu1 %v13908_v63  ;;  %9794 = vmatprep.subr.bf16.mxu0 %v13913_v53  ;;  %v7219_v63 = vadd.f32 %v17747_v3, %v7176_v8  ;;  %v7266_v53 = vadd.f32 %v7265_v16, %v7223_v47  ;;  %v13976_v3 = vld [vmem:[%s19832_s3 + $0x3ec] ss:$20 sps:$4 sm:$0xff]   ;;  %v14087_v8 = vld [vmem:[%s19832_s3 + $0x784] ss:$20 sps:$4 sm:$0xff]   ;;  %v14009_v16 = vld [vmem:[%s19832_s3 + $0x75c] ss:$20 sps:$4 sm:$0xff]  }
 0x41c   :  { %9837 = vmatprep.subr.bf16.mxu1 %v13916_v59  ;;  %v13965_v59 = vld [vmem:[%s19832_s3 + $0x190] ss:$20 sps:$4 sm:$0xff]   ;;  %v14007_v47 = vld [vmem:[%s19832_s3 + $0x758] ss:$20 sps:$4 sm:$0xff]  }
 0x41e   :  { %9795 = vmatpush1.bf16.msra.mxu0 %v13911_v14  ;;  %v7262_v14 = vadd.f32 %v17953_v15, %v7219_v63  ;;  %v13979_v15 = vld [vmem:[%s19832_s3 + $0x144] ss:$20 sps:$4 sm:$0xff]  }
 0x41f   :  { %9838 = vmatpush1.bf16.msra.mxu1 %v13914_v51  ;;  %9796 = vmatprep.subr.bf16.mxu0 %v13919_v34  ;;  %v7308_v51 = vpop.f32.mrf.mxu1  ;;  %v14091_v63 = vld [vmem:[%s19832_s3 + $0x9d8] ss:$20 sps:$4 sm:$0xff]  }
 0x420   :  { %9839 = vmatprep.subr.bf16.mxu1 %v13922_v22  ;;  %v7309_v34 = vadd.f32 %v7308_v51, %v7266_v53  ;;  %v13971_v22 = vld [vmem:[%s19832_s3 + $0x168] ss:$20 sps:$4 sm:$0xff]   ;;  %v14018_v51 = vld [vmem:[%s19832_s3 + $0x6e4] ss:$20 sps:$4 sm:$0xff]  }
 0x421   :  { %v14099_v53 = vld [vmem:[%s19832_s3 + $0x9b4] ss:$20 sps:$4 sm:$0xff]  }
 0x422   :  { %9797 = vmatpush1.bf16.msra.mxu0 %v13917_v33  ;;  %v13974_v33 = vld [vmem:[%s19832_s3 + $0x3e8] ss:$20 sps:$4 sm:$0xff]   ;;  %vm7668_vm10 = vcmp.gt.f32.partialorder %v7309_v34, 0.0 }
 0x423   :  { %9840 = vmatpush1.bf16.msra.mxu1 %v13920_v50  ;;  %9798 = vmatprep.subr.bf16.mxu0 %v13925_v1  ;;  %v7305_v50 = vadd.f32 %v17958_v5, %v7262_v14  ;;  %v13982_v1 = vld [vmem:[%s19832_s3 + $0x3c4] ss:$20 sps:$4 sm:$0xff]   ;;  %v13985_v5 = vld [vmem:[%s19832_s3 + $0x61c] ss:$20 sps:$4 sm:$0xff]   ;;  %v14105_v14 = vld [vmem:[%s19832_s3 + $0x98c] ss:$20 sps:$4 sm:$0xff]  }
 0x424   :  { %9841 = vmatprep.subr.bf16.mxu1 %v13928_v35  ;;  %v7684_v35 = vmul.f32 0.2, %v7309_v34 }
 0x425   :  { %vm7660_vm11 = vcmp.gt.f32.partialorder %v7305_v50, 0.0 }
 0x426   :  { %9799 = vmatpush1.bf16.msra.mxu0 %v13923_v52  ;;  %v13977_v52 = vld [vmem:[%s19832_s3 + $0x140] ss:$20 sps:$4 sm:$0xff]  }
 0x427   :  { %9842 = vmatpush1.bf16.msra.mxu1 %v13926_v21  ;;  %9800 = vmatprep.subr.bf16.mxu0 %v13931_v24  ;;  %v13980_v21 = vld [vmem:[%s19832_s3 + $0x3c0] ss:$20 sps:$4 sm:$0xff]   ;;  %v7676_v24 = vmul.f32 0.2, %v7305_v50 }
 0x428   :  { %9843 = vmatprep.subr.bf16.mxu1 %v13934_v49  ;;  %v14045_v49 = vld [vmem:[%s19832_s3 + $0x89c] ss:$20 sps:$4 sm:$0xff]  }
 0x42a   :  { %9801 = vmatpush1.bf16.msra.mxu0 %v13929_v13  ;;  %v13983_v13 = vld [vmem:[%s19832_s3 + $0x618] ss:$20 sps:$4 sm:$0xff]  }
 0x42b   :  { %9844 = vmatpush1.bf16.msra.mxu1 %v13932_v17  ;;  %9802 = vmatprep.subr.bf16.mxu0 %v13937_v12  ;;  %v7700_v17 = vsel %vm7668_vm10, %v7309_v34, %v7684_v35  ;;  %v13988_v12 = vld [vmem:[%s19832_s3 + $0x5f4] ss:$20 sps:$4 sm:$0xff]   ;;  %v14019_v35 = vld [vmem:[%s19832_s3 + $0x6b8] ss:$20 sps:$4 sm:$0xff]  }
 0x42c   :  { %9845 = vmatprep.subr.bf16.mxu1 %v13940_v30  ;;  %v7692_v30 = vsel %vm7660_vm11, %v7305_v50, %v7676_v24  ;;  %v14103_v34 = vld [vmem:[%s19832_s3 + $0x988] ss:$20 sps:$4 sm:$0xff]   ;;  %v14109_v50 = vld [vmem:[%s19832_s3 + $0x960] ss:$20 sps:$4 sm:$0xff]   ;;  %v14022_v24 = vld [vmem:[%s19832_s3 + $0x690] ss:$20 sps:$4 sm:$0xff]  }
 0x42e   :  { %9803 = vmatpush2.bf16.msra.mxu0 %v13935_v56  ;;  %v19875_v56 = vld [vmem:[#allocation5_spill] sm:$0xff] }
 0x42f   :  { %9846 = vmatpush2.bf16.msra.mxu1 %v13938_v38  ;;  %9804 = vmatprep.subr.bf16.mxu0 %v13943_v41  ;;  %v18390_v38 = vpack.c.bf16 %v7700_v17, %v7692_v30  ;;  %v14051_v41 = vld [vmem:[%s19832_s3 + $0x874] ss:$20 sps:$4 sm:$0xff]   ;;  %v14129_v17 = vld [vmem:[%s19832_s3 + $0x8ec] ss:$20 sps:$4 sm:$0xff]   ;;  %v14030_v30 = vld [vmem:[%s19832_s3 + $0x644] ss:$20 sps:$4 sm:$0xff]  }
 0x430   :  { %9847 = vmatprep.subr.bf16.mxu1 %v13946_v48  ;;  %v19876_v48 = vld [vmem:[#allocation13_spill] sm:$0xff] }
 0x432   :  { %9805 = vmatpush2.bf16.msra.mxu0 %v13941_v11  ;;  %v14049_v11 = vld [vmem:[%s19832_s3 + $0x870] ss:$20 sps:$4 sm:$0xff]  }
 0x433   :  { %9848 = vmatpush2.bf16.msra.mxu1 %v13944_v7  ;;  %9806 = vmatprep.subr.bf16.mxu0 %v13949_v61  ;;  %v14057_v7 = vld [vmem:[%s19832_s3 + $0x84c] ss:$20 sps:$4 sm:$0xff]   ;;  %v13989_v61 = vld [vmem:[%s19832_s3 + $0x5c8] ss:$20 sps:$4 sm:$0xff]  }
 0x434   :  { %9849 = vmatprep.subr.bf16.mxu1 %v13952_v40  ;;  %v13994_v40 = vld [vmem:[%s19832_s3 + $0x5a4] ss:$20 sps:$4 sm:$0xff]  }
 0x436   :  { %9807 = vmatpush2.bf16.msra.mxu0 %v13947_v29  ;;  %v14069_v29 = vld [vmem:[%s19832_s3 + $0x7fc] ss:$20 sps:$4 sm:$0xff]  }
 0x437   :  { %9850 = vmatpush2.bf16.msra.mxu1 %v13950_v55  ;;  %9808 = vmatprep.subr.bf16.mxu0 %v13955_v19  ;;  %v13995_v55 = vld [vmem:[%s19832_s3 + $0x578] ss:$20 sps:$4 sm:$0xff]   ;;  %v14000_v19 = vld [vmem:[%s19832_s3 + $0x554] ss:$20 sps:$4 sm:$0xff]  }
 0x438   :  { %9851 = vmatprep.subr.bf16.mxu1 %v13958_v2  ;;  %v14067_v2 = vld [vmem:[%s19832_s3 + $0x7f8] ss:$20 sps:$4 sm:$0xff]  }
 0x43a   :  { %9809 = vmatpush2.bf16.msra.mxu0 %v13953_v26  ;;  %v14003_v26 = vld [vmem:[%s19832_s3 + $0x52c] ss:$20 sps:$4 sm:$0xff]  }
 0x43b   :  { %9852 = vmatpush2.bf16.msra.mxu1 %v13956_v6  ;;  %9810 = vmatprep.subr.bf16.mxu0 %v13961_v4  ;;  %v14073_v6 = vld [vmem:[%s19832_s3 + $0x7d0] ss:$20 sps:$4 sm:$0xff]   ;;  %v14081_v4 = vld [vmem:[%s19832_s3 + $0x7ac] ss:$20 sps:$4 sm:$0xff]  }
 0x43c   :  { %9853 = vmatprep.subr.bf16.mxu1 %v13964_v23  ;;  %v14001_v23 = vld [vmem:[%s19832_s3 + $0x528] ss:$20 sps:$4 sm:$0xff]  }
 0x43e   :  { %9811 = vmatpush2.bf16.msra.mxu0 %v13959_v60  ;;  %v14004_v60 = vld [vmem:[%s19832_s3 + $0x500] ss:$20 sps:$4 sm:$0xff]  }
 0x43f   :  { %9854 = vmatpush2.bf16.msra.mxu1 %v13962_v32  ;;  %9812 = vmatprep.subr.bf16.mxu0 %v13967_v39  ;;  %v14085_v32 = vld [vmem:[%s19832_s3 + $0x780] ss:$20 sps:$4 sm:$0xff]   ;;  %v14093_v39 = vld [vmem:[%s19832_s3 + $0x9dc] ss:$20 sps:$4 sm:$0xff]  }
 0x440   :  { %9855 = vmatprep.subr.bf16.mxu1 %v13970_v45  ;;  %v14012_v45 = vld [vmem:[%s19832_s3 + $0x734] ss:$20 sps:$4 sm:$0xff]  }
 0x442   :  { %9813 = vmatpush2.bf16.msra.mxu0 %v13965_v59  ;;  %v14010_v59 = vld [vmem:[%s19832_s3 + $0x730] ss:$20 sps:$4 sm:$0xff]  }
 0x443   :  { %9856 = vmatpush2.bf16.msra.mxu1 %v13968_v27  ;;  %9814 = vmatprep.subr.bf16.mxu0 %v13973_v58  ;;  %v14015_v27 = vld [vmem:[%s19832_s3 + $0x70c] ss:$20 sps:$4 sm:$0xff]   ;;  %v14097_v58 = vld [vmem:[%s19832_s3 + $0x9b0] ss:$20 sps:$4 sm:$0xff]  }
 0x444   :  { %9857 = vmatprep.subr.bf16.mxu1 %v13976_v3  ;;  %v14013_v3 = vld [vmem:[%s19832_s3 + $0x708] ss:$20 sps:$4 sm:$0xff]  }
 0x446   :  { %9815 = vmatpush2.bf16.msra.mxu0 %v13971_v22  ;;  %v14111_v22 = vld [vmem:[%s19832_s3 + $0x964] ss:$20 sps:$4 sm:$0xff]  }
 0x447   :  { %9858 = vmatpush2.bf16.msra.mxu1 %v13974_v33  ;;  %9816 = vmatprep.subr.bf16.mxu0 %v13979_v15  ;;  %v14016_v33 = vld [vmem:[%s19832_s3 + $0x6e0] ss:$20 sps:$4 sm:$0xff]   ;;  %v14021_v15 = vld [vmem:[%s19832_s3 + $0x6bc] ss:$20 sps:$4 sm:$0xff]  }
 0x448   :  { %9859 = vmatprep.subr.bf16.mxu1 %v13982_v1  ;;  %v14117_v1 = vld [vmem:[%s19832_s3 + $0x93c] ss:$20 sps:$4 sm:$0xff]  }
 0x44a   :  { %9817 = vmatpush2.bf16.msra.mxu0 %v13977_v52  ;;  %v14024_v52 = vld [vmem:[%s19832_s3 + $0x694] ss:$20 sps:$4 sm:$0xff]  }
 0x44b   :  { %9860 = vmatpush2.bf16.msra.mxu1 %v13980_v21  ;;  %9872 = vmatprep.subr.bf16.mxu0 %v13985_v5  ;;  %v14115_v21 = vld [vmem:[%s19832_s3 + $0x938] ss:$20 sps:$4 sm:$0xff]   ;;  %v14123_v5 = vld [vmem:[%s19832_s3 + $0x914] ss:$20 sps:$4 sm:$0xff]  }
 0x44c   :  { %9915 = vmatprep.subr.bf16.mxu1 %v14045_v49  ;;  %v14027_v49 = vld [vmem:[%s19832_s3 + $0x66c] ss:$20 sps:$4 sm:$0xff]  }
 0x44d   :  { %9819 = vmatmul.mubr.bf16.vlgmr.msra.gmra.mxu0 %v19875_v56 }
 0x44e   :  { %9862 = vmatmul.mubr.bf16.vlgmr.msra.gmra.mxu1 %v19876_v48  ;;  %9873 = vmatpush1.bf16.msra.mxu0 %v13983_v13  ;;  %v14121_v13 = vld [vmem:[%s19832_s3 + $0x910] ss:$20 sps:$4 sm:$0xff]  }
 0x44f   :  { %9904 = vmatprep.mubr.bf16.mxu0 %v18390_v38  ;;  %9874 = vmatprep.subr.bf16.mxu0 %v13988_v12  ;;  %v14025_v12 = vld [vmem:[%s19832_s3 + $0x668] ss:$20 sps:$4 sm:$0xff]  }
 0x450   :  { %9916 = vmatpush1.bf16.msra.mxu1 %v14043_v20  ;;  %v14127_v20 = vld [vmem:[%s19832_s3 + $0x8e8] ss:$20 sps:$4 sm:$0xff]  }
 0x451   :  { %9917 = vmatprep.subr.bf16.mxu1 %v14051_v41  ;;  %v14135_v41 = vld [vmem:[%s19832_s3 + $0x8c4] ss:$20 sps:$4 sm:$0xff]  }
 0x452   :  { %9875 = vmatpush1.bf16.msra.mxu0 %v13986_v37  ;;  %v14028_v37 = vld [vmem:[%s19832_s3 + $0x640] ss:$20 sps:$4 sm:$0xff]  }
 0x453   :  { %9876 = vmatprep.subr.bf16.mxu0 %v13991_v57  ;;  %v14033_v57 = vld [vmem:[%s19832_s3 + $0x124] ss:$20 sps:$4 sm:$0xff]  }
 0x454   :  { %9918 = vmatpush1.bf16.msra.mxu1 %v14049_v11  ;;  %v14133_v11 = vld [vmem:[%s19832_s3 + $0x8c0] ss:$20 sps:$4 sm:$0xff]  }
 0x455   :  { %9919 = vmatprep.subr.bf16.mxu1 %v14057_v7  ;;  %v14141_v7 = vld [vmem:[%s19832_s3 + $0x3a4] ss:$20 sps:$4 sm:$0xff]  }
 0x456   :  { %9877 = vmatpush1.bf16.msra.mxu0 %v13989_v61  ;;  %v14031_v61 = vld [vmem:[%s19832_s3 + $0x120] ss:$20 sps:$4 sm:$0xff]  }
 0x457   :  { %9878 = vmatprep.subr.bf16.mxu0 %v13994_v40  ;;  %v14036_v40 = vld [vmem:[%s19832_s3 + $0xfc] ss:$20 sps:$4 sm:$0xff]  }
 0x458   :  { %9920 = vmatpush1.bf16.msra.mxu1 %v14055_v10  ;;  %v14034_v10 = vld [vmem:[%s19832_s3 + $0xf8] ss:$20 sps:$4 sm:$0xff]  }
 0x459   :  { %9921 = vmatprep.subr.bf16.mxu1 %v14063_v9  ;;  %v14039_v9 = vld [vmem:[%s19832_s3 + $0xd4] ss:$20 sps:$4 sm:$0xff]  }
 0x45a   :  { %9879 = vmatpush1.bf16.msra.mxu0 %v13992_v36  ;;  %v14037_v36 = vld [vmem:[%s19832_s3 + $0xd0] ss:$20 sps:$4 sm:$0xff]  }
 0x45b   :  { %9880 = vmatprep.subr.bf16.mxu0 %v13997_v62  ;;  %v14042_v62 = vld [vmem:[%s19832_s3 + $0xac] ss:$20 sps:$4 sm:$0xff]  }
 0x45c   :  { %9922 = vmatpush1.bf16.msra.mxu1 %v14061_v18  ;;  %v14040_v18 = vld [vmem:[%s19832_s3 + $0xa8] ss:$20 sps:$4 sm:$0xff]  }
 0x45d   :  { %9923 = vmatprep.subr.bf16.mxu1 %v14069_v29  ;;  %v14048_v29 = vld [vmem:[%s19832_s3 + $0x84] ss:$20 sps:$4 sm:$0xff]  }
 0x45e   :  { %9881 = vmatpush1.bf16.msra.mxu0 %v13995_v55  ;;  %v14046_v55 = vld [vmem:[%s19832_s3 + $0x80] ss:$20 sps:$4 sm:$0xff]  }
 0x45f   :  { %9882 = vmatprep.subr.bf16.mxu0 %v14000_v19  ;;  %v14054_v19 = vld [vmem:[%s19832_s3 + $0x5c] ss:$20 sps:$4 sm:$0xff]  }
 0x460   :  { %9924 = vmatpush1.bf16.msra.mxu1 %v14067_v2  ;;  %v14052_v2 = vld [vmem:[%s19832_s3 + $0x58] ss:$20 sps:$4 sm:$0xff]  }
 0x461   :  { %9925 = vmatprep.subr.bf16.mxu1 %v14075_v28  ;;  %v14060_v28 = vld [vmem:[%s19832_s3 + $0x34] ss:$20 sps:$4 sm:$0xff]  }
 0x462   :  { %9883 = vmatpush1.bf16.msra.mxu0 %v13998_v54  ;;  %v14058_v54 = vld [vmem:[%s19832_s3 + $0x30] ss:$20 sps:$4 sm:$0xff]  }
 0x463   :  { %9884 = vmatprep.subr.bf16.mxu0 %v14003_v26  ;;  %v7345_v26 = vpop.f32.mrf.mxu0 }
 0x464   :  { %9926 = vmatpush1.bf16.msra.mxu1 %v14073_v6  ;;  %v14066_v6 = vld [vmem:[%s19832_s3 + $0xc] ss:$20 sps:$4 sm:$0xff]  }
 0x465   :  { %9927 = vmatprep.subr.bf16.mxu1 %v14081_v4  ;;  %v7388_v4 = vpop.f32.mrf.mxu1 }
 0x466   :  { %9885 = vmatpush1.bf16.msra.mxu0 %v14001_v23  ;;  %v14064_v23 = vld [vmem:[%s19832_s3 + $0x8] ss:$20 sps:$4 sm:$0xff]  }
 0x467   :  { %9886 = vmatprep.subr.bf16.mxu0 %v14006_v31  ;;  %v7347_v31 = vpop.f32.mrf.mxu0 }
 0x468   :  { %9928 = vmatpush1.bf16.msra.mxu1 %v14079_v43  ;;  %v14072_v43 = vld [vmem:[%s19832_s3 + $0x264] ss:$20 sps:$4 sm:$0xff]  }
 0x469   :  { %9929 = vmatprep.subr.bf16.mxu1 %v14087_v8  ;;  %v7390_v8 = vpop.f32.mrf.mxu1 }
 0x46a   :  { %9887 = vmatpush1.bf16.msra.mxu0 %v14004_v60  ;;  %v14070_v60 = vld [vmem:[%s19832_s3 + $0x260] ss:$20 sps:$4 sm:$0xff]  }
 0x46b   :  { %9888 = vmatprep.subr.bf16.mxu0 %v14009_v16  ;;  %v7349_v16 = vpop.f32.mrf.mxu0 }
 0x46c   :  { %9930 = vmatpush1.bf16.msra.mxu1 %v14085_v32  ;;  %v14078_v32 = vld [vmem:[%s19832_s3 + $0x23c] ss:$20 sps:$4 sm:$0xff]  }
 0x46d   :  { %9931 = vmatprep.subr.bf16.mxu1 %v14093_v39  ;;  %v7392_v39 = vpop.f32.mrf.mxu1 }
 0x46e   :  { %9889 = vmatpush2.bf16.msra.mxu0 %v14007_v47  ;;  %v14076_v47 = vld [vmem:[%s19832_s3 + $0x238] ss:$20 sps:$4 sm:$0xff]  }
 0x46f   :  { %9890 = vmatprep.subr.bf16.mxu0 %v14012_v45  ;;  %v7351_v45 = vpop.f32.mrf.mxu0 }
 0x470   :  { %9932 = vmatpush2.bf16.msra.mxu1 %v14091_v63  ;;  %v14084_v63 = vld [vmem:[%s19832_s3 + $0x214] ss:$20 sps:$4 sm:$0xff]  }
 0x471   :  { %9933 = vmatprep.subr.bf16.mxu1 %v14099_v53  ;;  %v7394_v53 = vpop.f32.mrf.mxu1 }
 0x472   :  { %9891 = vmatpush2.bf16.msra.mxu0 %v14010_v59  ;;  %v7431_v59 = vpop.f32.mrf.mxu0 }
 0x473   :  { %9892 = vmatprep.subr.bf16.mxu0 %v14015_v27  ;;  %v7474_v27 = vpop.f32.mrf.mxu1 }
 0x474   :  { %9934 = vmatpush2.bf16.msra.mxu1 %v14097_v58  ;;  %v14082_v58 = vld [vmem:[%s19832_s3 + $0x210] ss:$20 sps:$4 sm:$0xff]  }
 0x475   :  { %9935 = vmatprep.subr.bf16.mxu1 %v14105_v14  ;;  %v14090_v14 = vld [vmem:[%s19832_s3 + $0x1ec] ss:$20 sps:$4 sm:$0xff]  }
 0x476   :  { %9893 = vmatpush2.bf16.msra.mxu0 %v14013_v3  ;;  %v7433_v3 = vpop.f32.mrf.mxu0 }
 0x477   :  { %9894 = vmatprep.subr.bf16.mxu0 %v14018_v51  ;;  %v1145_v51 = vsub.s32 6, %v15570_v42 }
 0x478   :  { %9936 = vmatpush2.bf16.msra.mxu1 %v14103_v34  ;;  %v1149_v34 = vsub.s32 7, %v15570_v42 }
 0x479   :  { %9937 = vmatprep.subr.bf16.mxu1 %v14111_v22  ;;  %v7476_v22 = vpop.f32.mrf.mxu1 }
 0x47a   :  { %9895 = vmatpush2.bf16.msra.mxu0 %v14016_v33  ;;  %v14088_v33 = vld [vmem:[%s19832_s3 + $0x1e8] ss:$20 sps:$4 sm:$0xff]  }
 0x47b   :  { %9896 = vmatprep.subr.bf16.mxu0 %v14021_v15  ;;  %v14096_v15 = vld [vmem:[%s19832_s3 + $0x1c4] ss:$20 sps:$4 sm:$0xff]  }
 0x47c   :  { %9938 = vmatpush2.bf16.msra.mxu1 %v14109_v50  ;;  %v7435_v50 = vpop.f32.mrf.mxu0 }
 0x47d   :  { %9939 = vmatprep.subr.bf16.mxu1 %v14117_v1  ;;  %v14602_v1 = vld [vmem:[%s19831_s2] sm:$0xff] }
 0x47e   :  { %9897 = vmatpush2.bf16.msra.mxu0 %v14019_v35  ;;  %v1146_v35 = vrot.slane %v14602_v1, %v1145_v51  ;;  %v14132_v51 = vld [vmem:[%s19832_s3 + $0x5d4] ss:$20 sps:$4 sm:$0xff]  }
 0x47f   :  { %9898 = vmatprep.subr.bf16.mxu0 %v14024_v52  ;;  %v1150_v52 = vrot.slane %v14602_v1, %v1149_v34 }
 0x480   :  { %9940 = vmatpush2.bf16.msra.mxu1 %v14115_v21  ;;  %v7478_v21 = vpop.f32.mrf.mxu1 }
 0x481   :  { %9941 = vmatprep.subr.bf16.mxu1 %v14123_v5  ;;  %v14094_v5 = vld [vmem:[%s19832_s3 + $0x1c0] ss:$20 sps:$4 sm:$0xff]  }
 0x482   :  { %9899 = vmatpush2.bf16.msra.mxu0 %v14022_v24  ;;  %v14102_v24 = vld [vmem:[%s19832_s3 + $0x19c] ss:$20 sps:$4 sm:$0xff]  }
 0x483   :  { %9900 = vmatprep.subr.bf16.mxu0 %v14027_v49  ;;  %v7437_v49 = vpop.f32.mrf.mxu0 }
 0x484   :  { %9942 = vmatpush2.bf16.msra.mxu1 %v14121_v13  ;;  %v7346_v13 = vadd.f32 %v7345_v26, %v1146_v35 }
 0x485   :  { %9943 = vmatprep.subr.bf16.mxu1 %v14129_v17  ;;  %v7348_v17 = vadd.f32 %v7347_v31, %v1150_v52 }
 0x486   :  { %9901 = vmatpush2.bf16.msra.mxu0 %v14025_v12  ;;  %v7480_v12 = vpop.f32.mrf.mxu1 }
 0x487   :  { %9902 = vmatprep.subr.bf16.mxu0 %v14030_v30  ;;  %v14100_v30 = vld [vmem:[%s19832_s3 + $0x198] ss:$20 sps:$4 sm:$0xff]  }
 0x488   :  { %9944 = vmatpush2.bf16.msra.mxu1 %v14127_v20 }
 0x489   :  { %9945 = vmatprep.subr.bf16.mxu1 %v14135_v41  ;;  %v14108_v41 = vld [vmem:[%s19832_s3 + $0x174] ss:$20 sps:$4 sm:$0xff]  }
 0x48a   :  { %9903 = vmatpush2.bf16.msra.mxu0 %v14028_v37  ;;  %v7350_v37 = vadd.f32 %v7349_v16, %v1146_v35 }
 0x48b   :  { %9958 = vmatprep.subr.bf16.mxu0 %v14033_v57 }
 0x48c   :  { %9946 = vmatpush2.bf16.msra.mxu1 %v14133_v11  ;;  %v7389_v11 = vadd.f32 %v7388_v4, %v7346_v13 }
 0x48d   :  { %9905 = vmatmul.mubr.bf16.vlgmr.msra.gmra.mxu0 %v17990_v25  ;;  %10001 = vmatprep.subr.bf16.mxu1 %v14141_v7  ;;  %v7517_v20 = vpop.f32.mrf.mxu0  ;;  %v7560_v57 = vpop.f32.mrf.mxu1  ;;  %v7391_v7 = vadd.f32 %v7390_v8, %v7348_v17 }
 0x48e   :  { %9959 = vmatpush1.bf16.msra.mxu0 %v14031_v61  ;;  %9990 = vmatprep.mubr.bf16.mxu0 %v18180_v46  ;;  %v14106_v61 = vld [vmem:[%s19832_s3 + $0x170] ss:$20 sps:$4 sm:$0xff]  }
 0x48f   :  { %9960 = vmatprep.subr.bf16.mxu0 %v14036_v40  ;;  %v7352_v40 = vadd.f32 %v7351_v45, %v1150_v52  ;;  %v14130_v52 = vld [vmem:[%s19832_s3 + $0x5d0] ss:$20 sps:$4 sm:$0xff]  }
 0x492   :  { %9961 = vmatpush1.bf16.msra.mxu0 %v14034_v10  ;;  %v7519_v10 = vpop.f32.mrf.mxu0 }
 0x493   :  { %9962 = vmatprep.subr.bf16.mxu0 %v14039_v9  ;;  %v14114_v9 = vld [vmem:[%s19832_s3 + $0x14c] ss:$20 sps:$4 sm:$0xff]  }
 0x496   :  { %9963 = vmatpush1.bf16.msra.mxu0 %v14037_v36  ;;  %v7393_v36 = vadd.f32 %v7392_v39, %v7350_v37 }
 0x497   :  { %9964 = vmatprep.subr.bf16.mxu0 %v14042_v62  ;;  %v7432_v62 = vadd.f32 %v7431_v59, %v7389_v11  ;;  %v14144_v11 = vld [vmem:[%s19832_s3 + $0x584] ss:$20 sps:$4 sm:$0xff]  }
 0x499   :  { %v7475_v26 = vadd.f32 %v7474_v27, %v7432_v62  ;;  %v14150_v62 = vld [vmem:[%s19832_s3 + $0x55c] ss:$20 sps:$4 sm:$0xff]  }
 0x49a   :  { %9965 = vmatpush1.bf16.msra.mxu0 %v14040_v18  ;;  %v7434_v18 = vadd.f32 %v7433_v3, %v7391_v7 }
 0x49b   :  { %9966 = vmatprep.subr.bf16.mxu0 %v14048_v29  ;;  %v7562_v29 = vpop.f32.mrf.mxu1 }
 0x49d   :  { %v7564_v4 = vpop.f32.mrf.mxu1 }
 0x49e   :  { %9967 = vmatpush1.bf16.msra.mxu0 %v14046_v55  ;;  %v7436_v55 = vadd.f32 %v7435_v50, %v7393_v36 }
 0x49f   :  { %9968 = vmatprep.subr.bf16.mxu0 %v14054_v19  ;;  %v14112_v19 = vld [vmem:[%s19832_s3 + $0x148] ss:$20 sps:$4 sm:$0xff]  }
 0x4a0   :  { %v7479_v31 = vadd.f32 %v7478_v21, %v7436_v55  ;;  %v14139_v55 = vld [vmem:[%s19832_s3 + $0x3a0] ss:$20 sps:$4 sm:$0xff]  }
 0x4a2   :  { %9969 = vmatpush1.bf16.msra.mxu0 %v14052_v2  ;;  %v7395_v2 = vadd.f32 %v7394_v53, %v7352_v40 }
 0x4a3   :  { %9970 = vmatprep.subr.bf16.mxu0 %v14060_v28  ;;  %v7521_v28 = vpop.f32.mrf.mxu0 }
 0x4a4   :  { %v7522_v39 = vadd.f32 %v7521_v28, %v7479_v31  ;;  %v14148_v28 = vld [vmem:[%s19832_s3 + $0x558] ss:$20 sps:$4 sm:$0xff]   ;;  %v14151_v31 = vld [vmem:[%s19832_s3 + $0x350] ss:$20 sps:$4 sm:$0xff]  }
 0x4a5   :  { %v7523_v16 = vpop.f32.mrf.mxu0 }
 0x4a6   :  { %9971 = vmatpush1.bf16.msra.mxu0 %v14058_v54  ;;  %v14120_v54 = vld [vmem:[%s19832_s3 + $0x624] ss:$20 sps:$4 sm:$0xff]   ;;  %v7565_v34 = vadd.f32 %v7564_v4, %v7522_v39  ;;  %v14166_v39 = vld [vmem:[%s19832_s3 + $0x760] ss:$20 sps:$4 sm:$0xff]  }
 0x4a7   :  { %9972 = vmatprep.subr.bf16.mxu0 %v14066_v6  ;;  %v7477_v6 = vadd.f32 %v7476_v22, %v7434_v18  ;;  %v14154_v4 = vld [vmem:[%s19832_s3 + $0x530] ss:$20 sps:$4 sm:$0xff]  }
 0x4a9   :  { %v7520_v8 = vadd.f32 %v7519_v10, %v7477_v6  ;;  %v14142_v10 = vld [vmem:[%s19832_s3 + $0x580] ss:$20 sps:$4 sm:$0xff]  }
 0x4aa   :  { %9973 = vmatpush1.bf16.msra.mxu0 %v14064_v23  ;;  %v7438_v23 = vadd.f32 %v7437_v49, %v7395_v2  ;;  %v14138_v49 = vld [vmem:[%s19832_s3 + $0x5ac] ss:$20 sps:$4 sm:$0xff]   ;;  %v14147_v2 = vld [vmem:[%s19832_s3 + $0x37c] ss:$20 sps:$4 sm:$0xff]   ;;  %v14153_v6 = vld [vmem:[%s19832_s3 + $0x354] ss:$20 sps:$4 sm:$0xff]  }
 0x4ab   :  { %9974 = vmatprep.subr.bf16.mxu0 %v14072_v43  ;;  %v7518_v43 = vadd.f32 %v7517_v20, %v7475_v26  ;;  %v7563_v59 = vadd.f32 %v7562_v29, %v7520_v8  ;;  %v14145_v26 = vld [vmem:[%s19832_s3 + $0x378] ss:$20 sps:$4 sm:$0xff]   ;;  %v14160_v8 = vld [vmem:[%s19832_s3 + $0x508] ss:$20 sps:$4 sm:$0xff]  }
 0x4ac   :  { %v7481_v45 = vadd.f32 %v7480_v12, %v7438_v23  ;;  %v14162_v23 = vld [vmem:[%s19832_s3 + $0x50c] ss:$20 sps:$4 sm:$0xff]  }
 0x4ad   :  { %v7561_v53 = vadd.f32 %v7560_v57, %v7518_v43  ;;  %v14159_v43 = vld [vmem:[%s19832_s3 + $0x32c] ss:$20 sps:$4 sm:$0xff]  }
 0x4ae   :  { %9975 = vmatpush2.bf16.msra.mxu0 %v14070_v60  ;;  %v14118_v60 = vld [vmem:[%s19832_s3 + $0x620] ss:$20 sps:$4 sm:$0xff]  }
 0x4af   :  { %9976 = vmatprep.subr.bf16.mxu0 %v14078_v32  ;;  %v14126_v32 = vld [vmem:[%s19832_s3 + $0x5fc] ss:$20 sps:$4 sm:$0xff]  }
 0x4b2   :  { %9977 = vmatpush2.bf16.msra.mxu0 %v14076_v47  ;;  %v7566_v47 = vpop.f32.mrf.mxu1 }
 0x4b3   :  { %9978 = vmatprep.subr.bf16.mxu0 %v14084_v63 }
 0x4b6   :  { %9979 = vmatpush2.bf16.msra.mxu0 %v14082_v58  ;;  %v14124_v58 = vld [vmem:[%s19832_s3 + $0x5f8] ss:$20 sps:$4 sm:$0xff]  }
 0x4b7   :  { %9980 = vmatprep.subr.bf16.mxu0 %v14090_v14  ;;  %v7524_v14 = vadd.f32 %v7523_v16, %v7481_v45  ;;  %v14157_v16 = vld [vmem:[%s19832_s3 + $0x328] ss:$20 sps:$4 sm:$0xff]   ;;  %v14163_v45 = vld [vmem:[%s19832_s3 + $0x300] ss:$20 sps:$4 sm:$0xff]  }
 0x4b9   :  { %v7567_v21 = vadd.f32 %v7566_v47, %v7524_v14  ;;  %v14174_v47 = vld [vmem:[%s19832_s3 + $0x73c] ss:$20 sps:$4 sm:$0xff]  }
 0x4ba   :  { %9981 = vmatpush2.bf16.msra.mxu0 %v14088_v33  ;;  %v14178_v14 = vld [vmem:[%s19832_s3 + $0x710] ss:$20 sps:$4 sm:$0xff]  }
 0x4bb   :  { %9982 = vmatprep.subr.bf16.mxu0 %v14096_v15 }
 0x4be   :  { %9983 = vmatpush2.bf16.msra.mxu0 %v14094_v5 }
 0x4bf   :  { %9984 = vmatprep.subr.bf16.mxu0 %v14102_v24 }
 0x4c2   :  { %9985 = vmatpush2.bf16.msra.mxu0 %v14100_v30 }
 0x4c3   :  { %9986 = vmatprep.subr.bf16.mxu0 %v14108_v41  ;;  %v14136_v41 = vld [vmem:[%s19832_s3 + $0x5a8] ss:$20 sps:$4 sm:$0xff]  }
 0x4c6   :  { %9987 = vmatpush2.bf16.msra.mxu0 %v14106_v61 }
 0x4c7   :  { %9988 = vmatprep.subr.bf16.mxu0 %v14114_v9 }
 0x4ca   :  { %9989 = vmatpush2.bf16.msra.mxu0 %v14112_v19 }
 0x4cb   :  { %10044 = vmatprep.subr.bf16.mxu0 %v14120_v54  ;;  %v14156_v54 = vld [vmem:[%s19832_s3 + $0x534] ss:$20 sps:$4 sm:$0xff]  }
 0x4cd   :  { %v7603_v63 = vpop.f32.mrf.mxu0  ;;  %9991 = vmatmul.mubr.bf16.vlgmr.msra.gmra.mxu0 %v19875_v56  ;;  %v7646_v27 = vpop.f32.mrf.mxu1 }
 0x4ce   :  { %10045 = vmatpush1.bf16.msra.mxu0 %v14118_v60  ;;  %10076 = vmatprep.mubr.bf16.mxu0 %v18390_v38  ;;  %v7604_v22 = vadd.f32 %v7603_v63, %v7561_v53  ;;  %v14168_v60 = vld [vmem:[%s19832_s3 + $0x764] ss:$20 sps:$4 sm:$0xff]   ;;  %v14171_v63 = vld [vmem:[%s19832_s3 + $0x2dc] ss:$20 sps:$4 sm:$0xff]  }
 0x4cf   :  { %v7605_v3 = vpop.f32.mrf.mxu0  ;;  %10046 = vmatprep.subr.bf16.mxu0 %v14126_v32  ;;  %v7648_v15 = vpop.f32.mrf.mxu1  ;;  %v14165_v32 = vld [vmem:[%s19832_s3 + $0x304] ss:$20 sps:$4 sm:$0xff]  }
 0x4d0   :  { %v7606_v33 = vadd.f32 %v7605_v3, %v7563_v59  ;;  %v7647_v13 = vadd.f32 %v7646_v27, %v7604_v22  ;;  %v14172_v53 = vld [vmem:[%s19832_s3 + $0x738] ss:$20 sps:$4 sm:$0xff]   ;;  %v14180_v59 = vld [vmem:[%s19832_s3 + $0x714] ss:$20 sps:$4 sm:$0xff]  }
 0x4d1   :  { %v7607_v50 = vpop.f32.mrf.mxu0  ;;  %v7650_v35 = vpop.f32.mrf.mxu1  ;;  %v14169_v27 = vld [vmem:[%s19832_s3 + $0x2d8] ss:$20 sps:$4 sm:$0xff]   ;;  %v14184_v22 = vld [vmem:[%s19832_s3 + $0x6e8] ss:$20 sps:$4 sm:$0xff]  }
 0x4d2   :  { %v7608_v1 = vadd.f32 %v7607_v50, %v7565_v34  ;;  %10047 = vmatpush1.bf16.msra.mxu0 %v14124_v58  ;;  %v7649_v5 = vadd.f32 %v7648_v15, %v7606_v33  ;;  %v7677_v7 = vmul.f32 0.2, %v7647_v13  ;;  %vm7661_vm14 = vcmp.gt.f32.partialorder %v7647_v13, 0.0  ;;  %v14177_v58 = vld [vmem:[%s19832_s3 + $0x2b4] ss:$20 sps:$4 sm:$0xff]  }
 0x4d3   :  { %v7609_v24 = vpop.f32.mrf.mxu0  ;;  %10048 = vmatprep.subr.bf16.mxu0 %v14132_v51  ;;  %v7652_v20 = vpop.f32.mrf.mxu1  ;;  %v14186_v3 = vld [vmem:[%s19832_s3 + $0x6ec] ss:$20 sps:$4 sm:$0xff]   ;;  %v14175_v51 = vld [vmem:[%s19832_s3 + $0x2b0] ss:$20 sps:$4 sm:$0xff]   ;;  %v14181_v15 = vld [vmem:[%s19832_s3 + $0x288] ss:$20 sps:$4 sm:$0xff]  }
 0x4d4   :  { %v7651_v17 = vadd.f32 %v7650_v35, %v7608_v1  ;;  %v7610_v12 = vadd.f32 %v7609_v24, %v7567_v21  ;;  %v7678_v37 = vmul.f32 0.2, %v7649_v5  ;;  %vm7662_vm13 = vcmp.gt.f32.partialorder %v7649_v5, 0.0  ;;  %v14183_v34 = vld [vmem:[%s19832_s3 + $0x28c] ss:$20 sps:$4 sm:$0xff]  }
 0x4d5   :  { %v7693_v18 = vsel %vm7661_vm14, %v7647_v13, %v7677_v7  ;;  %v14192_v33 = vld [vmem:[%s19832_s3 + $0x6c4] ss:$20 sps:$4 sm:$0xff]   ;;  %v14190_v1 = vld [vmem:[%s19832_s3 + $0x6c0] ss:$20 sps:$4 sm:$0xff]   ;;  %v14198_v35 = vld [vmem:[%s19832_s3 + $0x69c] ss:$20 sps:$4 sm:$0xff]  }
 0x4d6   :  { %v7685_v30 = vmul.f32 0.2, %v7651_v17  ;;  %10049 = vmatpush1.bf16.msra.mxu0 %v14130_v52  ;;  %vm7669_vm12 = vcmp.gt.f32.partialorder %v7651_v17, 0.0  ;;  %v7653_v57 = vadd.f32 %v7652_v20, %v7610_v12  ;;  %v7694_v9 = vsel %vm7662_vm13, %v7649_v5, %v7678_v37  ;;  %v14189_v50 = vld [vmem:[%s19832_s3 + $0x4e4] ss:$20 sps:$4 sm:$0xff]  }
 0x4d7   :  { %10050 = vmatprep.subr.bf16.mxu0 %v14138_v49  ;;  %v14187_v52 = vld [vmem:[%s19832_s3 + $0x4e0] ss:$20 sps:$4 sm:$0xff]   ;;  %v14195_v21 = vld [vmem:[%s19832_s3 + $0x4bc] ss:$20 sps:$4 sm:$0xff]   ;;  %v14196_v5 = vld [vmem:[%s19832_s3 + $0x698] ss:$20 sps:$4 sm:$0xff]  }
 0x4d8   :  { %vm7670_vm15 = vcmp.gt.f32.partialorder %v7653_v57, 0.0  ;;  %v7686_v61 = vmul.f32 0.2, %v7653_v57  ;;  %v7701_v40 = vsel %vm7669_vm12, %v7651_v17, %v7685_v30  ;;  %v14204_v24 = vld [vmem:[%s19832_s3 + $0x674] ss:$20 sps:$4 sm:$0xff]  }
 0x4d9   :  { %v18717_v19 = vpack.c.bf16 %v7701_v40, %v7693_v18  ;;  %v14193_v49 = vld [vmem:[%s19832_s3 + $0x4b8] ss:$20 sps:$4 sm:$0xff]   ;;  %v14201_v13 = vld [vmem:[%s19832_s3 + $0x494] ss:$20 sps:$4 sm:$0xff]   ;;  %v14202_v17 = vld [vmem:[%s19832_s3 + $0x670] ss:$20 sps:$4 sm:$0xff]  }
 0x4da   :  { %10051 = vmatpush1.bf16.msra.mxu0 %v14136_v41  ;;  %v7702_v36 = vsel %vm7670_vm15, %v7653_v57, %v7686_v61  ;;  %v14210_v12 = vld [vmem:[%s19832_s3 + $0x64c] ss:$20 sps:$4 sm:$0xff]   ;;  %v14199_v30 = vld [vmem:[%s19832_s3 + $0x490] ss:$20 sps:$4 sm:$0xff]   ;;  %v14208_v41 = vld [vmem:[%s19832_s3 + $0x648] ss:$20 sps:$4 sm:$0xff]  }
 0x4db   :  { %10052 = vmatprep.subr.bf16.mxu0 %v14144_v11  ;;  %v18712_v29 = vpack.c.bf16 %v7702_v36, %v7694_v9  ;;  %v14207_v20 = vld [vmem:[%s19832_s3 + $0x46c] ss:$20 sps:$4 sm:$0xff]   ;;  %v14214_v37 = vld [vmem:[%s19832_s3 + $0x268] ss:$20 sps:$4 sm:$0xff]   ;;  %v14213_v11 = vld [vmem:[%s19832_s3 + $0x444] ss:$20 sps:$4 sm:$0xff]  }
 0x4dc   :  { %v14205_v57 = vld [vmem:[%s19832_s3 + $0x468] ss:$20 sps:$4 sm:$0xff]   ;;  %v14219_v61 = vld [vmem:[%s19832_s3 + $0x240] ss:$20 sps:$4 sm:$0xff]   ;;  %v14216_v9 = vld [vmem:[%s19832_s3 + $0x418] ss:$20 sps:$4 sm:$0xff]  }
 0x4dd   :  { %9947 = vmatprep.mubr.bf16.mxu1 %v18712_v29  ;;  %v14215_v7 = vld [vmem:[%s19832_s3 + $0x128] ss:$20 sps:$4 sm:$0xff]   ;;  %v14211_v40 = vld [vmem:[%s19832_s3 + $0x440] ss:$20 sps:$4 sm:$0xff]  }
 0x4de   :  { %10053 = vmatpush1.bf16.msra.mxu0 %v14142_v10  ;;  %9948 = vmatmul.mubr.bf16.vlgmr.msra.gmra.mxu1 %v18717_v19  ;;  %v14218_v10 = vld [vmem:[%s19832_s3 + $0x41c] ss:$20 sps:$4 sm:$0xff]   ;;  %v14220_v36 = vld [vmem:[%s19832_s3 + $0x100] ss:$20 sps:$4 sm:$0xff]  }
 0x4df   :  { %10054 = vmatprep.subr.bf16.mxu0 %v14150_v62  ;;  %10002 = vmatpush1.bf16.msra.mxu1 %v14139_v55  ;;  %v14224_v62 = vld [vmem:[%s19832_s3 + $0x218] ss:$20 sps:$4 sm:$0xff]   ;;  %v14223_v18 = vld [vmem:[%s19832_s3 + $0x3f4] ss:$20 sps:$4 sm:$0xff]   ;;  %v14229_v55 = vld [vmem:[%s19832_s3 + $0x1f0] ss:$20 sps:$4 sm:$0xff]  }
 0x4e0   :  { %10033 = vmatprep.mubr.bf16.mxu1 %v18189_v0  ;;  %10003 = vmatprep.subr.bf16.mxu1 %v14147_v2  ;;  %v14221_v2 = vld [vmem:[%s19832_s3 + $0x3f0] ss:$20 sps:$4 sm:$0xff]  }
 0x4e2   :  { %10055 = vmatpush1.bf16.msra.mxu0 %v14148_v28  ;;  %v14228_v28 = vld [vmem:[%s19832_s3 + $0x3cc] ss:$20 sps:$4 sm:$0xff]  }
 0x4e3   :  { %10056 = vmatprep.subr.bf16.mxu0 %v14156_v54  ;;  %10004 = vmatpush1.bf16.msra.mxu1 %v14145_v26  ;;  %v14230_v54 = vld [vmem:[%s19832_s3 + $0xb0] ss:$20 sps:$4 sm:$0xff]   ;;  %v14234_v26 = vld [vmem:[%s19832_s3 + $0x1c8] ss:$20 sps:$4 sm:$0xff]  }
 0x4e4   :  { %10005 = vmatprep.subr.bf16.mxu1 %v14153_v6  ;;  %v14226_v6 = vld [vmem:[%s19832_s3 + $0x3c8] ss:$20 sps:$4 sm:$0xff]  }
 0x4e6   :  { %10057 = vmatpush1.bf16.msra.mxu0 %v14154_v4  ;;  %v14233_v4 = vld [vmem:[%s19832_s3 + $0x8a4] ss:$20 sps:$4 sm:$0xff]  }
 0x4e7   :  { %10058 = vmatprep.subr.bf16.mxu0 %v14162_v23  ;;  %10006 = vmatpush1.bf16.msra.mxu1 %v14151_v31  ;;  %v14235_v23 = vld [vmem:[%s19832_s3 + $0x88] ss:$20 sps:$4 sm:$0xff]   ;;  %v14239_v31 = vld [vmem:[%s19832_s3 + $0x1a0] ss:$20 sps:$4 sm:$0xff]  }
 0x4e8   :  { %10007 = vmatprep.subr.bf16.mxu1 %v14159_v43  ;;  %v14231_v43 = vld [vmem:[%s19832_s3 + $0x8a0] ss:$20 sps:$4 sm:$0xff]  }
 0x4ea   :  { %10059 = vmatpush1.bf16.msra.mxu0 %v14160_v8  ;;  %v14238_v8 = vld [vmem:[%s19832_s3 + $0x87c] ss:$20 sps:$4 sm:$0xff]  }
 0x4eb   :  { %10060 = vmatprep.subr.bf16.mxu0 %v14168_v60  ;;  %10008 = vmatpush1.bf16.msra.mxu1 %v14157_v16  ;;  %v14240_v60 = vld [vmem:[%s19832_s3 + $0x60] ss:$20 sps:$4 sm:$0xff]   ;;  %v14236_v16 = vld [vmem:[%s19832_s3 + $0x878] ss:$20 sps:$4 sm:$0xff]  }
 0x4ec   :  { %10009 = vmatprep.subr.bf16.mxu1 %v14165_v32  ;;  %v14244_v32 = vld [vmem:[%s19832_s3 + $0x178] ss:$20 sps:$4 sm:$0xff]  }
 0x4ee   :  { %10061 = vmatpush2.bf16.msra.mxu0 %v14166_v39  ;;  %v14243_v39 = vld [vmem:[%s19832_s3 + $0x854] ss:$20 sps:$4 sm:$0xff]  }
 0x4ef   :  { %10062 = vmatprep.subr.bf16.mxu0 %v14174_v47  ;;  %10010 = vmatpush1.bf16.msra.mxu1 %v14163_v45  ;;  %v14245_v47 = vld [vmem:[%s19832_s3 + $0x38] ss:$20 sps:$4 sm:$0xff]   ;;  %v14241_v45 = vld [vmem:[%s19832_s3 + $0x850] ss:$20 sps:$4 sm:$0xff]  }
 0x4f0   :  { %10011 = vmatprep.subr.bf16.mxu1 %v14171_v63  ;;  %v14249_v63 = vld [vmem:[%s19832_s3 + $0x150] ss:$20 sps:$4 sm:$0xff]  }
 0x4f2   :  { %10063 = vmatpush2.bf16.msra.mxu0 %v14172_v53  ;;  %v14248_v53 = vld [vmem:[%s19832_s3 + $0x82c] ss:$20 sps:$4 sm:$0xff]  }
 0x4f3   :  { %10064 = vmatprep.subr.bf16.mxu0 %v14180_v59  ;;  %10012 = vmatpush1.bf16.msra.mxu1 %v14169_v27  ;;  %v14250_v59 = vld [vmem:[%s19832_s3 + $0x10] ss:$20 sps:$4 sm:$0xff]   ;;  %v14246_v27 = vld [vmem:[%s19832_s3 + $0x828] ss:$20 sps:$4 sm:$0xff]  }
 0x4f4   :  { %10013 = vmatprep.subr.bf16.mxu1 %v14177_v58  ;;  %v14254_v58 = vld [vmem:[%s19832_s3 + $0x768] ss:$20 sps:$4 sm:$0xff]  }
 0x4f6   :  { %10065 = vmatpush2.bf16.msra.mxu0 %v14178_v14  ;;  %v14253_v14 = vld [vmem:[%s19832_s3 + $0x804] ss:$20 sps:$4 sm:$0xff]  }
 0x4f7   :  { %10066 = vmatprep.subr.bf16.mxu0 %v14186_v3  ;;  %10014 = vmatpush1.bf16.msra.mxu1 %v14175_v51  ;;  %v14255_v3 = vld [vmem:[%s19832_s3 + $0x628] ss:$20 sps:$4 sm:$0xff]   ;;  %v14259_v51 = vld [vmem:[%s19832_s3 + $0x740] ss:$20 sps:$4 sm:$0xff]  }
 0x4f8   :  { %10015 = vmatprep.subr.bf16.mxu1 %v14183_v34  ;;  %v14251_v34 = vld [vmem:[%s19832_s3 + $0x800] ss:$20 sps:$4 sm:$0xff]  }
 0x4fa   :  { %10067 = vmatpush2.bf16.msra.mxu0 %v14184_v22  ;;  %v14258_v22 = vld [vmem:[%s19832_s3 + $0x7dc] ss:$20 sps:$4 sm:$0xff]  }
 0x4fb   :  { %10068 = vmatprep.subr.bf16.mxu0 %v14192_v33  ;;  %10016 = vmatpush1.bf16.msra.mxu1 %v14181_v15  ;;  %v14260_v33 = vld [vmem:[%s19832_s3 + $0x600] ss:$20 sps:$4 sm:$0xff]   ;;  %v14264_v15 = vld [vmem:[%s19832_s3 + $0x718] ss:$20 sps:$4 sm:$0xff]  }
 0x4fc   :  { %10017 = vmatprep.subr.bf16.mxu1 %v14189_v50  ;;  %v14256_v50 = vld [vmem:[%s19832_s3 + $0x7d8] ss:$20 sps:$4 sm:$0xff]  }
 0x4fe   :  { %10069 = vmatpush2.bf16.msra.mxu0 %v14190_v1  ;;  %v14263_v1 = vld [vmem:[%s19832_s3 + $0x7b4] ss:$20 sps:$4 sm:$0xff]  }
 0x4ff   :  { %10070 = vmatprep.subr.bf16.mxu0 %v14198_v35  ;;  %10018 = vmatpush2.bf16.msra.mxu1 %v14187_v52  ;;  %v14269_v35 = vld [vmem:[%s19832_s3 + $0x6f0] ss:$20 sps:$4 sm:$0xff]   ;;  %v14268_v52 = vld [vmem:[%s19832_s3 + $0x78c] ss:$20 sps:$4 sm:$0xff]  }
 0x500   :  { %10019 = vmatprep.subr.bf16.mxu1 %v14195_v21  ;;  %v14270_v21 = vld [vmem:[%s19832_s3 + $0x5b0] ss:$20 sps:$4 sm:$0xff]  }
 0x502   :  { %10071 = vmatpush2.bf16.msra.mxu0 %v14196_v5  ;;  %v14274_v5 = vld [vmem:[%s19832_s3 + $0x6c8] ss:$20 sps:$4 sm:$0xff]  }
 0x503   :  { %10072 = vmatprep.subr.bf16.mxu0 %v14204_v24  ;;  %10020 = vmatpush2.bf16.msra.mxu1 %v14193_v49  ;;  %v14266_v24 = vld [vmem:[%s19832_s3 + $0x788] ss:$20 sps:$4 sm:$0xff]   ;;  %v14273_v49 = vld [vmem:[%s19832_s3 + $0x9e4] ss:$20 sps:$4 sm:$0xff]  }
 0x504   :  { %10021 = vmatprep.subr.bf16.mxu1 %v14201_v13  ;;  %v14275_v13 = vld [vmem:[%s19832_s3 + $0x588] ss:$20 sps:$4 sm:$0xff]  }
 0x506   :  { %10073 = vmatpush2.bf16.msra.mxu0 %v14202_v17  ;;  %v14279_v17 = vld [vmem:[%s19832_s3 + $0x6a0] ss:$20 sps:$4 sm:$0xff]  }
 0x507   :  { %10074 = vmatprep.subr.bf16.mxu0 %v14210_v12  ;;  %10022 = vmatpush2.bf16.msra.mxu1 %v14199_v30  ;;  %v14271_v12 = vld [vmem:[%s19832_s3 + $0x9e0] ss:$20 sps:$4 sm:$0xff]   ;;  %v14278_v30 = vld [vmem:[%s19832_s3 + $0x9bc] ss:$20 sps:$4 sm:$0xff]  }
 0x508   :  { %10023 = vmatprep.subr.bf16.mxu1 %v14207_v20  ;;  %v14280_v20 = vld [vmem:[%s19832_s3 + $0x560] ss:$20 sps:$4 sm:$0xff]  }
 0x50a   :  { %10075 = vmatpush2.bf16.msra.mxu0 %v14208_v41  ;;  %v14284_v41 = vld [vmem:[%s19832_s3 + $0x678] ss:$20 sps:$4 sm:$0xff]  }
 0x50b   :  { %13672 = vmatprep.subr.bf16.mxu0 %v14214_v37  ;;  %10024 = vmatpush2.bf16.msra.mxu1 %v14205_v57  ;;  %v14276_v37 = vld [vmem:[%s19832_s3 + $0x9b8] ss:$20 sps:$4 sm:$0xff]   ;;  %v14283_v57 = vld [vmem:[%s19832_s3 + $0x994] ss:$20 sps:$4 sm:$0xff]  }
 0x50c   :  { %10025 = vmatprep.subr.bf16.mxu1 %v14213_v11  ;;  %v14285_v11 = vld [vmem:[%s19832_s3 + $0x538] ss:$20 sps:$4 sm:$0xff]  }
 0x50d   :  { %10077 = vmatmul.mubr.bf16.vlgmr.msra.gmra.mxu0 %v17990_v25 }
 0x50e   :  { %13673 = vmatpush3.bf16.msra.mxu0 %v14215_v7  ;;  %10162 = vmatprep.mubr.bf16.mxu0 %v18180_v46  ;;  %v14225_v46 = vld [vmem:[%s19832_s3 + $0xd8] ss:$20 sps:$4 sm:$0xff]   ;;  %v14289_v7 = vld [vmem:[%s19832_s3 + $0x650] ss:$20 sps:$4 sm:$0xff]  }
 0x50f   :  { %13674 = vmatprep.subr.bf16.mxu0 %v14219_v61  ;;  %10026 = vmatpush2.bf16.msra.mxu1 %v14211_v40  ;;  %v14281_v61 = vld [vmem:[%s19832_s3 + $0x990] ss:$20 sps:$4 sm:$0xff]   ;;  %v14288_v40 = vld [vmem:[%s19832_s3 + $0x96c] ss:$20 sps:$4 sm:$0xff]  }
 0x510   :  { %10027 = vmatprep.subr.bf16.mxu1 %v14218_v10  ;;  %v14290_v10 = vld [vmem:[%s19832_s3 + $0x510] ss:$20 sps:$4 sm:$0xff]  }
 0x512   :  { %13675 = vmatpush3.bf16.msra.mxu0 %v14220_v36  ;;  %v14286_v36 = vld [vmem:[%s19832_s3 + $0x968] ss:$20 sps:$4 sm:$0xff]  }
 0x513   :  { %13676 = vmatprep.subr.bf16.mxu0 %v14224_v62  ;;  %10028 = vmatpush2.bf16.msra.mxu1 %v14216_v9  ;;  %v14314_v9 = vld [vmem:[%s19833_s5 + $0xac] ss:$12 sps:$4 sm:$0xff]  }
 0x514   :  { %10029 = vmatprep.subr.bf16.mxu1 %v14223_v18  ;;  %v14293_v62 = vld [vmem:[%s19832_s3 + $0x944] ss:$20 sps:$4 sm:$0xff]   ;;  %v14312_v18 = vld [vmem:[%s19833_s5 + $0xa8] ss:$12 sps:$4 sm:$0xff]  }
 0x516   :  { %13677 = vmatpush3.bf16.msra.mxu0 %v14225_v46  ;;  %v14319_v46 = vld [vmem:[%s19833_s5 + $0x94] ss:$12 sps:$4 sm:$0xff]  }
 0x517   :  { %13678 = vmatprep.subr.bf16.mxu0 %v14229_v55  ;;  %10030 = vmatpush2.bf16.msra.mxu1 %v14221_v2  ;;  %v14291_v55 = vld [vmem:[%s19832_s3 + $0x940] ss:$20 sps:$4 sm:$0xff]   ;;  %v14296_v2 = vld [vmem:[%s19832_s3 + $0x91c] ss:$20 sps:$4 sm:$0xff]  }
 0x518   :  { %10031 = vmatprep.subr.bf16.mxu1 %v14228_v28  ;;  %v14317_v28 = vld [vmem:[%s19833_s5 + $0x90] ss:$12 sps:$4 sm:$0xff]  }
 0x51a   :  { %13679 = vmatpush3.bf16.msra.mxu0 %v14230_v54  ;;  %v14324_v54 = vld [vmem:[%s19833_s5 + $0x7c] ss:$12 sps:$4 sm:$0xff]  }
 0x51b   :  { %13680 = vmatprep.subr.bf16.mxu0 %v14234_v26  ;;  %10032 = vmatpush2.bf16.msra.mxu1 %v14226_v6  ;;  %v14294_v26 = vld [vmem:[%s19832_s3 + $0x918] ss:$20 sps:$4 sm:$0xff]  }
 0x51c   :  { %10087 = vmatprep.subr.bf16.mxu1 %v14233_v4  ;;  %v14322_v6 = vld [vmem:[%s19833_s5 + $0x78] ss:$12 sps:$4 sm:$0xff]  }
 0x51d   :  { %v14329_v4 = vld [vmem:[%s19833_s5 + $0x64] ss:$12 sps:$4 sm:$0xff]  }
 0x51e   :  { %13681 = vmatpush3.bf16.msra.mxu0 %v14235_v23  ;;  %10034 = vmatmul.mubr.bf16.vlgmr.msra.gmra.mxu1 %v19876_v48  ;;  %v14297_v23 = vld [vmem:[%s19832_s3 + $0x8f0] ss:$20 sps:$4 sm:$0xff]  }
 0x51f   :  { %13682 = vmatprep.subr.bf16.mxu0 %v14239_v31  ;;  %10088 = vmatpush1.bf16.msra.mxu1 %v14231_v43  ;;  %v14302_v31 = vld [vmem:[%s19832_s3 + $0x8cc] ss:$20 sps:$4 sm:$0xff]  }
 0x520   :  { %10119 = vmatprep.mubr.bf16.mxu1 %v18712_v29  ;;  %10089 = vmatprep.subr.bf16.mxu1 %v14238_v8  ;;  %v14327_v43 = vld [vmem:[%s19833_s5 + $0x60] ss:$12 sps:$4 sm:$0xff]  }
 0x521   :  { %v14334_v8 = vld [vmem:[%s19833_s5 + $0x4c] ss:$12 sps:$4 sm:$0xff]  }
 0x522   :  { %13683 = vmatpush3.bf16.msra.mxu0 %v14240_v60  ;;  %v14300_v60 = vld [vmem:[%s19832_s3 + $0x8c8] ss:$20 sps:$4 sm:$0xff]  }
 0x523   :  { %13684 = vmatprep.subr.bf16.mxu0 %v14244_v32  ;;  %10090 = vmatpush1.bf16.msra.mxu1 %v14236_v16  ;;  %v14303_v16 = vld [vmem:[%s19832_s3 + $0x4e8] ss:$20 sps:$4 sm:$0xff]  }
 0x524   :  { %10091 = vmatprep.subr.bf16.mxu1 %v14243_v39  ;;  %v14332_v32 = vld [vmem:[%s19833_s5 + $0x48] ss:$12 sps:$4 sm:$0xff]  }
 0x525   :  { %v14339_v39 = vld [vmem:[%s19833_s5 + $0x34] ss:$12 sps:$4 sm:$0xff]  }
 0x526   :  { %13685 = vmatpush3.bf16.msra.mxu0 %v14245_v47  ;;  %v14304_v47 = vld [vmem:[%s19832_s3 + $0x3a8] ss:$20 sps:$4 sm:$0xff]  }
 0x527   :  { %13686 = vmatprep.subr.bf16.mxu0 %v14249_v63  ;;  %10092 = vmatpush1.bf16.msra.mxu1 %v14241_v45  ;;  %v14305_v45 = vld [vmem:[%s19832_s3 + $0x4c0] ss:$20 sps:$4 sm:$0xff]   ;;  %v14337_v63 = vld [vmem:[%s19833_s5 + $0x30] ss:$12 sps:$4 sm:$0xff]  }
 0x528   :  { %10093 = vmatprep.subr.bf16.mxu1 %v14248_v53  ;;  %v14344_v53 = vld [vmem:[%s19833_s5 + $0x1c] ss:$12 sps:$4 sm:$0xff]  }
 0x52a   :  { %13687 = vmatpush3.bf16.msra.mxu0 %v14250_v59  ;;  %v14306_v59 = vld [vmem:[%s19832_s3 + $0x380] ss:$20 sps:$4 sm:$0xff]  }
 0x52b   :  { %13716 = vmatprep.subr.bf16.mxu0 %v14254_v58  ;;  %10094 = vmatpush1.bf16.msra.mxu1 %v14246_v27  ;;  %v14307_v27 = vld [vmem:[%s19832_s3 + $0x498] ss:$20 sps:$4 sm:$0xff]  }
 0x52c   :  { %10095 = vmatprep.subr.bf16.mxu1 %v14253_v14  ;;  %v14342_v58 = vld [vmem:[%s19833_s5 + $0x18] ss:$12 sps:$4 sm:$0xff]  }
 0x52d   :  { %10163 = vmatmul.mubr.bf16.vlgmr.msra.gmra.mxu0 %v19875_v56  ;;  %v14265_v56 = vld [vmem:[%s19832_s3 + $0x5d8] ss:$20 sps:$4 sm:$0xff]   ;;  %v14349_v14 = vld [vmem:[%s19833_s5 + $0x4] ss:$12 sps:$4 sm:$0xff]  }
 0x52e   :  { %13717 = vmatpush3.bf16.msra.mxu0 %v14255_v3  ;;  %10244 = vmatprep.mubr.bf16.mxu0 %v18390_v38  ;;  %v14261_v38 = vld [vmem:[%s19832_s3 + $0x7b0] ss:$20 sps:$4 sm:$0xff]  }
 0x52f   :  { %13718 = vmatprep.subr.bf16.mxu0 %v14259_v51  ;;  %10096 = vmatpush1.bf16.msra.mxu1 %v14251_v34  ;;  %v14309_v3 = vld [vmem:[%s19832_s3 + $0x470] ss:$20 sps:$4 sm:$0xff]   ;;  %v14347_v51 = vld [vmem:[%s19833_s5] ss:$12 sps:$4 sm:$0xff]  }
 0x530   :  { %10097 = vmatprep.subr.bf16.mxu1 %v14258_v22  ;;  %v14354_v34 = vld [vmem:[%s19833_s5 + $0x16c] ss:$12 sps:$4 sm:$0xff]   ;;  %v14310_v22 = vld [vmem:[%s19832_s3 + $0x330] ss:$20 sps:$4 sm:$0xff]  }
 0x532   :  { %13719 = vmatpush3.bf16.msra.mxu0 %v14260_v33  ;;  %v14311_v33 = vld [vmem:[%s19832_s3 + $0x448] ss:$20 sps:$4 sm:$0xff]  }
 0x533   :  { %13720 = vmatprep.subr.bf16.mxu0 %v14264_v15  ;;  %10098 = vmatpush1.bf16.msra.mxu1 %v14256_v50  ;;  %v14352_v15 = vld [vmem:[%s19833_s5 + $0x168] ss:$12 sps:$4 sm:$0xff]  }
 0x534   :  { %10099 = vmatprep.subr.bf16.mxu1 %v14263_v1  ;;  %v14359_v50 = vld [vmem:[%s19833_s5 + $0x154] ss:$12 sps:$4 sm:$0xff]   ;;  %v14315_v1 = vld [vmem:[%s19832_s3 + $0x308] ss:$20 sps:$4 sm:$0xff]  }
 0x536   :  { %13721 = vmatpush3.bf16.msra.mxu0 %v14265_v56  ;;  %v14316_v56 = vld [vmem:[%s19832_s3 + $0x420] ss:$20 sps:$4 sm:$0xff]  }
 0x537   :  { %13722 = vmatprep.subr.bf16.mxu0 %v14269_v35  ;;  %10100 = vmatpush1.bf16.msra.mxu1 %v14261_v38  ;;  %v14357_v35 = vld [vmem:[%s19833_s5 + $0x150] ss:$12 sps:$4 sm:$0xff]  }
 0x538   :  { %10101 = vmatprep.subr.bf16.mxu1 %v14268_v52  ;;  %v14364_v38 = vld [vmem:[%s19833_s5 + $0x13c] ss:$12 sps:$4 sm:$0xff]   ;;  %v14320_v52 = vld [vmem:[%s19832_s3 + $0x2e0] ss:$20 sps:$4 sm:$0xff]  }
 0x53a   :  { %13723 = vmatpush3.bf16.msra.mxu0 %v14270_v21  ;;  %v14321_v21 = vld [vmem:[%s19832_s3 + $0x3f8] ss:$20 sps:$4 sm:$0xff]  }
 0x53b   :  { %13724 = vmatprep.subr.bf16.mxu0 %v14274_v5  ;;  %10102 = vmatpush1.bf16.msra.mxu1 %v14266_v24  ;;  %v14362_v5 = vld [vmem:[%s19833_s5 + $0x138] ss:$12 sps:$4 sm:$0xff]  }
 0x53c   :  { %10103 = vmatprep.subr.bf16.mxu1 %v14273_v49  ;;  %v14369_v24 = vld [vmem:[%s19833_s5 + $0x124] ss:$12 sps:$4 sm:$0xff]   ;;  %v14325_v49 = vld [vmem:[%s19832_s3 + $0x2b8] ss:$20 sps:$4 sm:$0xff]  }
 0x53e   :  { %13725 = vmatpush3.bf16.msra.mxu0 %v14275_v13  ;;  %v14326_v13 = vld [vmem:[%s19832_s3 + $0x3d0] ss:$20 sps:$4 sm:$0xff]  }
 0x53f   :  { %13726 = vmatprep.subr.bf16.mxu0 %v14279_v17  ;;  %10104 = vmatpush2.bf16.msra.mxu1 %v14271_v12  ;;  %v14367_v17 = vld [vmem:[%s19833_s5 + $0x120] ss:$12 sps:$4 sm:$0xff]  }
 0x540   :  { %10105 = vmatprep.subr.bf16.mxu1 %v14278_v30  ;;  %v14373_v12 = vld [vmem:[%s19833_s5 + $0x10c] ss:$12 sps:$4 sm:$0xff]   ;;  %v14330_v30 = vld [vmem:[%s19832_s3 + $0x290] ss:$20 sps:$4 sm:$0xff]  }
 0x542   :  { %13727 = vmatpush3.bf16.msra.mxu0 %v14280_v20  ;;  %v14331_v20 = vld [vmem:[%s19832_s3 + $0x9e8] ss:$20 sps:$4 sm:$0xff]  }
 0x543   :  { %13728 = vmatprep.subr.bf16.mxu0 %v14284_v41  ;;  %10106 = vmatpush2.bf16.msra.mxu1 %v14276_v37  ;;  %v14371_v41 = vld [vmem:[%s19833_s5 + $0x108] ss:$12 sps:$4 sm:$0xff]  }
 0x544   :  { %10107 = vmatprep.subr.bf16.mxu1 %v14283_v57  ;;  %v14376_v37 = vld [vmem:[%s19833_s5 + $0xf4] ss:$12 sps:$4 sm:$0xff]   ;;  %v14335_v57 = vld [vmem:[%s19832_s3 + $0x8a8] ss:$20 sps:$4 sm:$0xff]  }
 0x546   :  { %13729 = vmatpush3.bf16.msra.mxu0 %v14285_v11  ;;  %v14336_v11 = vld [vmem:[%s19832_s3 + $0x9c0] ss:$20 sps:$4 sm:$0xff]  }
 0x547   :  { %13730 = vmatprep.subr.bf16.mxu0 %v14289_v7  ;;  %10108 = vmatpush2.bf16.msra.mxu1 %v14281_v61  ;;  %v14374_v7 = vld [vmem:[%s19833_s5 + $0xf0] ss:$12 sps:$4 sm:$0xff]  }
 0x548   :  { %10109 = vmatprep.subr.bf16.mxu1 %v14288_v40  ;;  %v14379_v61 = vld [vmem:[%s19833_s5 + $0xdc] ss:$12 sps:$4 sm:$0xff]   ;;  %v14340_v40 = vld [vmem:[%s19832_s3 + $0x880] ss:$20 sps:$4 sm:$0xff]  }
 0x54a   :  { %13731 = vmatpush3.bf16.msra.mxu0 %v14290_v10  ;;  %v14341_v10 = vld [vmem:[%s19832_s3 + $0x998] ss:$20 sps:$4 sm:$0xff]  }
 0x54b   :  { %11146 = vmatprep.subr.bf16.mxu0 %v14314_v9  ;;  %10110 = vmatpush2.bf16.msra.mxu1 %v14286_v36  ;;  %v14382_v9 = vld [vmem:[%s19833_s5 + $0xc4] ss:$12 sps:$4 sm:$0xff]  }
 0x54c   :  { %10111 = vmatprep.subr.bf16.mxu1 %v14293_v62  ;;  %v14346_v36 = vld [vmem:[%s19832_s3 + $0x970] ss:$20 sps:$4 sm:$0xff]   ;;  %v14380_v62 = vld [vmem:[%s19833_s5 + $0xc0] ss:$12 sps:$4 sm:$0xff]  }
 0x54d   :  { %10245 = vmatmul.mubr.bf16.vlgmr.msra.gmra.mxu0 %v17990_v25  ;;  %v14299_v25 = vld [vmem:[%s19832_s3 + $0x8f4] ss:$20 sps:$4 sm:$0xff]  }
 0x54e   :  { %11147 = vmatpush1.bf16.msra.mxu0 %v14312_v18  ;;  %v9820_v18 = vpop.f32.mrf.mxu0 }
 0x54f   :  { %11148 = vmatprep.subr.bf16.mxu0 %v14319_v46  ;;  %10112 = vmatpush2.bf16.msra.mxu1 %v14291_v55  ;;  %v14350_v46 = vld [vmem:[%s19832_s3 + $0x830] ss:$20 sps:$4 sm:$0xff]   ;;  %v14351_v55 = vld [vmem:[%s19832_s3 + $0x948] ss:$20 sps:$4 sm:$0xff]  }
 0x550   :  { %10113 = vmatprep.subr.bf16.mxu1 %v14296_v2  ;;  %v9822_v2 = vpop.f32.mrf.mxu0 }
 0x552   :  { %11149 = vmatpush1.bf16.msra.mxu0 %v14317_v28  ;;  %v14355_v28 = vld [vmem:[%s19832_s3 + $0x808] ss:$20 sps:$4 sm:$0xff]  }
 0x553   :  { %11150 = vmatprep.subr.bf16.mxu0 %v14324_v54  ;;  %10114 = vmatpush2.bf16.msra.mxu1 %v14294_v26  ;;  %v14356_v54 = vld [vmem:[%s19832_s3 + $0x920] ss:$20 sps:$4 sm:$0xff]   ;;  %v9824_v26 = vpop.f32.mrf.mxu0 }
 0x554   :  { %10115 = vmatprep.subr.bf16.mxu1 %v14299_v25  ;;  %v14360_v25 = vld [vmem:[%s19832_s3 + $0x7e0] ss:$20 sps:$4 sm:$0xff]  }
 0x556   :  { %11151 = vmatpush1.bf16.msra.mxu0 %v14322_v6  ;;  %v9863_v6 = vpop.f32.mrf.mxu1 }
 0x557   :  { %11152 = vmatprep.subr.bf16.mxu0 %v14329_v4  ;;  %10116 = vmatpush2.bf16.msra.mxu1 %v14297_v23  ;;  %v14361_v4 = vld [vmem:[%s19832_s3 + $0x8f8] ss:$20 sps:$4 sm:$0xff]   ;;  %v9826_v23 = vpop.f32.mrf.mxu0 }
 0x558   :  { %10117 = vmatprep.subr.bf16.mxu1 %v14302_v31  ;;  %v19264_v31 = vld [vmem:[%s19834_s4] sm:$0x1f] }
 0x55a   :  { %11153 = vmatpush1.bf16.msra.mxu0 %v14327_v43  ;;  %v14365_v43 = vld [vmem:[%s19832_s3 + $0x7b8] ss:$20 sps:$4 sm:$0xff]  }
 0x55b   :  { %11154 = vmatprep.subr.bf16.mxu0 %v14334_v8  ;;  %10118 = vmatpush2.bf16.msra.mxu1 %v14300_v60  ;;  %v9865_v8 = vpop.f32.mrf.mxu1  ;;  %v9906_v60 = vpop.f32.mrf.mxu0 }
 0x55c   :  { %13694 = vmatprep.subr.bf16.mxu1 %v14303_v16  ;;  %v14366_v16 = vld [vmem:[%s19832_s3 + $0x8d0] ss:$20 sps:$4 sm:$0xff]  }
 0x55e   :  { %11155 = vmatpush1.bf16.msra.mxu0 %v14332_v32  ;;  %10120 = vmatmul.mubr.bf16.vlgmr.msra.gmra.mxu1 %v18717_v19  ;;  %v8104_v32 = vrot.slane %v19264_v31, %v18011_v44 }
 0x55f   :  { %11156 = vmatprep.subr.bf16.mxu0 %v14339_v39  ;;  %13695 = vmatpush3.bf16.msra.mxu1 %v14304_v47  ;;  %v19877_v39 = vld [vmem:[#allocation2_spill] sm:$0xff] }
 0x560   :  { %10203 = vmatprep.mubr.bf16.mxu1 %v18189_v0  ;;  %13696 = vmatprep.subr.bf16.mxu1 %v14305_v45  ;;  %v14308_v0 = vld [vmem:[%s19832_s3 + $0x358] ss:$20 sps:$4 sm:$0xff]   ;;  %v8100_v47 = vrot.slane %v19264_v31, %v19877_v39  ;;  %v14370_v45 = vld [vmem:[%s19832_s3 + $0x790] ss:$20 sps:$4 sm:$0xff]  }
 0x562   :  { %11157 = vmatpush1.bf16.msra.mxu0 %v14337_v63  ;;  %v9867_v63 = vpop.f32.mrf.mxu1 }
 0x563   :  { %11158 = vmatprep.subr.bf16.mxu0 %v14344_v53  ;;  %13697 = vmatpush3.bf16.msra.mxu1 %v14306_v59  ;;  %v9908_v53 = vpop.f32.mrf.mxu0  ;;  %v14385_v59 = vld [vmem:[%s19833_s5 + $0x22c] ss:$12 sps:$4 sm:$0xff]  }
 0x564   :  { %13698 = vmatprep.subr.bf16.mxu1 %v14307_v27  ;;  %v9823_v27 = vadd.f32 %v9822_v2, %v8104_v32  ;;  %v14400_v2 = vld [vmem:[%s19833_s5 + $0x1b4] ss:$12 sps:$4 sm:$0xff]  }
 0x566   :  { %11159 = vmatpush1.bf16.msra.mxu0 %v14342_v58  ;;  %v9821_v58 = vadd.f32 %v9820_v18, %v8100_v47 }
 0x567   :  { %11160 = vmatprep.subr.bf16.mxu0 %v14349_v14  ;;  %13699 = vmatpush3.bf16.msra.mxu1 %v14308_v0  ;;  %v9825_v14 = vadd.f32 %v9824_v26, %v8100_v47  ;;  %v14383_v0 = vld [vmem:[%s19833_s5 + $0x228] ss:$12 sps:$4 sm:$0xff]   ;;  %v14401_v26 = vld [vmem:[%s19833_s5 + $0x198] ss:$12 sps:$4 sm:$0xff]   ;;  %v14416_v47 = vld [vmem:[%s19833_s5 + $0x2a0] ss:$12 sps:$4 sm:$0xff]  }
 0x568   :  { %13700 = vmatprep.subr.bf16.mxu1 %v14309_v3  ;;  %v9869_v3 = vpop.f32.mrf.mxu1 }
 0x56a   :  { %11161 = vmatpush1.bf16.msra.mxu0 %v14347_v51  ;;  %v9910_v51 = vpop.f32.mrf.mxu0 }
 0x56b   :  { %11162 = vmatprep.subr.bf16.mxu0 %v14354_v34  ;;  %13701 = vmatpush3.bf16.msra.mxu1 %v14310_v22  ;;  %v14388_v34 = vld [vmem:[%s19833_s5 + $0x214] ss:$12 sps:$4 sm:$0xff]   ;;  %v9866_v22 = vadd.f32 %v9865_v8, %v9823_v27  ;;  %v14410_v8 = vld [vmem:[%s19833_s5 + $0x2d0] ss:$12 sps:$4 sm:$0xff]  }
 0x56c   :  { %13702 = vmatprep.subr.bf16.mxu1 %v14311_v33  ;;  %v9827_v33 = vadd.f32 %v9826_v23, %v8104_v32  ;;  %v14407_v23 = vld [vmem:[%s19833_s5 + $0x2e8] ss:$12 sps:$4 sm:$0xff]   ;;  %v14418_v32 = vld [vmem:[%s19833_s5 + $0x2a4] ss:$12 sps:$4 sm:$0xff]  }
 0x56d   :  { %v14447_v27 = vld [vmem:[%s19833_s5 + $0x3a8] ss:$12 sps:$4 sm:$0xff]  }
 0x56e   :  { %11163 = vmatpush2.bf16.msra.mxu0 %v14352_v15  ;;  %v9864_v15 = vadd.f32 %v9863_v6, %v9821_v58  ;;  %v14404_v6 = vld [vmem:[%s19833_s5 + $0x180] ss:$12 sps:$4 sm:$0xff]  }
 0x56f   :  { %11164 = vmatprep.subr.bf16.mxu0 %v14359_v50  ;;  %13703 = vmatpush3.bf16.msra.mxu1 %v14315_v1  ;;  %v9868_v1 = vadd.f32 %v9867_v63, %v9825_v14  ;;  %v14419_v63 = vld [vmem:[%s19833_s5 + $0x288] ss:$12 sps:$4 sm:$0xff]   ;;  %v14422_v14 = vld [vmem:[%s19833_s5 + $0x270] ss:$12 sps:$4 sm:$0xff]  }
 0x570   :  { %13704 = vmatprep.subr.bf16.mxu1 %v14316_v56  ;;  %v9909_v56 = vadd.f32 %v9908_v53, %v9866_v22  ;;  %v14424_v53 = vld [vmem:[%s19833_s5 + $0x274] ss:$12 sps:$4 sm:$0xff]   ;;  %v14455_v22 = vld [vmem:[%s19833_s5 + $0x378] ss:$12 sps:$4 sm:$0xff]  }
 0x571   :  { %v14453_v58 = vld [vmem:[%s19833_s5 + $0x394] ss:$12 sps:$4 sm:$0xff]  }
 0x572   :  { %11165 = vmatpush2.bf16.msra.mxu0 %v14357_v35  ;;  %v14386_v35 = vld [vmem:[%s19833_s5 + $0x210] ss:$12 sps:$4 sm:$0xff]  }
 0x573   :  { %11166 = vmatprep.subr.bf16.mxu0 %v14364_v38  ;;  %13705 = vmatpush3.bf16.msra.mxu1 %v14320_v52  ;;  %v9907_v38 = vadd.f32 %v9906_v60, %v9864_v15  ;;  %v9912_v52 = vpop.f32.mrf.mxu0  ;;  %v14415_v60 = vld [vmem:[%s19833_s5 + $0x2bc] ss:$12 sps:$4 sm:$0xff]   ;;  %v14461_v15 = vld [vmem:[%s19833_s5 + $0x364] ss:$12 sps:$4 sm:$0xff]  }
 0x574   :  { %13706 = vmatprep.subr.bf16.mxu1 %v14321_v21 }
 0x576   :  { %11167 = vmatpush2.bf16.msra.mxu0 %v14362_v5  ;;  %v14391_v5 = vld [vmem:[%s19833_s5 + $0x1fc] ss:$12 sps:$4 sm:$0xff]  }
 0x577   :  { %11168 = vmatprep.subr.bf16.mxu0 %v14369_v24  ;;  %13707 = vmatpush3.bf16.msra.mxu1 %v14325_v49  ;;  %v9870_v24 = vadd.f32 %v9869_v3, %v9827_v33  ;;  %v9911_v49 = vadd.f32 %v9910_v51, %v9868_v1  ;;  %v14427_v3 = vld [vmem:[%s19833_s5 + $0x25c] ss:$12 sps:$4 sm:$0xff]   ;;  %v14430_v33 = vld [vmem:[%s19833_s5 + $0x244] ss:$12 sps:$4 sm:$0xff]   ;;  %v14459_v1 = vld [vmem:[%s19833_s5 + $0x360] ss:$12 sps:$4 sm:$0xff]  }
 0x578   :  { %13708 = vmatprep.subr.bf16.mxu1 %v14326_v13  ;;  %v14457_v51 = vld [vmem:[%s19833_s5 + $0x37c] ss:$12 sps:$4 sm:$0xff]  }
 0x57a   :  { %11169 = vmatpush2.bf16.msra.mxu0 %v14367_v17 }
 0x57b   :  { %11170 = vmatprep.subr.bf16.mxu0 %v14373_v12  ;;  %13709 = vmatpush3.bf16.msra.mxu1 %v14330_v30  ;;  %v9913_v12 = vadd.f32 %v9912_v52, %v9870_v24  ;;  %v14469_v52 = vld [vmem:[%s19833_s5 + $0x334] ss:$12 sps:$4 sm:$0xff]   ;;  %v14471_v24 = vld [vmem:[%s19833_s5 + $0x318] ss:$12 sps:$4 sm:$0xff]  }
 0x57c   :  { %13738 = vmatprep.subr.bf16.mxu1 %v14331_v20  ;;  %v14389_v20 = vld [vmem:[%s19833_s5 + $0x1f8] ss:$12 sps:$4 sm:$0xff]  }
 0x57e   :  { %11171 = vmatpush2.bf16.msra.mxu0 %v14371_v41  ;;  %10204 = vmatmul.mubr.bf16.vlgmr.msra.gmra.mxu1 %v19876_v48  ;;  %v14377_v48 = vld [vmem:[%s19833_s5 + $0xd8] ss:$12 sps:$4 sm:$0xff]  }
 0x57f   :  { %11172 = vmatprep.subr.bf16.mxu0 %v14376_v37  ;;  %13739 = vmatpush3.bf16.msra.mxu1 %v14335_v57  ;;  %v14394_v37 = vld [vmem:[%s19833_s5 + $0x1e4] ss:$12 sps:$4 sm:$0xff]  }
 0x580   :  { %10285 = vmatprep.mubr.bf16.mxu1 %v18712_v29  ;;  %13740 = vmatprep.subr.bf16.mxu1 %v14336_v11  ;;  %v14345_v29 = vld [vmem:[%s19832_s3 + $0x858] ss:$20 sps:$4 sm:$0xff]  }
 0x582   :  { %11173 = vmatpush2.bf16.msra.mxu0 %v14374_v7 }
 0x583   :  { %11174 = vmatprep.subr.bf16.mxu0 %v14379_v61  ;;  %13741 = vmatpush3.bf16.msra.mxu1 %v14340_v40 }
 0x584   :  { %13742 = vmatprep.subr.bf16.mxu1 %v14341_v10  ;;  %v14392_v10 = vld [vmem:[%s19833_s5 + $0x1e0] ss:$12 sps:$4 sm:$0xff]  }
 0x586   :  { %11175 = vmatpush2.bf16.msra.mxu0 %v14377_v48 }
 0x587   :  { %11176 = vmatprep.subr.bf16.mxu0 %v14382_v9  ;;  %13743 = vmatpush3.bf16.msra.mxu1 %v14345_v29  ;;  %v14397_v9 = vld [vmem:[%s19833_s5 + $0x1cc] ss:$12 sps:$4 sm:$0xff]  }
 0x588   :  { %13744 = vmatprep.subr.bf16.mxu1 %v14346_v36 }
 0x58a   :  { %11177 = vmatpush2.bf16.msra.mxu0 %v14380_v62 }
 0x58b   :  { %13745 = vmatpush3.bf16.msra.mxu1 %v14350_v46 }
 0x58c   :  { %13746 = vmatprep.subr.bf16.mxu1 %v14351_v55  ;;  %v14395_v55 = vld [vmem:[%s19833_s5 + $0x1c8] ss:$12 sps:$4 sm:$0xff]  }
 0x58f   :  { %13747 = vmatpush3.bf16.msra.mxu1 %v14355_v28  ;;  %v14398_v28 = vld [vmem:[%s19833_s5 + $0x1b0] ss:$12 sps:$4 sm:$0xff]  }
 0x590   :  { %13748 = vmatprep.subr.bf16.mxu1 %v14356_v54  ;;  %v14403_v54 = vld [vmem:[%s19833_s5 + $0x19c] ss:$12 sps:$4 sm:$0xff]  }
 0x593   :  { %13749 = vmatpush3.bf16.msra.mxu1 %v14360_v25  ;;  %v14406_v25 = vld [vmem:[%s19833_s5 + $0x184] ss:$12 sps:$4 sm:$0xff]  }
 0x594   :  { %13750 = vmatprep.subr.bf16.mxu1 %v14361_v4  ;;  %v14409_v4 = vld [vmem:[%s19833_s5 + $0x2ec] ss:$12 sps:$4 sm:$0xff]  }
 0x597   :  { %13751 = vmatpush3.bf16.msra.mxu1 %v14365_v43  ;;  %v14412_v43 = vld [vmem:[%s19833_s5 + $0x2d4] ss:$12 sps:$4 sm:$0xff]  }
 0x598   :  { %13752 = vmatprep.subr.bf16.mxu1 %v14366_v16  ;;  %v14413_v16 = vld [vmem:[%s19833_s5 + $0x2b8] ss:$12 sps:$4 sm:$0xff]  }
 0x59b   :  { %13753 = vmatpush3.bf16.msra.mxu1 %v14370_v45  ;;  %v14421_v45 = vld [vmem:[%s19833_s5 + $0x28c] ss:$12 sps:$4 sm:$0xff]  }
 0x59c   :  { %11189 = vmatprep.subr.bf16.mxu1 %v14385_v59  ;;  %v14449_v59 = vld [vmem:[%s19833_s5 + $0x3ac] ss:$12 sps:$4 sm:$0xff]  }
 0x59d   :  { %11232 = vmatprep.subr.bf16.mxu0 %v14449_v59 }
 0x59e   :  { %10286 = vmatmul.mubr.bf16.vlgmr.msra.gmra.mxu1 %v18717_v19  ;;  %v9949_v50 = vpop.f32.mrf.mxu1 }
 0x59f   :  { %11190 = vmatpush1.bf16.msra.mxu1 %v14383_v0  ;;  %v9950_v19 = vadd.f32 %v9949_v50, %v9907_v38  ;;  %v14451_v0 = vld [vmem:[%s19833_s5 + $0x390] ss:$12 sps:$4 sm:$0xff]   ;;  %v14428_v50 = vld [vmem:[%s19833_s5 + $0x240] ss:$12 sps:$4 sm:$0xff]   ;;  %v14463_v38 = vld [vmem:[%s19833_s5 + $0x348] ss:$12 sps:$4 sm:$0xff]  }
 0x5a0   :  { %v9951_v21 = vpop.f32.mrf.mxu1  ;;  %11191 = vmatprep.subr.bf16.mxu1 %v14388_v34  ;;  %v14425_v34 = vld [vmem:[%s19833_s5 + $0x258] ss:$12 sps:$4 sm:$0xff]  }
 0x5a1   :  { %v9952_v13 = vadd.f32 %v9951_v21, %v9909_v56  ;;  %v10304_v61 = vmul.f32 0.2, %v9950_v19  ;;  %vm10294_vm2 = vcmp.gt.f32.partialorder %v9950_v19, 0.0  ;;  %v14431_v56 = vld [vmem:[%s19833_s5 + $0x170] ss:$12 sps:$4 sm:$0xff]  }
 0x5a2   :  { %v9953_v17 = vpop.f32.mrf.mxu1  ;;  %v14467_v21 = vld [vmem:[%s19833_s5 + $0x330] ss:$12 sps:$4 sm:$0xff]  }
 0x5a3   :  { %v9954_v30 = vadd.f32 %v9953_v17, %v9911_v49  ;;  %11192 = vmatpush1.bf16.msra.mxu1 %v14386_v35  ;;  %v10305_v57 = vmul.f32 0.2, %v9952_v13  ;;  %vm10295_vm1 = vcmp.gt.f32.partialorder %v9952_v13, 0.0  ;;  %v10314_v62 = vsel %vm10294_vm2, %v9950_v19, %v10304_v61  ;;  %v14465_v35 = vld [vmem:[%s19833_s5 + $0x34c] ss:$12 sps:$4 sm:$0xff]   ;;  %v19879_v61 = vld [vmem:[#allocation6_spill] sm:$0xff] }
 0x5a4   :  { %v9955_v41 = vpop.f32.mrf.mxu1  ;;  %11193 = vmatprep.subr.bf16.mxu1 %v14391_v5  ;;  %v14473_v5 = vld [vmem:[%s19833_s5 + $0x31c] ss:$12 sps:$4 sm:$0xff]   ;;  %v14477_v49 = vld [vmem:[%s19833_s5 + $0x304] ss:$12 sps:$4 sm:$0xff]   ;;  %v14603_v17 = vmov 0  }
 0x5a5   :  { %vm10299_vm0 = vcmp.gt.f32.partialorder %v9954_v30, 0.0  ;;  %v10309_v11 = vmul.f32 0.2, %v9954_v30  ;;  %v9956_v7 = vadd.f32 %v9955_v41, %v9913_v12  ;;  %v10315_v29 = vsel %vm10295_vm1, %v9952_v13, %v10305_v57  ;;  %v14475_v13 = vld [vmem:[%s19833_s5 + $0x300] ss:$12 sps:$4 sm:$0xff]   ;;  %v9992_v12 = vpop.f32.mrf.mxu0 }
 0x5a6   :  { %v14479_v19 = vld [vmem:[%s19833_s5 + $0x2f0] ss:$12 sps:$4 sm:$0xff]  }
 0x5a7   :  { %vm10300_vm3 = vcmp.gt.f32.partialorder %v9956_v7, 0.0  ;;  %v10310_v40 = vmul.f32 0.2, %v9956_v7  ;;  %11194 = vmatpush1.bf16.msra.mxu1 %v14389_v20  ;;  %v10319_v48 = vsel %vm10299_vm0, %v9954_v30, %v10309_v11  ;;  %v9994_v30 = vpop.f32.mrf.mxu0  ;;  %v19878_v11 = vsub.s32 3, %v15570_v42 }
 0x5a8   :  { %11195 = vmatprep.subr.bf16.mxu1 %v14394_v37  ;;  %v19309_v46 = vpack.c.bf16 %v10319_v48, %v10314_v62 }
 0x5a9   :  { %v10320_v36 = vsel %vm10300_vm3, %v9956_v7, %v10310_v40  ;;  %v9996_v20 = vpop.f32.mrf.mxu0  ;;  %v8112_v7 = vrot.slane %v19264_v31, %v19878_v11  ;;  %v8108_v40 = vrot.slane %v19264_v31, %v19879_v61  ;;  %v14604_v11 = vmov 0.0  }
 0x5aa   :  { %v19307_v18 = vpack.c.bf16 %v10320_v36, %v10315_v29 }
 0x5ab   :  { %11196 = vmatpush1.bf16.msra.mxu1 %v14392_v10  ;;  %v9998_v37 = vpop.f32.mrf.mxu0  ;;  %v9993_v29 = vadd.f32 %v9992_v12, %v8108_v40  ;;  %v9997_v62 = vadd.f32 %v9996_v20, %v8108_v40  ;;  %v14444_v12 = vld [vmem:[%s19833_s5 + $0x20] ss:$12 sps:$4 sm:$0xff]  }
 0x5ac   :  { %11178 = vmatprep.mubr.bf16.mxu0 %v19307_v18  ;;  %11197 = vmatprep.subr.bf16.mxu1 %v14397_v9  ;;  %v9995_v9 = vadd.f32 %v9994_v30, %v8112_v7  ;;  %v14445_v30 = vld [vmem:[%s19833_s5 + $0xc8] ss:$12 sps:$4 sm:$0xff]  }
 0x5ad   :  { %11179 = vmatmul.mubr.bf16.vlgmr.msra.gmra.mxu0 %v19309_v46 }
 0x5ae   :  { %11233 = vmatpush1.bf16.msra.mxu0 %v14447_v27  ;;  %11264 = vmatprep.mubr.bf16.mxu0 %v14603_v17 }
 0x5af   :  { %11198 = vmatpush1.bf16.msra.mxu1 %v14395_v55  ;;  %11234 = vmatprep.subr.bf16.mxu0 %v14453_v58 }
 0x5b0   :  { %11199 = vmatprep.subr.bf16.mxu1 %v14400_v2 }
 0x5b2   :  { %11235 = vmatpush1.bf16.msra.mxu0 %v14451_v0 }
 0x5b3   :  { %11200 = vmatpush1.bf16.msra.mxu1 %v14398_v28  ;;  %11236 = vmatprep.subr.bf16.mxu0 %v14457_v51 }
 0x5b4   :  { %11201 = vmatprep.subr.bf16.mxu1 %v14403_v54  ;;  %v9999_v54 = vadd.f32 %v9998_v37, %v8112_v7 }
 0x5b6   :  { %11237 = vmatpush1.bf16.msra.mxu0 %v14455_v22 }
 0x5b7   :  { %11202 = vmatpush1.bf16.msra.mxu1 %v14401_v26  ;;  %11238 = vmatprep.subr.bf16.mxu0 %v14461_v15 }
 0x5b8   :  { %11203 = vmatprep.subr.bf16.mxu1 %v14406_v25 }
 0x5ba   :  { %11239 = vmatpush1.bf16.msra.mxu0 %v14459_v1 }
 0x5bb   :  { %11204 = vmatpush1.bf16.msra.mxu1 %v14404_v6  ;;  %11240 = vmatprep.subr.bf16.mxu0 %v14465_v35  ;;  %v14434_v35 = vld [vmem:[%s19833_s5 + $0x98] ss:$12 sps:$4 sm:$0xff]  }
 0x5bc   :  { %11205 = vmatprep.subr.bf16.mxu1 %v14409_v4 }
 0x5be   :  { %11241 = vmatpush1.bf16.msra.mxu0 %v14463_v38  ;;  %v14435_v38 = vld [vmem:[%s19833_s5 + $0x140] ss:$12 sps:$4 sm:$0xff]  }
 0x5bf   :  { %11206 = vmatpush2.bf16.msra.mxu1 %v14407_v23  ;;  %11242 = vmatprep.subr.bf16.mxu0 %v14469_v52  ;;  %v14436_v52 = vld [vmem:[%s19833_s5 + $0x80] ss:$12 sps:$4 sm:$0xff]  }
 0x5c0   :  { %11207 = vmatprep.subr.bf16.mxu1 %v14412_v43 }
 0x5c2   :  { %11243 = vmatpush1.bf16.msra.mxu0 %v14467_v21  ;;  %v14437_v21 = vld [vmem:[%s19833_s5 + $0x128] ss:$12 sps:$4 sm:$0xff]  }
 0x5c3   :  { %11208 = vmatpush2.bf16.msra.mxu1 %v14410_v8  ;;  %11244 = vmatprep.subr.bf16.mxu0 %v14473_v5  ;;  %v14439_v5 = vld [vmem:[%s19833_s5 + $0x110] ss:$12 sps:$4 sm:$0xff]  }
 0x5c4   :  { %11209 = vmatprep.subr.bf16.mxu1 %v14415_v60 }
 0x5c6   :  { %11245 = vmatpush1.bf16.msra.mxu0 %v14471_v24  ;;  %v14440_v24 = vld [vmem:[%s19833_s5 + $0x50] ss:$12 sps:$4 sm:$0xff]  }
 0x5c7   :  { %11210 = vmatpush2.bf16.msra.mxu1 %v14413_v16  ;;  %11246 = vmatprep.subr.bf16.mxu0 %v14477_v49  ;;  %v14441_v49 = vld [vmem:[%s19833_s5 + $0xf8] ss:$12 sps:$4 sm:$0xff]  }
 0x5c8   :  { %11211 = vmatprep.subr.bf16.mxu1 %v14418_v32 }
 0x5ca   :  { %11247 = vmatpush1.bf16.msra.mxu0 %v14475_v13  ;;  %v14442_v13 = vld [vmem:[%s19833_s5 + $0x38] ss:$12 sps:$4 sm:$0xff]  }
 0x5cb   :  { %11212 = vmatpush2.bf16.msra.mxu1 %v14416_v47  ;;  %13782 = vmatprep.subr.bf16.mxu0 %v14479_v19  ;;  %v14443_v19 = vld [vmem:[%s19833_s5 + $0xe0] ss:$12 sps:$4 sm:$0xff]  }
 0x5cc   :  { %11213 = vmatprep.subr.bf16.mxu1 %v14421_v45 }
 0x5cd   :  { %v10078_v10 = vpop.f32.mrf.mxu0 }
 0x5cf   :  { %11214 = vmatpush2.bf16.msra.mxu1 %v14419_v63  ;;  %v10080_v36 = vpop.f32.mrf.mxu0 }
 0x5d0   :  { %11215 = vmatprep.subr.bf16.mxu1 %v14424_v53 }
 0x5d1   :  { %v10082_v25 = vpop.f32.mrf.mxu0 }
 0x5d3   :  { %11216 = vmatpush2.bf16.msra.mxu1 %v14422_v14  ;;  %v10084_v32 = vpop.f32.mrf.mxu0 }
 0x5d4   :  { %11217 = vmatprep.subr.bf16.mxu1 %v14427_v3 }
 0x5d7   :  { %11218 = vmatpush2.bf16.msra.mxu1 %v14425_v34 }
 0x5d8   :  { %11219 = vmatprep.subr.bf16.mxu1 %v14430_v33 }
 0x5db   :  { %11220 = vmatpush2.bf16.msra.mxu1 %v14428_v50  ;;  %v14432_v50 = vld [vmem:[%s19833_s5 + $0xb0] ss:$12 sps:$4 sm:$0xff]  }
 0x5dc   :  { %13760 = vmatprep.subr.bf16.mxu1 %v14431_v56  ;;  %v14433_v56 = vld [vmem:[%s19833_s5 + $0x158] ss:$12 sps:$4 sm:$0xff]  }
 0x5de   :  { %v10035_v41 = vpop.f32.mrf.mxu1 }
 0x5df   :  { %v10036_v2 = vadd.f32 %v10035_v41, %v9993_v29  ;;  %v14446_v41 = vld [vmem:[%s19833_s5 + $0x8] ss:$12 sps:$4 sm:$0xff]  }
 0x5e0   :  { %v10037_v57 = vpop.f32.mrf.mxu1 }
 0x5e1   :  { %v10038_v55 = vadd.f32 %v10037_v57, %v9995_v9  ;;  %v10079_v43 = vadd.f32 %v10078_v10, %v10036_v2  ;;  %v14450_v57 = vld [vmem:[%s19833_s5 + $0x3b0] ss:$12 sps:$4 sm:$0xff]   ;;  %v14454_v10 = vld [vmem:[%s19833_s5 + $0x398] ss:$12 sps:$4 sm:$0xff]  }
 0x5e2   :  { %v10039_v48 = vpop.f32.mrf.mxu1 }
 0x5e3   :  { %v10040_v26 = vadd.f32 %v10039_v48, %v9997_v62  ;;  %v10081_v23 = vadd.f32 %v10080_v36, %v10038_v55  ;;  %v14462_v62 = vld [vmem:[%s19833_s5 + $0x368] ss:$12 sps:$4 sm:$0xff]   ;;  %v19880_v55 = vsub.s32 4, %v15570_v42 }
 0x5e4   :  { %v10041_v28 = vpop.f32.mrf.mxu1 }
 0x5e5   :  { %v10042_v4 = vadd.f32 %v10041_v28, %v9999_v54  ;;  %v10083_v16 = vadd.f32 %v10082_v25, %v10040_v26  ;;  %v8116_v2 = vrot.slane %v19264_v31, %v19880_v55  ;;  %v14470_v31 = vld [vmem:[%s19833_s5 + $0x338] ss:$12 sps:$4 sm:$0xff]  }
 0x5e6   :  { %v14512_v55 = vld [vmem:[%s19835_s7 + $0x24] ss:$8 sps:$4 sm:$0xff]  }
 0x5e7   :  { %v10085_v53 = vadd.f32 %v10084_v32, %v10042_v4 }
 0x5ed   :  { %v13688_v20 = vpop.f32.mrf.mxu0 }
 0x5ef   :  { %v13689_v37 = vpop.f32.mrf.mxu0 }
 0x5f0   :  { %v13690_v28 = vadd.f32 %v13689_v37, %v13688_v20  ;;  %v14491_v20 = vld [vmem:[%s19833_s5 + $0x260] ss:$12 sps:$4 sm:$0xff]   ;;  %v14493_v37 = vld [vmem:[%s19833_s5 + $0x248] ss:$12 sps:$4 sm:$0xff]  }
 0x5f1   :  { %v13691_v7 = vpop.f32.mrf.mxu0 }
 0x5f2   :  { %v10165_v4 = vadd.f32 %v13690_v28, %v8116_v2  ;;  %v14515_v28 = vld [vmem:[%s19835_s7 + $0x14] ss:$8 sps:$4 sm:$0xff]  }
 0x5f3   :  { %v13692_v48 = vpop.f32.mrf.mxu0 }
 0x60d   :  { %v13732_v29 = vpop.f32.mrf.mxu0 }
 0x60f   :  { %v13733_v54 = vpop.f32.mrf.mxu0 }
 0x610   :  { %v13734_v32 = vadd.f32 %v13733_v54, %v13732_v29  ;;  %v14504_v29 = vld [vmem:[%s19835_s7 + $0x40] ss:$8 sps:$4 sm:$0xff]   ;;  %v14513_v54 = vld [vmem:[%s19835_s7 + $0x10] ss:$8 sps:$4 sm:$0xff]  }
 0x61e   :  { %v10121_v6 = vpop.f32.mrf.mxu1 }
 0x61f   :  { %v10122_v47 = vadd.f32 %v10121_v6, %v10079_v43  ;;  %v14466_v6 = vld [vmem:[%s19833_s5 + $0x350] ss:$12 sps:$4 sm:$0xff]   ;;  %v13735_v43 = vpop.f32.mrf.mxu0 }
 0x620   :  { %v10123_v8 = vpop.f32.mrf.mxu1 }
 0x621   :  { %v10124_v60 = vadd.f32 %v10123_v8, %v10081_v23  ;;  %v10306_v0 = vmul.f32 0.2, %v10122_v47  ;;  %vm10296_vm6 = vcmp.gt.f32.partialorder %v10122_v47, 0.0  ;;  %v13693_v23 = vadd.f32 %v13692_v48, %v13691_v7  ;;  %v14497_v7 = vld [vmem:[%s19835_s7 + $0x74] ss:$8 sps:$4 sm:$0xff]  }
 0x622   :  { %v10125_v45 = vpop.f32.mrf.mxu1  ;;  %v14498_v48 = vld [vmem:[%s19835_s7 + $0x60] ss:$8 sps:$4 sm:$0xff]  }
 0x623   :  { %v10126_v63 = vadd.f32 %v10125_v45, %v10083_v16  ;;  %v10307_v27 = vmul.f32 0.2, %v10124_v60  ;;  %vm10297_vm5 = vcmp.gt.f32.partialorder %v10124_v60, 0.0  ;;  %v10316_v33 = vsel %vm10296_vm6, %v10122_v47, %v10306_v0  ;;  %v13736_v47 = vpop.f32.mrf.mxu0 }
 0x624   :  { %v10127_v59 = vpop.f32.mrf.mxu1  ;;  %v10168_v16 = vadd.f32 %v13693_v23, %v8116_v2  ;;  %v14510_v2 = vld [vmem:[%s19835_s7 + $0x20] ss:$8 sps:$4 sm:$0xff]   ;;  %v14524_v23 = vld [vmem:[%s19835_s7 + $0xe4] ss:$8 sps:$4 sm:$0xff]  }
 0x625   :  { %vm10301_vm4 = vcmp.gt.f32.partialorder %v10126_v63, 0.0  ;;  %v10311_v58 = vmul.f32 0.2, %v10126_v63  ;;  %v10128_v14 = vadd.f32 %v10127_v59, %v10085_v53  ;;  %v10317_v34 = vsel %vm10297_vm5, %v10124_v60, %v10307_v27 }
 0x627   :  { %vm10302_vm7 = vcmp.gt.f32.partialorder %v10128_v14, 0.0  ;;  %v10312_v3 = vmul.f32 0.2, %v10128_v14  ;;  %v10321_v51 = vsel %vm10301_vm4, %v10126_v63, %v10311_v58  ;;  %v14474_v58 = vld [vmem:[%s19833_s5 + $0x320] ss:$12 sps:$4 sm:$0xff]  }
 0x628   :  { %v19447_v1 = vpack.c.bf16 %v10321_v51, %v10316_v33 }
 0x629   :  { %v10322_v22 = vsel %vm10302_vm7, %v10128_v14, %v10312_v3  ;;  %v13737_v14 = vadd.f32 %v13736_v47, %v13735_v43  ;;  %v14522_v43 = vld [vmem:[%s19835_s7 + $0xe0] ss:$8 sps:$4 sm:$0xff]   ;;  %v14536_v47 = vld [vmem:[%s19835_s7 + $0xa4] ss:$8 sps:$4 sm:$0xff]  }
 0x62a   :  { %v19442_v15 = vpack.c.bf16 %v10322_v22, %v10317_v34  ;;  %v14478_v22 = vld [vmem:[%s19833_s5 + $0x308] ss:$12 sps:$4 sm:$0xff]  }
 0x62c   :  { %11221 = vmatprep.mubr.bf16.mxu1 %v19442_v15 }
 0x62d   :  { %11222 = vmatmul.mubr.bf16.vlgmr.msra.gmra.mxu1 %v19447_v1 }
 0x62e   :  { %13761 = vmatpush3.bf16.msra.mxu1 %v14432_v50  ;;  %11307 = vmatprep.mubr.bf16.mxu1 %v19307_v18  ;;  %v14438_v18 = vld [vmem:[%s19833_s5 + $0x68] ss:$12 sps:$4 sm:$0xff]  }
 0x62f   :  { %13762 = vmatprep.subr.bf16.mxu1 %v14433_v56 }
 0x632   :  { %13763 = vmatpush3.bf16.msra.mxu1 %v14434_v35 }
 0x633   :  { %13764 = vmatprep.subr.bf16.mxu1 %v14435_v38 }
 0x636   :  { %13765 = vmatpush3.bf16.msra.mxu1 %v14436_v52  ;;  %v14480_v52 = vld [vmem:[%s19833_s5 + $0x230] ss:$12 sps:$4 sm:$0xff]  }
 0x637   :  { %13766 = vmatprep.subr.bf16.mxu1 %v14437_v21 }
 0x63a   :  { %13767 = vmatpush3.bf16.msra.mxu1 %v14438_v18  ;;  %v14481_v18 = vld [vmem:[%s19833_s5 + $0x2d8] ss:$12 sps:$4 sm:$0xff]  }
 0x63b   :  { %13768 = vmatprep.subr.bf16.mxu1 %v14439_v5  ;;  %v14482_v5 = vld [vmem:[%s19833_s5 + $0x218] ss:$12 sps:$4 sm:$0xff]  }
 0x63e   :  { %13769 = vmatpush3.bf16.msra.mxu1 %v14440_v24  ;;  %v13710_v40 = vpop.f32.mrf.mxu1  ;;  %v14483_v24 = vld [vmem:[%s19833_s5 + $0x2c0] ss:$12 sps:$4 sm:$0xff]  }
 0x63f   :  { %13770 = vmatprep.subr.bf16.mxu1 %v14441_v49  ;;  %v14484_v49 = vld [vmem:[%s19833_s5 + $0x200] ss:$12 sps:$4 sm:$0xff]  }
 0x640   :  { %v13711_v9 = vpop.f32.mrf.mxu1 }
 0x641   :  { %v13712_v26 = vadd.f32 %v13711_v9, %v13710_v40  ;;  %v14495_v40 = vld [vmem:[%s19835_s7 + $0x70] ss:$8 sps:$4 sm:$0xff]   ;;  %v14503_v9 = vld [vmem:[%s19835_s7 + $0x54] ss:$8 sps:$4 sm:$0xff]  }
 0x642   :  { %13771 = vmatpush3.bf16.msra.mxu1 %v14442_v13  ;;  %v13713_v36 = vpop.f32.mrf.mxu1  ;;  %v14486_v13 = vld [vmem:[%s19833_s5 + $0x1e8] ss:$12 sps:$4 sm:$0xff]  }
 0x643   :  { %13772 = vmatprep.subr.bf16.mxu1 %v14443_v19  ;;  %v10206_v8 = vadd.f32 %v13712_v26, %v10165_v4  ;;  %v14488_v19 = vld [vmem:[%s19833_s5 + $0x1d0] ss:$12 sps:$4 sm:$0xff]   ;;  %v14518_v26 = vld [vmem:[%s19835_s7 + $0x4] ss:$8 sps:$4 sm:$0xff]  }
 0x644   :  { %v13714_v25 = vpop.f32.mrf.mxu1  ;;  %v14519_v4 = vld [vmem:[%s19835_s7 + $0xf0] ss:$8 sps:$4 sm:$0xff]  }
 0x645   :  { %v13715_v42 = vadd.f32 %v13714_v25, %v13713_v36  ;;  %v10247_v53 = vadd.f32 %v13734_v32, %v10206_v8  ;;  %v14509_v36 = vld [vmem:[%s19835_s7 + $0x34] ss:$8 sps:$4 sm:$0xff]   ;;  %v14516_v25 = vld [vmem:[%s19835_s7] ss:$8 sps:$4 sm:$0xff]   ;;  %v14531_v32 = vld [vmem:[%s19835_s7 + $0xb0] ss:$8 sps:$4 sm:$0xff]  }
 0x646   :  { %13773 = vmatpush3.bf16.msra.mxu1 %v14444_v12  ;;  %v14489_v12 = vld [vmem:[%s19833_s5 + $0x278] ss:$12 sps:$4 sm:$0xff]   ;;  %v14527_v8 = vld [vmem:[%s19835_s7 + $0xd4] ss:$8 sps:$4 sm:$0xff]  }
 0x647   :  { %13774 = vmatprep.subr.bf16.mxu1 %v14445_v30  ;;  %v10209_v63 = vadd.f32 %v13715_v42, %v10168_v16  ;;  %v14490_v30 = vld [vmem:[%s19833_s5 + $0x1b8] ss:$12 sps:$4 sm:$0xff]   ;;  %v14533_v16 = vld [vmem:[%s19835_s7 + $0xb4] ss:$8 sps:$4 sm:$0xff]  }
 0x648   :  { %v14525_v42 = vld [vmem:[%s19835_s7 + $0xd0] ss:$8 sps:$4 sm:$0xff]  }
 0x649   :  { %v10250_v51 = vadd.f32 %v13737_v14, %v10209_v63  ;;  %v14545_v63 = vld [vmem:[%s19835_s7 + $0x174] ss:$8 sps:$4 sm:$0xff]  }
 0x64a   :  { %13775 = vmatpush3.bf16.msra.mxu1 %v14446_v41  ;;  %v14492_v41 = vld [vmem:[%s19833_s5 + $0x1a0] ss:$12 sps:$4 sm:$0xff]   ;;  %v14551_v14 = vld [vmem:[%s19835_s7 + $0x154] ss:$8 sps:$4 sm:$0xff]  }
 0x64b   :  { %13844 = vmatprep.subr.bf16.mxu1 %v14604_v11 }
 0x64d   :  { %11308 = vmatmul.mubr.bf16.vlgmr.msra.gmra.mxu1 %v19309_v46  ;;  %v14458_v46 = vld [vmem:[%s19833_s5 + $0x380] ss:$12 sps:$4 sm:$0xff]  }
 0x64e   :  { %13845 = vmatpush3.bf16.msra.mxu1 %v14450_v57  ;;  %13860 = vmatprep.mubr.msk.bf16.mxu1 %vm14605_vm8, %v14604_v11  ;;  %v14494_v57 = vld [vmem:[%s19833_s5 + $0x188] ss:$12 sps:$4 sm:$0xff]  }
 0x64f   :  { %13846 = vmatprep.subr.bf16.mxu1 %v14604_v11 }
 0x652   :  { %13847 = vmatpush3.bf16.msra.mxu1 %v14454_v10  ;;  %v14500_v10 = vld [vmem:[%s19835_s7 + $0x64] ss:$8 sps:$4 sm:$0xff]  }
 0x653   :  { %13848 = vmatprep.subr.bf16.mxu1 %v14604_v11 }
 0x656   :  { %13849 = vmatpush3.bf16.msra.mxu1 %v14458_v46  ;;  %v14501_v46 = vld [vmem:[%s19835_s7 + $0x50] ss:$8 sps:$4 sm:$0xff]  }
 0x657   :  { %13850 = vmatprep.subr.bf16.mxu1 %v14604_v11 }
 0x65a   :  { %13851 = vmatpush3.bf16.msra.mxu1 %v14462_v62  ;;  %v14507_v62 = vld [vmem:[%s19835_s7 + $0x30] ss:$8 sps:$4 sm:$0xff]  }
 0x65b   :  { %13852 = vmatprep.subr.bf16.mxu1 %v14604_v11 }
 0x65e   :  { %v13754_v60 = vpop.f32.mrf.mxu1  ;;  %13853 = vmatpush3.bf16.msra.mxu1 %v14466_v6  ;;  %v14521_v6 = vld [vmem:[%s19835_s7 + $0xf4] ss:$8 sps:$4 sm:$0xff]  }
 0x65f   :  { %13854 = vmatprep.subr.bf16.mxu1 %v14604_v11 }
 0x660   :  { %v13755_v45 = vpop.f32.mrf.mxu1 }
 0x661   :  { %v13756_v59 = vadd.f32 %v13755_v45, %v13754_v60  ;;  %v14530_v60 = vld [vmem:[%s19835_s7 + $0xc4] ss:$8 sps:$4 sm:$0xff]   ;;  %v14543_v45 = vld [vmem:[%s19835_s7 + $0x170] ss:$8 sps:$4 sm:$0xff]  }
 0x662   :  { %v13757_v27 = vpop.f32.mrf.mxu1  ;;  %13855 = vmatpush3.bf16.msra.mxu1 %v14470_v31  ;;  %v14528_v31 = vld [vmem:[%s19835_s7 + $0xc0] ss:$8 sps:$4 sm:$0xff]  }
 0x663   :  { %v10288_v0 = vadd.f32 %v13756_v59, %v10247_v53  ;;  %13856 = vmatprep.subr.bf16.mxu1 %v14604_v11  ;;  %v14548_v53 = vld [vmem:[%s19835_s7 + $0x164] ss:$8 sps:$4 sm:$0xff]   ;;  %v14534_v59 = vld [vmem:[%s19835_s7 + $0xa0] ss:$8 sps:$4 sm:$0xff]  }
 0x664   :  { %v13758_v3 = vpop.f32.mrf.mxu1 }
 0x665   :  { %v13759_v34 = vadd.f32 %v13758_v3, %v13757_v27  ;;  %v10308_v33 = vmul.f32 0.2, %v10288_v0  ;;  %vm10298_vm9 = vcmp.gt.f32.partialorder %v10288_v0, 0.0  ;;  %v14539_v27 = vld [vmem:[%s19835_s7 + $0x94] ss:$8 sps:$4 sm:$0xff]  }
 0x666   :  { %13857 = vmatpush3.bf16.msra.mxu1 %v14474_v58  ;;  %v14546_v58 = vld [vmem:[%s19835_s7 + $0x160] ss:$8 sps:$4 sm:$0xff]   ;;  %v14542_v3 = vld [vmem:[%s19835_s7 + $0x84] ss:$8 sps:$4 sm:$0xff]  }
 0x667   :  { %v10291_v50 = vadd.f32 %v13759_v34, %v10250_v51  ;;  %13858 = vmatprep.subr.bf16.mxu1 %v14604_v11  ;;  %v10318_v35 = vsel %vm10298_vm9, %v10288_v0, %v10308_v33  ;;  %v14537_v0 = vld [vmem:[%s19835_s7 + $0x90] ss:$8 sps:$4 sm:$0xff]   ;;  %v14554_v34 = vld [vmem:[%s19835_s7 + $0x144] ss:$8 sps:$4 sm:$0xff]   ;;  %v14552_v33 = vld [vmem:[%s19835_s7 + $0x140] ss:$8 sps:$4 sm:$0xff]  }
 0x668   :  { %v14549_v51 = vld [vmem:[%s19835_s7 + $0x150] ss:$8 sps:$4 sm:$0xff]  }
 0x669   :  { %vm10303_vm10 = vcmp.gt.f32.partialorder %v10291_v50, 0.0  ;;  %v10313_v56 = vmul.f32 0.2, %v10291_v50 }
 0x66a   :  { %13859 = vmatpush3.bf16.msra.mxu1 %v14478_v22  ;;  %v14540_v22 = vld [vmem:[%s19835_s7 + $0x80] ss:$8 sps:$4 sm:$0xff]  }
 0x66b   :  { %v10323_v38 = vsel %vm10303_vm10, %v10291_v50, %v10313_v56  ;;  %11762 = vmatprep.subr.bf16.mxu1 %v14545_v63  ;;  %v14557_v50 = vld [vmem:[%s19835_s7 + $0x134] ss:$8 sps:$4 sm:$0xff]   ;;  %v14555_v56 = vld [vmem:[%s19835_s7 + $0x130] ss:$8 sps:$4 sm:$0xff]  }
 0x66c   :  { %v10328_v21 = vpack.c.bf16 %v10323_v38, %v10318_v35  ;;  %v14560_v35 = vld [vmem:[%s19835_s7 + $0x124] ss:$8 sps:$4 sm:$0xff]   ;;  %v14558_v38 = vld [vmem:[%s19835_s7 + $0x120] ss:$8 sps:$4 sm:$0xff]  }
 0x66e   :  { %11265 = vmatmul.mubr.bf16.vlgmr.msra.gmra.mxu0 %v10328_v21  ;;  %13861 = vmatmul.mubr.bf16.vlgmr.msra.gmra.mxu1 %v10328_v21  ;;  %v14561_v21 = vld [vmem:[%s19835_s7 + $0x110] ss:$8 sps:$4 sm:$0xff]  }
 0x66f   :  { %13783 = vmatpush3.bf16.msra.mxu0 %v14480_v52  ;;  %11348 = vmatprep.mubr.bf16.mxu0 %v19442_v15  ;;  %v14485_v15 = vld [vmem:[%s19833_s5 + $0x2a8] ss:$12 sps:$4 sm:$0xff]  }
 0x670   :  { %13784 = vmatprep.subr.bf16.mxu0 %v14481_v18  ;;  %11794 = vmatprep.mubr.bf16.mxu1 %v14603_v17  ;;  %v14487_v17 = vld [vmem:[%s19833_s5 + $0x290] ss:$12 sps:$4 sm:$0xff]   ;;  %v14566_v18 = vld [vmem:[%s19835_s7 + $0x104] ss:$8 sps:$4 sm:$0xff]  }
 0x671   :  { %11763 = vmatpush1.bf16.msra.mxu1 %v14543_v45  ;;  %v14563_v52 = vld [vmem:[%s19835_s7 + $0x114] ss:$8 sps:$4 sm:$0xff]  }
 0x672   :  { %11764 = vmatprep.subr.bf16.mxu1 %v14548_v53 }
 0x673   :  { %13785 = vmatpush3.bf16.msra.mxu0 %v14482_v5  ;;  %v14564_v5 = vld [vmem:[%s19835_s7 + $0x100] ss:$8 sps:$4 sm:$0xff]  }
 0x674   :  { %13786 = vmatprep.subr.bf16.mxu0 %v14483_v24 }
 0x675   :  { %11765 = vmatpush1.bf16.msra.mxu1 %v14546_v58 }
 0x676   :  { %11766 = vmatprep.subr.bf16.mxu1 %v14551_v14 }
 0x677   :  { %13787 = vmatpush3.bf16.msra.mxu0 %v14484_v49 }
 0x678   :  { %13788 = vmatprep.subr.bf16.mxu0 %v14485_v15 }
 0x679   :  { %11767 = vmatpush1.bf16.msra.mxu1 %v14549_v51 }
 0x67a   :  { %11768 = vmatprep.subr.bf16.mxu1 %v14554_v34 }
 0x67b   :  { %13789 = vmatpush3.bf16.msra.mxu0 %v14486_v13 }
 0x67c   :  { %13790 = vmatprep.subr.bf16.mxu0 %v14487_v17  ;;  %v11180_v17 = vpop.f32.mrf.mxu0 }
 0x67d   :  { %11769 = vmatpush1.bf16.msra.mxu1 %v14552_v33 }
 0x67e   :  { %11770 = vmatprep.subr.bf16.mxu1 %v14557_v50 }
 0x67f   :  { %13791 = vmatpush3.bf16.msra.mxu0 %v14488_v19 }
 0x680   :  { %13792 = vmatprep.subr.bf16.mxu0 %v14489_v12  ;;  %v11182_v12 = vpop.f32.mrf.mxu0 }
 0x681   :  { %11771 = vmatpush1.bf16.msra.mxu1 %v14555_v56 }
 0x682   :  { %11772 = vmatprep.subr.bf16.mxu1 %v14560_v35 }
 0x683   :  { %13793 = vmatpush3.bf16.msra.mxu0 %v14490_v30 }
 0x684   :  { %13794 = vmatprep.subr.bf16.mxu0 %v14491_v20  ;;  %v10489_v20 = vld [vmem:[%s19836_s6] sm:$0x7] }
 0x685   :  { %11773 = vmatpush1.bf16.msra.mxu1 %v14558_v38  ;;  %v10502_v14 = vrot.slane %v10489_v20, %v19879_v61 }
 0x686   :  { %11774 = vmatprep.subr.bf16.mxu1 %v14563_v52 }
 0x687   :  { %13795 = vmatpush3.bf16.msra.mxu0 %v14492_v41  ;;  %v11184_v41 = vpop.f32.mrf.mxu0 }
 0x688   :  { %13796 = vmatprep.subr.bf16.mxu0 %v14493_v37 }
 0x689   :  { %11775 = vmatpush1.bf16.msra.mxu1 %v14561_v21 }
 0x68a   :  { %11776 = vmatprep.subr.bf16.mxu1 %v14566_v18 }
 0x68b   :  { %13797 = vmatpush3.bf16.msra.mxu0 %v14494_v57  ;;  %v10498_v57 = vrot.slane %v10489_v20, %v18011_v44 }
 0x68c   :  { %11719 = vmatprep.subr.bf16.mxu0 %v14497_v7  ;;  %v10494_v7 = vrot.slane %v10489_v20, %v19877_v39  ;;  %v14571_v20 = vld [vmem:[%s19837_s9 + $0x68] sm:$0xff]  }
 0x68d   :  { %11777 = vmatpush1.bf16.msra.mxu1 %v14564_v5 }
 0x68e   :  { %11349 = vmatmul.mubr.bf16.vlgmr.msra.gmra.mxu0 %v19447_v1  ;;  %v14506_v1 = vld [vmem:[%s19835_s7 + $0x44] ss:$8 sps:$4 sm:$0xff]  }
 0x68f   :  { %11720 = vmatpush1.bf16.msra.mxu0 %v14495_v40  ;;  %v11186_v40 = vpop.f32.mrf.mxu0 }
 0x690   :  { %11721 = vmatprep.subr.bf16.mxu0 %v14500_v10 }
 0x693   :  { %11722 = vmatpush1.bf16.msra.mxu0 %v14498_v48  ;;  %v11183_v48 = vadd.f32 %v11182_v12, %v10498_v57  ;;  %v14569_v12 = vld [vmem:[%s19837_s9 + $0x70] sm:$0xff]  }
 0x694   :  { %11723 = vmatprep.subr.bf16.mxu0 %v14503_v9  ;;  %v11181_v9 = vadd.f32 %v11180_v17, %v10494_v7  ;;  %v14567_v17 = vld [vmem:[%s19837_s9 + $0x78] sm:$0xff]  }
 0x695   :  { %13813 = vmatprep.subr.bf16.mxu1 %v14567_v17 }
 0x697   :  { %11724 = vmatpush1.bf16.msra.mxu0 %v14501_v46 }
 0x698   :  { %11725 = vmatprep.subr.bf16.mxu0 %v14506_v1 }
 0x69b   :  { %11726 = vmatpush1.bf16.msra.mxu0 %v14504_v29  ;;  %v11185_v29 = vadd.f32 %v11184_v41, %v10494_v7  ;;  %v14572_v41 = vld [vmem:[%s19837_s9 + $0x28] sm:$0xff]   ;;  %v14575_v7 = vld [vmem:[%s19837_s9 + $0x58] sm:$0xff]  }
 0x69c   :  { %11727 = vmatprep.subr.bf16.mxu0 %v14509_v36 }
 0x69f   :  { %11728 = vmatpush1.bf16.msra.mxu0 %v14507_v62 }
 0x6a0   :  { %11729 = vmatprep.subr.bf16.mxu0 %v14512_v55 }
 0x6a3   :  { %11730 = vmatpush1.bf16.msra.mxu0 %v14510_v2 }
 0x6a4   :  { %11731 = vmatprep.subr.bf16.mxu0 %v14515_v28  ;;  %v11187_v28 = vadd.f32 %v11186_v40, %v10498_v57  ;;  %v14574_v57 = vld [vmem:[%s19837_s9 + $0x20] sm:$0xff]   ;;  %v14576_v40 = vld [vmem:[%s19837_s9 + $0x18] sm:$0xff]  }
 0x6a7   :  { %11732 = vmatpush1.bf16.msra.mxu0 %v14513_v54 }
 0x6a8   :  { %11733 = vmatprep.subr.bf16.mxu0 %v14518_v26 }
 0x6ab   :  { %11734 = vmatpush1.bf16.msra.mxu0 %v14516_v25 }
 0x6ac   :  { %11735 = vmatprep.subr.bf16.mxu0 %v14521_v6 }
 0x6af   :  { %11736 = vmatpush2.bf16.msra.mxu0 %v14519_v4 }
 0x6b0   :  { %11737 = vmatprep.subr.bf16.mxu0 %v14524_v23 }
 0x6b3   :  { %11738 = vmatpush2.bf16.msra.mxu0 %v14522_v43 }
 0x6b4   :  { %11739 = vmatprep.subr.bf16.mxu0 %v14527_v8 }
 0x6b7   :  { %11740 = vmatpush2.bf16.msra.mxu0 %v14525_v42 }
 0x6b8   :  { %11741 = vmatprep.subr.bf16.mxu0 %v14530_v60 }
 0x6bb   :  { %11742 = vmatpush2.bf16.msra.mxu0 %v14528_v31 }
 0x6bc   :  { %11743 = vmatprep.subr.bf16.mxu0 %v14533_v16 }
 0x6bf   :  { %11744 = vmatpush2.bf16.msra.mxu0 %v14531_v32 }
 0x6c0   :  { %11745 = vmatprep.subr.bf16.mxu0 %v14536_v47 }
 0x6c3   :  { %11746 = vmatpush2.bf16.msra.mxu0 %v14534_v59 }
 0x6c4   :  { %11747 = vmatprep.subr.bf16.mxu0 %v14539_v27 }
 0x6c7   :  { %11748 = vmatpush2.bf16.msra.mxu0 %v14537_v0 }
 0x6c8   :  { %11749 = vmatprep.subr.bf16.mxu0 %v14542_v3 }
 0x6cb   :  { %11750 = vmatpush2.bf16.msra.mxu0 %v14540_v22 }
 0x6cc   :  { %13864 = vmatprep.subr.bf16.mxu0 %v14604_v11 }
 0x6ed   :  { %v11223_v24 = vpop.f32.mrf.mxu1 }
 0x6ee   :  { %v11224_v62 = vadd.f32 %v11223_v24, %v11181_v9  ;;  %v14579_v9 = vld [vmem:[%s19837_s9 + $0x48] sm:$0xff]  }
 0x6ef   :  { %v11225_v49 = vpop.f32.mrf.mxu1 }
 0x6f0   :  { %v11226_v36 = vadd.f32 %v11225_v49, %v11183_v48  ;;  %v14578_v48 = vld [vmem:[%s19837_s9 + $0x10] sm:$0xff]  }
 0x6f1   :  { %v11227_v15 = vpop.f32.mrf.mxu1 }
 0x6f2   :  { %v11228_v54 = vadd.f32 %v11227_v15, %v11185_v29  ;;  %v14582_v29 = vld [vmem:[%s19837_s9] sm:$0xff]  }
 0x6f3   :  { %v11229_v13 = vpop.f32.mrf.mxu1 }
 0x6f4   :  { %v11230_v23 = vadd.f32 %v11229_v13, %v11187_v28 }
 0x70d   :  { %v13776_v19 = vpop.f32.mrf.mxu1 }
 0x70f   :  { %v13777_v30 = vpop.f32.mrf.mxu1 }
 0x710   :  { %v13778_v0 = vadd.f32 %v13777_v30, %v13776_v19  ;;  %v14568_v19 = vld [vmem:[%s19837_s9 + $0x38] sm:$0xff]   ;;  %v14570_v30 = vld [vmem:[%s19837_s9 + $0x30] sm:$0xff]  }
 0x711   :  { %v13779_v37 = vpop.f32.mrf.mxu1 }
 0x712   :  { %v11310_v34 = vadd.f32 %v13778_v0, %v10502_v14 }
 0x713   :  { %v13780_v10 = vpop.f32.mrf.mxu1 }
 0x714   :  { %v13781_v22 = vadd.f32 %v13780_v10, %v13779_v37  ;;  %v14573_v37 = vld [vmem:[%s19837_s9 + $0x60] sm:$0xff]   ;;  %v14577_v10 = vld [vmem:[%s19837_s9 + $0x50] sm:$0xff]  }
 0x716   :  { %v11313_v38 = vadd.f32 %v13781_v22, %v10502_v14 }
 0x72e   :  { %v11266_v46 = vpop.f32.mrf.mxu0  ;;  %v11391_v1 = vpop.f32.mrf.mxu1 }
 0x72f   :  { %v11267_v25 = vadd.f32 %v11266_v46, %v11224_v62  ;;  %v14580_v46 = vld [vmem:[%s19837_s9 + $0x8] sm:$0xff]   ;;  %v14584_v62 = vld [vmem:[%s19838_s11 + $0x30] sm:$0xff]  }
 0x730   :  { %v11268_v55 = vpop.f32.mrf.mxu0  ;;  %v13862_v2 = vpop.f32.mrf.mxu1 }
 0x731   :  { %v11269_v26 = vadd.f32 %v11268_v55, %v11226_v36  ;;  %v11404_v32 = vmul.f32 0.2, %v11267_v25  ;;  %vm11398_vm13 = vcmp.gt.f32.partialorder %v11267_v25, 0.0  ;;  %v14583_v36 = vld [vmem:[%s19838_s11 + $0x38] sm:$0xff]   ;;  %v14585_v55 = vld [vmem:[%s19838_s11 + $0x28] sm:$0xff]   ;;  %v14586_v2 = vld [vmem:[%s19838_s11 + $0x20] sm:$0xff]  }
 0x732   :  { %v11270_v6 = vpop.f32.mrf.mxu0  ;;  %v11394_v4 = vpop.f32.mrf.mxu1 }
 0x733   :  { %v11271_v43 = vadd.f32 %v11270_v6, %v11228_v54  ;;  %v11405_v60 = vmul.f32 0.2, %v11269_v26  ;;  %vm11399_vm12 = vcmp.gt.f32.partialorder %v11269_v26, 0.0  ;;  %v11410_v59 = vsel %vm11398_vm13, %v11267_v25, %v11404_v32 }
 0x734   :  { %v11272_v8 = vpop.f32.mrf.mxu0  ;;  %v13863_v42 = vpop.f32.mrf.mxu1 }
 0x735   :  { %vm11401_vm11 = vcmp.gt.f32.partialorder %v11271_v43, 0.0  ;;  %v11407_v31 = vmul.f32 0.2, %v11271_v43  ;;  %v11273_v16 = vadd.f32 %v11272_v8, %v11230_v23  ;;  %v11411_v63 = vsel %vm11399_vm12, %v11269_v26, %v11405_v60  ;;  %v11467_v26 = vld [vmem:[%s19839_s8] sm:$0x3] }
 0x736   :  { %v11476_v25 = vrot.slane %v11467_v26, %v18011_v44  ;;  %v11472_v6 = vrot.slane %v11467_v26, %v19877_v39 }
 0x737   :  { %vm11402_vm14 = vcmp.gt.f32.partialorder %v11273_v16, 0.0  ;;  %v11408_v47 = vmul.f32 0.2, %v11273_v16  ;;  %v11413_v45 = vsel %vm11401_vm11, %v11271_v43, %v11407_v31 }
 0x738   :  { %v11416_v58 = vpack.c.bf16 %v11413_v45, %v11410_v59 }
 0x739   :  { %v11414_v53 = vsel %vm11402_vm14, %v11273_v16, %v11408_v47 }
 0x73a   :  { %v11417_v27 = vpack.c.bf16 %v11414_v53, %v11411_v63 }
 0x73c   :  { %11751 = vmatprep.mubr.bf16.mxu0 %v11417_v27 }
 0x73d   :  { %11752 = vmatmul.mubr.bf16.vlgmr.msra.gmra.mxu0 %v11416_v58 }
 0x73e   :  { %13880 = vmatprep.mubr.msk.bf16.mxu0 %vm14605_vm8, %v14604_v11  ;;  %13865 = vmatpush3.bf16.msra.mxu0 %v14583_v36 }
 0x73f   :  { %13866 = vmatprep.subr.bf16.mxu0 %v14604_v11 }
 0x742   :  { %13867 = vmatpush3.bf16.msra.mxu0 %v14584_v62 }
 0x743   :  { %13868 = vmatprep.subr.bf16.mxu0 %v14604_v11 }
 0x746   :  { %13869 = vmatpush3.bf16.msra.mxu0 %v14585_v55 }
 0x747   :  { %13870 = vmatprep.subr.bf16.mxu0 %v14604_v11 }
 0x74a   :  { %13871 = vmatpush3.bf16.msra.mxu0 %v14586_v2 }
 0x74b   :  { %13872 = vmatprep.subr.bf16.mxu0 %v14604_v11 }
 0x74e   :  { %v13798_v3 = vpop.f32.mrf.mxu0 }
 0x750   :  { %v13799_v51 = vpop.f32.mrf.mxu0 }
 0x751   :  { %v13800_v33 = vadd.f32 %v13799_v51, %v13798_v3 }
 0x752   :  { %v13801_v50 = vpop.f32.mrf.mxu0 }
 0x753   :  { %v11351_v56 = vadd.f32 %v13800_v33, %v11310_v34  ;;  %v14587_v33 = vld [vmem:[%s19838_s11 + $0x18] sm:$0xff]  }
 0x754   :  { %v13802_v35 = vpop.f32.mrf.mxu0  ;;  %13873 = vmatpush3.bf16.msra.mxu0 %v14587_v33 }
 0x755   :  { %v11392_v52 = vadd.f32 %v11391_v1, %v11351_v56  ;;  %v13803_v21 = vadd.f32 %v13802_v35, %v13801_v50  ;;  %v14581_v1 = vld [vmem:[%s19837_s9 + $0x40] sm:$0xff]   ;;  %13874 = vmatprep.subr.bf16.mxu0 %v14604_v11  ;;  %v14588_v50 = vld [vmem:[%s19838_s11 + $0x10] sm:$0xff]   ;;  %v14589_v56 = vld [vmem:[%s19838_s11 + $0x8] sm:$0xff]  }
 0x756   :  { %v14590_v35 = vld [vmem:[%s19838_s11] sm:$0xff]  }
 0x757   :  { %v11354_v18 = vadd.f32 %v13803_v21, %v11313_v38  ;;  %v11406_v5 = vmul.f32 0.2, %v11392_v52  ;;  %vm11400_vm15 = vcmp.gt.f32.partialorder %v11392_v52, 0.0 }
 0x758   :  { %13875 = vmatpush3.bf16.msra.mxu0 %v14588_v50 }
 0x759   :  { %v11395_v24 = vadd.f32 %v11394_v4, %v11354_v18  ;;  %v11412_v15 = vsel %vm11400_vm15, %v11392_v52, %v11406_v5  ;;  %13876 = vmatprep.subr.bf16.mxu0 %v14604_v11  ;;  %v13644_v52 = vld [vmem:[%s19840_s10] ss:$0 sm:$0xff] }
 0x75b   :  { %vm11403_vm0 = vcmp.gt.f32.partialorder %v11395_v24, 0.0  ;;  %v11409_v49 = vmul.f32 0.2, %v11395_v24 }
 0x75c   :  { %13877 = vmatpush3.bf16.msra.mxu0 %v14589_v56 }
 0x75d   :  { %v11415_v61 = vsel %vm11403_vm0, %v11395_v24, %v11409_v49  ;;  %13878 = vmatprep.subr.bf16.mxu0 %v14604_v11 }
 0x75e   :  { %v11418_v13 = vpack.c.bf16 %v11415_v61, %v11412_v15 }
 0x760   :  { %11795 = vmatmul.mubr.bf16.vlgmr.msra.gmra.mxu1 %v11418_v13  ;;  %13879 = vmatpush3.bf16.msra.mxu0 %v14590_v35 }
 0x761   :  { %13814 = vmatpush3.bf16.msra.mxu1 %v14568_v19 }
 0x762   :  { %13815 = vmatprep.subr.bf16.mxu1 %v14569_v12 }
 0x765   :  { %13816 = vmatpush3.bf16.msra.mxu1 %v14570_v30  ;;  %v13661_v30 = vld [vmem:[%s19841_s12] ss:$0 sm:$0xff] }
 0x766   :  { %13817 = vmatprep.subr.bf16.mxu1 %v14571_v20 }
 0x769   :  { %13818 = vmatpush3.bf16.msra.mxu1 %v14572_v41 }
 0x76a   :  { %13819 = vmatprep.subr.bf16.mxu1 %v14573_v37 }
 0x76d   :  { %13820 = vmatpush3.bf16.msra.mxu1 %v14574_v57 }
 0x76e   :  { %13821 = vmatprep.subr.bf16.mxu1 %v14575_v7 }
 0x771   :  { %13822 = vmatpush3.bf16.msra.mxu1 %v14576_v40 }
 0x772   :  { %13823 = vmatprep.subr.bf16.mxu1 %v14577_v10 }
 0x775   :  { %13824 = vmatpush3.bf16.msra.mxu1 %v14578_v48 }
 0x776   :  { %13825 = vmatprep.subr.bf16.mxu1 %v14579_v9 }
 0x779   :  { %13826 = vmatpush3.bf16.msra.mxu1 %v14580_v46 }
 0x77a   :  { %13827 = vmatprep.subr.bf16.mxu1 %v14581_v1 }
 0x77d   :  { %13828 = vmatpush3.bf16.msra.mxu1 %v14582_v29 }
 0x7fd   :  { %v11753_v28 = vpop.f32.mrf.mxu0 }
 0x7fe   :  { %v11754_v8 = vadd.f32 %v11753_v28, %v11472_v6 }
 0x7ff   :  { %v11755_v54 = vpop.f32.mrf.mxu0 }
 0x800   :  { %v11756_v43 = vadd.f32 %v11755_v54, %v11476_v25 }
 0x801   :  { %v11757_v4 = vpop.f32.mrf.mxu0 }
 0x802   :  { %v11758_v31 = vadd.f32 %v11757_v4, %v11472_v6 }
 0x803   :  { %v11759_v42 = vpop.f32.mrf.mxu0 }
 0x804   :  { %v11760_v45 = vadd.f32 %v11759_v42, %v11476_v25 }
 0x820   :  { %v11796_v23 = vpop.f32.mrf.mxu1 }
 0x821   :  { %v11797_v32 = vadd.f32 %v11796_v23, %v11754_v8 }
 0x822   :  { %v11798_v60 = vpop.f32.mrf.mxu1 }
 0x823   :  { %v11799_v16 = vadd.f32 %v11798_v60, %v11756_v43  ;;  %v11809_v44 = vmul.f32 0.2, %v11797_v32  ;;  %vm11805_vm3 = vcmp.gt.f32.partialorder %v11797_v32, 0.0 }
 0x824   :  { %v11800_v47 = vpop.f32.mrf.mxu1 }
 0x825   :  { %v11801_v63 = vadd.f32 %v11800_v47, %v11758_v31  ;;  %v11810_v59 = vmul.f32 0.2, %v11799_v16  ;;  %vm11806_vm2 = vcmp.gt.f32.partialorder %v11799_v16, 0.0  ;;  %v11813_v51 = vsel %vm11805_vm3, %v11797_v32, %v11809_v44 }
 0x826   :  { %v11802_v53 = vpop.f32.mrf.mxu1 }
 0x827   :  { %vm11807_vm1 = vcmp.gt.f32.partialorder %v11801_v63, 0.0  ;;  %v11811_v27 = vmul.f32 0.2, %v11801_v63  ;;  %v11803_v58 = vadd.f32 %v11802_v53, %v11760_v45  ;;  %v11814_v0 = vsel %vm11806_vm2, %v11799_v16, %v11810_v59 }
 0x829   :  { %vm11808_vm4 = vcmp.gt.f32.partialorder %v11803_v58, 0.0  ;;  %v11812_v39 = vmul.f32 0.2, %v11803_v58  ;;  %v11815_v14 = vsel %vm11807_vm1, %v11801_v63, %v11811_v27 }
 0x82a   :  { %v11817_v22 = vpack.c.bf16 %v11815_v14, %v11813_v51 }
 0x82b   :  { %v11816_v3 = vsel %vm11808_vm4, %v11803_v58, %v11812_v39 }
 0x82c   :  { %v11818_v34 = vpack.c.bf16 %v11816_v3, %v11814_v0 }
 0x82e   :  { %11986 = vmatprep.mubr.bf16.mxu1 %v11818_v34 }
 0x82f   :  { %11987 = vmatmul.mubr.bf16.vlgmr.msra.gmra.mxu1 %v11817_v22 }
 0x8ef   :  { %v13829_v38 = vpop.f32.mrf.mxu1 }
 0x8f1   :  { %v13830_v21 = vpop.f32.mrf.mxu1 }
 0x8f2   :  { %v13831_v18 = vadd.f32 %v13830_v21, %v13829_v38 }
 0x8f3   :  { %v13832_v5 = vpop.f32.mrf.mxu1 }
 0x8f4   :  { %v11989_v24 = vadd.f32 %v13831_v18, %v13644_v52 }
 0x8f5   :  { %v13833_v49 = vpop.f32.mrf.mxu1 }
 0x8f6   :  { %v13834_v15 = vadd.f32 %v13833_v49, %v13832_v5  ;;  %v11997_v61 = vmul.f32 0.2, %v11989_v24  ;;  %vm11995_vm5 = vcmp.gt.f32.partialorder %v11989_v24, 0.0 }
 0x8f8   :  { %v11992_v13 = vadd.f32 %v13834_v15, %v13644_v52  ;;  %v11999_v17 = vsel %vm11995_vm5, %v11989_v24, %v11997_v61 }
 0x8fa   :  { %vm11996_vm6 = vcmp.gt.f32.partialorder %v11992_v13, 0.0  ;;  %v11998_v11 = vmul.f32 0.2, %v11992_v13 }
 0x8fc   :  { %v12000_v19 = vsel %vm11996_vm6, %v11992_v13, %v11998_v11 }
 0x8fd   :  { %v12001_v12 = vpack.c.bf16 %v12000_v19, %v11999_v17 }
 0x8ff   :  { %13881 = vmatmul.mubr.bf16.vlgmr.msra.gmra.mxu0 %v12001_v12 }
 0x9bf   :  { %v12107_v20 = vpop.f32.mrf.mxu0 }
 0x9c0   :  { %v12108_v41 = vadd.f32 %v13661_v30, %v12107_v20 }
 0x9c1   :  { %v13882_v37 = vpop.f32.mrf.mxu0 }
 0x9c2   :  { %v13670_v57 = vmul.f32 -1.442695, %v12108_v41 }
 0x9c3   :  { %v12110_v7 = vpop.f32.mrf.mxu0 }
 0x9c4   :  { %14591 = vpow2.f32 %v13670_v57  ;;  %v12111_v40 = vadd.f32 %v13661_v30, %v12110_v7 }
 0x9c5   :  { %v13883_v10 = vpop.f32.mrf.mxu0 }
 0x9c6   :  { %v13671_v48 = vmul.f32 -1.442695, %v12111_v40 }
 0x9c8   :  { %14593 = vpow2.f32 %v13671_v48 }
 0x9d1   :  { %v14592_v9 = vpop.eup %14591 }
 0x9d2   :  { %v12120_v46 = vadd.f32 1.0, %v14592_v9 }
 0x9d4   :  { %14595 = vrcp.f32 %v12120_v46 }
 0x9d5   :  { %v14594_v1 = vpop.eup %14593 }
 0x9d6   :  { %v12121_v29 = vadd.f32 1.0, %v14594_v1 }
 0x9d8   :  { %14597 = vrcp.f32 %v12121_v29 }
 0x9e1   :  { %v14596_v36 = vpop.eup %14595 }
 0x9e2   :  { %12126 = vst [vmem:[%s19842_s13] sm:$0xff] %v14596_v36 }
 0x9e5   :  { %v14598_v62 = vpop.eup %14597 }
 0x9e6   :  { %12127 = vst [vmem:[%s19842_s13 + $0x8] sm:$0xff] %v14598_v62 }

</bundles_post_ra>
